<compile_context>
chip_gen: v7x
topology: tpu7x:2x2x1
jax: 0.10.0
libtpu: 0.0.40
codegen_flags: <defaults>
</compile_context>

<pallas_src>
import functools

import jax
import jax.numpy as jnp
from jax.experimental import pallas as pl
from jax.experimental.pallas import tpu as pltpu


def _round_up(x: int, m: int) -> int:
    return (x + m - 1) // m * m


# ----------------------------------------------------------------------------
# Fused kernel: out[i, j] tile = sigmoid(z_rows @ z_cols.T [+ scattered edges])
# ----------------------------------------------------------------------------
def _edge_predictor_kernel(counts_ref, z_rows_ref, z_cols_ref, rows_ref,
                           cols_ref, feats_ref, out_ref, *, ec, grid_cols,
                           approx_sigmoid, fep_precision):
    i = pl.program_id(0)
    j = pl.program_id(1)
    tm, tn = out_ref.shape
    ep = rows_ref.shape[1]          # padded edge count (multiple of ec)

    # z @ z.T tile on the MXU, contracting the latent dim of both operands
    # directly (no transposed copy materialized in VMEM).
    logits = jax.lax.dot_general(
        z_rows_ref[...], z_cols_ref[...],
        dimension_numbers=(((1,), (1,)), ((), ())),
        preferred_element_type=jnp.float32,
        precision=jax.lax.Precision.HIGHEST,
    )                                                            # (tm, tn)

    def _store(x):
        # sigmoid(x) = 1 / (1 + exp(-x)). exp goes to the EUP; with
        # approx_sigmoid=True the divide stays on the cheap EUP vrcp slot.
        s = pl.reciprocal(1.0 + jnp.exp(-x), approx=approx_sigmoid)
        out_ref[...] = s.astype(out_ref.dtype)

    cnt = counts_ref[i * grid_cols + j]   # edges landing in this output tile

    @pl.when(cnt == 0)
    def _():
        _store(logits)

    @pl.when(cnt > 0)
    def _():
        # Rebuild this tile's slice of full_edge_probs from the padded edge
        # list:  fep = (feat-weighted row one-hot) @ (col one-hot)^T,
        # chunked over the edge axis. Padding sentinels (-1 indices, 0.0
        # features) never match a real node index and contribute 0.
        row_base = i * tm
        col_base = j * tn
        r_sub = jax.lax.broadcasted_iota(jnp.int32, (tm, ec), 0) + row_base
        c_sub = jax.lax.broadcasted_iota(jnp.int32, (tn, ec), 0) + col_base

        fep = jnp.zeros((tm, tn), jnp.float32)
        for c0 in range(0, ep, ec):                       # static chunk loop
            rows_c = rows_ref[:, c0:c0 + ec]              # (1, ec) int32
            cols_c = cols_ref[:, c0:c0 + ec]              # (1, ec) int32
            feats_c = feats_ref[:, c0:c0 + ec]            # (1, ec) f32
            row_feat = jnp.where(r_sub == rows_c, feats_c, 0.0)   # (tm, ec)
            col_onehot = (c_sub == cols_c).astype(jnp.float32)    # (tn, ec)
            fep = fep + jax.lax.dot_general(
                row_feat, col_onehot,
                dimension_numbers=(((1,), (1,)), ((), ())),
                preferred_element_type=jnp.float32,
                precision=fep_precision,
            )
        _store(logits + fep)


# ----------------------------------------------------------------------------
# Wrapper reproducing EdgePredictor.forward
# ----------------------------------------------------------------------------
def edge_predictor_forward(z, edge_index, edge_attr, *,
                           tile_m=512, tile_n=2048, edge_chunk=512,
                           out_dtype=jnp.float32,
                           approx_sigmoid=False,
                           fep_precision=jax.lax.Precision.HIGHEST):
    n, d = z.shape
    e = int(edge_attr.shape[0])

    # Mean over the attribute dim: trivial glue, XLA fuses it into the padding.
    edge_features = jnp.mean(edge_attr.astype(jnp.float32), axis=1)      # (E,)

    # Lane-dense padded edge vectors, all (1, Ep) with Ep a multiple of the
    # in-kernel edge chunk.
    ec = max(128, min(_round_up(edge_chunk, 128), _round_up(max(e, 1), 128)))
    ep = _round_up(max(e, 1), ec)
    row = edge_index[0].astype(jnp.int32)
    col = edge_index[1].astype(jnp.int32)
    rows_p = jnp.full((1, ep), -1, jnp.int32).at[0, :e].set(row)
    cols_p = jnp.full((1, ep), -1, jnp.int32).at[0, :e].set(col)
    feat_p = jnp.zeros((1, ep), jnp.float32).at[0, :e].set(edge_features)
    # TODO(synk): duplicate (row, col) pairs are summed here; PyTorch's dense
    # indexed assignment keeps a single (unspecified) writer for duplicates.

    # Adaptive, alignment-safe tiles (no divisibility assert): pad N up to the
    # tile grid and slice the result back. Guarantee >= 2 row tiles when
    # possible so both v7x TensorCores get work.
    tm = min(tile_m, _round_up(n, 8))
    tn = min(tile_n, _round_up(n, 128))
    if pl.cdiv(n, tm) < 2 and n > 8:
        tm = _round_up(-(-n // 2), 8)
    grid_rows = pl.cdiv(n, tm)
    grid_cols = pl.cdiv(n, tn)
    pad_rows, pad_cols = grid_rows * tm, grid_cols * tn

    zf = z.astype(jnp.float32)
    n_pad = max(pad_rows, pad_cols)
    if n_pad > n:
        zf = jnp.pad(zf, ((0, n_pad - n), (0, 0)))   # zero rows -> logits 0

    # Per-output-tile edge counts, scalar-prefetched into SMEM so edge-free
    # tiles skip the scatter rebuild entirely. Flattened 1D to avoid 2D SMEM
    # padding blowup.
    counts = jnp.zeros((grid_rows * grid_cols,), jnp.int32).at[
        (row // tm) * grid_cols + (col // tn)].add(1)

    kernel = functools.partial(
        _edge_predictor_kernel, ec=ec, grid_cols=grid_cols,
        approx_sigmoid=approx_sigmoid, fep_precision=fep_precision)

    out = pl.pallas_call(
        kernel,
        out_shape=jax.ShapeDtypeStruct((pad_rows, pad_cols), out_dtype),
        grid_spec=pltpu.PrefetchScalarGridSpec(
            num_scalar_prefetch=1,
            grid=(grid_rows, grid_cols),
            in_specs=[
                pl.BlockSpec((tm, d), lambda i, j, c: (i, 0)),   # z row tile
                pl.BlockSpec((tn, d), lambda i, j, c: (j, 0)),   # z col tile
                pl.BlockSpec((1, ep), lambda i, j, c: (0, 0)),   # edge rows
                pl.BlockSpec((1, ep), lambda i, j, c: (0, 0)),   # edge cols
                pl.BlockSpec((1, ep), lambda i, j, c: (0, 0)),   # edge feats
            ],
            out_specs=pl.BlockSpec((tm, tn), lambda i, j, c: (i, j)),
        ),
        compiler_params=pltpu.CompilerParams(
            dimension_semantics=("parallel", "parallel"),
            # 48 MiB: room for 512x2048 f32 double-buffered output + one-hot
            # spills, still under v7x's 64 MiB physical VMEM.
            vmem_limit_bytes=48 * 1024 * 1024,
        ),
    )(counts, zf, zf, rows_p, cols_p, feat_p)

    if pad_rows > n or pad_cols > n:
        out = out[:n, :n]
    return out


if __name__ == "__main__":
    key = jax.random.PRNGKey(0)
    num_nodes, latent_dim = 512, 32
    num_edges, attr_dim = 64, 8

    k_z, k_ei, k_ea = jax.random.split(key, 3)
    z = jax.random.normal(k_z, (num_nodes, latent_dim), jnp.float32)
    # Unique (row, col) pairs so the scatter semantics are unambiguous.
    lin = jax.random.choice(k_ei, num_nodes * num_nodes, shape=(num_edges,),
                            replace=False)
    edge_index = jnp.stack([(lin // num_nodes).astype(jnp.int32),
                            (lin % num_nodes).astype(jnp.int32)])
    edge_attr = jax.random.normal(k_ea, (num_edges, attr_dim), jnp.float32)

    out = jax.block_until_ready(edge_predictor_forward(z, edge_index, edge_attr))

    # Pure-JAX reference.
    feat_ref = jnp.mean(edge_attr, axis=1)
    fep_ref = jnp.zeros((num_nodes, num_nodes), jnp.float32).at[
        edge_index[0], edge_index[1]].set(feat_ref)
    logits_ref = jax.lax.dot_general(
        z, z, (((1,), (1,)), ((), ())),
        preferred_element_type=jnp.float32,
        precision=jax.lax.Precision.HIGHEST)
    ref = jax.nn.sigmoid(logits_ref + fep_ref)

    assert out.shape == (num_nodes, num_nodes)
    assert jnp.allclose(out, ref, atol=1e-5, rtol=1e-5), float(
        jnp.max(jnp.abs(out - ref)))

    print("KERNEL_OK")
</pallas_src>

<mosaic_0001>
module attributes {stable_mosaic.version = 11 : i64} {
  func.func @_edge_predictor_kernel(%arg0: i32, %arg1: i32, %arg2: memref<2xi32, #tpu.memory_space<smem>>, %arg3: memref<256x32xf32, #tpu.memory_space<vmem>>, %arg4: memref<512x32xf32, #tpu.memory_space<vmem>>, %arg5: memref<1x128xi32, #tpu.memory_space<vmem>>, %arg6: memref<1x128xi32, #tpu.memory_space<vmem>>, %arg7: memref<1x128xf32, #tpu.memory_space<vmem>>, %arg8: memref<256x512xf32, #tpu.memory_space<vmem>>) attributes {dimension_semantics = [#tpu.dimension_semantics<parallel>, #tpu.dimension_semantics<parallel>], iteration_bounds = array<i64: 2, 1>, scalar_prefetch = 1 : i64, scratch_operands = 0 : i64, tpu.core_type = #tpu.core_type<tc>, window_params = [{transform_indices = @transform_0, window_bounds = array<i64: 256, 32>}, {transform_indices = @transform_1, window_bounds = array<i64: 512, 32>}, {pipeline_mode = #tpu.pipeline_mode<synchronous>, transform_indices = @transform_2, window_bounds = array<i64: 1, 128>}, {pipeline_mode = #tpu.pipeline_mode<synchronous>, transform_indices = @transform_3, window_bounds = array<i64: 1, 128>}, {pipeline_mode = #tpu.pipeline_mode<synchronous>, transform_indices = @transform_4, window_bounds = array<i64: 1, 128>}, {transform_indices = @transform_5, window_bounds = array<i64: 256, 512>}]} {
    %c0 = arith.constant 0 : index
    %c0_0 = arith.constant 0 : index
    %0 = vector.load %arg3[%c0, %c0_0] : memref<256x32xf32, #tpu.memory_space<vmem>>, vector<256x32xf32>
    %c0_1 = arith.constant 0 : index
    %c0_2 = arith.constant 0 : index
    %1 = vector.load %arg4[%c0_1, %c0_2] : memref<512x32xf32, #tpu.memory_space<vmem>>, vector<512x32xf32>
    %cst = arith.constant dense<0.000000e+00> : vector<256x512xf32>
    %2 = tpu.matmul %0, %1, %cst {dimension_numbers = #tpu.dot_dimension_numbers<[1], [1], [0], [0], [0, 0, 1, 0], [], []>, precision = #tpu.contract_precision<fp32>} : vector<256x32xf32>, vector<512x32xf32>, vector<256x512xf32> -> vector<256x512xf32>
    %c1_i32 = arith.constant 1 : i32
    %3 = arith.muli %arg0, %c1_i32 : i32
    %4 = arith.addi %3, %arg1 : i32
    %5 = arith.index_cast %4 : i32 to index
    %6 = memref.load %arg2[%5] : memref<2xi32, #tpu.memory_space<smem>>
    %c0_i32 = arith.constant 0 : i32
    %7 = arith.cmpi eq, %6, %c0_i32 : i32
    %8 = arith.extui %7 : i1 to i32
    %c0_i32_3 = arith.constant 0 : i32
    %9 = arith.cmpi ne, %8, %c0_i32_3 : i32
    scf.if %9 {
      %cst_6 = arith.constant 0.000000e+00 : f32
      %13 = vector.broadcast %cst_6 : f32 to vector<256x512xf32>
      %14 = arith.subf %13, %2 : vector<256x512xf32>
      %15 = math.exp %14 : vector<256x512xf32>
      %cst_7 = arith.constant 1.000000e+00 : f32
      %16 = vector.broadcast %cst_7 : f32 to vector<256x512xf32>
      %17 = arith.addf %16, %15 : vector<256x512xf32>
      %18 = tpu.reciprocal %17 : vector<256x512xf32> -> vector<256x512xf32>
      %c0_8 = arith.constant 0 : index
      %c0_9 = arith.constant 0 : index
      %19 = vector.load %arg8[%c0_8, %c0_9] : memref<256x512xf32, #tpu.memory_space<vmem>>, vector<256x512xf32>
      tpu.vector_store %arg8[%c0_8, %c0_9], %18 {strides = array<i32>} : memref<256x512xf32, #tpu.memory_space<vmem>>, vector<256x512xf32>,
    } else {
    }
    %c0_i32_4 = arith.constant 0 : i32
    %10 = arith.cmpi sgt, %6, %c0_i32_4 : i32
    %11 = arith.extui %10 : i1 to i32
    %c0_i32_5 = arith.constant 0 : i32
    %12 = arith.cmpi ne, %11, %c0_i32_5 : i32
    scf.if %12 {
      %c256_i32 = arith.constant 256 : i32
      %13 = arith.muli %arg0, %c256_i32 : i32
      %c512_i32 = arith.constant 512 : i32
      %14 = arith.muli %arg1, %c512_i32 : i32
      %15 = tpu.iota {dimensions = array<i32: 0>} : vector<256x128xi32>
      %16 = vector.broadcast %13 : i32 to vector<256x128xi32>
      %17 = arith.addi %15, %16 : vector<256x128xi32>
      %18 = tpu.iota {dimensions = array<i32: 0>} : vector<512x128xi32>
      %19 = vector.broadcast %14 : i32 to vector<512x128xi32>
      %20 = arith.addi %18, %19 : vector<512x128xi32>
      %cst_6 = arith.constant 0.000000e+00 : f32
      %21 = vector.broadcast %cst_6 : f32 to vector<256x512xf32>
      %c0_7 = arith.constant 0 : index
      %c0_8 = arith.constant 0 : index
      %22 = vector.load %arg5[%c0_7, %c0_8] : memref<1x128xi32, #tpu.memory_space<vmem>>, vector<1x128xi32>
      %c0_9 = arith.constant 0 : index
      %c0_10 = arith.constant 0 : index
      %23 = vector.load %arg6[%c0_9, %c0_10] : memref<1x128xi32, #tpu.memory_space<vmem>>, vector<1x128xi32>
      %c0_11 = arith.constant 0 : index
      %c0_12 = arith.constant 0 : index
      %24 = vector.load %arg7[%c0_11, %c0_12] : memref<1x128xf32, #tpu.memory_space<vmem>>, vector<1x128xf32>
      %25 = vector.broadcast %22 : vector<1x128xi32> to vector<256x128xi32>
      %26 = arith.cmpi eq, %17, %25 : vector<256x128xi32>
      %cst_13 = arith.constant 0.000000e+00 : f32
      %27 = vector.shape_cast %24 : vector<1x128xf32> to vector<1x128xf32>
      %28 = vector.broadcast %27 : vector<1x128xf32> to vector<256x128xf32>
      %29 = vector.broadcast %cst_13 : f32 to vector<256x128xf32>
      %30 = arith.select %26, %28, %29 : vector<256x128xi1>, vector<256x128xf32>
      %31 = vector.broadcast %23 : vector<1x128xi32> to vector<512x128xi32>
      %32 = arith.cmpi eq, %20, %31 : vector<512x128xi32>
      %33 = arith.extui %32 : vector<512x128xi1> to vector<512x128xi32>
      %34 = arith.sitofp %33 : vector<512x128xi32> to vector<512x128xf32>
      %cst_14 = arith.constant dense<0.000000e+00> : vector<256x512xf32>
      %35 = tpu.matmul %30, %34, %cst_14 {dimension_numbers = #tpu.dot_dimension_numbers<[1], [1], [0], [0], [0, 0, 1, 0], [], []>, precision = #tpu.contract_precision<fp32>} : vector<256x128xf32>, vector<512x128xf32>, vector<256x512xf32> -> vector<256x512xf32>
      %36 = arith.addf %21, %35 : vector<256x512xf32>
      %37 = arith.addf %2, %36 : vector<256x512xf32>
      %cst_15 = arith.constant 0.000000e+00 : f32
      %38 = vector.broadcast %cst_15 : f32 to vector<256x512xf32>
      %39 = arith.subf %38, %37 : vector<256x512xf32>
      %40 = math.exp %39 : vector<256x512xf32>
      %cst_16 = arith.constant 1.000000e+00 : f32
      %41 = vector.broadcast %cst_16 : f32 to vector<256x512xf32>
      %42 = arith.addf %41, %40 : vector<256x512xf32>
      %43 = tpu.reciprocal %42 : vector<256x512xf32> -> vector<256x512xf32>
      %c0_17 = arith.constant 0 : index
      %c0_18 = arith.constant 0 : index
      %44 = vector.load %arg8[%c0_17, %c0_18] : memref<256x512xf32, #tpu.memory_space<vmem>>, vector<256x512xf32>
      tpu.vector_store %arg8[%c0_17, %c0_18], %43 {strides = array<i32>} : memref<256x512xf32, #tpu.memory_space<vmem>>, vector<256x512xf32>,
    } else {
    }
    return
  }
  func.func @transform_0(%arg0: i32, %arg1: i32, %arg2: memref<2xi32, #tpu.memory_space<smem>>) -> (i32, i32) {
    %c0_i32 = arith.constant 0 : i32
    %c0_i32_0 = arith.constant 0 : i32
    return %arg0, %c0_i32 : i32, i32
  }
  func.func @transform_1(%arg0: i32, %arg1: i32, %arg2: memref<2xi32, #tpu.memory_space<smem>>) -> (i32, i32) {
    %c0_i32 = arith.constant 0 : i32
    %c0_i32_0 = arith.constant 0 : i32
    return %arg1, %c0_i32 : i32, i32
  }
  func.func @transform_2(%arg0: i32, %arg1: i32, %arg2: memref<2xi32, #tpu.memory_space<smem>>) -> (i32, i32) {
    %c0_i32 = arith.constant 0 : i32
    %c0_i32_0 = arith.constant 0 : i32
    %c0_i32_1 = arith.constant 0 : i32
    return %c0_i32, %c0_i32_0 : i32, i32
  }
  func.func @transform_3(%arg0: i32, %arg1: i32, %arg2: memref<2xi32, #tpu.memory_space<smem>>) -> (i32, i32) {
    %c0_i32 = arith.constant 0 : i32
    %c0_i32_0 = arith.constant 0 : i32
    %c0_i32_1 = arith.constant 0 : i32
    return %c0_i32, %c0_i32_0 : i32, i32
  }
  func.func @transform_4(%arg0: i32, %arg1: i32, %arg2: memref<2xi32, #tpu.memory_space<smem>>) -> (i32, i32) {
    %c0_i32 = arith.constant 0 : i32
    %c0_i32_0 = arith.constant 0 : i32
    %c0_i32_1 = arith.constant 0 : i32
    return %c0_i32, %c0_i32_0 : i32, i32
  }
  func.func @transform_5(%arg0: i32, %arg1: i32, %arg2: memref<2xi32, #tpu.memory_space<smem>>) -> (i32, i32) {
    %c0_i32 = arith.constant 0 : i32
    return %arg0, %arg1 : i32, i32
  }
}

</mosaic_0001>

<bundles_post_ra>
// kernel: tpu_custom_call.1
= control target key start
LH: loop header
LB: loop body
LE: loop exit
PB: predicated region body
PF: predicated region fallthrough
CT: control target
= control target key end

     0   :  { %s24514_s0 = inlined_call_operand.vmem [shape: s32[2], index: 0, kind: input, shape index: {}]   ;;  %s24515_s1 = inlined_call_operand.vmem [shape: f32[512,32], index: 1, kind: input, shape index: {}]   ;;  %s24516_s2 = inlined_call_operand.vmem [shape: f32[512,32], index: 2, kind: input, shape index: {}]   ;;  %s24517_s3 = inlined_call_operand.vmem [shape: s32[1,128], index: 3, kind: input, shape index: {}]   ;;  %s24518_s4 = inlined_call_operand.vmem [shape: s32[1,128], index: 4, kind: input, shape index: {}]   ;;  %s24519_s5 = inlined_call_operand.vmem [shape: f32[1,128], index: 5, kind: input, shape index: {}]   ;;  %s24520_s6 = inlined_call_operand.hbm [shape: f32[512,512], index: 6, kind: output, shape index: {}]  }
   0x1   :  { %s11_s23 = sshll.u32 %s24514_s0, 4  ;;  %s12_s23 = int_to_ptr.vmem [resolvable:$true] %s11_s23 }
   0x2   :  { %s18085_s24 = scalar_lea.vmem %s12_s23, 16  ;;  %p18090_p1 = scmp.lt.s32.totalorder %s12_s23, %s12_s23 }
   0x3   :  { %p18086_p0 = scmp.ne.s32.totalorder %s12_s23, %s18085_s24  ;;  %p18091_p2 = scmp.lt.s32.totalorder %s18085_s24, %s18085_s24 }
   0x5   :  { %p18092_p3 = por %p18091_p2, %p18090_p1 }
   0x7   :  { %p18093_p4 = pnand %p18092_p3, %p18086_p0 }
   0x9   :  { %18096 = shalt.err (!%p18093_p4)  }
   0xa   :  { %s18179_s25 = smov [#allocation3]  }
   0xb   :  { %14 = dma.vmem_to_smem %s12_s23, 16, %s18179_s25, [#allocation2] }
   0xc   :  { %18149 = dma.done.wait [#allocation2], 16 }
   0xd   :  { %18150 = vsyncadd [#allocation2], 4294967280 }
   0xe   :  { %16 = sfence }
   0xf   :  { %17 = vsyncpa [#allocation5], 0 }
  0x10   :  { %19 = vsyncpa [#allocation5 + $0x1], 0  ;;  %s18223_s26 = smov 0   ;;  %s18225_s27 = smov 0  }
  0x11   :  { %s18227_s0 = smov 0   ;;  %s18229_s28 = smov 0  }
  0x12   :  { %s18231_s29 = smov 0   ;;  %s18233_s30 = smov 0  }
  0x13 LB: > { %s12368_s7 = sadd.s32 4294967295, %s18177_s30   ;;  %s12369_s8 = sadd.s32 4294967294, %s18177_s30   ;;  %s18177_s30 = sphi %s18233_s30, %s25_s30   ;;  %s18173_s29 = sphi %s18231_s29, %s27117_s29   ;;  %s18169_s28 = sphi %s18229_s28, %s27116_s28   ;;  %s18165_s0 = sphi %s18227_s0, %s27115_s0   ;;  %s18161_s27 = sphi %s18225_s27, %s27114_s27   ;;  %s18157_s26 = sphi %s18223_s26, %s27113_s26  }
  0x14   : > { %s37_s9 = sadd.s32 1, %s18173_s29  ;;  %s161_s10 = sadd.s32 1, %s18165_s0 }
  0x15   : > { %p39_p5 = scmp.ge.s32.totalorder %s37_s9, 2  ;;  %p171_p6 = scmp.ne.s32.totalorder %s18165_s0, %s18161_s27 }
  0x16   : > { %p172_p7 = scmp.eq.s32.totalorder %s12368_s7, 1  ;;  %p177_p8 = scmp.ne.s32.totalorder %s18161_s27, %s18157_s26 }
  0x17   : > { %s27119_s9 = smov (%p39_p5, %s37_s9), 0  ;;  %p178_p10 = scmp.eq.s32.totalorder %s12369_s8, 1 }
  0x18   : > { %p18263_p9 = por %p172_p7, %p171_p6  ;;  %s156_s12 = ssub.s32 %s18173_s29, %s27119_s9 }
  0x19   : > { %p12373_p11 = scmp.ge.s32.totalorder %s18177_s30, 1  ;;  %p159_p12 = scmp.eq.s32.totalorder %s156_s12, 0 }
  0x1a   : > { %p18270_p13 = por %p178_p10, %p177_p8  ;;  %p223_p0 = scmp.lt.s32.totalorder %s18177_s30, 3 }
  0x1b   : > { %s18276_s14 = scalar_select %p159_p12, %s18165_s0, %s161_s10  }
  0x1c   : > { %p224_p1 = pnand %p12373_p11, %p223_p0 }
  0x1e   : > { %227 = sbr.rel (%p224_p1) target bundleno = 2655 (0xa5f), region = 40 }
  0x25   : > { %s253_s15 = sand.u32 1, %s18161_s27   ;;  %v318_v0 = vld [vmem:[%s24516_s2 + $0x80] sm:$0xff]  ;;  %v319_v1 = vld [vmem:[%s24516_s2 + $0x88] sm:$0xff]  ;;  %vm366_vm0 = vcmask 261120   ;;  %v320_v18 = vld [vmem:[%s24516_s2 + $0x90] sm:$0xff]  ;;  %s12375_s8 = sshll.u32 %s18169_s28, 5 }
  0x26   : > { %v350_v2 = vld [vmem:[%s24516_s2 + $0x180] sm:$0xff]  ;;  %s18290_s22 = sshll.u32 %s253_s15, 10  ;;  %v512_v3 = vsel %vm366_vm0, %v318_v0, 0  ;;  %v515_v4 = vsel %vm366_vm0, %v319_v1, 0  ;;  %v351_v5 = vld [vmem:[%s24516_s2 + $0x188] sm:$0xff]  ;;  %v321_v23 = vld [vmem:[%s24516_s2 + $0x98] sm:$0xff] }
  0x27   : > { %v608_v6 = vsel %vm366_vm0, %v350_v2, 0  ;;  %v302_v7 = vld [vmem:[%s24516_s2] sm:$0xff]  ;;  %v704_v8 = vand.u32 4294901760, %v512_v3  ;;  %v707_v9 = vand.u32 4294901760, %v515_v4  ;;  %v611_v10 = vsel %vm366_vm0, %v351_v5, 0  ;;  %v303_v12 = vld [vmem:[%s24516_s2 + $0x8] sm:$0xff] }
  0x28   : > { %v3078_v11 = vand.u32 4294901760, %v608_v6  ;;  %v3081_v13 = vand.u32 4294901760, %v611_v10  ;;  %v464_v14 = vsel %vm366_vm0, %v302_v7, 0  ;;  %v467_v15 = vsel %vm366_vm0, %v303_v12, 0  ;;  %v334_v16 = vld [vmem:[%s24516_s2 + $0x100] sm:$0xff]  ;;  %v335_v17 = vld [vmem:[%s24516_s2 + $0x108] sm:$0xff] }
  0x29   : > { %v18316_v19 = vpack.c.bf16 %v707_v9, %v704_v8  ;;  %v18318_v20 = vsub.f32 %v512_v3, %v704_v8  ;;  %v18320_v21 = vsub.f32 %v515_v4, %v707_v9  ;;  %v656_v26 = vand.u32 4294901760, %v464_v14  ;;  %v352_v28 = vld [vmem:[%s24516_s2 + $0x190] sm:$0xff]  ;;  %v353_v33 = vld [vmem:[%s24516_s2 + $0x198] sm:$0xff]  ;;  %v322_v58 = vld [vmem:[%s24516_s2 + $0xa0] sm:$0xff]  ;;  %p18606_p2 = scmp.lt.s32.totalorder %s12375_s8, 63  ;;  %s20394_s24 = sld [smem:[#allocation3 + %s18169_s28]] }
  0x2a   : > { %v18322_v22 = vsub.f32 %v608_v6, %v3078_v11  ;;  %v18327_v24 = vpack.c.bf16 %v3081_v13, %v3078_v11  ;;  %v18329_v25 = vsub.f32 %v611_v10, %v3081_v13  ;;  %v659_v27 = vand.u32 4294901760, %v467_v15  ;;  %v304_v34 = vld [vmem:[%s24516_s2 + $0x10] sm:$0xff]  ;;  %v305_v43 = vld [vmem:[%s24516_s2 + $0x18] sm:$0xff]  ;;  %v323_v63 = vld [vmem:[%s24516_s2 + $0xa8] sm:$0xff]  ;;  %s20653_s18 = scalar_lea.vmem [#allocation4], %s18290_s22 }
  0x2b   : > { %25494 = vst [vmem:[#allocation8_spill] sm:$0xff] %v18316_v19  ;;  %25495 = vst [vmem:[#allocation9_spill] sm:$0xff] %v18318_v20  ;;  %14952 = vmatprep.subr.bf16.mxu0 %v18316_v19  ;;  %v560_v29 = vsel %vm366_vm0, %v334_v16, 0  ;;  %v563_v30 = vsel %vm366_vm0, %v335_v17, 0  ;;  %v518_v31 = vsel %vm366_vm0, %v320_v18, 0  ;;  %v521_v32 = vsel %vm366_vm0, %v321_v23, 0 }
  0x2c   : > { %25496 = vst [vmem:[#allocation10_spill] sm:$0xff] %v18320_v21  ;;  %25497 = vst [vmem:[#allocation11_spill] sm:$0xff] %v18322_v22  ;;  %15144 = vmatprep.subr.bf16.mxu1 %v18327_v24  ;;  %v18346_v35 = vpack.c.bf16 %v659_v27, %v656_v26  ;;  %v18348_v36 = vsub.f32 %v464_v14, %v656_v26  ;;  %v18350_v37 = vsub.f32 %v467_v15, %v659_v27  ;;  %v336_v48 = vld [vmem:[%s24516_s2 + $0x110] sm:$0xff]  ;;  %v337_v49 = vld [vmem:[%s24516_s2 + $0x118] sm:$0xff]  ;;  %s27121_s8 = smov (!%p18606_p2, %s12375_s8), 63 }
  0x2d   : > { %25498 = vst [vmem:[#allocation12_spill] sm:$0xff] %v18327_v24  ;;  %25499 = vst [vmem:[#allocation13_spill] sm:$0xff] %v18329_v25  ;;  %v3030_v38 = vand.u32 4294901760, %v560_v29  ;;  %v3033_v39 = vand.u32 4294901760, %v563_v30  ;;  %v710_v40 = vand.u32 4294901760, %v518_v31  ;;  %v713_v41 = vand.u32 4294901760, %v521_v32 }
  0x2e   : > { %25500 = vst [vmem:[#allocation14_spill] sm:$0xff] %v18346_v35  ;;  %25501 = vst [vmem:[#allocation15_spill] sm:$0xff] %v18348_v36  ;;  %v614_v42 = vsel %vm366_vm0, %v352_v28, 0  ;;  %14954 = vmatpush3.bf16.xpose.msra.mxu0 %v18346_v35  ;;  %v617_v45 = vsel %vm366_vm0, %v353_v33, 0  ;;  %v470_v47 = vsel %vm366_vm0, %v304_v34, 0  ;;  %v473_v57 = vsel %vm366_vm0, %v305_v43, 0 }
  0x2f   : > { %25502 = vst [vmem:[#allocation16_spill] sm:$0xff] %v18350_v37  ;;  %v18357_v44 = vsub.f32 %v560_v29, %v3030_v38  ;;  %v3084_v46 = vand.u32 4294901760, %v614_v42  ;;  %v18367_v50 = vpack.c.bf16 %v3033_v39, %v3030_v38  ;;  %v18369_v51 = vsub.f32 %v563_v30, %v3033_v39  ;;  %v354_v4 = vld [vmem:[%s24516_s2 + $0x1a0] sm:$0xff]  ;;  %v355_v5 = vld [vmem:[%s24516_s2 + $0x1a8] sm:$0xff]  ;;  %s12376_s17 = sshll.u32 %s27121_s8, 3  ;;  %p12377_p3 = scmp.ne.s32.totalorder %s20394_s24, 0 }
  0x30   : > { %v18371_v52 = vpack.c.bf16 %v713_v41, %v710_v40  ;;  %v18373_v53 = vsub.f32 %v518_v31, %v710_v40  ;;  %v18375_v54 = vsub.f32 %v521_v32, %v713_v41  ;;  %v3087_v55 = vand.u32 4294901760, %v617_v45  ;;  %v306_v10 = vld [vmem:[%s24516_s2 + $0x20] sm:$0xff]  ;;  %v307_v11 = vld [vmem:[%s24516_s2 + $0x28] sm:$0xff]  ;;  %v324_v32 = vld [vmem:[%s24516_s2 + $0xb0] sm:$0xff]  ;;  %s18725_s12 = scalar_lea.vmem %s24515_s1, %s12376_s17 }
  0x31   : > { %25503 = vst [vmem:[#allocation17_spill] sm:$0xff] %v18357_v44  ;;  %25504 = vst [vmem:[#allocation18_spill] sm:$0xff] %v18367_v50  ;;  %v18377_v56 = vsub.f32 %v614_v42, %v3084_v46  ;;  %15146 = vmatpush3.bf16.xpose.msra.mxu1 %v18367_v50  ;;  %v662_v59 = vand.u32 4294901760, %v470_v47  ;;  %v665_v60 = vand.u32 4294901760, %v473_v57  ;;  %v566_v61 = vsel %vm366_vm0, %v336_v48, 0  ;;  %v338_v26 = vld [vmem:[%s24516_s2 + $0x120] sm:$0xff] }
  0x32   : > { %25505 = vst [vmem:[#allocation19_spill] sm:$0xff] %v18369_v51  ;;  %25506 = vst [vmem:[#allocation20_spill] sm:$0xff] %v18371_v52  ;;  %14956 = vmatprep.subr.bf16.mxu0 %v18371_v52  ;;  %v569_v62 = vsel %vm366_vm0, %v337_v49, 0  ;;  %v18390_v0 = vpack.c.bf16 %v3087_v55, %v3084_v46  ;;  %v18392_v1 = vsub.f32 %v617_v45, %v3087_v55  ;;  %v3036_v2 = vand.u32 4294901760, %v566_v61  ;;  %v339_v31 = vld [vmem:[%s24516_s2 + $0x128] sm:$0xff]  ;;  %v325_v45 = vld [vmem:[%s24516_s2 + $0xb8] sm:$0xff] }
  0x33   : > { %25507 = vst [vmem:[#allocation21_spill] sm:$0xff] %v18373_v53  ;;  %25508 = vst [vmem:[#allocation22_spill] sm:$0xff] %v18375_v54  ;;  %v3039_v3 = vand.u32 4294901760, %v569_v62  ;;  %v18400_v6 = vpack.c.bf16 %v665_v60, %v662_v59  ;;  %v18402_v7 = vsub.f32 %v470_v47, %v662_v59  ;;  %v18404_v8 = vsub.f32 %v473_v57, %v665_v60  ;;  %v356_v46 = vld [vmem:[%s24516_s2 + $0x1b0] sm:$0xff]  ;;  %v357_v47 = vld [vmem:[%s24516_s2 + $0x1b8] sm:$0xff] }
  0x34   : > { %25509 = vst [vmem:[#allocation23_spill] sm:$0xff] %v18377_v56  ;;  %25510 = vst [vmem:[#allocation24_spill] sm:$0xff] %v18390_v0  ;;  %v524_v9 = vsel %vm366_vm0, %v322_v58, 0  ;;  %15148 = vmatprep.subr.bf16.mxu1 %v18390_v0  ;;  %v18416_v13 = vsub.f32 %v566_v61, %v3036_v2  ;;  %v527_v15 = vsel %vm366_vm0, %v323_v63, 0  ;;  %v620_v18 = vsel %vm366_vm0, %v354_v4, 0  ;;  %v331_v19 = vld [vmem:[%s24516_s2 + $0xe8] sm:$0xff] }
  0x35   : > { %25511 = vst [vmem:[#allocation25_spill] sm:$0xff] %v18392_v1  ;;  %25512 = vst [vmem:[#allocation26_spill] sm:$0xff] %v18400_v6  ;;  %v18414_v12 = vpack.c.bf16 %v3039_v3, %v3036_v2  ;;  %v18418_v14 = vsub.f32 %v569_v62, %v3039_v3  ;;  %v716_v16 = vand.u32 4294901760, %v524_v9  ;;  %v719_v17 = vand.u32 4294901760, %v527_v15  ;;  %v308_v62 = vld [vmem:[%s24516_s2 + $0x30] sm:$0xff] }
  0x36   : > { %25513 = vst [vmem:[#allocation27_spill] sm:$0xff] %v18402_v7  ;;  %25514 = vst [vmem:[#allocation28_spill] sm:$0xff] %v18404_v8  ;;  %v623_v23 = vsel %vm366_vm0, %v355_v5, 0  ;;  %14958 = vmatpush3.bf16.xpose.msra.mxu0 %v18400_v6  ;;  %v3090_v27 = vand.u32 4294901760, %v620_v18  ;;  %v476_v29 = vsel %vm366_vm0, %v306_v10, 0  ;;  %v479_v30 = vsel %vm366_vm0, %v307_v11, 0 }
  0x37   : > { %25515 = vst [vmem:[#allocation29_spill] sm:$0xff] %v18414_v12  ;;  %25516 = vst [vmem:[#allocation30_spill] sm:$0xff] %v18416_v13  ;;  %v3093_v28 = vand.u32 4294901760, %v623_v23  ;;  %v18435_v33 = vpack.c.bf16 %v719_v17, %v716_v16  ;;  %v18437_v34 = vsub.f32 %v524_v9, %v716_v16  ;;  %v18439_v38 = vsub.f32 %v527_v15, %v719_v17  ;;  %v309_v5 = vld [vmem:[%s24516_s2 + $0x38] sm:$0xff] }
  0x38   : > { %25517 = vst [vmem:[#allocation31_spill] sm:$0xff] %v18418_v14  ;;  %v668_v39 = vand.u32 4294901760, %v476_v29  ;;  %v18443_v41 = vsub.f32 %v620_v18, %v3090_v27  ;;  %v671_v43 = vand.u32 4294901760, %v479_v30  ;;  %v572_v49 = vsel %vm366_vm0, %v338_v26, 0  ;;  %v340_v26 = vld [vmem:[%s24516_s2 + $0x130] sm:$0xff] }
  0x39   : > { %25518 = vst [vmem:[#allocation32_spill] sm:$0xff] %v18435_v33  ;;  %25519 = vst [vmem:[#allocation33_spill] sm:$0xff] %v18437_v34  ;;  %v18441_v40 = vpack.c.bf16 %v3093_v28, %v3090_v27  ;;  %v18445_v42 = vsub.f32 %v623_v23, %v3093_v28  ;;  %15150 = vmatpush3.bf16.xpose.msra.mxu1 %v18414_v12  ;;  %14960 = vmatprep.subr.bf16.mxu0 %v18435_v33  ;;  %v575_v55 = vsel %vm366_vm0, %v339_v31, 0  ;;  %v341_v27 = vld [vmem:[%s24516_s2 + $0x138] sm:$0xff]  ;;  %v326_v28 = vld [vmem:[%s24516_s2 + $0xc0] sm:$0xff] }
  0x3a   : > { %25520 = vst [vmem:[#allocation34_spill] sm:$0xff] %v18439_v38  ;;  %25522 = vst [vmem:[#allocation36_spill] sm:$0xff] %v18443_v41  ;;  %v18458_v48 = vsub.f32 %v476_v29, %v668_v39  ;;  %v530_v57 = vsel %vm366_vm0, %v324_v32, 0  ;;  %v18464_v58 = vpack.c.bf16 %v671_v43, %v668_v39  ;;  %v18466_v59 = vsub.f32 %v479_v30, %v671_v43 }
  0x3b   : > { %25521 = vst [vmem:[#allocation35_spill] sm:$0xff] %v18441_v40  ;;  %25523 = vst [vmem:[#allocation37_spill] sm:$0xff] %v18445_v42  ;;  %15152 = vmatprep.subr.bf16.mxu1 %v18441_v40  ;;  %v3042_v60 = vand.u32 4294901760, %v572_v49  ;;  %v3045_v61 = vand.u32 4294901760, %v575_v55  ;;  %v533_v63 = vsel %vm366_vm0, %v325_v45, 0  ;;  %v722_v2 = vand.u32 4294901760, %v530_v57 }
  0x3c   : > { %25524 = vst [vmem:[#allocation38_spill] sm:$0xff] %v18458_v48  ;;  %25525 = vst [vmem:[#allocation39_spill] sm:$0xff] %v18464_v58  ;;  %v626_v3 = vsel %vm366_vm0, %v356_v46, 0  ;;  %v629_v4 = vsel %vm366_vm0, %v357_v47, 0  ;;  %v725_v15 = vand.u32 4294901760, %v533_v63  ;;  %v482_v23 = vsel %vm366_vm0, %v308_v62, 0 }
  0x3d   : > { %25526 = vst [vmem:[#allocation40_spill] sm:$0xff] %v18466_v59  ;;  %v18477_v9 = vpack.c.bf16 %v3045_v61, %v3042_v60  ;;  %v18479_v10 = vsub.f32 %v572_v49, %v3042_v60  ;;  %v18481_v11 = vsub.f32 %v575_v55, %v3045_v61  ;;  %v18483_v16 = vsub.f32 %v530_v57, %v722_v2  ;;  %v327_v47 = vld [vmem:[%s24516_s2 + $0xc8] sm:$0xff]  ;;  %v358_v49 = vld [vmem:[%s24516_s2 + $0x1c0] sm:$0xff] }
  0x3e   : > { %v3096_v17 = vand.u32 4294901760, %v626_v3  ;;  %v3099_v18 = vand.u32 4294901760, %v629_v4  ;;  %14962 = vmatpush3.bf16.xpose.msra.mxu0 %v18464_v58  ;;  %v18496_v29 = vpack.c.bf16 %v725_v15, %v722_v2  ;;  %v18498_v30 = vsub.f32 %v533_v63, %v725_v15  ;;  %v359_v55 = vld [vmem:[%s24516_s2 + $0x1c8] sm:$0xff] }
  0x3f   : > { %25527 = vst [vmem:[#allocation41_spill] sm:$0xff] %v18477_v9  ;;  %25528 = vst [vmem:[#allocation42_spill] sm:$0xff] %v18479_v10  ;;  %v485_v31 = vsel %vm366_vm0, %v309_v5, 0  ;;  %v674_v32 = vand.u32 4294901760, %v482_v23  ;;  %v578_v60 = vsel %vm366_vm0, %v340_v26, 0  ;;  %v581_v61 = vsel %vm366_vm0, %v341_v27, 0 }
  0x40   : > { %25529 = vst [vmem:[#allocation43_spill] sm:$0xff] %v18481_v11  ;;  %25530 = vst [vmem:[#allocation44_spill] sm:$0xff] %v18483_v16  ;;  %v18501_v39 = vpack.c.bf16 %v3099_v18, %v3096_v17  ;;  %v18503_v43 = vsub.f32 %v626_v3, %v3096_v17  ;;  %v18505_v45 = vsub.f32 %v629_v4, %v3099_v18  ;;  %v677_v46 = vand.u32 4294901760, %v485_v31  ;;  %v310_v5 = vld [vmem:[%s24516_s2 + $0x40] sm:$0xff]  ;;  %v311_v26 = vld [vmem:[%s24516_s2 + $0x48] sm:$0xff] }
  0x41   : > { %25531 = vst [vmem:[#allocation45_spill] sm:$0xff] %v18496_v29  ;;  %25532 = vst [vmem:[#allocation46_spill] sm:$0xff] %v18498_v30  ;;  %14964 = vmatprep.subr.bf16.mxu0 %v18496_v29  ;;  %v18517_v57 = vsub.f32 %v482_v23, %v674_v32  ;;  %v536_v62 = vsel %vm366_vm0, %v326_v28, 0  ;;  %15154 = vmatpush3.bf16.xpose.msra.mxu1 %v18477_v9  ;;  %v3048_v3 = vand.u32 4294901760, %v578_v60  ;;  %v3051_v4 = vand.u32 4294901760, %v581_v61 }
  0x42   : > { %25533 = vst [vmem:[#allocation47_spill] sm:$0xff] %v18501_v39  ;;  %25534 = vst [vmem:[#allocation48_spill] sm:$0xff] %v18503_v43  ;;  %v18523_v63 = vpack.c.bf16 %v677_v46, %v674_v32  ;;  %v18525_v2 = vsub.f32 %v485_v31, %v677_v46  ;;  %15156 = vmatprep.subr.bf16.mxu1 %v18501_v39  ;;  %v539_v15 = vsel %vm366_vm0, %v327_v47, 0  ;;  %v728_v17 = vand.u32 4294901760, %v536_v62 }
  0x43   : > { %25535 = vst [vmem:[#allocation49_spill] sm:$0xff] %v18505_v45  ;;  %25536 = vst [vmem:[#allocation50_spill] sm:$0xff] %v18517_v57  ;;  %v632_v18 = vsel %vm366_vm0, %v358_v49, 0  ;;  %v635_v23 = vsel %vm366_vm0, %v359_v55, 0  ;;  %v18537_v27 = vpack.c.bf16 %v3051_v4, %v3048_v3  ;;  %v18539_v28 = vsub.f32 %v578_v60, %v3048_v3  ;;  %v342_v49 = vld [vmem:[%s24516_s2 + $0x140] sm:$0xff]  ;;  %v343_v55 = vld [vmem:[%s24516_s2 + $0x148] sm:$0xff] }
  0x44   : > { %25537 = vst [vmem:[#allocation51_spill] sm:$0xff] %v18523_v63  ;;  %25538 = vst [vmem:[#allocation52_spill] sm:$0xff] %v18525_v2  ;;  %v18541_v31 = vsub.f32 %v581_v61, %v3051_v4  ;;  %v731_v32 = vand.u32 4294901760, %v539_v15  ;;  %v18543_v46 = vsub.f32 %v536_v62, %v728_v17  ;;  %v3102_v39 = vand.u32 4294901760, %v632_v18  ;;  %v328_v60 = vld [vmem:[%s24516_s2 + $0xd0] sm:$0xff] }
  0x45   : > { %25539 = vst [vmem:[#allocation53_spill] sm:$0xff] %v18537_v27  ;;  %v3105_v47 = vand.u32 4294901760, %v635_v23  ;;  %v488_v9 = vsel %vm366_vm0, %v310_v5, 0  ;;  %v491_v3 = vsel %vm366_vm0, %v311_v26, 0  ;;  %v361_v26 = vld [vmem:[%s24516_s2 + $0x1d8] sm:$0xff] }
  0x46   : > { %v18555_v61 = vpack.c.bf16 %v731_v32, %v728_v17  ;;  %v18557_v62 = vsub.f32 %v539_v15, %v731_v32  ;;  %v680_v4 = vand.u32 4294901760, %v488_v9  ;;  %14966 = vmatpush3.bf16.xpose.msra.mxu0 %v18523_v63  ;;  %v18563_v29 = vsub.f32 %v632_v18, %v3102_v39  ;;  %v329_v17 = vld [vmem:[%s24516_s2 + $0xd8] sm:$0xff]  ;;  %v360_v15 = vld [vmem:[%s24516_s2 + $0x1d0] sm:$0xff] }
  0x47   : > { %v18561_v5 = vpack.c.bf16 %v3105_v47, %v3102_v39  ;;  %v18565_v58 = vsub.f32 %v635_v23, %v3105_v47  ;;  %v683_v40 = vand.u32 4294901760, %v491_v3  ;;  %v584_v39 = vsel %vm366_vm0, %v342_v49, 0 }
  0x48   : > { %25540 = vst [vmem:[#allocation54_spill] sm:$0xff] %v18555_v61  ;;  %14968 = vmatprep.subr.bf16.mxu0 %v18555_v61  ;;  %v18577_v32 = vsub.f32 %v488_v9, %v680_v4  ;;  %v587_v18 = vsel %vm366_vm0, %v343_v55, 0  ;;  %v542_v23 = vsel %vm366_vm0, %v328_v60, 0  ;;  %v3054_v12 = vand.u32 4294901760, %v584_v39  ;;  %v312_v61 = vld [vmem:[%s24516_s2 + $0x50] sm:$0xff] }
  0x49   : > { %25541 = vst [vmem:[#allocation55_spill] sm:$0xff] %v18561_v5  ;;  %v18583_v47 = vpack.c.bf16 %v683_v40, %v680_v4  ;;  %v18585_v63 = vsub.f32 %v491_v3, %v683_v40  ;;  %v3057_v33 = vand.u32 4294901760, %v587_v18  ;;  %15158 = vmatpush3.bf16.xpose.msra.mxu1 %v18537_v27  ;;  %v545_v9 = vsel %vm366_vm0, %v329_v17, 0  ;;  %v313_v40 = vld [vmem:[%s24516_s2 + $0x58] sm:$0xff] }
  0x4a   : > { %v734_v49 = vand.u32 4294901760, %v542_v23  ;;  %v638_v55 = vsel %vm366_vm0, %v360_v15, 0  ;;  %v641_v60 = vsel %vm366_vm0, %v361_v26, 0  ;;  %15160 = vmatprep.subr.bf16.mxu1 %v18561_v5  ;;  %v18600_v4 = vsub.f32 %v584_v39, %v3054_v12  ;;  %v344_v5 = vld [vmem:[%s24516_s2 + $0x150] sm:$0xff] }
  0x4b   : > { %25542 = vst [vmem:[#allocation56_spill] sm:$0xff] %v18583_v47  ;;  %v18598_v3 = vpack.c.bf16 %v3057_v33, %v3054_v12  ;;  %v18602_v6 = vsub.f32 %v587_v18, %v3057_v33  ;;  %v737_v27 = vand.u32 4294901760, %v545_v9  ;;  %v3108_v15 = vand.u32 4294901760, %v638_v55  ;;  %v345_v12 = vld [vmem:[%s24516_s2 + $0x158] sm:$0xff]  ;;  %v330_v33 = vld [vmem:[%s24516_s2 + $0xe0] sm:$0xff] }
  0x4c   : > { %v18610_v17 = vsub.f32 %v542_v23, %v734_v49  ;;  %v3111_v26 = vand.u32 4294901760, %v641_v60  ;;  %v494_v0 = vsel %vm366_vm0, %v312_v61, 0  ;;  %v497_v23 = vsel %vm366_vm0, %v313_v40, 0 }
  0x4d   : > { %25543 = vst [vmem:[#allocation57_spill] sm:$0xff] %v18598_v3  ;;  %25544 = vst [vmem:[#allocation58_spill] sm:$0xff] %v18602_v6  ;;  %v18622_v39 = vpack.c.bf16 %v737_v27, %v734_v49  ;;  %v18624_v18 = vsub.f32 %v545_v9, %v737_v27  ;;  %v686_v50 = vand.u32 4294901760, %v494_v0  ;;  %v18629_v52 = vsub.f32 %v638_v55, %v3108_v15  ;;  %v362_v27 = vld [vmem:[%s24516_s2 + $0x1e0] sm:$0xff]  ;;  %v363_v9 = vld [vmem:[%s24516_s2 + $0x1e8] sm:$0xff] }
  0x4e   : > { %25546 = vst [vmem:[#allocation59_spill] sm:$0xff] %v18610_v17  ;;  %v18627_v61 = vpack.c.bf16 %v3111_v26, %v3108_v15  ;;  %v18631_v35 = vsub.f32 %v641_v60, %v3111_v26  ;;  %v689_v24 = vand.u32 4294901760, %v497_v23  ;;  %14970 = vmatpush3.bf16.xpose.msra.mxu0 %v18583_v47  ;;  %v590_v55 = vsel %vm366_vm0, %v344_v5, 0  ;;  %v314_v47 = vld [vmem:[%s24516_s2 + $0x60] sm:$0xff] }
  0x4f   : > { %25547 = vst [vmem:[#allocation60_spill] sm:$0xff] %v18622_v39  ;;  %25548 = vst [vmem:[#allocation61_spill] sm:$0xff] %v18624_v18  ;;  %v18643_v49 = vsub.f32 %v494_v0, %v686_v50  ;;  %v593_v60 = vsel %vm366_vm0, %v345_v12, 0  ;;  %v548_v40 = vsel %vm366_vm0, %v330_v33, 0  ;;  %14972 = vmatprep.subr.bf16.mxu0 %v18622_v39  ;;  %v551_v0 = vsel %vm366_vm0, %v331_v19, 0  ;;  %v333_v18 = vld [vmem:[%s24516_s2 + $0xf8] sm:$0xff] }
  0x50   : > { %25549 = vst [vmem:[#allocation62_spill] sm:$0xff] %v18627_v61  ;;  %25550 = vst [vmem:[#allocation63_spill] sm:$0xff] %v18629_v52  ;;  %v18649_v15 = vpack.c.bf16 %v689_v24, %v686_v50  ;;  %v18651_v26 = vsub.f32 %v497_v23, %v689_v24  ;;  %v3063_v52 = vand.u32 4294901760, %v593_v60  ;;  %v740_v5 = vand.u32 4294901760, %v548_v40  ;;  %v315_v24 = vld [vmem:[%s24516_s2 + $0x68] sm:$0xff] }
  0x51   : > { %25551 = vst [vmem:[#allocation64_spill] sm:$0xff] %v18631_v35  ;;  %25552 = vst [vmem:[#allocation65_spill] sm:$0xff] %v18643_v49  ;;  %v3060_v35 = vand.u32 4294901760, %v590_v55  ;;  %v644_v12 = vsel %vm366_vm0, %v362_v27, 0  ;;  %v647_v50 = vsel %vm366_vm0, %v363_v9, 0  ;;  %15162 = vmatpush3.bf16.xpose.msra.mxu1 %v18598_v3  ;;  %v500_v49 = vsel %vm366_vm0, %v314_v47, 0 }
  0x52   : > { %25553 = vst [vmem:[#allocation66_spill] sm:$0xff] %v18649_v15  ;;  %25554 = vst [vmem:[#allocation67_spill] sm:$0xff] %v18651_v26  ;;  %v18673_v39 = vsub.f32 %v593_v60, %v3063_v52  ;;  %v743_v26 = vand.u32 4294901760, %v551_v0  ;;  %15164 = vmatprep.subr.bf16.mxu1 %v18627_v61  ;;  %v18676_v19 = vsub.f32 %v548_v40, %v740_v5  ;;  %v3114_v27 = vand.u32 4294901760, %v644_v12  ;;  %v346_v3 = vld [vmem:[%s24516_s2 + $0x160] sm:$0xff] }
  0x53   : > { %v18669_v33 = vpack.c.bf16 %v3063_v52, %v3060_v35  ;;  %v18671_v23 = vsub.f32 %v590_v55, %v3060_v35  ;;  %v3117_v9 = vand.u32 4294901760, %v647_v50  ;;  %v347_v35 = vld [vmem:[%s24516_s2 + $0x168] sm:$0xff]  ;;  %v332_v52 = vld [vmem:[%s24516_s2 + $0xf0] sm:$0xff]  ;;  %v503_v40 = vsel %vm366_vm0, %v315_v24, 0 }
  0x54   : > { %25557 = vst [vmem:[#allocation70_spill] sm:$0xff] %v18673_v39  ;;  %25558 = vst [vmem:[#allocation71_spill] sm:$0xff] %v18676_v19  ;;  %v18688_v55 = vpack.c.bf16 %v743_v26, %v740_v5  ;;  %v18690_v60 = vsub.f32 %v551_v0, %v743_v26  ;;  %v692_v61 = vand.u32 4294901760, %v500_v49  ;;  %v18696_v19 = vsub.f32 %v644_v12, %v3114_v27  ;;  %v364_v26 = vld [vmem:[%s24516_s2 + $0x1f0] sm:$0xff]  ;;  %v365_v0 = vld [vmem:[%s24516_s2 + $0x1f8] sm:$0xff] }
  0x55   : > { %25555 = vst [vmem:[#allocation68_spill] sm:$0xff] %v18669_v33  ;;  %25556 = vst [vmem:[#allocation69_spill] sm:$0xff] %v18671_v23  ;;  %v18694_v47 = vpack.c.bf16 %v3117_v9, %v3114_v27  ;;  %v18698_v39 = vsub.f32 %v647_v50, %v3117_v9  ;;  %v695_v23 = vand.u32 4294901760, %v503_v40  ;;  %v596_v12 = vsel %vm366_vm0, %v346_v3, 0 }
  0x56   : > { %25559 = vst [vmem:[#allocation72_spill] sm:$0xff] %v18688_v55  ;;  %25560 = vst [vmem:[#allocation73_spill] sm:$0xff] %v18690_v60  ;;  %v18709_v5 = vsub.f32 %v500_v49, %v692_v61  ;;  %v599_v50 = vsel %vm366_vm0, %v347_v35, 0  ;;  %v554_v24 = vsel %vm366_vm0, %v332_v52, 0  ;;  %14974 = vmatpush3.bf16.xpose.msra.mxu0 %v18649_v15  ;;  %v316_v60 = vld [vmem:[%s24516_s2 + $0x70] sm:$0xff]  ;;  %v557_v3 = vsel %vm366_vm0, %v333_v18, 0 }
  0x57   : > { %25561 = vst [vmem:[#allocation74_spill] sm:$0xff] %v18694_v47  ;;  %25562 = vst [vmem:[#allocation75_spill] sm:$0xff] %v18696_v19  ;;  %v18715_v27 = vpack.c.bf16 %v695_v23, %v692_v61  ;;  %v18717_v9 = vsub.f32 %v503_v40, %v695_v23  ;;  %v3069_v19 = vand.u32 4294901760, %v599_v50  ;;  %14976 = vmatprep.subr.bf16.mxu0 %v18688_v55  ;;  %v746_v61 = vand.u32 4294901760, %v554_v24  ;;  %v317_v35 = vld [vmem:[%s24516_s2 + $0x78] sm:$0xff] }
  0x58   : > { %25563 = vst [vmem:[#allocation76_spill] sm:$0xff] %v18698_v39  ;;  %25564 = vst [vmem:[#allocation77_spill] sm:$0xff] %v18709_v5  ;;  %v3066_v39 = vand.u32 4294901760, %v596_v12  ;;  %v650_v49 = vsel %vm366_vm0, %v364_v26, 0  ;;  %v653_v23 = vsel %vm366_vm0, %v365_v0, 0  ;;  %v506_v26 = vsel %vm366_vm0, %v316_v60, 0 }
  0x59   : > { %25565 = vst [vmem:[#allocation78_spill] sm:$0xff] %v18715_v27  ;;  %25566 = vst [vmem:[#allocation79_spill] sm:$0xff] %v18717_v9  ;;  %v18738_v15 = vsub.f32 %v599_v50, %v3069_v19  ;;  %v749_v9 = vand.u32 4294901760, %v557_v3  ;;  %15166 = vmatpush3.bf16.xpose.msra.mxu1 %v18669_v33  ;;  %v18741_v18 = vsub.f32 %v554_v24, %v746_v61  ;;  %v3120_v55 = vand.u32 4294901760, %v650_v49  ;;  %v348_v0 = vld [vmem:[%s24516_s2 + $0x170] sm:$0xff] }
  0x5a   : > { %v18734_v52 = vpack.c.bf16 %v3069_v19, %v3066_v39  ;;  %v18736_v40 = vsub.f32 %v596_v12, %v3066_v39  ;;  %v3123_v5 = vand.u32 4294901760, %v653_v23  ;;  %v349_v39 = vld [vmem:[%s24516_s2 + $0x178] sm:$0xff]  ;;  %v270_v12 = vld [vmem:[%s18725_s12] sm:$0xff]  ;;  %15168 = vmatprep.subr.bf16.mxu1 %v18694_v47  ;;  %v509_v24 = vsel %vm366_vm0, %v317_v35, 0 }
  0x5b   : > { %25569 = vst [vmem:[#allocation82_spill] sm:$0xff] %v18738_v15  ;;  %25570 = vst [vmem:[#allocation83_spill] sm:$0xff] %v18741_v18  ;;  %v18752_v19 = vpack.c.bf16 %v749_v9, %v746_v61  ;;  %v18754_v50 = vsub.f32 %v557_v3, %v749_v9  ;;  %v698_v33 = vand.u32 4294901760, %v506_v26  ;;  %v18759_v60 = vsub.f32 %v650_v49, %v3120_v55 }
  0x5c   : > { %25567 = vst [vmem:[#allocation80_spill] sm:$0xff] %v18734_v52  ;;  %25568 = vst [vmem:[#allocation81_spill] sm:$0xff] %v18736_v40  ;;  %v18757_v18 = vpack.c.bf16 %v3123_v5, %v3120_v55  ;;  %v18761_v15 = vsub.f32 %v653_v23, %v3123_v5  ;;  %v701_v40 = vand.u32 4294901760, %v509_v24  ;;  %v602_v6 = vsel %vm366_vm0, %v348_v0, 0 }
  0x5d   : > { %25571 = vst [vmem:[#allocation84_spill] sm:$0xff] %v18752_v19  ;;  %25572 = vst [vmem:[#allocation85_spill] sm:$0xff] %v18754_v50  ;;  %v18763_v17 = vsub.f32 %v506_v26, %v698_v33  ;;  %v605_v47 = vsel %vm366_vm0, %v349_v39, 0  ;;  %v368_v61 = vsel %vm366_vm0, %v270_v12, 0  ;;  %v3072_v35 = vand.u32 4294901760, %v602_v6 }
  0x5e   : > { %25573 = vst [vmem:[#allocation86_spill] sm:$0xff] %v18757_v18  ;;  %v18768_v9 = vpack.c.bf16 %v701_v40, %v698_v33  ;;  %v18770_v3 = vsub.f32 %v509_v24, %v701_v40  ;;  %v3075_v50 = vand.u32 4294901760, %v605_v47  ;;  %14978 = vmatpush3.bf16.xpose.msra.mxu0 %v18715_v27  ;;  %v18773_v55 = vand.u32 4294901760, %v368_v61 }
  0x5f   : > { %v24592_v5 = vand.u32 4294901760, %v18318_v20  ;;  %v24594_v49 = vand.u32 4294901760, %v18320_v21  ;;  %v24593_v23 = vand.u32 4294901760, %v18322_v22  ;;  %14980 = vmatprep.subr.bf16.mxu0 %v18752_v19  ;;  %v18781_v33 = vsub.f32 %v602_v6, %v3072_v35 }
  0x60   : > { %25574 = vst [vmem:[#allocation87_spill] sm:$0xff] %v18768_v9  ;;  %25575 = vst [vmem:[#allocation88_spill] sm:$0xff] %v18773_v55  ;;  %v18779_v26 = vpack.c.bf16 %v3075_v50, %v3072_v35  ;;  %v18783_v40 = vsub.f32 %v605_v47, %v3075_v50  ;;  %v24601_v0 = vand.u32 4294901760, %v18329_v25  ;;  %v18787_v39 = vsub.f32 %v368_v61, %v18773_v55 }
  0x61   : > { %v1220_v12 = vsub.f32 %v18318_v20, %v24592_v5  ;;  %v1227_v24 = vsub.f32 %v18320_v21, %v24594_v49  ;;  %v3594_v6 = vsub.f32 %v18322_v22, %v24593_v23  ;;  %15170 = vmatpush3.bf16.xpose.msra.mxu1 %v18734_v52  ;;  %v24612_v50 = vand.u32 4294901760, %v18348_v36  ;;  %v271_v5 = vld [vmem:[%s18725_s12 + $0x8] sm:$0xff]  ;;  %v274_v21 = vld [vmem:[%s18725_s12 + $0x20] sm:$0xff] }
  0x62   : > { %25576 = vst [vmem:[#allocation89_spill] sm:$0xff] %v18779_v26  ;;  %25577 = vst [vmem:[#allocation90_spill] sm:$0xff] %v18783_v40  ;;  %v3601_v47 = vsub.f32 %v18329_v25, %v24601_v0  ;;  %v24618_v61 = vand.u32 4294901760, %v18350_v37  ;;  %15172 = vmatprep.subr.bf16.mxu1 %v18757_v18  ;;  %v18808_v23 = vand.u32 4294901760, %v18787_v39  ;;  %v25580_v55 = vand.u32 4294901760, %v18357_v44  ;;  %v272_v18 = vld [vmem:[%s18725_s12 + $0x10] sm:$0xff] }
  0x63   : > { %25578 = vst [vmem:[#allocation91_spill] sm:$0xff] %v18787_v39  ;;  %v1221_v49 = vand.u32 4294901760, %v1220_v12  ;;  %v1228_v52 = vand.u32 4294901760, %v1227_v24  ;;  %v3595_v19 = vand.u32 4294901760, %v3594_v6  ;;  %v1108_v0 = vsub.f32 %v18348_v36, %v24612_v50 }
  0x64   : > { %25579 = vst [vmem:[#allocation92_spill] sm:$0xff] %v18808_v23  ;;  %v3602_v27 = vand.u32 4294901760, %v3601_v47  ;;  %v1115_v35 = vsub.f32 %v18350_v37, %v24618_v61  ;;  %v3482_v25 = vsub.f32 %v18357_v44, %v25580_v55  ;;  %v755_v22 = vsub.f32 %v18787_v39, %v18808_v23  ;;  %v273_v47 = vld [vmem:[%s18725_s12 + $0x18] sm:$0xff] }
  0x65   : > { %v14983_v12 = vpack.c.bf16 %v1228_v52, %v1221_v49  ;;  %v24621_v24 = vand.u32 4294901760, %v18369_v51  ;;  %v371_v6 = vsel %vm366_vm0, %v271_v5, 0  ;;  %v1109_v36 = vand.u32 4294901760, %v1108_v0 }
  0x66   : > { %v15175_v50 = vpack.c.bf16 %v3602_v27, %v3595_v19  ;;  %v1116_v20 = vand.u32 4294901760, %v1115_v35  ;;  %v3483_v40 = vand.u32 4294901760, %v3482_v25  ;;  %14982 = vmatpush3.bf16.xpose.msra.mxu0 %v18768_v9  ;;  %v756_v61 = vand.u32 4294901760, %v755_v22 }
  0x67   : > { %v3489_v55 = vsub.f32 %v18369_v51, %v24621_v24  ;;  %v18830_v44 = vand.u32 4294901760, %v371_v6  ;;  %v374_v52 = vsel %vm366_vm0, %v272_v18, 0  ;;  %14984 = vmatprep.subr.bf16.mxu0 %v14983_v12  ;;  %v377_v27 = vsel %vm366_vm0, %v273_v47, 0  ;;  %v25682_v51 = vld [vmem:[#allocation11_spill] sm:$0xff] }
  0x68   : > { %v14985_v49 = vpack.c.bf16 %v1116_v20, %v1109_v36  ;;  %v18833_v5 = vand.u32 4294901760, %v374_v52  ;;  %v380_v19 = vsel %vm366_vm0, %v274_v21, 0  ;;  %12679 = vmatprep.mubr.f32.mxu0 %v756_v61  ;;  %13255 = vmatprep.mubr.f32.mxu1 %v756_v61  ;;  %v18840_v0 = vand.u32 4294901760, %v377_v27 }
  0x69   : > { %25581 = vst [vmem:[#allocation93_spill] sm:$0xff] %v18830_v44  ;;  %v3490_v25 = vand.u32 4294901760, %v3489_v55  ;;  %v18838_v22 = vsub.f32 %v371_v6, %v18830_v44  ;;  %v18842_v35 = vand.u32 4294901760, %v380_v19  ;;  %15174 = vmatpush3.bf16.xpose.msra.mxu1 %v18779_v26  ;;  %v24622_v36 = vand.u32 4294901760, %v18373_v53 }
  0x6a   : > { %25582 = vst [vmem:[#allocation94_spill] sm:$0xff] %v18833_v5  ;;  %25584 = vst [vmem:[#allocation96_spill] sm:$0xff] %v18840_v0  ;;  %v18846_v20 = vsub.f32 %v374_v52, %v18833_v5  ;;  %v24623_v18 = vand.u32 4294901760, %v18375_v54  ;;  %v24630_v21 = vand.u32 4294901760, %v18377_v56  ;;  %15176 = vmatprep.subr.bf16.mxu1 %v15175_v50  ;;  %v18855_v47 = vsub.f32 %v377_v27, %v18840_v0 }
  0x6b   : > { %25583 = vst [vmem:[#allocation95_spill] sm:$0xff] %v18838_v22  ;;  %25585 = vst [vmem:[#allocation97_spill] sm:$0xff] %v18842_v35  ;;  %v15177_v12 = vpack.c.bf16 %v3490_v25, %v3483_v40  ;;  %v18852_v6 = vand.u32 4294901760, %v18838_v22  ;;  %v18858_v55 = vsub.f32 %v380_v19, %v18842_v35  ;;  %v1234_v24 = vsub.f32 %v18373_v53, %v24622_v36  ;;  %v275_v35 = vld [vmem:[%s18725_s12 + $0x28] sm:$0xff] }
  0x6c   : > { %25586 = vst [vmem:[#allocation98_spill] sm:$0xff] %v18846_v20  ;;  %25588 = vst [vmem:[#allocation100_spill] sm:$0xff] %v18855_v47  ;;  %v18861_v52 = vand.u32 4294901760, %v18846_v20  ;;  %v1241_v40 = vsub.f32 %v18375_v54, %v24623_v18  ;;  %v3608_v50 = vsub.f32 %v18377_v56, %v24630_v21  ;;  %v18875_v19 = vand.u32 4294901760, %v18855_v47  ;;  %v25683_v54 = vld [vmem:[#allocation13_spill] sm:$0xff] }
  0x6d   : > { %25587 = vst [vmem:[#allocation99_spill] sm:$0xff] %v18852_v6  ;;  %25589 = vst [vmem:[#allocation101_spill] sm:$0xff] %v18858_v55  ;;  %v766_v27 = vsub.f32 %v18838_v22, %v18852_v6  ;;  %v18878_v25 = vand.u32 4294901760, %v18858_v55  ;;  %v24647_v36 = vand.u32 4294901760, %v18392_v1  ;;  %12680 = vmatmul.mubr.f32.vlgmr.msra.gmra.mrb[0].mxu0 %v756_v61  ;;  %v1235_v23 = vand.u32 4294901760, %v1234_v24 }
  0x6e   : > { %25590 = vst [vmem:[#allocation102_spill] sm:$0xff] %v18861_v52  ;;  %25591 = vst [vmem:[#allocation103_spill] sm:$0xff] %v18875_v19  ;;  %v777_v18 = vsub.f32 %v18846_v20, %v18861_v52  ;;  %v1242_v26 = vand.u32 4294901760, %v1241_v40  ;;  %v3609_v9 = vand.u32 4294901760, %v3608_v50  ;;  %14986 = vmatpush3.bf16.xpose.msra.mxu0 %v14985_v49  ;;  %v788_v6 = vsub.f32 %v18855_v47, %v18875_v19  ;;  %v276_v40 = vld [vmem:[%s18725_s12 + $0x30] sm:$0xff] }
  0x6f   : > { %25592 = vst [vmem:[#allocation104_spill] sm:$0xff] %v18878_v25  ;;  %v767_v21 = vand.u32 4294901760, %v766_v27  ;;  %v799_v22 = vsub.f32 %v18858_v55, %v18878_v25  ;;  %v3615_v39 = vsub.f32 %v18392_v1, %v24647_v36  ;;  %v24648_v24 = vand.u32 4294901760, %v18402_v7 }
  0x70   : > { %v778_v0 = vand.u32 4294901760, %v777_v18  ;;  %v14987_v5 = vpack.c.bf16 %v1242_v26, %v1235_v23  ;;  %v24651_v49 = vand.u32 4294901760, %v18404_v8  ;;  %13256 = vmatmul.mubr.f32.vlgmr.msra.gmra.mrb[0].mxu1 %v756_v61  ;;  %v18894_v50 = vand.u32 4294901760, %v788_v6  ;;  %v277_v6 = vld [vmem:[%s18725_s12 + $0x38] sm:$0xff] }
  0x71   : > { %12681 = vmatprep.mubr.f32.mxu0 %v767_v21  ;;  %v18896_v27 = vand.u32 4294901760, %v799_v22  ;;  %v3616_v25 = vand.u32 4294901760, %v3615_v39  ;;  %v24654_v19 = vand.u32 4294901760, %v18416_v13  ;;  %15178 = vmatpush3.bf16.xpose.msra.mxu1 %v15177_v12  ;;  %v1122_v23 = vsub.f32 %v18402_v7, %v24648_v24  ;;  %v278_v22 = vld [vmem:[%s18725_s12 + $0x40] sm:$0xff] }
  0x72   : > { %13257 = vmatprep.mubr.f32.mxu1 %v767_v21  ;;  %v1129_v26 = vsub.f32 %v18404_v8, %v24651_v49  ;;  %v24657_v61 = vand.u32 4294901760, %v18418_v14  ;;  %v383_v18 = vsel %vm366_vm0, %v275_v35, 0  ;;  %12682 = vmatmul.mubr.f32.gmra.mrb[2].mxu0 %v767_v21  ;;  %v386_v24 = vsel %vm366_vm0, %v276_v40, 0 }
  0x73   : > { %14988 = vmatprep.subr.bf16.mxu0 %v14987_v5  ;;  %v15179_v39 = vpack.c.bf16 %v3616_v25, %v3609_v9  ;;  %v3496_v12 = vsub.f32 %v18416_v13, %v24654_v19  ;;  %v18912_v36 = vand.u32 4294901760, %v383_v18  ;;  %12683 = vmatprep.mubr.f32.mxu0 %v778_v0  ;;  %v1123_v52 = vand.u32 4294901760, %v1122_v23 }
  0x74   : > { %v1130_v49 = vand.u32 4294901760, %v1129_v26  ;;  %v3503_v35 = vsub.f32 %v18418_v14, %v24657_v61  ;;  %v18918_v55 = vand.u32 4294901760, %v386_v24  ;;  %13258 = vmatmul.mubr.f32.gmra.mrb[2].mxu1 %v767_v21  ;;  %v389_v25 = vsel %vm366_vm0, %v277_v6, 0  ;;  %v25661_v14 = vld [vmem:[#allocation79_spill] sm:$0xff] }
  0x75   : > { %25593 = vst [vmem:[#allocation105_spill] sm:$0xff] %v18912_v36  ;;  %15180 = vmatprep.subr.bf16.mxu1 %v15179_v39  ;;  %v3497_v9 = vand.u32 4294901760, %v3496_v12  ;;  %v18921_v5 = vsub.f32 %v383_v18, %v18912_v36  ;;  %v392_v19 = vsel %vm366_vm0, %v278_v22, 0  ;;  %13259 = vmatprep.mubr.f32.mxu1 %v778_v0  ;;  %v18928_v47 = vand.u32 4294901760, %v389_v25 }
  0x76   : > { %25594 = vst [vmem:[#allocation106_spill] sm:$0xff] %v18918_v55  ;;  %v14989_v40 = vpack.c.bf16 %v1130_v49, %v1123_v52  ;;  %v3504_v23 = vand.u32 4294901760, %v3503_v35  ;;  %v18926_v26 = vsub.f32 %v386_v24, %v18918_v55  ;;  %12684 = vmatmul.mubr.f32.gmra.mrb[4].mxu0 %v778_v0  ;;  %v18933_v39 = vand.u32 4294901760, %v392_v19 }
  0x77   : > { %25595 = vst [vmem:[#allocation107_spill] sm:$0xff] %v18921_v5  ;;  %25597 = vst [vmem:[#allocation109_spill] sm:$0xff] %v18928_v47  ;;  %v18931_v21 = vand.u32 4294901760, %v18921_v5  ;;  %v24659_v18 = vand.u32 4294901760, %v18437_v34  ;;  %v24658_v6 = vand.u32 4294901760, %v18439_v38  ;;  %12685 = vmatprep.mubr.f32.mxu0 %v18894_v50  ;;  %v18942_v24 = vsub.f32 %v389_v25, %v18928_v47 }
  0x78   : > { %25596 = vst [vmem:[#allocation108_spill] sm:$0xff] %v18926_v26  ;;  %25599 = vst [vmem:[#allocation111_spill] sm:$0xff] %v18933_v39  ;;  %14990 = vmatpush3.bf16.xpose.msra.mxu0 %v14989_v40  ;;  %v15181_v52 = vpack.c.bf16 %v3504_v23, %v3497_v9  ;;  %v18939_v49 = vand.u32 4294901760, %v18926_v26  ;;  %v24664_v22 = vand.u32 4294901760, %v18443_v41  ;;  %13260 = vmatmul.mubr.f32.gmra.mrb[4].mxu1 %v778_v0  ;;  %v24673_v23 = vand.u32 4294901760, %v18445_v42 }
  0x79   : > { %25598 = vst [vmem:[#allocation110_spill] sm:$0xff] %v18931_v21  ;;  %25601 = vst [vmem:[#allocation113_spill] sm:$0xff] %v18942_v24  ;;  %v810_v12 = vsub.f32 %v18921_v5, %v18931_v21  ;;  %v18948_v35 = vsub.f32 %v392_v19, %v18933_v39  ;;  %v1248_v40 = vsub.f32 %v18437_v34, %v24659_v18  ;;  %13261 = vmatprep.mubr.f32.mxu1 %v18894_v50  ;;  %v282_v39 = vld [vmem:[%s18725_s12 + $0x60] sm:$0xff] }
  0x7a   : > { %25600 = vst [vmem:[#allocation112_spill] sm:$0xff] %v18939_v49  ;;  %v1255_v9 = vsub.f32 %v18439_v38, %v24658_v6  ;;  %15182 = vmatpush3.bf16.xpose.msra.mxu1 %v15181_v52  ;;  %v821_v0 = vsub.f32 %v18926_v26, %v18939_v49  ;;  %v18960_v25 = vand.u32 4294901760, %v18942_v24  ;;  %v3622_v19 = vsub.f32 %v18443_v41, %v24664_v22  ;;  %v279_v26 = vld [vmem:[%s18725_s12 + $0x48] sm:$0xff] }
  0x7b   : > { %25602 = vst [vmem:[#allocation114_spill] sm:$0xff] %v18948_v35  ;;  %12686 = vmatmul.mubr.f32.gmra.mrb[6].mxu0 %v18894_v50  ;;  %v18968_v61 = vand.u32 4294901760, %v18948_v35  ;;  %v1249_v6 = vand.u32 4294901760, %v1248_v40  ;;  %v811_v52 = vand.u32 4294901760, %v810_v12  ;;  %v3629_v22 = vsub.f32 %v18445_v42, %v24673_v23  ;;  %v25660_v41 = vld [vmem:[#allocation77_spill] sm:$0xff] }
  0x7c   : > { %25603 = vst [vmem:[#allocation115_spill] sm:$0xff] %v18960_v25  ;;  %v1256_v18 = vand.u32 4294901760, %v1255_v9  ;;  %12687 = vmatprep.mubr.f32.mxu0 %v18896_v27  ;;  %v832_v49 = vsub.f32 %v18942_v24, %v18960_v25  ;;  %v3623_v21 = vand.u32 4294901760, %v3622_v19  ;;  %13262 = vmatmul.mubr.f32.gmra.mrb[6].mxu1 %v18894_v50  ;;  %v18978_v5 = vand.u32 4294901760, %v821_v0  ;;  %v280_v24 = vld [vmem:[%s18725_s12 + $0x50] sm:$0xff]  ;;  %v281_v50 = vld [vmem:[%s18725_s12 + $0x58] sm:$0xff] }
  0x7d   : > { %25604 = vst [vmem:[#allocation116_spill] sm:$0xff] %v18968_v61  ;;  %v24682_v9 = vand.u32 4294901760, %v18458_v48  ;;  %v24685_v20 = vand.u32 4294901760, %v18466_v59  ;;  %13263 = vmatprep.mubr.f32.mxu1 %v18896_v27  ;;  %v843_v12 = vsub.f32 %v18948_v35, %v18968_v61  ;;  %v3630_v19 = vand.u32 4294901760, %v3629_v22  ;;  %v25662_v38 = vld [vmem:[#allocation81_spill] sm:$0xff] }
  0x7e   : > { %v14991_v40 = vpack.c.bf16 %v1256_v18, %v1249_v6  ;;  %v18990_v18 = vand.u32 4294901760, %v832_v49  ;;  %v395_v0 = vsel %vm366_vm0, %v279_v26, 0  ;;  %v25605_v23 = vand.u32 4294901760, %v18479_v10 }
  0x7f   : > { %12688 = vmatmul.mubr.f32.gmra.mrb[8].mxu0 %v18896_v27  ;;  %v1136_v6 = vsub.f32 %v18458_v48, %v24682_v9  ;;  %v1143_v22 = vsub.f32 %v18466_v59, %v24685_v20  ;;  %v15183_v25 = vpack.c.bf16 %v3630_v19, %v3623_v21  ;;  %v25606_v49 = vand.u32 4294901760, %v18481_v11  ;;  %v25655_v48 = vld [vmem:[#allocation73_spill] sm:$0xff] }
  0x80   : > { %14992 = vmatprep.subr.bf16.mxu0 %v14991_v40  ;;  %12689 = vmatprep.mubr.f32.mxu0 %v811_v52  ;;  %v3510_v61 = vsub.f32 %v18479_v10, %v25605_v23  ;;  %v19005_v35 = vand.u32 4294901760, %v395_v0  ;;  %v398_v20 = vsel %vm366_vm0, %v280_v24, 0  ;;  %v401_v26 = vsel %vm366_vm0, %v281_v50, 0 }
  0x81   : > { %v3517_v40 = vsub.f32 %v18481_v11, %v25606_v49  ;;  %13264 = vmatmul.mubr.f32.gmra.mrb[8].mxu1 %v18896_v27  ;;  %v1137_v9 = vand.u32 4294901760, %v1136_v6  ;;  %v1144_v47 = vand.u32 4294901760, %v1143_v22  ;;  %15184 = vmatprep.subr.bf16.mxu1 %v15183_v25  ;;  %v19014_v55 = vand.u32 4294901760, %v398_v20  ;;  %v25635_v11 = vld [vmem:[#allocation61_spill] sm:$0xff] }
  0x82   : > { %25607 = vst [vmem:[#allocation117_spill] sm:$0xff] %v19005_v35  ;;  %13265 = vmatprep.mubr.f32.mxu1 %v811_v52  ;;  %v3511_v21 = vand.u32 4294901760, %v3510_v61  ;;  %v19012_v23 = vsub.f32 %v395_v0, %v19005_v35  ;;  %v19016_v36 = vand.u32 4294901760, %v401_v26  ;;  %v404_v27 = vsel %vm366_vm0, %v282_v39, 0 }
  0x83   : > { %v3518_v19 = vand.u32 4294901760, %v3517_v40  ;;  %25609 = vst [vmem:[#allocation119_spill] sm:$0xff] %v19014_v55  ;;  %12690 = vmatmul.mubr.f32.gmra.mrb[10].mxu0 %v811_v52  ;;  %v14993_v49 = vpack.c.bf16 %v1144_v47, %v1137_v9  ;;  %v24690_v6 = vand.u32 4294901760, %v18483_v16  ;;  %v19025_v61 = vsub.f32 %v398_v20, %v19014_v55 }
  0x84   : > { %25608 = vst [vmem:[#allocation118_spill] sm:$0xff] %v19012_v23  ;;  %25610 = vst [vmem:[#allocation120_spill] sm:$0xff] %v19016_v36  ;;  %12691 = vmatprep.mubr.f32.mxu0 %v18978_v5  ;;  %v19022_v25 = vand.u32 4294901760, %v19012_v23  ;;  %v19027_v50 = vand.u32 4294901760, %v404_v27  ;;  %v24691_v39 = vand.u32 4294901760, %v18498_v30  ;;  %v24694_v9 = vand.u32 4294901760, %v18503_v43 }
  0x85   : > { %v15185_v24 = vpack.c.bf16 %v3518_v19, %v3511_v21  ;;  %25612 = vst [vmem:[#allocation122_spill] sm:$0xff] %v19025_v61  ;;  %13266 = vmatmul.mubr.f32.gmra.mrb[10].mxu1 %v811_v52  ;;  %14994 = vmatpush3.bf16.xpose.msra.mxu0 %v14993_v49  ;;  %v1262_v47 = vsub.f32 %v18483_v16, %v24690_v6  ;;  %v24699_v52 = vand.u32 4294901760, %v18505_v45  ;;  %v19043_v0 = vand.u32 4294901760, %v19025_v61 }
  0x86   : > { %25611 = vst [vmem:[#allocation121_spill] sm:$0xff] %v19022_v25  ;;  %25613 = vst [vmem:[#allocation123_spill] sm:$0xff] %v19027_v50  ;;  %13267 = vmatprep.mubr.f32.mxu1 %v18978_v5  ;;  %v854_v22 = vsub.f32 %v19012_v23, %v19022_v25  ;;  %v19038_v20 = vsub.f32 %v401_v26, %v19016_v36  ;;  %v1269_v21 = vsub.f32 %v18498_v30, %v24691_v39  ;;  %v283_v23 = vld [vmem:[%s18725_s12 + $0x68] sm:$0xff] }
  0x87   : > { %15186 = vmatpush3.bf16.xpose.msra.mxu1 %v15185_v24  ;;  %12692 = vmatmul.mubr.f32.gmra.mrb[12].mxu0 %v18978_v5  ;;  %25615 = vst [vmem:[#allocation125_spill] sm:$0xff] %v19043_v0  ;;  %v1263_v40 = vand.u32 4294901760, %v1262_v47  ;;  %v3636_v19 = vsub.f32 %v18503_v43, %v24694_v9  ;;  %v844_v26 = vand.u32 4294901760, %v843_v12  ;;  %v19053_v49 = vsub.f32 %v404_v27, %v19027_v50  ;;  %v284_v50 = vld [vmem:[%s18725_s12 + $0x70] sm:$0xff] }
  0x88   : > { %25614 = vst [vmem:[#allocation124_spill] sm:$0xff] %v19038_v20  ;;  %12693 = vmatprep.mubr.f32.mxu0 %v18990_v18  ;;  %v3643_v24 = vsub.f32 %v18505_v45, %v24699_v52  ;;  %v1270_v47 = vand.u32 4294901760, %v1269_v21  ;;  %v24704_v39 = vand.u32 4294901760, %v18517_v57  ;;  %v855_v25 = vand.u32 4294901760, %v854_v22 }
  0x89   : > { %25616 = vst [vmem:[#allocation126_spill] sm:$0xff] %v19053_v49  ;;  %13268 = vmatmul.mubr.f32.gmra.mrb[12].mxu1 %v18978_v5  ;;  %v3637_v6 = vand.u32 4294901760, %v3636_v19  ;;  %v19062_v9 = vand.u32 4294901760, %v19038_v20  ;;  %v24707_v27 = vand.u32 4294901760, %v18525_v2  ;;  %v865_v5 = vsub.f32 %v19025_v61, %v19043_v0  ;;  %v286_v61 = vld [vmem:[%s18725_s12 + $0x80] sm:$0xff] }
  0x8a   : > { %13269 = vmatprep.mubr.f32.mxu1 %v18990_v18  ;;  %v3644_v12 = vand.u32 4294901760, %v3643_v24  ;;  %v14995_v21 = vpack.c.bf16 %v1270_v47, %v1263_v40  ;;  %v1150_v19 = vsub.f32 %v18517_v57, %v24704_v39  ;;  %v24708_v22 = vand.u32 4294901760, %v18539_v28 }
  0x8b   : > { %25617 = vst [vmem:[#allocation127_spill] sm:$0xff] %v19062_v9  ;;  %12694 = vmatmul.mubr.f32.gmra.mrb[14].mxu0 %v18990_v18  ;;  %v19075_v24 = vand.u32 4294901760, %v19053_v49  ;;  %v1157_v36 = vsub.f32 %v18525_v2, %v24707_v27  ;;  %v24713_v55 = vand.u32 4294901760, %v18541_v31  ;;  %v407_v39 = vsel %vm366_vm0, %v283_v23, 0 }
  0x8c   : > { %12695 = vmatprep.mubr.f32.mxu0 %v844_v26  ;;  %v15187_v52 = vpack.c.bf16 %v3644_v12, %v3637_v6  ;;  %14996 = vmatprep.subr.bf16.mxu0 %v14995_v21  ;;  %v1151_v40 = vand.u32 4294901760, %v1150_v19  ;;  %v3524_v47 = vsub.f32 %v18539_v28, %v24708_v22  ;;  %v410_v0 = vsel %vm366_vm0, %v284_v50, 0  ;;  %v285_v6 = vld [vmem:[%s18725_s12 + $0x78] sm:$0xff] }
  0x8d   : > { %25618 = vst [vmem:[#allocation128_spill] sm:$0xff] %v19075_v24  ;;  %13270 = vmatmul.mubr.f32.gmra.mrb[14].mxu1 %v18990_v18  ;;  %v1158_v12 = vand.u32 4294901760, %v1157_v36  ;;  %v3531_v27 = vsub.f32 %v18541_v31, %v24713_v55  ;;  %v19091_v18 = vand.u32 4294901760, %v407_v39  ;;  %v19093_v21 = vand.u32 4294901760, %v410_v0 }
  0x8e   : > { %13271 = vmatprep.mubr.f32.mxu1 %v844_v26  ;;  %15188 = vmatprep.subr.bf16.mxu1 %v15187_v52  ;;  %v866_v19 = vand.u32 4294901760, %v865_v5  ;;  %v876_v22 = vsub.f32 %v19038_v20, %v19062_v9  ;;  %v3525_v23 = vand.u32 4294901760, %v3524_v47  ;;  %v24716_v50 = vand.u32 4294901760, %v18543_v46 }
  0x8f   : > { %25619 = vst [vmem:[#allocation129_spill] sm:$0xff] %v19091_v18  ;;  %25620 = vst [vmem:[#allocation130_spill] sm:$0xff] %v19093_v21  ;;  %12696 = vmatmul.mubr.f32.gmra.mrb[16].mxu0 %v844_v26  ;;  %v14997_v52 = vpack.c.bf16 %v1158_v12, %v1151_v40  ;;  %v3532_v36 = vand.u32 4294901760, %v3531_v27  ;;  %v19100_v35 = vsub.f32 %v407_v39, %v19091_v18  ;;  %v413_v55 = vsel %vm366_vm0, %v285_v6, 0 }
  0x90   : > { %12697 = vmatprep.mubr.f32.mxu0 %v855_v25  ;;  %v19104_v2 = vsub.f32 %v410_v0, %v19093_v21  ;;  %v1276_v5 = vsub.f32 %v18543_v46, %v24716_v50  ;;  %v24721_v47 = vand.u32 4294901760, %v18557_v62  ;;  %v887_v40 = vsub.f32 %v19053_v49, %v19075_v24  ;;  %v25628_v21 = vld [vmem:[#allocation58_spill] sm:$0xff] }
  0x91   : > { %25621 = vst [vmem:[#allocation131_spill] sm:$0xff] %v19100_v35  ;;  %13272 = vmatmul.mubr.f32.gmra.mrb[16].mxu1 %v844_v26  ;;  %14998 = vmatpush3.bf16.xpose.msra.mxu0 %v14997_v52  ;;  %v15189_v27 = vpack.c.bf16 %v3532_v36, %v3525_v23  ;;  %v416_v39 = vsel %vm366_vm0, %v286_v61, 0  ;;  %v24724_v6 = vand.u32 4294901760, %v18563_v29  ;;  %v19115_v0 = vand.u32 4294901760, %v19100_v35 }
  0x92   : > { %25622 = vst [vmem:[#allocation132_spill] sm:$0xff] %v19104_v2  ;;  %13273 = vmatprep.mubr.f32.mxu1 %v855_v25  ;;  %v19117_v26 = vand.u32 4294901760, %v413_v55  ;;  %v1277_v12 = vand.u32 4294901760, %v1276_v5  ;;  %v1283_v50 = vsub.f32 %v18557_v62, %v24721_v47  ;;  %v877_v24 = vand.u32 4294901760, %v876_v22 }
  0x93   : > { %12698 = vmatmul.mubr.f32.gmra.mrb[18].mxu0 %v855_v25  ;;  %25623 = vst [vmem:[#allocation133_spill] sm:$0xff] %v19115_v0  ;;  %15190 = vmatpush3.bf16.xpose.msra.mxu1 %v15189_v27  ;;  %v3650_v61 = vsub.f32 %v18563_v29, %v24724_v6  ;;  %v24727_v23 = vand.u32 4294901760, %v18565_v58  ;;  %v19127_v52 = vand.u32 4294901760, %v19104_v2  ;;  %v19129_v36 = vand.u32 4294901760, %v416_v39  ;;  %v287_v27 = vld [vmem:[%s18725_s12 + $0x88] sm:$0xff] }
  0x94   : > { %25624 = vst [vmem:[#allocation134_spill] sm:$0xff] %v19117_v26  ;;  %12699 = vmatprep.mubr.f32.mxu0 %v866_v19  ;;  %v1284_v5 = vand.u32 4294901760, %v1283_v50  ;;  %v24734_v9 = vand.u32 4294901760, %v18577_v32  ;;  %v888_v47 = vand.u32 4294901760, %v887_v40  ;;  %v19139_v6 = vsub.f32 %v413_v55, %v19117_v26 }
  0x95   : > { %13274 = vmatmul.mubr.f32.gmra.mrb[18].mxu1 %v855_v25  ;;  %25625 = vst [vmem:[#allocation135_spill] sm:$0xff] %v19127_v52  ;;  %25626 = vst [vmem:[#allocation136_spill] sm:$0xff] %v19129_v36  ;;  %v3651_v49 = vand.u32 4294901760, %v3650_v61  ;;  %v3657_v22 = vsub.f32 %v18565_v58, %v24727_v23  ;;  %v898_v25 = vsub.f32 %v19100_v35, %v19115_v0  ;;  %v24737_v61 = vand.u32 4294901760, %v18585_v63 }
  0x96   : > { %13275 = vmatprep.mubr.f32.mxu1 %v866_v19  ;;  %25627 = vst [vmem:[#allocation137_spill] sm:$0xff] %v19139_v6  ;;  %v14999_v20 = vpack.c.bf16 %v1284_v5, %v1277_v12  ;;  %v1164_v50 = vsub.f32 %v18577_v32, %v24734_v9  ;;  %v24742_v23 = vand.u32 4294901760, %v18600_v4  ;;  %v909_v0 = vsub.f32 %v19104_v2, %v19127_v52  ;;  %v288_v9 = vld [vmem:[%s18725_s12 + $0x90] sm:$0xff] }
  0x97   : > { %12700 = vmatmul.mubr.f32.gmra.mrb[20].mxu0 %v866_v19  ;;  %v3658_v40 = vand.u32 4294901760, %v3657_v22  ;;  %v19150_v55 = vsub.f32 %v416_v39, %v19129_v36  ;;  %v419_v5 = vsel %vm366_vm0, %v287_v27, 0  ;;  %v1171_v18 = vsub.f32 %v18585_v63, %v24737_v61 }
  0x98   : > { %12701 = vmatprep.mubr.f32.mxu0 %v877_v24  ;;  %15000 = vmatprep.subr.bf16.mxu0 %v14999_v20  ;;  %v1165_v12 = vand.u32 4294901760, %v1164_v50  ;;  %v25630_v52 = vand.u32 4294901760, %v25628_v21  ;;  %v899_v20 = vand.u32 4294901760, %v898_v25  ;;  %v19164_v27 = vand.u32 4294901760, %v19139_v6  ;;  %v25634_v25 = vld [vmem:[#allocation59_spill] sm:$0xff] }
  0x99   : > { %13276 = vmatmul.mubr.f32.gmra.mrb[20].mxu1 %v866_v19  ;;  %25629 = vst [vmem:[#allocation58_spill] sm:$0xff] %v19150_v55  ;;  %v15191_v22 = vpack.c.bf16 %v3658_v40, %v3651_v49  ;;  %v3538_v19 = vsub.f32 %v18600_v4, %v24742_v23  ;;  %v19166_v50 = vand.u32 4294901760, %v419_v5  ;;  %v289_v49 = vld [vmem:[%s18725_s12 + $0x98] sm:$0xff]  ;;  %v1172_v40 = vand.u32 4294901760, %v1171_v18  ;;  %v290_v23 = vld [vmem:[%s18725_s12 + $0xa0] sm:$0xff] }
  0x9a   : > { %13277 = vmatprep.mubr.f32.mxu1 %v877_v24  ;;  %v3545_v39 = vsub.f32 %v25628_v21, %v25630_v52  ;;  %25631 = vst [vmem:[#allocation138_spill] sm:$0xff] %v19164_v27  ;;  %v422_v35 = vsel %vm366_vm0, %v288_v9, 0  ;;  %v910_v36 = vand.u32 4294901760, %v909_v0  ;;  %v19172_v52 = vand.u32 4294901760, %v19150_v55 }
  0x9b   : > { %12702 = vmatmul.mubr.f32.gmra.mrb[22].mxu0 %v877_v24  ;;  %25632 = vst [vmem:[#allocation139_spill] sm:$0xff] %v19166_v50  ;;  %15192 = vmatprep.subr.bf16.mxu1 %v15191_v22  ;;  %v3539_v61 = vand.u32 4294901760, %v3538_v19  ;;  %v24755_v26 = vand.u32 4294901760, %v25634_v25  ;;  %v15001_v57 = vpack.c.bf16 %v1172_v40, %v1165_v12  ;;  %v425_v43 = vsel %vm366_vm0, %v289_v49, 0  ;;  %v25638_v12 = vld [vmem:[#allocation63_spill] sm:$0xff]  ;;  %v25639_v19 = vld [vmem:[#allocation64_spill] sm:$0xff] }
  0x9c   : > { %12703 = vmatprep.mubr.f32.mxu0 %v888_v47  ;;  %v3546_v2 = vand.u32 4294901760, %v3545_v39  ;;  %25633 = vst [vmem:[#allocation140_spill] sm:$0xff] %v19172_v52  ;;  %v24756_v22 = vand.u32 4294901760, %v25635_v11  ;;  %v19178_v18 = vsub.f32 %v419_v5, %v19166_v50  ;;  %v19180_v9 = vand.u32 4294901760, %v422_v35 }
  0x9d   : > { %13278 = vmatmul.mubr.f32.gmra.mrb[22].mxu1 %v877_v24  ;;  %v428_v24 = vsel %vm366_vm0, %v290_v23, 0  ;;  %v1290_v0 = vsub.f32 %v25634_v25, %v24755_v26  ;;  %15002 = vmatpush3.bf16.xpose.msra.mxu0 %v15001_v57  ;;  %v24761_v5 = vand.u32 4294901760, %v25638_v12  ;;  %v24766_v39 = vand.u32 4294901760, %v25639_v19 }
  0x9e   : > { %13279 = vmatprep.mubr.f32.mxu1 %v888_v47  ;;  %v15193_v45 = vpack.c.bf16 %v3546_v2, %v3539_v61  ;;  %25636 = vst [vmem:[#allocation59_spill] sm:$0xff] %v19178_v18  ;;  %25637 = vst [vmem:[#allocation61_spill] sm:$0xff] %v19180_v9  ;;  %v920_v2 = vsub.f32 %v19139_v6, %v19164_v27  ;;  %v1297_v61 = vsub.f32 %v25635_v11, %v24756_v22 }
  0x9f   : > { %12704 = vmatmul.mubr.f32.gmra.mrb[24].mxu0 %v888_v47  ;;  %v19193_v49 = vand.u32 4294901760, %v425_v43  ;;  %v1291_v23 = vand.u32 4294901760, %v1290_v0  ;;  %v19195_v40 = vand.u32 4294901760, %v428_v24  ;;  %v3664_v57 = vsub.f32 %v25638_v12, %v24761_v5  ;;  %v25644_v0 = vld [vmem:[#allocation65_spill] sm:$0xff] }
  0xa0   : > { %12705 = vmatprep.mubr.f32.mxu0 %v899_v20  ;;  %15194 = vmatpush3.bf16.xpose.msra.mxu1 %v15193_v45  ;;  %v1298_v26 = vand.u32 4294901760, %v1297_v61  ;;  %v3671_v22 = vsub.f32 %v25639_v19, %v24766_v39  ;;  %v19206_v27 = vand.u32 4294901760, %v19178_v18  ;;  %v19209_v45 = vsub.f32 %v422_v35, %v19180_v9 }
  0xa1   : > { %13280 = vmatmul.mubr.f32.gmra.mrb[24].mxu1 %v888_v47  ;;  %25640 = vst [vmem:[#allocation63_spill] sm:$0xff] %v19193_v49  ;;  %25641 = vst [vmem:[#allocation64_spill] sm:$0xff] %v19195_v40  ;;  %v931_v47 = vsub.f32 %v19150_v55, %v19172_v52  ;;  %v24775_v61 = vand.u32 4294901760, %v25644_v0  ;;  %v921_v6 = vand.u32 4294901760, %v920_v2  ;;  %v3665_v50 = vand.u32 4294901760, %v3664_v57  ;;  %v25646_v55 = vld [vmem:[#allocation67_spill] sm:$0xff] }
  0xa2   : > { %13281 = vmatprep.mubr.f32.mxu1 %v899_v20  ;;  %25642 = vst [vmem:[#allocation141_spill] sm:$0xff] %v19206_v27  ;;  %25643 = vst [vmem:[#allocation142_spill] sm:$0xff] %v19209_v45  ;;  %v15003_v5 = vpack.c.bf16 %v1298_v26, %v1291_v23  ;;  %v3672_v10 = vand.u32 4294901760, %v3671_v22  ;;  %v19213_v39 = vsub.f32 %v425_v43, %v19193_v49  ;;  %v24782_v30 = vand.u32 4294901760, %v25646_v55  ;;  %v25648_v2 = vld [vmem:[#allocation69_spill] sm:$0xff]  ;;  %v25649_v23 = vld [vmem:[#allocation70_spill] sm:$0xff] }
  0xa3   : > { %12706 = vmatmul.mubr.f32.gmra.mrb[26].mxu0 %v899_v20  ;;  %v1178_v52 = vsub.f32 %v25644_v0, %v24775_v61  ;;  %v19220_v35 = vsub.f32 %v428_v24, %v19195_v40  ;;  %v24783_v26 = vand.u32 4294901760, %v25648_v2  ;;  %v24784_v22 = vand.u32 4294901760, %v25649_v23  ;;  %v292_v40 = vld [vmem:[%s18725_s12 + $0xb0] sm:$0xff]  ;;  %v25653_v49 = vld [vmem:[#allocation71_spill] sm:$0xff] }
  0xa4   : > { %12707 = vmatprep.mubr.f32.mxu0 %v910_v36  ;;  %25645 = vst [vmem:[#allocation65_spill] sm:$0xff] %v19213_v39  ;;  %15004 = vmatprep.subr.bf16.mxu0 %v15003_v5  ;;  %v15195_v9 = vpack.c.bf16 %v3672_v10, %v3665_v50  ;;  %v942_v43 = vsub.f32 %v19178_v18, %v19206_v27  ;;  %v19228_v57 = vand.u32 4294901760, %v19209_v45  ;;  %v932_v10 = vand.u32 4294901760, %v931_v47 }
  0xa5   : > { %13282 = vmatmul.mubr.f32.gmra.mrb[26].mxu1 %v899_v20  ;;  %25647 = vst [vmem:[#allocation67_spill] sm:$0xff] %v19220_v35  ;;  %v291_v20 = vld [vmem:[%s18725_s12 + $0xa8] sm:$0xff]  ;;  %v1179_v61 = vand.u32 4294901760, %v1178_v52  ;;  %v1185_v24 = vsub.f32 %v25646_v55, %v24782_v30  ;;  %v3552_v50 = vsub.f32 %v25648_v2, %v24783_v26  ;;  %v3559_v5 = vsub.f32 %v25649_v23, %v24784_v22 }
  0xa6   : > { %13283 = vmatprep.mubr.f32.mxu1 %v910_v36  ;;  %25650 = vst [vmem:[#allocation69_spill] sm:$0xff] %v19228_v57  ;;  %15196 = vmatprep.subr.bf16.mxu1 %v15195_v9  ;;  %v19240_v27 = vand.u32 4294901760, %v19213_v39  ;;  %v431_v18 = vsel %vm366_vm0, %v291_v20, 0  ;;  %v19245_v47 = vand.u32 4294901760, %v19220_v35  ;;  %v943_v26 = vand.u32 4294901760, %v942_v43  ;;  %v293_v43 = vld [vmem:[%s18725_s12 + $0xb8] sm:$0xff] }
  0xa7   : > { %12708 = vmatmul.mubr.f32.gmra.mrb[28].mxu0 %v910_v36  ;;  %v1186_v52 = vand.u32 4294901760, %v1185_v24  ;;  %v3553_v9 = vand.u32 4294901760, %v3552_v50  ;;  %v3560_v30 = vand.u32 4294901760, %v3559_v5  ;;  %v953_v22 = vsub.f32 %v19209_v45, %v19228_v57  ;;  %v25656_v5 = vld [vmem:[#allocation75_spill] sm:$0xff]  ;;  %v294_v57 = vld [vmem:[%s18725_s12 + $0xc0] sm:$0xff] }
  0xa8   : > { %12709 = vmatprep.mubr.f32.mxu0 %v921_v6  ;;  %25651 = vst [vmem:[#allocation70_spill] sm:$0xff] %v19240_v27  ;;  %25652 = vst [vmem:[#allocation143_spill] sm:$0xff] %v19245_v47  ;;  %v24801_v16 = vand.u32 4294901760, %v25653_v49  ;;  %v19250_v59 = vand.u32 4294901760, %v431_v18  ;;  %v434_v20 = vsel %vm366_vm0, %v292_v40, 0  ;;  %v24806_v42 = vand.u32 4294901760, %v25655_v48 }
  0xa9   : > { %13284 = vmatmul.mubr.f32.gmra.mrb[28].mxu1 %v910_v36  ;;  %v15005_v36 = vpack.c.bf16 %v1186_v52, %v1179_v61  ;;  %v15197_v24 = vpack.c.bf16 %v3560_v30, %v3553_v9  ;;  %v964_v50 = vsub.f32 %v19213_v39, %v19240_v27  ;;  %v24815_v52 = vand.u32 4294901760, %v25656_v5  ;;  %v25657_v40 = vld [vmem:[#allocation76_spill] sm:$0xff] }
  0xaa   : > { %13285 = vmatprep.mubr.f32.mxu1 %v921_v6  ;;  %25654 = vst [vmem:[#allocation71_spill] sm:$0xff] %v19250_v59  ;;  %v1304_v61 = vsub.f32 %v25653_v49, %v24801_v16  ;;  %v975_v30 = vsub.f32 %v19220_v35, %v19245_v47  ;;  %v24820_v9 = vand.u32 4294901760, %v25657_v40  ;;  %v19267_v27 = vand.u32 4294901760, %v434_v20 }
  0xab   : > { %12710 = vmatmul.mubr.f32.gmra.mrb[30].mxu0 %v921_v6  ;;  %15198 = vmatpush3.bf16.xpose.msra.mxu1 %v15197_v24  ;;  %v3678_v16 = vsub.f32 %v25656_v5, %v24815_v52  ;;  %v19274_v47 = vsub.f32 %v431_v18, %v19250_v59  ;;  %v437_v24 = vsel %vm366_vm0, %v293_v43, 0  ;;  %v24824_v13 = vand.u32 4294901760, %v25661_v14 }
  0xac   : > { %12711 = vmatprep.mubr.f32.mxu0 %v932_v10  ;;  %15006 = vmatpush3.bf16.xpose.msra.mxu0 %v15005_v36  ;;  %v954_v36 = vand.u32 4294901760, %v953_v22  ;;  %25658 = vst [vmem:[#allocation73_spill] sm:$0xff] %v19267_v27  ;;  %v1305_v39 = vand.u32 4294901760, %v1304_v61  ;;  %v965_v22 = vand.u32 4294901760, %v964_v50  ;;  %v24821_v61 = vand.u32 4294901760, %v25660_v41  ;;  %v25664_v50 = vld [vmem:[#allocation82_spill] sm:$0xff] }
  0xad   : > { %13286 = vmatmul.mubr.f32.gmra.mrb[30].mxu1 %v921_v6  ;;  %v1311_v6 = vsub.f32 %v25655_v48, %v24806_v42  ;;  %25659 = vst [vmem:[#allocation75_spill] sm:$0xff] %v19274_v47  ;;  %v3685_v42 = vsub.f32 %v25657_v40, %v24820_v9  ;;  %v3679_v45 = vand.u32 4294901760, %v3678_v16  ;;  %v440_v52 = vsel %vm366_vm0, %v294_v57, 0 }
  0xae   : > { %13287 = vmatprep.mubr.f32.mxu1 %v932_v10  ;;  %v24829_v43 = vand.u32 4294901760, %v25662_v38  ;;  %v1199_v16 = vsub.f32 %v25661_v14, %v24824_v13  ;;  %v19294_v57 = vand.u32 4294901760, %v19274_v47  ;;  %v19303_v34 = vand.u32 4294901760, %v440_v52 }
  0xaf   : > { %12712 = vmatmul.mubr.f32.gmra.mrb[32].mxu0 %v932_v10  ;;  %v1312_v35 = vand.u32 4294901760, %v1311_v6  ;;  %v3686_v59 = vand.u32 4294901760, %v3685_v42  ;;  %v19284_v6 = vand.u32 4294901760, %v437_v24  ;;  %v19297_v42 = vsub.f32 %v434_v20, %v19267_v27  ;;  %v296_v27 = vld [vmem:[%s18725_s12 + $0xd0] sm:$0xff] }
  0xb0   : > { %12713 = vmatprep.mubr.f32.mxu0 %v943_v26  ;;  %25665 = vst [vmem:[#allocation77_spill] sm:$0xff] %v19294_v57  ;;  %25667 = vst [vmem:[#allocation81_spill] sm:$0xff] %v19303_v34  ;;  %v1200_v9 = vand.u32 4294901760, %v1199_v16  ;;  %v25668_v8 = vand.u32 4294901760, %v25664_v50  ;;  %v976_v20 = vand.u32 4294901760, %v975_v30  ;;  %v24859_v44 = vand.u32 4294901760, %v18781_v33 }
  0xb1   : > { %13288 = vmatmul.mubr.f32.gmra.mrb[32].mxu1 %v932_v10  ;;  %v15007_v18 = vpack.c.bf16 %v1312_v35, %v1305_v39  ;;  %25663 = vst [vmem:[#allocation76_spill] sm:$0xff] %v19284_v6  ;;  %v1192_v10 = vsub.f32 %v25660_v41, %v24821_v61  ;;  %25666 = vst [vmem:[#allocation79_spill] sm:$0xff] %v19297_v42  ;;  %v15199_v39 = vpack.c.bf16 %v3686_v59, %v3679_v45  ;;  %v295_v61 = vld [vmem:[%s18725_s12 + $0xc8] sm:$0xff] }
  0xb2   : > { %13289 = vmatprep.mubr.f32.mxu1 %v943_v26  ;;  %v3566_v35 = vsub.f32 %v25662_v38, %v24829_v43  ;;  %v3573_v7 = vsub.f32 %v25664_v50, %v25668_v8  ;;  %v19309_v59 = vsub.f32 %v437_v24, %v19284_v6  ;;  %v19316_v16 = vand.u32 4294901760, %v19297_v42  ;;  %v25671_v8 = vld [vmem:[#allocation83_spill] sm:$0xff] }
  0xb3   : > { %12714 = vmatmul.mubr.f32.gmra.mrb[34].mxu0 %v943_v26  ;;  %15008 = vmatprep.subr.bf16.mxu0 %v15007_v18  ;;  %v1193_v13 = vand.u32 4294901760, %v1192_v10  ;;  %v986_v10 = vsub.f32 %v19274_v47, %v19294_v57  ;;  %v24834_v30 = vand.u32 4294901760, %v25671_v8  ;;  %v19321_v24 = vsub.f32 %v440_v52, %v19303_v34 }
  0xb4   : > { %12715 = vmatprep.mubr.f32.mxu0 %v954_v36  ;;  %15200 = vmatprep.subr.bf16.mxu1 %v15199_v39  ;;  %v3567_v18 = vand.u32 4294901760, %v3566_v35  ;;  %25669 = vst [vmem:[#allocation82_spill] sm:$0xff] %v19309_v59  ;;  %v3574_v43 = vand.u32 4294901760, %v3573_v7  ;;  %25670 = vst [vmem:[#allocation144_spill] sm:$0xff] %v19316_v16  ;;  %v25672_v39 = vld [vmem:[#allocation85_spill] sm:$0xff]  ;;  %v19334_v52 = vand.u32 4294901760, %v19309_v59  ;;  %v15207_v53 = vpack.c.bf16 %v25683_v54, %v25682_v51 }
  0xb5   : > { %13290 = vmatmul.mubr.f32.gmra.mrb[34].mxu1 %v943_v26  ;;  %v15009_v45 = vpack.c.bf16 %v1200_v9, %v1193_v13  ;;  %v443_v26 = vsel %vm366_vm0, %v295_v61, 0  ;;  %v24839_v35 = vand.u32 4294901760, %v25672_v39  ;;  %v24842_v13 = vand.u32 4294901760, %v18759_v60 }
  0xb6   : > { %13291 = vmatprep.mubr.f32.mxu1 %v954_v36  ;;  %v15201_v7 = vpack.c.bf16 %v3574_v43, %v3567_v18  ;;  %v19324_v9 = vand.u32 4294901760, %v443_v26  ;;  %v446_v61 = vsel %vm366_vm0, %v296_v27, 0  ;;  %v1318_v57 = vsub.f32 %v25671_v8, %v24834_v30  ;;  %25674 = vst [vmem:[#allocation85_spill] sm:$0xff] %v19334_v52  ;;  %v297_v30 = vld [vmem:[%s18725_s12 + $0xd8] sm:$0xff] }
  0xb7   : > { %12716 = vmatmul.mubr.f32.gmra.mrb[36].mxu0 %v954_v36  ;;  %v3692_v43 = vsub.f32 %v18759_v60, %v24842_v13  ;;  %v24853_v18 = vand.u32 4294901760, %v18761_v15  ;;  %v987_v27 = vand.u32 4294901760, %v986_v10  ;;  %v19346_v6 = vand.u32 4294901760, %v446_v61 }
  0xb8   : > { %12717 = vmatprep.mubr.f32.mxu0 %v965_v22  ;;  %15010 = vmatpush3.bf16.xpose.msra.mxu0 %v15009_v45  ;;  %25673 = vst [vmem:[#allocation83_spill] sm:$0xff] %v19324_v9  ;;  %v997_v45 = vsub.f32 %v19297_v42, %v19316_v16  ;;  %v1319_v47 = vand.u32 4294901760, %v1318_v57  ;;  %v19352_v10 = vsub.f32 %v443_v26, %v19324_v9  ;;  %v24856_v57 = vand.u32 4294901760, %v18763_v17  ;;  %v298_v26 = vld [vmem:[%s18725_s12 + $0xe0] sm:$0xff]  ;;  %v25681_v9 = vld [vmem:[#allocation10_spill] sm:$0xff] }
  0xb9   : > { %13292 = vmatmul.mubr.f32.gmra.mrb[36].mxu1 %v954_v36  ;;  %v1325_v36 = vsub.f32 %v25672_v39, %v24839_v35  ;;  %v19344_v35 = vand.u32 4294901760, %v19321_v24  ;;  %25676 = vst [vmem:[#allocation146_spill] sm:$0xff] %v19346_v6  ;;  %v3699_v13 = vsub.f32 %v18761_v15, %v24853_v18  ;;  %v1008_v18 = vsub.f32 %v19309_v59, %v19334_v52 }
  0xba   : > { %13293 = vmatprep.mubr.f32.mxu1 %v965_v22  ;;  %15202 = vmatpush3.bf16.xpose.msra.mxu1 %v15201_v7  ;;  %v3693_v7 = vand.u32 4294901760, %v3692_v43  ;;  %v25677_v43 = vld [vmem:[#allocation90_spill] sm:$0xff]  ;;  %v998_v56 = vand.u32 4294901760, %v997_v45 }
  0xbb   : > { %12718 = vmatmul.mubr.f32.gmra.mrb[38].mxu0 %v965_v22  ;;  %v1326_v34 = vand.u32 4294901760, %v1325_v36  ;;  %25675 = vst [vmem:[#allocation145_spill] sm:$0xff] %v19344_v35  ;;  %v449_v36 = vsel %vm366_vm0, %v297_v30, 0  ;;  %v3700_v42 = vand.u32 4294901760, %v3699_v13  ;;  %v24860_v1 = vand.u32 4294901760, %v25677_v43 }
  0xbc   : > { %12719 = vmatprep.mubr.f32.mxu0 %v976_v20  ;;  %v3580_v13 = vsub.f32 %v18781_v33, %v24859_v44  ;;  %v19377_v52 = vand.u32 4294901760, %v449_v36 }
  0xbd   : > { %13294 = vmatmul.mubr.f32.gmra.mrb[38].mxu1 %v965_v22  ;;  %v15011_v16 = vpack.c.bf16 %v1326_v34, %v1319_v47  ;;  %v24861_v22 = vand.u32 4294901760, %v18770_v3  ;;  %v1206_v34 = vsub.f32 %v18763_v17, %v24856_v57  ;;  %v15203_v30 = vpack.c.bf16 %v3700_v42, %v3693_v7 }
  0xbe   : > { %13295 = vmatprep.mubr.f32.mxu1 %v976_v20  ;;  %v3587_v45 = vsub.f32 %v25677_v43, %v24860_v1  ;;  %25678 = vst [vmem:[#allocation90_spill] sm:$0xff] %v19377_v52  ;;  %v452_v42 = vsel %vm366_vm0, %v298_v26, 0  ;;  %v3581_v7 = vand.u32 4294901760, %v3580_v13  ;;  %v1009_v1 = vand.u32 4294901760, %v1008_v18 }
  0xbf   : > { %12720 = vmatmul.mubr.f32.gmra.mrb[40].mxu0 %v976_v20  ;;  %15012 = vmatprep.subr.bf16.mxu0 %v15011_v16  ;;  %v1213_v47 = vsub.f32 %v18770_v3, %v24861_v22  ;;  %v19375_v16 = vsub.f32 %v446_v61, %v19346_v6  ;;  %v1207_v57 = vand.u32 4294901760, %v1206_v34  ;;  %v1019_v61 = vsub.f32 %v19321_v24, %v19344_v35  ;;  %v25680_v6 = vld [vmem:[#allocation9_spill] sm:$0xff]  ;;  %v25702_v35 = vld [vmem:[#allocation23_spill] sm:$0xff] }
  0xc0   : > { %12721 = vmatprep.mubr.f32.mxu0 %v987_v27  ;;  %15204 = vmatprep.subr.bf16.mxu1 %v15203_v30  ;;  %v3588_v44 = vand.u32 4294901760, %v3587_v45  ;;  %v15015_v34 = vpack.c.bf16 %v25681_v9, %v25680_v6  ;;  %v19393_v30 = vsub.f32 %v449_v36, %v19377_v52  ;;  %v19395_v18 = vand.u32 4294901760, %v452_v42  ;;  %v300_v45 = vld [vmem:[%s18725_s12 + $0xf0] sm:$0xff] }
  0xc1   : > { %13296 = vmatmul.mubr.f32.gmra.mrb[40].mxu1 %v976_v20  ;;  %v1214_v59 = vand.u32 4294901760, %v1213_v47  ;;  %v19380_v20 = vand.u32 4294901760, %v19352_v10  ;;  %v19390_v26 = vand.u32 4294901760, %v19375_v16 }
  0xc2   : > { %13297 = vmatprep.mubr.f32.mxu1 %v987_v27  ;;  %v15205_v47 = vpack.c.bf16 %v3588_v44, %v3581_v7  ;;  %25685 = vst [vmem:[#allocation10_spill] sm:$0xff] %v19395_v18  ;;  %v1020_v44 = vand.u32 4294901760, %v1019_v61  ;;  %v19404_v13 = vand.u32 4294901760, %v19393_v30 }
  0xc3   : > { %12722 = vmatmul.mubr.f32.gmra.mrb[42].mxu0 %v987_v27  ;;  %25679 = vst [vmem:[#allocation147_spill] sm:$0xff] %v19380_v20  ;;  %v15013_v22 = vpack.c.bf16 %v1214_v59, %v1207_v57  ;;  %25684 = vst [vmem:[#allocation9_spill] sm:$0xff] %v19390_v26  ;;  %v299_v59 = vld [vmem:[%s18725_s12 + $0xe8] sm:$0xff]  ;;  %v1041_v36 = vsub.f32 %v19375_v16, %v19390_v26 }
  0xc4   : > { %12723 = vmatprep.mubr.f32.mxu0 %v998_v56  ;;  %15206 = vmatpush3.bf16.xpose.msra.mxu1 %v15205_v47  ;;  %v455_v57 = vsel %vm366_vm0, %v299_v59, 0  ;;  %25686 = vst [vmem:[#allocation11_spill] sm:$0xff] %v19404_v13 }
  0xc5   : > { %13298 = vmatmul.mubr.f32.gmra.mrb[42].mxu1 %v987_v27  ;;  %15014 = vmatpush3.bf16.xpose.msra.mxu0 %v15013_v22  ;;  %v1030_v27 = vsub.f32 %v19352_v10, %v19380_v20  ;;  %v19407_v22 = vsub.f32 %v452_v42, %v19395_v18  ;;  %v301_v42 = vld [vmem:[%s18725_s12 + $0xf8] sm:$0xff] }
  0xc6   : > { %13299 = vmatprep.mubr.f32.mxu1 %v998_v56  ;;  %15016 = vmatprep.subr.bf16.mxu0 %v15015_v34  ;;  %v19416_v34 = vand.u32 4294901760, %v455_v57 }
  0xc7   : > { %12724 = vmatmul.mubr.f32.gmra.mrb[44].mxu0 %v998_v56  ;;  %15208 = vmatprep.subr.bf16.mxu1 %v15207_v53  ;;  %v1031_v7 = vand.u32 4294901760, %v1030_v27  ;;  %v458_v27 = vsel %vm366_vm0, %v300_v45, 0  ;;  %v19433_v47 = vand.u32 4294901760, %v19407_v22  ;;  %v1042_v45 = vand.u32 4294901760, %v1041_v36 }
  0xc8   : > { %12725 = vmatprep.mubr.f32.mxu0 %v1009_v1  ;;  %25687 = vst [vmem:[#allocation13_spill] sm:$0xff] %v19416_v34  ;;  %v19440_v59 = vsub.f32 %v455_v57, %v19416_v34  ;;  %v19442_v61 = vand.u32 4294901760, %v458_v27  ;;  %v461_v53 = vsel %vm366_vm0, %v301_v42, 0 }
  0xc9   : > { %13300 = vmatmul.mubr.f32.gmra.mrb[44].mxu1 %v998_v56  ;;  %25688 = vst [vmem:[#allocation148_spill] sm:$0xff] %v19433_v47  ;;  %v1052_v56 = vsub.f32 %v19393_v30, %v19404_v13  ;;  %v1063_v57 = vsub.f32 %v19407_v22, %v19433_v47  ;;  %v19459_v26 = vand.u32 4294901760, %v461_v53 }
  0xca   : > { %13301 = vmatprep.mubr.f32.mxu1 %v1009_v1  ;;  %25689 = vst [vmem:[#allocation149_spill] sm:$0xff] %v19442_v61  ;;  %v19457_v42 = vsub.f32 %v458_v27, %v19442_v61 }
  0xcb   : > { %12726 = vmatmul.mubr.f32.gmra.mrb[46].mxu0 %v1009_v1  ;;  %25692 = vst [vmem:[#allocation152_spill] sm:$0xff] %v19459_v26  ;;  %v1064_v36 = vand.u32 4294901760, %v1063_v57  ;;  %v25699_v57 = vld [vmem:[#allocation22_spill] sm:$0xff] }
  0xcc   : > { %12727 = vmatprep.mubr.f32.mxu0 %v1020_v44  ;;  %25691 = vst [vmem:[#allocation151_spill] sm:$0xff] %v19457_v42  ;;  %v19464_v47 = vand.u32 4294901760, %v19457_v42 }
  0xcd   : > { %13302 = vmatmul.mubr.f32.gmra.mrb[46].mxu1 %v1009_v1  ;;  %v1053_v1 = vand.u32 4294901760, %v1052_v56  ;;  %v19467_v56 = vsub.f32 %v461_v53, %v19459_v26 }
  0xce   : > { %13303 = vmatprep.mubr.f32.mxu1 %v1020_v44  ;;  %25693 = vst [vmem:[#allocation153_spill] sm:$0xff] %v19464_v47 }
  0xcf   : > { %12728 = vmatmul.mubr.f32.gmra.mrb[48].mxu0 %v1020_v44  ;;  %25694 = vst [vmem:[#allocation154_spill] sm:$0xff] %v19467_v56  ;;  %v19472_v13 = vand.u32 4294901760, %v19467_v56 }
  0xd0   : > { %12729 = vmatprep.mubr.f32.mxu0 %v1031_v7 }
  0xd1   : > { %13304 = vmatmul.mubr.f32.gmra.mrb[48].mxu1 %v1020_v44  ;;  %v19454_v44 = vand.u32 4294901760, %v19440_v59  ;;  %25695 = vst [vmem:[#allocation155_spill] sm:$0xff] %v19472_v13 }
  0xd2   : > { %13305 = vmatprep.mubr.f32.mxu1 %v1031_v7 }
  0xd3   : > { %12730 = vmatmul.mubr.f32.gmra.mrb[50].mxu0 %v1031_v7  ;;  %25690 = vst [vmem:[#allocation150_spill] sm:$0xff] %v19454_v44  ;;  %v1074_v20 = vsub.f32 %v19440_v59, %v19454_v44 }
  0xd4   : > { %12731 = vmatprep.mubr.f32.mxu0 %v1042_v45 }
  0xd5   : > { %13306 = vmatmul.mubr.f32.gmra.mrb[50].mxu1 %v1031_v7  ;;  %v1075_v27 = vand.u32 4294901760, %v1074_v20  ;;  %v1085_v7 = vsub.f32 %v19457_v42, %v19464_v47  ;;  %v25698_v47 = vld [vmem:[#allocation21_spill] sm:$0xff] }
  0xd6   : > { %13307 = vmatprep.mubr.f32.mxu1 %v1042_v45  ;;  %v25704_v42 = vld [vmem:[#allocation93_spill] sm:$0xff] }
  0xd7   : > { %12732 = vmatmul.mubr.f32.gmra.mrb[52].mxu0 %v1042_v45  ;;  %v1086_v53 = vand.u32 4294901760, %v1085_v7  ;;  %v25697_v7 = vld [vmem:[#allocation15_spill] sm:$0xff] }
  0xd8   : > { %12733 = vmatprep.mubr.f32.mxu0 %v1053_v1  ;;  %v15017_v20 = vpack.c.bf16 %v18350_v37, %v25697_v7  ;;  %v25713_v37 = vld [vmem:[#allocation37_spill] sm:$0xff]  ;;  %v25714_v7 = vld [vmem:[#allocation96_spill] sm:$0xff] }
  0xd9   : > { %13308 = vmatmul.mubr.f32.gmra.mrb[52].mxu1 %v1042_v45  ;;  %v1096_v45 = vsub.f32 %v19467_v56, %v19472_v13  ;;  %v25700_v13 = vld [vmem:[#allocation17_spill] sm:$0xff] }
  0xda   : > { %13309 = vmatprep.mubr.f32.mxu1 %v1053_v1 }
  0xdb   : > { %12734 = vmatmul.mubr.f32.gmra.mrb[54].mxu0 %v1053_v1  ;;  %v1097_v44 = vand.u32 4294901760, %v1096_v45  ;;  %v25701_v45 = vld [vmem:[#allocation19_spill] sm:$0xff] }
  0xdc   : > { %12735 = vmatprep.mubr.f32.mxu0 %v1064_v36 }
  0xdd   : > { %13310 = vmatmul.mubr.f32.gmra.mrb[54].mxu1 %v1053_v1  ;;  %v15019_v1 = vpack.c.bf16 %v25699_v57, %v25698_v47  ;;  %v25712_v47 = vld [vmem:[#allocation36_spill] sm:$0xff] }
  0xde   : > { %13311 = vmatprep.mubr.f32.mxu1 %v1064_v36 }
  0xdf   : > { %12736 = vmatmul.mubr.f32.gmra.mrb[56].mxu0 %v1064_v36 }
  0xe0   : > { %12737 = vmatprep.mubr.f32.mxu0 %v1075_v27 }
  0xe1   : > { %13312 = vmatmul.mubr.f32.gmra.mrb[56].mxu1 %v1064_v36  ;;  %v25696_v36 = vld [vmem:[#allocation88_spill] sm:$0xff] }
  0xe2   : > { %13313 = vmatprep.mubr.f32.mxu1 %v1075_v27 }
  0xe3   : > { %12738 = vmatmul.mubr.f32.gmra.mrb[58].mxu0 %v1075_v27 }
  0xe4   : > { %12739 = vmatprep.mubr.f32.mxu0 %v1086_v53 }
  0xe5   : > { %13314 = vmatmul.mubr.f32.gmra.mrb[58].mxu1 %v1075_v27  ;;  %v15209_v27 = vpack.c.bf16 %v25701_v45, %v25700_v13  ;;  %v25706_v45 = vld [vmem:[#allocation27_spill] sm:$0xff]  ;;  %v25707_v13 = vld [vmem:[#allocation28_spill] sm:$0xff] }
  0xe6   : > { %13315 = vmatprep.mubr.f32.mxu1 %v1086_v53  ;;  %v15021_v57 = vpack.c.bf16 %v25707_v13, %v25706_v45  ;;  %v25723_v13 = vld [vmem:[#allocation49_spill] sm:$0xff] }
  0xe7   : > { %12740 = vmatmul.mubr.f32.gmra.mrb[60].mxu0 %v1086_v53  ;;  %v25724_v45 = vld [vmem:[#allocation105_spill] sm:$0xff] }
  0xe8   : > { %12741 = vmatprep.mubr.f32.mxu0 %v1097_v44 }
  0xe9   : > { %13316 = vmatmul.mubr.f32.gmra.mrb[60].mxu1 %v1086_v53  ;;  %v25703_v53 = vld [vmem:[#allocation25_spill] sm:$0xff] }
  0xea   : > { %13317 = vmatprep.mubr.f32.mxu1 %v1097_v44  ;;  %v15211_v56 = vpack.c.bf16 %v25703_v53, %v25702_v35  ;;  %v25708_v53 = vld [vmem:[#allocation33_spill] sm:$0xff] }
  0xeb   : > { %12742 = vmatmul.mubr.f32.gmra.mrb[62].mxu0 %v1097_v44 }
  0xec   : > { %12775 = vmatprep.mubr.f32.mxu0 %v25696_v36 }
  0xed   : > { %13318 = vmatmul.mubr.f32.gmra.mrb[62].mxu1 %v1097_v44  ;;  %v25705_v44 = vld [vmem:[#allocation94_spill] sm:$0xff] }
  0xee   : > { %13351 = vmatprep.mubr.f32.mxu1 %v25696_v36 }
  0xef   : > { %12776 = vmatmul.mubr.f32.vlgmr.msra.gmra.mrb[0].mxu0 %v25696_v36 }
  0xf0   : > { %15018 = vmatpush3.bf16.xpose.msra.mxu0 %v15017_v20  ;;  %12777 = vmatprep.mubr.f32.mxu0 %v25704_v42  ;;  %v25709_v20 = vld [vmem:[#allocation34_spill] sm:$0xff] }
  0xf1   : > { %13352 = vmatmul.mubr.f32.vlgmr.msra.gmra.mrb[0].mxu1 %v25696_v36  ;;  %15020 = vmatprep.subr.bf16.mxu0 %v15019_v1  ;;  %v15023_v35 = vpack.c.bf16 %v25709_v20, %v25708_v53  ;;  %v25710_v36 = vld [vmem:[#allocation30_spill] sm:$0xff]  ;;  %v25711_v1 = vld [vmem:[#allocation31_spill] sm:$0xff] }
  0xf2   : > { %15210 = vmatpush3.bf16.xpose.msra.mxu1 %v15209_v27  ;;  %13353 = vmatprep.mubr.f32.mxu1 %v25704_v42  ;;  %v15213_v27 = vpack.c.bf16 %v25711_v1, %v25710_v36  ;;  %v25716_v1 = vld [vmem:[#allocation38_spill] sm:$0xff]  ;;  %v25717_v36 = vld [vmem:[#allocation40_spill] sm:$0xff] }
  0xf3   : > { %12778 = vmatmul.mubr.f32.gmra.mrb[2].mxu0 %v25704_v42  ;;  %15212 = vmatprep.subr.bf16.mxu1 %v15211_v56  ;;  %v15215_v56 = vpack.c.bf16 %v25713_v37, %v25712_v47  ;;  %v15025_v20 = vpack.c.bf16 %v25717_v36, %v25716_v1  ;;  %v25718_v37 = vld [vmem:[#allocation44_spill] sm:$0xff]  ;;  %v25719_v47 = vld [vmem:[#allocation46_spill] sm:$0xff] }
  0xf4   : > { %12779 = vmatprep.mubr.f32.mxu0 %v25705_v44  ;;  %v15027_v53 = vpack.c.bf16 %v25719_v47, %v25718_v37 }
  0xf5   : > { %13354 = vmatmul.mubr.f32.gmra.mrb[2].mxu1 %v25704_v42  ;;  %v25715_v42 = vld [vmem:[#allocation97_spill] sm:$0xff] }
  0xf6   : > { %13355 = vmatprep.mubr.f32.mxu1 %v25705_v44 }
  0xf7   : > { %12780 = vmatmul.mubr.f32.gmra.mrb[4].mxu0 %v25705_v44 }
  0xf8   : > { %12781 = vmatprep.mubr.f32.mxu0 %v25714_v7  ;;  %15022 = vmatpush3.bf16.xpose.msra.mxu0 %v15021_v57  ;;  %v25720_v57 = vld [vmem:[#allocation42_spill] sm:$0xff] }
  0xf9   : > { %13356 = vmatmul.mubr.f32.gmra.mrb[4].mxu1 %v25705_v44  ;;  %15024 = vmatprep.subr.bf16.mxu0 %v15023_v35  ;;  %v25721_v35 = vld [vmem:[#allocation43_spill] sm:$0xff] }
  0xfa   : > { %13357 = vmatprep.mubr.f32.mxu1 %v25714_v7  ;;  %15214 = vmatpush3.bf16.xpose.msra.mxu1 %v15213_v27  ;;  %v15217_v44 = vpack.c.bf16 %v25721_v35, %v25720_v57  ;;  %v25722_v27 = vld [vmem:[#allocation48_spill] sm:$0xff]  ;;  %v25726_v35 = vld [vmem:[#allocation50_spill] sm:$0xff] }
  0xfb   : > { %12782 = vmatmul.mubr.f32.gmra.mrb[6].mxu0 %v25714_v7  ;;  %15216 = vmatprep.subr.bf16.mxu1 %v15215_v56  ;;  %v15219_v56 = vpack.c.bf16 %v25723_v13, %v25722_v27  ;;  %v25727_v57 = vld [vmem:[#allocation52_spill] sm:$0xff] }
  0xfc   : > { %12783 = vmatprep.mubr.f32.mxu0 %v25715_v42  ;;  %v15029_v47 = vpack.c.bf16 %v25727_v57, %v25726_v35 }
  0xfd   : > { %13358 = vmatmul.mubr.f32.gmra.mrb[6].mxu1 %v25714_v7  ;;  %v25725_v7 = vld [vmem:[#allocation106_spill] sm:$0xff] }
  0xfe   : > { %13359 = vmatprep.mubr.f32.mxu1 %v25715_v42 }
  0xff   : > { %12784 = vmatmul.mubr.f32.gmra.mrb[8].mxu0 %v25715_v42 }
 0x100   : > { %12785 = vmatprep.mubr.f32.mxu0 %v25724_v45  ;;  %15026 = vmatpush3.bf16.xpose.msra.mxu0 %v15025_v20  ;;  %v25728_v20 = vld [vmem:[#allocation109_spill] sm:$0xff] }
 0x101   : > { %13360 = vmatmul.mubr.f32.gmra.mrb[8].mxu1 %v25715_v42  ;;  %15028 = vmatprep.subr.bf16.mxu0 %v15027_v53  ;;  %v25729_v53 = vpack.c.bf16 %v18557_v62, %v18543_v46  ;;  %v25778_v42 = vld [vmem:[#allocation35_spill] sm:$0xff] }
 0x102   : > { %13361 = vmatprep.mubr.f32.mxu1 %v25724_v45  ;;  %15218 = vmatpush3.bf16.xpose.msra.mxu1 %v15217_v44  ;;  %v25730_v44 = vpack.c.bf16 %v18541_v31, %v18539_v28 }
 0x103   : > { %12786 = vmatmul.mubr.f32.gmra.mrb[10].mxu0 %v25724_v45  ;;  %15220 = vmatprep.subr.bf16.mxu1 %v15219_v56  ;;  %v25731_v56 = vpack.c.bf16 %v18565_v58, %v18563_v29 }
 0x104   : > { %12787 = vmatprep.mubr.f32.mxu0 %v25725_v7 }
 0x105   : > { %13362 = vmatmul.mubr.f32.gmra.mrb[10].mxu1 %v25724_v45  ;;  %v25732_v45 = vld [vmem:[#allocation111_spill] sm:$0xff] }
 0x106   : > { %13363 = vmatprep.mubr.f32.mxu1 %v25725_v7 }
 0x107   : > { %12788 = vmatmul.mubr.f32.gmra.mrb[12].mxu0 %v25725_v7 }
 0x108   : > { %12789 = vmatprep.mubr.f32.mxu0 %v25728_v20  ;;  %15030 = vmatpush3.bf16.xpose.msra.mxu0 %v15029_v47  ;;  %v25733_v47 = vld [vmem:[#allocation117_spill] sm:$0xff] }
 0x109   : > { %13364 = vmatmul.mubr.f32.gmra.mrb[12].mxu1 %v25725_v7  ;;  %15032 = vmatprep.subr.bf16.mxu0 %v25729_v53  ;;  %v25734_v53 = vpack.c.bf16 %v18585_v63, %v18577_v32  ;;  %v25738_v7 = vld [vmem:[#allocation119_spill] sm:$0xff] }
 0x10a   : > { %13365 = vmatprep.mubr.f32.mxu1 %v25728_v20  ;;  %15222 = vmatpush3.bf16.xpose.msra.mxu1 %v25730_v44  ;;  %v25735_v44 = vpack.c.bf16 %v25635_v11, %v25634_v25 }
 0x10b   : > { %12790 = vmatmul.mubr.f32.gmra.mrb[14].mxu0 %v25728_v20  ;;  %15224 = vmatprep.subr.bf16.mxu1 %v25731_v56  ;;  %v25736_v56 = vpack.c.bf16 %v25628_v21, %v18600_v4 }
 0x10c   : > { %12791 = vmatprep.mubr.f32.mxu0 %v25732_v45 }
 0x10d   : > { %13366 = vmatmul.mubr.f32.gmra.mrb[14].mxu1 %v25728_v20  ;;  %v25737_v20 = vpack.c.bf16 %v25639_v19, %v25638_v12 }
 0x10e   : > { %13367 = vmatprep.mubr.f32.mxu1 %v25732_v45 }
 0x10f   : > { %12792 = vmatmul.mubr.f32.gmra.mrb[16].mxu0 %v25732_v45 }
 0x110   : > { %12793 = vmatprep.mubr.f32.mxu0 %v25733_v47  ;;  %15034 = vmatpush3.bf16.xpose.msra.mxu0 %v25734_v53  ;;  %v25739_v53 = vld [vmem:[#allocation120_spill] sm:$0xff] }
 0x111   : > { %13368 = vmatmul.mubr.f32.gmra.mrb[16].mxu1 %v25732_v45  ;;  %15036 = vmatprep.subr.bf16.mxu0 %v25735_v44  ;;  %v25740_v44 = vpack.c.bf16 %v25646_v55, %v25644_v0  ;;  %v25744_v45 = vld [vmem:[#allocation123_spill] sm:$0xff] }
 0x112   : > { %13369 = vmatprep.mubr.f32.mxu1 %v25733_v47  ;;  %15226 = vmatpush3.bf16.xpose.msra.mxu1 %v25736_v56  ;;  %v25741_v56 = vpack.c.bf16 %v25655_v48, %v25653_v49 }
 0x113   : > { %12794 = vmatmul.mubr.f32.gmra.mrb[18].mxu0 %v25733_v47  ;;  %15228 = vmatprep.subr.bf16.mxu1 %v25737_v20  ;;  %v25742_v20 = vpack.c.bf16 %v25649_v23, %v25648_v2 }
 0x114   : > { %12795 = vmatprep.mubr.f32.mxu0 %v25738_v7 }
 0x115   : > { %13370 = vmatmul.mubr.f32.gmra.mrb[18].mxu1 %v25733_v47  ;;  %v25743_v47 = vpack.c.bf16 %v25657_v40, %v25656_v5 }
 0x116   : > { %13371 = vmatprep.mubr.f32.mxu1 %v25738_v7 }
 0x117   : > { %12796 = vmatmul.mubr.f32.gmra.mrb[20].mxu0 %v25738_v7 }
 0x118   : > { %12797 = vmatprep.mubr.f32.mxu0 %v25739_v53  ;;  %15038 = vmatpush3.bf16.xpose.msra.mxu0 %v25740_v44  ;;  %v25745_v44 = vld [vmem:[#allocation129_spill] sm:$0xff] }
 0x119   : > { %13372 = vmatmul.mubr.f32.gmra.mrb[20].mxu1 %v25738_v7  ;;  %15040 = vmatprep.subr.bf16.mxu0 %v25741_v56  ;;  %v25746_v56 = vpack.c.bf16 %v25661_v14, %v25660_v41  ;;  %v25750_v7 = vld [vmem:[#allocation130_spill] sm:$0xff] }
 0x11a   : > { %13373 = vmatprep.mubr.f32.mxu1 %v25739_v53  ;;  %15230 = vmatpush3.bf16.xpose.msra.mxu1 %v25742_v20  ;;  %v25747_v20 = vpack.c.bf16 %v25672_v39, %v25671_v8 }
 0x11b   : > { %12798 = vmatmul.mubr.f32.gmra.mrb[22].mxu0 %v25739_v53  ;;  %15232 = vmatprep.subr.bf16.mxu1 %v25743_v47  ;;  %v25748_v47 = vpack.c.bf16 %v25664_v50, %v25662_v38 }
 0x11c   : > { %12799 = vmatprep.mubr.f32.mxu0 %v25744_v45 }
 0x11d   : > { %13374 = vmatmul.mubr.f32.gmra.mrb[22].mxu1 %v25739_v53  ;;  %v25749_v53 = vpack.c.bf16 %v18761_v15, %v18759_v60 }
 0x11e   : > { %13375 = vmatprep.mubr.f32.mxu1 %v25744_v45 }
 0x11f   : > { %12800 = vmatmul.mubr.f32.gmra.mrb[24].mxu0 %v25744_v45 }
 0x120   : > { %12801 = vmatprep.mubr.f32.mxu0 %v25745_v44  ;;  %15042 = vmatpush3.bf16.xpose.msra.mxu0 %v25746_v56  ;;  %v25751_v56 = vld [vmem:[#allocation134_spill] sm:$0xff] }
 0x121   : > { %13376 = vmatmul.mubr.f32.gmra.mrb[24].mxu1 %v25744_v45  ;;  %15044 = vmatprep.subr.bf16.mxu0 %v25747_v20  ;;  %v25752_v20 = vpack.c.bf16 %v18770_v3, %v18763_v17  ;;  %v25756_v45 = vld [vmem:[#allocation136_spill] sm:$0xff] }
 0x122   : > { %13377 = vmatprep.mubr.f32.mxu1 %v25745_v44  ;;  %15234 = vmatpush3.bf16.xpose.msra.mxu1 %v25748_v47  ;;  %v25753_v47 = vld [vmem:[#allocation8_spill] sm:$0xff] }
 0x123   : > { %12802 = vmatmul.mubr.f32.gmra.mrb[26].mxu0 %v25745_v44  ;;  %15236 = vmatprep.subr.bf16.mxu1 %v25749_v53  ;;  %v25754_v53 = vpack.c.bf16 %v25677_v43, %v18781_v33 }
 0x124   : > { %12803 = vmatprep.mubr.f32.mxu0 %v25750_v7 }
 0x125   : > { %13378 = vmatmul.mubr.f32.gmra.mrb[26].mxu1 %v25745_v44  ;;  %v25755_v44 = vld [vmem:[#allocation12_spill] sm:$0xff] }
 0x126   : > { %13379 = vmatprep.mubr.f32.mxu1 %v25750_v7 }
 0x127   : > { %12804 = vmatmul.mubr.f32.gmra.mrb[28].mxu0 %v25750_v7 }
 0x128   : > { %12805 = vmatprep.mubr.f32.mxu0 %v25751_v56  ;;  %15046 = vmatpush3.bf16.xpose.msra.mxu0 %v25752_v20  ;;  %v25757_v20 = vld [vmem:[#allocation139_spill] sm:$0xff] }
 0x129   : > { %13380 = vmatmul.mubr.f32.gmra.mrb[28].mxu1 %v25750_v7  ;;  %15048 = vmatprep.subr.bf16.mxu0 %v25753_v47  ;;  %v25777_v7 = vld [vmem:[#allocation29_spill] sm:$0xff] }
 0x12a   : > { %13381 = vmatprep.mubr.f32.mxu1 %v25751_v56  ;;  %15238 = vmatpush3.bf16.xpose.msra.mxu1 %v25754_v53  ;;  %v25758_v53 = vld [vmem:[#allocation61_spill] sm:$0xff] }
 0x12b   : > { %12806 = vmatmul.mubr.f32.gmra.mrb[30].mxu0 %v25751_v56  ;;  %15240 = vmatprep.subr.bf16.mxu1 %v25755_v44 }
 0x12c   : > { %12807 = vmatprep.mubr.f32.mxu0 %v25756_v45 }
 0x12d   : > { %13382 = vmatmul.mubr.f32.gmra.mrb[30].mxu1 %v25751_v56  ;;  %v25759_v56 = vld [vmem:[#allocation63_spill] sm:$0xff] }
 0x12e   : > { %13383 = vmatprep.mubr.f32.mxu1 %v25756_v45 }
 0x12f   : > { %12808 = vmatmul.mubr.f32.gmra.mrb[32].mxu0 %v25756_v45 }
 0x130   : > { %12809 = vmatprep.mubr.f32.mxu0 %v25757_v20 }
 0x131   : > { %13384 = vmatmul.mubr.f32.gmra.mrb[32].mxu1 %v25756_v45  ;;  %v25760_v45 = vld [vmem:[#allocation64_spill] sm:$0xff] }
 0x132   : > { %13385 = vmatprep.mubr.f32.mxu1 %v25757_v20 }
 0x133   : > { %12810 = vmatmul.mubr.f32.gmra.mrb[34].mxu0 %v25757_v20 }
 0x134   : > { %12811 = vmatprep.mubr.f32.mxu0 %v25758_v53 }
 0x135   : > { %13386 = vmatmul.mubr.f32.gmra.mrb[34].mxu1 %v25757_v20  ;;  %v25761_v20 = vld [vmem:[#allocation71_spill] sm:$0xff] }
 0x136   : > { %13387 = vmatprep.mubr.f32.mxu1 %v25758_v53 }
 0x137   : > { %12812 = vmatmul.mubr.f32.gmra.mrb[36].mxu0 %v25758_v53 }
 0x138   : > { %12813 = vmatprep.mubr.f32.mxu0 %v25759_v56 }
 0x139   : > { %13388 = vmatmul.mubr.f32.gmra.mrb[36].mxu1 %v25758_v53  ;;  %v25762_v53 = vld [vmem:[#allocation73_spill] sm:$0xff] }
 0x13a   : > { %13389 = vmatprep.mubr.f32.mxu1 %v25759_v56 }
 0x13b   : > { %12814 = vmatmul.mubr.f32.gmra.mrb[38].mxu0 %v25759_v56 }
 0x13c   : > { %12815 = vmatprep.mubr.f32.mxu0 %v25760_v45 }
 0x13d   : > { %13390 = vmatmul.mubr.f32.gmra.mrb[38].mxu1 %v25759_v56  ;;  %v25763_v56 = vld [vmem:[#allocation76_spill] sm:$0xff] }
 0x13e   : > { %13391 = vmatprep.mubr.f32.mxu1 %v25760_v45 }
 0x13f   : > { %12816 = vmatmul.mubr.f32.gmra.mrb[40].mxu0 %v25760_v45 }
 0x140   : > { %12817 = vmatprep.mubr.f32.mxu0 %v25761_v20 }
 0x141   : > { %13392 = vmatmul.mubr.f32.gmra.mrb[40].mxu1 %v25760_v45  ;;  %v25764_v45 = vld [vmem:[#allocation81_spill] sm:$0xff] }
 0x142   : > { %13393 = vmatprep.mubr.f32.mxu1 %v25761_v20 }
 0x143   : > { %12818 = vmatmul.mubr.f32.gmra.mrb[42].mxu0 %v25761_v20 }
 0x144   : > { %12819 = vmatprep.mubr.f32.mxu0 %v25762_v53 }
 0x145   : > { %13394 = vmatmul.mubr.f32.gmra.mrb[42].mxu1 %v25761_v20  ;;  %v25765_v20 = vld [vmem:[#allocation83_spill] sm:$0xff] }
 0x146   : > { %13395 = vmatprep.mubr.f32.mxu1 %v25762_v53 }
 0x147   : > { %12820 = vmatmul.mubr.f32.gmra.mrb[44].mxu0 %v25762_v53 }
 0x148   : > { %12821 = vmatprep.mubr.f32.mxu0 %v25763_v56 }
 0x149   : > { %13396 = vmatmul.mubr.f32.gmra.mrb[44].mxu1 %v25762_v53  ;;  %v25766_v53 = vld [vmem:[#allocation146_spill] sm:$0xff] }
 0x14a   : > { %13397 = vmatprep.mubr.f32.mxu1 %v25763_v56 }
 0x14b   : > { %12822 = vmatmul.mubr.f32.gmra.mrb[46].mxu0 %v25763_v56 }
 0x14c   : > { %12823 = vmatprep.mubr.f32.mxu0 %v25764_v45 }
 0x14d   : > { %13398 = vmatmul.mubr.f32.gmra.mrb[46].mxu1 %v25763_v56  ;;  %v25776_v56 = vld [vmem:[#allocation32_spill] sm:$0xff] }
 0x14e   : > { %13399 = vmatprep.mubr.f32.mxu1 %v25764_v45 }
 0x14f   : > { %12824 = vmatmul.mubr.f32.gmra.mrb[48].mxu0 %v25764_v45 }
 0x150   : > { %12825 = vmatprep.mubr.f32.mxu0 %v25765_v20 }
 0x151   : > { %13400 = vmatmul.mubr.f32.gmra.mrb[48].mxu1 %v25764_v45  ;;  %v25774_v45 = vld [vmem:[#allocation100_spill] sm:$0xff] }
 0x152   : > { %13401 = vmatprep.mubr.f32.mxu1 %v25765_v20 }
 0x153   : > { %12826 = vmatmul.mubr.f32.gmra.mrb[50].mxu0 %v25765_v20 }
 0x154   : > { %12827 = vmatprep.mubr.f32.mxu0 %v25766_v53 }
 0x155   : > { %13402 = vmatmul.mubr.f32.gmra.mrb[50].mxu1 %v25765_v20  ;;  %v25772_v20 = vld [vmem:[#allocation24_spill] sm:$0xff] }
 0x156   : > { %13403 = vmatprep.mubr.f32.mxu1 %v25766_v53 }
 0x157   : > { %12828 = vmatmul.mubr.f32.gmra.mrb[52].mxu0 %v25766_v53 }
 0x158   : > { %12829 = vmatprep.mubr.f32.mxu0 %v19377_v52 }
 0x159   : > { %13404 = vmatmul.mubr.f32.gmra.mrb[52].mxu1 %v25766_v53  ;;  %v25770_v53 = vld [vmem:[#allocation20_spill] sm:$0xff] }
 0x15a   : > { %13405 = vmatprep.mubr.f32.mxu1 %v19377_v52 }
 0x15b   : > { %12830 = vmatmul.mubr.f32.gmra.mrb[54].mxu0 %v19377_v52 }
 0x15c   : > { %12831 = vmatprep.mubr.f32.mxu0 %v19395_v18 }
 0x15d   : > { %13406 = vmatmul.mubr.f32.gmra.mrb[54].mxu1 %v19377_v52  ;;  %v25769_v52 = vld [vmem:[#allocation95_spill] sm:$0xff] }
 0x15e   : > { %13407 = vmatprep.mubr.f32.mxu1 %v19395_v18 }
 0x15f   : > { %12832 = vmatmul.mubr.f32.gmra.mrb[56].mxu0 %v19395_v18 }
 0x160   : > { %12833 = vmatprep.mubr.f32.mxu0 %v19416_v34 }
 0x161   : > { %13408 = vmatmul.mubr.f32.gmra.mrb[56].mxu1 %v19395_v18  ;;  %v25767_v18 = vld [vmem:[#allocation91_spill] sm:$0xff] }
 0x162   : > { %13409 = vmatprep.mubr.f32.mxu1 %v19416_v34 }
 0x163   : > { %12834 = vmatmul.mubr.f32.gmra.mrb[58].mxu0 %v19416_v34 }
 0x164   : > { %12835 = vmatprep.mubr.f32.mxu0 %v19442_v61 }
 0x165   : > { %13410 = vmatmul.mubr.f32.gmra.mrb[58].mxu1 %v19416_v34  ;;  %v25768_v34 = vld [vmem:[#allocation14_spill] sm:$0xff] }
 0x166   : > { %13411 = vmatprep.mubr.f32.mxu1 %v19442_v61 }
 0x167   : > { %12836 = vmatmul.mubr.f32.gmra.mrb[60].mxu0 %v19442_v61 }
 0x168   : > { %12837 = vmatprep.mubr.f32.mxu0 %v19459_v26 }
 0x169   : > { %13412 = vmatmul.mubr.f32.gmra.mrb[60].mxu1 %v19442_v61  ;;  %v25771_v61 = vld [vmem:[#allocation18_spill] sm:$0xff] }
 0x16a   : > { %13413 = vmatprep.mubr.f32.mxu1 %v19459_v26 }
 0x16b   : > { %12838 = vmatmul.mubr.f32.gmra.mrb[62].mxu0 %v19459_v26 }
 0x16c   : > { %12871 = vmatprep.mubr.f32.mxu0 %v25767_v18 }
 0x16d   : > { %13414 = vmatmul.mubr.f32.gmra.mrb[62].mxu1 %v19459_v26  ;;  %v25773_v26 = vld [vmem:[#allocation98_spill] sm:$0xff] }
 0x16e   : > { %13447 = vmatprep.mubr.f32.mxu1 %v25767_v18 }
 0x16f   : > { %12872 = vmatmul.mubr.f32.vlgmr.msra.gmra.mrb[0].mxu0 %v25767_v18 }
 0x170   : > { %15050 = vmatpush3.bf16.xpose.msra.mxu0 %v25768_v34  ;;  %12873 = vmatprep.mubr.f32.mxu0 %v25769_v52 }
 0x171   : > { %13448 = vmatmul.mubr.f32.vlgmr.msra.gmra.mrb[0].mxu1 %v25767_v18  ;;  %15052 = vmatprep.subr.bf16.mxu0 %v25770_v53  ;;  %v25775_v18 = vld [vmem:[#allocation26_spill] sm:$0xff]  ;;  %v25814_v53 = vld [vmem:[#allocation137_spill] sm:$0xff] }
 0x172   : > { %15242 = vmatpush3.bf16.xpose.msra.mxu1 %v25771_v61  ;;  %13449 = vmatprep.mubr.f32.mxu1 %v25769_v52 }
 0x173   : > { %12874 = vmatmul.mubr.f32.gmra.mrb[2].mxu0 %v25769_v52  ;;  %15244 = vmatprep.subr.bf16.mxu1 %v25772_v20  ;;  %v25810_v20 = vand.u32 4294901760, %v25680_v6  ;;  %v25816_v6 = vld [vmem:[#allocation89_spill] sm:$0xff] }
 0x174   : > { %12875 = vmatprep.mubr.f32.mxu0 %v25773_v26 }
 0x175   : > { %13450 = vmatmul.mubr.f32.gmra.mrb[2].mxu1 %v25769_v52  ;;  %v25779_v52 = vld [vmem:[#allocation101_spill] sm:$0xff] }
 0x176   : > { %13451 = vmatprep.mubr.f32.mxu1 %v25773_v26 }
 0x177   : > { %12876 = vmatmul.mubr.f32.gmra.mrb[4].mxu0 %v25773_v26 }
 0x178   : > { %12877 = vmatprep.mubr.f32.mxu0 %v25774_v45  ;;  %15054 = vmatpush3.bf16.xpose.msra.mxu0 %v25775_v18  ;;  %v25780_v18 = vld [vmem:[#allocation107_spill] sm:$0xff] }
 0x179   : > { %13452 = vmatmul.mubr.f32.gmra.mrb[4].mxu1 %v25773_v26  ;;  %15056 = vmatprep.subr.bf16.mxu0 %v25776_v56  ;;  %v25781_v26 = vld [vmem:[#allocation39_spill] sm:$0xff]  ;;  %v25782_v56 = vld [vmem:[#allocation45_spill] sm:$0xff] }
 0x17a   : > { %13453 = vmatprep.mubr.f32.mxu1 %v25774_v45  ;;  %15246 = vmatpush3.bf16.xpose.msra.mxu1 %v25777_v7  ;;  %v25783_v7 = vld [vmem:[#allocation41_spill] sm:$0xff] }
 0x17b   : > { %12878 = vmatmul.mubr.f32.gmra.mrb[6].mxu0 %v25774_v45  ;;  %15248 = vmatprep.subr.bf16.mxu1 %v25778_v42  ;;  %v25784_v42 = vld [vmem:[#allocation47_spill] sm:$0xff] }
 0x17c   : > { %12879 = vmatprep.mubr.f32.mxu0 %v25779_v52 }
 0x17d   : > { %13454 = vmatmul.mubr.f32.gmra.mrb[6].mxu1 %v25774_v45  ;;  %v25785_v45 = vld [vmem:[#allocation108_spill] sm:$0xff] }
 0x17e   : > { %13455 = vmatprep.mubr.f32.mxu1 %v25779_v52 }
 0x17f   : > { %12880 = vmatmul.mubr.f32.gmra.mrb[8].mxu0 %v25779_v52 }
 0x180   : > { %12881 = vmatprep.mubr.f32.mxu0 %v25780_v18  ;;  %15058 = vmatpush3.bf16.xpose.msra.mxu0 %v25781_v26  ;;  %v25786_v26 = vld [vmem:[#allocation113_spill] sm:$0xff] }
 0x181   : > { %13456 = vmatmul.mubr.f32.gmra.mrb[8].mxu1 %v25779_v52  ;;  %15060 = vmatprep.subr.bf16.mxu0 %v25782_v56  ;;  %v25787_v52 = vld [vmem:[#allocation51_spill] sm:$0xff]  ;;  %v25788_v56 = vld [vmem:[#allocation54_spill] sm:$0xff] }
 0x182   : > { %13457 = vmatprep.mubr.f32.mxu1 %v25780_v18  ;;  %15250 = vmatpush3.bf16.xpose.msra.mxu1 %v25783_v7  ;;  %v25789_v7 = vld [vmem:[#allocation53_spill] sm:$0xff] }
 0x183   : > { %12882 = vmatmul.mubr.f32.gmra.mrb[10].mxu0 %v25780_v18  ;;  %15252 = vmatprep.subr.bf16.mxu1 %v25784_v42  ;;  %v25790_v42 = vld [vmem:[#allocation55_spill] sm:$0xff] }
 0x184   : > { %12883 = vmatprep.mubr.f32.mxu0 %v25785_v45 }
 0x185   : > { %13458 = vmatmul.mubr.f32.gmra.mrb[10].mxu1 %v25780_v18  ;;  %v25791_v18 = vld [vmem:[#allocation114_spill] sm:$0xff] }
 0x186   : > { %13459 = vmatprep.mubr.f32.mxu1 %v25785_v45 }
 0x187   : > { %12884 = vmatmul.mubr.f32.gmra.mrb[12].mxu0 %v25785_v45 }
 0x188   : > { %12885 = vmatprep.mubr.f32.mxu0 %v25786_v26  ;;  %15062 = vmatpush3.bf16.xpose.msra.mxu0 %v25787_v52  ;;  %v25792_v52 = vld [vmem:[#allocation118_spill] sm:$0xff] }
 0x189   : > { %13460 = vmatmul.mubr.f32.gmra.mrb[12].mxu1 %v25785_v45  ;;  %15064 = vmatprep.subr.bf16.mxu0 %v25788_v56  ;;  %v25793_v45 = vld [vmem:[#allocation56_spill] sm:$0xff] }
 0x18a   : > { %13461 = vmatprep.mubr.f32.mxu1 %v25786_v26  ;;  %15254 = vmatpush3.bf16.xpose.msra.mxu1 %v25789_v7  ;;  %v25794_v56 = vld [vmem:[#allocation60_spill] sm:$0xff]  ;;  %v25795_v7 = vld [vmem:[#allocation57_spill] sm:$0xff] }
 0x18b   : > { %12886 = vmatmul.mubr.f32.gmra.mrb[14].mxu0 %v25786_v26  ;;  %15256 = vmatprep.subr.bf16.mxu1 %v25790_v42  ;;  %v25796_v42 = vld [vmem:[#allocation62_spill] sm:$0xff] }
 0x18c   : > { %12887 = vmatprep.mubr.f32.mxu0 %v25791_v18 }
 0x18d   : > { %13462 = vmatmul.mubr.f32.gmra.mrb[14].mxu1 %v25786_v26  ;;  %v25797_v26 = vld [vmem:[#allocation122_spill] sm:$0xff] }
 0x18e   : > { %13463 = vmatprep.mubr.f32.mxu1 %v25791_v18 }
 0x18f   : > { %12888 = vmatmul.mubr.f32.gmra.mrb[16].mxu0 %v25791_v18 }
 0x190   : > { %12889 = vmatprep.mubr.f32.mxu0 %v25792_v52  ;;  %15066 = vmatpush3.bf16.xpose.msra.mxu0 %v25793_v45  ;;  %v25798_v45 = vld [vmem:[#allocation124_spill] sm:$0xff] }
 0x191   : > { %13464 = vmatmul.mubr.f32.gmra.mrb[16].mxu1 %v25791_v18  ;;  %15068 = vmatprep.subr.bf16.mxu0 %v25794_v56  ;;  %v25799_v18 = vld [vmem:[#allocation66_spill] sm:$0xff]  ;;  %v25800_v56 = vld [vmem:[#allocation72_spill] sm:$0xff] }
 0x192   : > { %13465 = vmatprep.mubr.f32.mxu1 %v25792_v52  ;;  %15258 = vmatpush3.bf16.xpose.msra.mxu1 %v25795_v7  ;;  %v25801_v7 = vld [vmem:[#allocation68_spill] sm:$0xff] }
 0x193   : > { %12890 = vmatmul.mubr.f32.gmra.mrb[18].mxu0 %v25792_v52  ;;  %15260 = vmatprep.subr.bf16.mxu1 %v25796_v42  ;;  %v25802_v42 = vld [vmem:[#allocation74_spill] sm:$0xff] }
 0x194   : > { %12891 = vmatprep.mubr.f32.mxu0 %v25797_v26 }
 0x195   : > { %13466 = vmatmul.mubr.f32.gmra.mrb[18].mxu1 %v25792_v52  ;;  %v25803_v52 = vld [vmem:[#allocation126_spill] sm:$0xff] }
 0x196   : > { %13467 = vmatprep.mubr.f32.mxu1 %v25797_v26 }
 0x197   : > { %12892 = vmatmul.mubr.f32.gmra.mrb[20].mxu0 %v25797_v26 }
 0x198   : > { %12893 = vmatprep.mubr.f32.mxu0 %v25798_v45  ;;  %15070 = vmatpush3.bf16.xpose.msra.mxu0 %v25799_v18  ;;  %v25804_v18 = vld [vmem:[#allocation131_spill] sm:$0xff] }
 0x199   : > { %13468 = vmatmul.mubr.f32.gmra.mrb[20].mxu1 %v25797_v26  ;;  %15072 = vmatprep.subr.bf16.mxu0 %v25800_v56  ;;  %v25805_v26 = vld [vmem:[#allocation78_spill] sm:$0xff]  ;;  %v25806_v56 = vld [vmem:[#allocation84_spill] sm:$0xff] }
 0x19a   : > { %13469 = vmatprep.mubr.f32.mxu1 %v25798_v45  ;;  %15262 = vmatpush3.bf16.xpose.msra.mxu1 %v25801_v7  ;;  %v25807_v7 = vld [vmem:[#allocation80_spill] sm:$0xff] }
 0x19b   : > { %12894 = vmatmul.mubr.f32.gmra.mrb[22].mxu0 %v25798_v45  ;;  %15264 = vmatprep.subr.bf16.mxu1 %v25802_v42  ;;  %v25808_v42 = vld [vmem:[#allocation86_spill] sm:$0xff] }
 0x19c   : > { %12895 = vmatprep.mubr.f32.mxu0 %v25803_v52 }
 0x19d   : > { %13470 = vmatmul.mubr.f32.gmra.mrb[22].mxu1 %v25798_v45  ;;  %v25809_v45 = vld [vmem:[#allocation132_spill] sm:$0xff] }
 0x19e   : > { %13471 = vmatprep.mubr.f32.mxu1 %v25803_v52 }
 0x19f   : > { %12896 = vmatmul.mubr.f32.gmra.mrb[24].mxu0 %v25803_v52 }
 0x1a0   : > { %12897 = vmatprep.mubr.f32.mxu0 %v25804_v18  ;;  %15074 = vmatpush3.bf16.xpose.msra.mxu0 %v25805_v26  ;;  %v25811_v26 = vand.u32 4294901760, %v25681_v9  ;;  %v25817_v9 = vld [vmem:[#allocation58_spill] sm:$0xff] }
 0x1a1   : > { %13472 = vmatmul.mubr.f32.gmra.mrb[24].mxu1 %v25803_v52  ;;  %15076 = vmatprep.subr.bf16.mxu0 %v25806_v56  ;;  %v25812_v52 = vand.u32 4294901760, %v25682_v51  ;;  %v25818_v51 = vld [vmem:[#allocation59_spill] sm:$0xff] }
 0x1a2   : > { %13473 = vmatprep.mubr.f32.mxu1 %v25804_v18  ;;  %15266 = vmatpush3.bf16.xpose.msra.mxu1 %v25807_v7  ;;  %v15079_v61 = vpack.c.bf16 %v25811_v26, %v25810_v20  ;;  %v25813_v7 = vand.u32 4294901760, %v25683_v54  ;;  %v25819_v54 = vld [vmem:[#allocation142_spill] sm:$0xff]  ;;  %v25823_v20 = vld [vmem:[#allocation79_spill] sm:$0xff] }
 0x1a3   : > { %12898 = vmatmul.mubr.f32.gmra.mrb[26].mxu0 %v25804_v18  ;;  %15268 = vmatprep.subr.bf16.mxu1 %v25808_v42  ;;  %v25815_v42 = vld [vmem:[#allocation87_spill] sm:$0xff] }
 0x1a4   : > { %12899 = vmatprep.mubr.f32.mxu0 %v25809_v45  ;;  %v15271_v56 = vpack.c.bf16 %v25813_v7, %v25812_v52  ;;  %v25821_v7 = vld [vmem:[#allocation67_spill] sm:$0xff] }
 0x1a5   : > { %13474 = vmatmul.mubr.f32.gmra.mrb[26].mxu1 %v25804_v18  ;;  %v25830_v18 = vld [vmem:[#allocation16_spill] sm:$0xff] }
 0x1a6   : > { %13475 = vmatprep.mubr.f32.mxu1 %v25809_v45  ;;  %v25831_v26 = vand.u32 4294901760, %v25830_v18  ;;  %v25842_v18 = vld [vmem:[#allocation25_spill] sm:$0xff] }
 0x1a7   : > { %12900 = vmatmul.mubr.f32.gmra.mrb[28].mxu0 %v25809_v45 }
 0x1a8   : > { %12901 = vmatprep.mubr.f32.mxu0 %v25814_v53  ;;  %15078 = vmatpush3.bf16.xpose.msra.mxu0 %v25815_v42 }
 0x1a9   : > { %13476 = vmatmul.mubr.f32.gmra.mrb[28].mxu1 %v25809_v45  ;;  %15080 = vmatprep.subr.bf16.mxu0 %v15079_v61  ;;  %v25820_v61 = vld [vmem:[#allocation65_spill] sm:$0xff] }
 0x1aa   : > { %13477 = vmatprep.mubr.f32.mxu1 %v25814_v53  ;;  %15270 = vmatpush3.bf16.xpose.msra.mxu1 %v25816_v6 }
 0x1ab   : > { %12902 = vmatmul.mubr.f32.gmra.mrb[30].mxu0 %v25814_v53  ;;  %15272 = vmatprep.subr.bf16.mxu1 %v15271_v56  ;;  %v25822_v56 = vld [vmem:[#allocation75_spill] sm:$0xff] }
 0x1ac   : > { %12903 = vmatprep.mubr.f32.mxu0 %v25817_v9 }
 0x1ad   : > { %13478 = vmatmul.mubr.f32.gmra.mrb[30].mxu1 %v25814_v53  ;;  %v25824_v53 = vld [vmem:[#allocation82_spill] sm:$0xff] }
 0x1ae   : > { %13479 = vmatprep.mubr.f32.mxu1 %v25817_v9 }
 0x1af   : > { %12904 = vmatmul.mubr.f32.gmra.mrb[32].mxu0 %v25817_v9 }
 0x1b0   : > { %12905 = vmatprep.mubr.f32.mxu0 %v25818_v51 }
 0x1b1   : > { %13480 = vmatmul.mubr.f32.gmra.mrb[32].mxu1 %v25817_v9  ;;  %v25834_v9 = vld [vmem:[#allocation22_spill] sm:$0xff] }
 0x1b2   : > { %13481 = vmatprep.mubr.f32.mxu1 %v25818_v51 }
 0x1b3   : > { %12906 = vmatmul.mubr.f32.gmra.mrb[34].mxu0 %v25818_v51 }
 0x1b4   : > { %12907 = vmatprep.mubr.f32.mxu0 %v25819_v54 }
 0x1b5   : > { %13482 = vmatmul.mubr.f32.gmra.mrb[34].mxu1 %v25818_v51  ;;  %v25835_v51 = vand.u32 4294901760, %v25834_v9 }
 0x1b6   : > { %13483 = vmatprep.mubr.f32.mxu1 %v25819_v54 }
 0x1b7   : > { %12908 = vmatmul.mubr.f32.gmra.mrb[36].mxu0 %v25819_v54 }
 0x1b8   : > { %12909 = vmatprep.mubr.f32.mxu0 %v25820_v61 }
 0x1b9   : > { %13484 = vmatmul.mubr.f32.gmra.mrb[36].mxu1 %v25819_v54 }
 0x1ba   : > { %13485 = vmatprep.mubr.f32.mxu1 %v25820_v61 }
 0x1bb   : > { %12910 = vmatmul.mubr.f32.gmra.mrb[38].mxu0 %v25820_v61 }
 0x1bc   : > { %12911 = vmatprep.mubr.f32.mxu0 %v25821_v7 }
 0x1bd   : > { %13486 = vmatmul.mubr.f32.gmra.mrb[38].mxu1 %v25820_v61  ;;  %v25836_v61 = vld [vmem:[#allocation17_spill] sm:$0xff] }
 0x1be   : > { %13487 = vmatprep.mubr.f32.mxu1 %v25821_v7 }
 0x1bf   : > { %12912 = vmatmul.mubr.f32.gmra.mrb[40].mxu0 %v25821_v7 }
 0x1c0   : > { %12913 = vmatprep.mubr.f32.mxu0 %v25822_v56 }
 0x1c1   : > { %13488 = vmatmul.mubr.f32.gmra.mrb[40].mxu1 %v25821_v7  ;;  %v25837_v7 = vand.u32 4294901760, %v25836_v61 }
 0x1c2   : > { %13489 = vmatprep.mubr.f32.mxu1 %v25822_v56 }
 0x1c3   : > { %12914 = vmatmul.mubr.f32.gmra.mrb[42].mxu0 %v25822_v56 }
 0x1c4   : > { %12915 = vmatprep.mubr.f32.mxu0 %v25823_v20 }
 0x1c5   : > { %13490 = vmatmul.mubr.f32.gmra.mrb[42].mxu1 %v25822_v56  ;;  %v25838_v56 = vld [vmem:[#allocation19_spill] sm:$0xff] }
 0x1c6   : > { %13491 = vmatprep.mubr.f32.mxu1 %v25823_v20 }
 0x1c7   : > { %12916 = vmatmul.mubr.f32.gmra.mrb[44].mxu0 %v25823_v20 }
 0x1c8   : > { %12917 = vmatprep.mubr.f32.mxu0 %v25824_v53 }
 0x1c9   : > { %13492 = vmatmul.mubr.f32.gmra.mrb[44].mxu1 %v25823_v20  ;;  %v25839_v20 = vand.u32 4294901760, %v25838_v56 }
 0x1ca   : > { %13493 = vmatprep.mubr.f32.mxu1 %v25824_v53 }
 0x1cb   : > { %12918 = vmatmul.mubr.f32.gmra.mrb[46].mxu0 %v25824_v53 }
 0x1cc   : > { %12919 = vmatprep.mubr.f32.mxu0 %v19321_v24 }
 0x1cd   : > { %13494 = vmatmul.mubr.f32.gmra.mrb[46].mxu1 %v25824_v53  ;;  %v15273_v53 = vpack.c.bf16 %v25839_v20, %v25837_v7  ;;  %v25852_v20 = vld [vmem:[#allocation34_spill] sm:$0xff] }
 0x1ce   : > { %13495 = vmatprep.mubr.f32.mxu1 %v19321_v24 }
 0x1cf   : > { %12920 = vmatmul.mubr.f32.gmra.mrb[48].mxu0 %v19321_v24 }
 0x1d0   : > { %12921 = vmatprep.mubr.f32.mxu0 %v19352_v10 }
 0x1d1   : > { %13496 = vmatmul.mubr.f32.gmra.mrb[48].mxu1 %v19321_v24  ;;  %v25825_v24 = vld [vmem:[#allocation151_spill] sm:$0xff] }
 0x1d2   : > { %13497 = vmatprep.mubr.f32.mxu1 %v19352_v10 }
 0x1d3   : > { %12922 = vmatmul.mubr.f32.gmra.mrb[50].mxu0 %v19352_v10 }
 0x1d4   : > { %12923 = vmatprep.mubr.f32.mxu0 %v19375_v16 }
 0x1d5   : > { %13498 = vmatmul.mubr.f32.gmra.mrb[50].mxu1 %v19352_v10  ;;  %v25826_v10 = vld [vmem:[#allocation154_spill] sm:$0xff] }
 0x1d6   : > { %13499 = vmatprep.mubr.f32.mxu1 %v19375_v16 }
 0x1d7   : > { %12924 = vmatmul.mubr.f32.gmra.mrb[52].mxu0 %v19375_v16 }
 0x1d8   : > { %12925 = vmatprep.mubr.f32.mxu0 %v19393_v30 }
 0x1d9   : > { %13500 = vmatmul.mubr.f32.gmra.mrb[52].mxu1 %v19375_v16  ;;  %v25827_v16 = vld [vmem:[#allocation92_spill] sm:$0xff] }
 0x1da   : > { %13501 = vmatprep.mubr.f32.mxu1 %v19393_v30 }
 0x1db   : > { %12926 = vmatmul.mubr.f32.gmra.mrb[54].mxu0 %v19393_v30 }
 0x1dc   : > { %12927 = vmatprep.mubr.f32.mxu0 %v19407_v22 }
 0x1dd   : > { %13502 = vmatmul.mubr.f32.gmra.mrb[54].mxu1 %v19393_v30  ;;  %v25828_v30 = vld [vmem:[#allocation15_spill] sm:$0xff] }
 0x1de   : > { %13503 = vmatprep.mubr.f32.mxu1 %v19407_v22 }
 0x1df   : > { %12928 = vmatmul.mubr.f32.gmra.mrb[56].mxu0 %v19407_v22 }
 0x1e0   : > { %12929 = vmatprep.mubr.f32.mxu0 %v19440_v59 }
 0x1e1   : > { %13504 = vmatmul.mubr.f32.gmra.mrb[56].mxu1 %v19407_v22  ;;  %v25829_v22 = vand.u32 4294901760, %v25828_v30 }
 0x1e2   : > { %13505 = vmatprep.mubr.f32.mxu1 %v19440_v59 }
 0x1e3   : > { %12930 = vmatmul.mubr.f32.gmra.mrb[58].mxu0 %v19440_v59  ;;  %v15081_v45 = vpack.c.bf16 %v25831_v26, %v25829_v22  ;;  %v25843_v22 = vand.u32 4294901760, %v25842_v18 }
 0x1e4   : > { %12931 = vmatprep.mubr.f32.mxu0 %v25825_v24 }
 0x1e5   : > { %13506 = vmatmul.mubr.f32.gmra.mrb[58].mxu1 %v19440_v59  ;;  %v25832_v59 = vld [vmem:[#allocation21_spill] sm:$0xff] }
 0x1e6   : > { %13507 = vmatprep.mubr.f32.mxu1 %v25825_v24  ;;  %v25833_v52 = vand.u32 4294901760, %v25832_v59  ;;  %v25845_v59 = vld [vmem:[#allocation102_spill] sm:$0xff] }
 0x1e7   : > { %12932 = vmatmul.mubr.f32.gmra.mrb[60].mxu0 %v25825_v24 }
 0x1e8   : > { %12933 = vmatprep.mubr.f32.mxu0 %v25826_v10  ;;  %v15083_v54 = vpack.c.bf16 %v25835_v51, %v25833_v52  ;;  %v25846_v52 = vld [vmem:[#allocation27_spill] sm:$0xff]  ;;  %v25848_v51 = vld [vmem:[#allocation28_spill] sm:$0xff] }
 0x1e9   : > { %13508 = vmatmul.mubr.f32.gmra.mrb[60].mxu1 %v25825_v24  ;;  %v25840_v24 = vld [vmem:[#allocation23_spill] sm:$0xff]  ;;  %v25847_v9 = vand.u32 4294901760, %v25846_v52  ;;  %v25849_v61 = vand.u32 4294901760, %v25848_v51  ;;  %v25860_v51 = vld [vmem:[#allocation37_spill] sm:$0xff] }
 0x1ea   : > { %13509 = vmatprep.mubr.f32.mxu1 %v25826_v10  ;;  %v25841_v30 = vand.u32 4294901760, %v25840_v24 }
 0x1eb   : > { %12934 = vmatmul.mubr.f32.gmra.mrb[62].mxu0 %v25826_v10  ;;  %v15085_v7 = vpack.c.bf16 %v25849_v61, %v25847_v9  ;;  %v25861_v9 = vand.u32 4294901760, %v25860_v51  ;;  %v25875_v51 = vld [vmem:[#allocation110_spill] sm:$0xff] }
 0x1ec   : > { %12967 = vmatprep.mubr.f32.mxu0 %v25827_v16  ;;  %v15275_v26 = vpack.c.bf16 %v25843_v22, %v25841_v30  ;;  %v25856_v30 = vld [vmem:[#allocation31_spill] sm:$0xff] }
 0x1ed   : > { %13510 = vmatmul.mubr.f32.gmra.mrb[62].mxu1 %v25826_v10  ;;  %v25844_v10 = vld [vmem:[#allocation99_spill] sm:$0xff]  ;;  %v25857_v18 = vand.u32 4294901760, %v25856_v30 }
 0x1ee   : > { %13543 = vmatprep.mubr.f32.mxu1 %v25827_v16 }
 0x1ef   : > { %12968 = vmatmul.mubr.f32.vlgmr.msra.gmra.mrb[0].mxu0 %v25827_v16 }
 0x1f0   : > { %15082 = vmatpush3.bf16.xpose.msra.mxu0 %v15081_v45  ;;  %12969 = vmatprep.mubr.f32.mxu0 %v25844_v10  ;;  %v25850_v45 = vld [vmem:[#allocation33_spill] sm:$0xff] }
 0x1f1   : > { %13544 = vmatmul.mubr.f32.vlgmr.msra.gmra.mrb[0].mxu1 %v25827_v16  ;;  %15084 = vmatprep.subr.bf16.mxu0 %v15083_v54  ;;  %v25851_v56 = vand.u32 4294901760, %v25850_v45  ;;  %v25853_v16 = vand.u32 4294901760, %v25852_v20  ;;  %v25863_v45 = vld [vmem:[#allocation104_spill] sm:$0xff]  ;;  %v25865_v20 = vand.u32 4294901760, %v25717_v36  ;;  %v25874_v36 = vand.u32 4294901760, %v25723_v13 }
 0x1f2   : > { %15274 = vmatpush3.bf16.xpose.msra.mxu1 %v15273_v53  ;;  %13545 = vmatprep.mubr.f32.mxu1 %v25844_v10  ;;  %v25854_v53 = vld [vmem:[#allocation30_spill] sm:$0xff] }
 0x1f3   : > { %12970 = vmatmul.mubr.f32.gmra.mrb[2].mxu0 %v25844_v10  ;;  %15276 = vmatprep.subr.bf16.mxu1 %v15275_v26  ;;  %v15087_v54 = vpack.c.bf16 %v25853_v16, %v25851_v56  ;;  %v25855_v24 = vand.u32 4294901760, %v25854_v53  ;;  %v25858_v26 = vld [vmem:[#allocation36_spill] sm:$0xff]  ;;  %v25864_v56 = vand.u32 4294901760, %v25716_v1  ;;  %v25867_v53 = vld [vmem:[#allocation46_spill] sm:$0xff]  ;;  %v25873_v1 = vand.u32 4294901760, %v25722_v27 }
 0x1f4   : > { %12971 = vmatprep.mubr.f32.mxu0 %v25845_v59  ;;  %v25859_v52 = vand.u32 4294901760, %v25858_v26  ;;  %v25878_v27 = vand.u32 4294901760, %v25727_v57  ;;  %v25884_v57 = vand.u32 4294901760, %v18565_v58 }
 0x1f5   : > { %13546 = vmatmul.mubr.f32.gmra.mrb[2].mxu1 %v25844_v10  ;;  %v15277_v22 = vpack.c.bf16 %v25857_v18, %v25855_v24  ;;  %v25862_v10 = vld [vmem:[#allocation103_spill] sm:$0xff]  ;;  %v15089_v16 = vpack.c.bf16 %v25865_v20, %v25864_v56  ;;  %v25869_v24 = vld [vmem:[#allocation42_spill] sm:$0xff]  ;;  %v25881_v56 = vand.u32 4294901760, %v18539_v28  ;;  %v25882_v20 = vand.u32 4294901760, %v18541_v31  ;;  %v25886_v28 = vld [vmem:[#allocation116_spill] sm:$0xff] }
 0x1f6   : > { %13547 = vmatprep.mubr.f32.mxu1 %v25845_v59  ;;  %v15279_v61 = vpack.c.bf16 %v25861_v9, %v25859_v52  ;;  %v25870_v30 = vand.u32 4294901760, %v25869_v24  ;;  %v25871_v18 = vld [vmem:[#allocation43_spill] sm:$0xff]  ;;  %v15283_v52 = vpack.c.bf16 %v25874_v36, %v25873_v1  ;;  %v25877_v9 = vand.u32 4294901760, %v25726_v35 }
 0x1f7   : > { %12972 = vmatmul.mubr.f32.gmra.mrb[4].mxu0 %v25845_v59  ;;  %v25883_v35 = vand.u32 4294901760, %v18563_v29  ;;  %v25887_v31 = vand.u32 4294901760, %v18577_v32  ;;  %v25888_v29 = vand.u32 4294901760, %v18585_v63  ;;  %v25892_v24 = vand.u32 4294901760, %v25628_v21 }
 0x1f8   : > { %12973 = vmatprep.mubr.f32.mxu0 %v25862_v10  ;;  %15086 = vmatpush3.bf16.xpose.msra.mxu0 %v15085_v7  ;;  %v25866_v7 = vand.u32 4294901760, %v25718_v37  ;;  %v25876_v37 = vld [vmem:[#allocation112_spill] sm:$0xff]  ;;  %v15093_v13 = vpack.c.bf16 %v25878_v27, %v25877_v9  ;;  %v25893_v32 = vand.u32 4294901760, %v25638_v12  ;;  %v25894_v63 = vand.u32 4294901760, %v25639_v19 }
 0x1f9   : > { %13548 = vmatmul.mubr.f32.gmra.mrb[4].mxu1 %v25845_v59  ;;  %15088 = vmatprep.subr.bf16.mxu0 %v15087_v54  ;;  %v25868_v59 = vand.u32 4294901760, %v25867_v53  ;;  %v25885_v53 = vld [vmem:[#allocation115_spill] sm:$0xff]  ;;  %v15097_v58 = vpack.c.bf16 %v25888_v29, %v25887_v31  ;;  %v25898_v21 = vand.u32 4294901760, %v25646_v55  ;;  %v25899_v12 = vand.u32 4294901760, %v25653_v49  ;;  %v25934_v31 = vld [vmem:[#allocation148_spill] sm:$0xff]  ;;  %v25935_v29 = vld [vmem:[#allocation150_spill] sm:$0xff] }
 0x1fa   : > { %13549 = vmatprep.mubr.f32.mxu1 %v25862_v10  ;;  %15278 = vmatpush3.bf16.xpose.msra.mxu1 %v15277_v22  ;;  %v25872_v22 = vand.u32 4294901760, %v25871_v18  ;;  %v15291_v18 = vpack.c.bf16 %v25894_v63, %v25893_v32  ;;  %v25900_v19 = vand.u32 4294901760, %v25655_v48  ;;  %v25901_v1 = vand.u32 4294901760, %v25648_v2  ;;  %v25906_v48 = vld [vmem:[#allocation128_spill] sm:$0xff]  ;;  %v25943_v32 = vld [vmem:[#allocation94_spill] sm:$0xff] }
 0x1fb   : > { %12974 = vmatmul.mubr.f32.gmra.mrb[6].mxu0 %v25862_v10  ;;  %15280 = vmatprep.subr.bf16.mxu1 %v15279_v61  ;;  %v15091_v54 = vpack.c.bf16 %v25868_v59, %v25866_v7  ;;  %v25879_v61 = vand.u32 4294901760, %v18543_v46  ;;  %v15287_v7 = vpack.c.bf16 %v25884_v57, %v25883_v35  ;;  %v25889_v46 = vand.u32 4294901760, %v25634_v25  ;;  %v25929_v35 = vld [vmem:[#allocation85_spill] sm:$0xff]  ;;  %v25945_v63 = vld [vmem:[#allocation26_spill] sm:$0xff] }
 0x1fc   : > { %12975 = vmatprep.mubr.f32.mxu0 %v25863_v45  ;;  %v15281_v26 = vpack.c.bf16 %v25872_v22, %v25870_v30  ;;  %v25895_v22 = vld [vmem:[#allocation121_spill] sm:$0xff]  ;;  %v25902_v36 = vand.u32 4294901760, %v25649_v23  ;;  %v25904_v55 = vand.u32 4294901760, %v25657_v40  ;;  %v25907_v49 = vand.u32 4294901760, %v25660_v41 }
 0x1fd   : > { %13550 = vmatmul.mubr.f32.gmra.mrb[6].mxu1 %v25862_v10  ;;  %v25880_v10 = vand.u32 4294901760, %v18557_v62  ;;  %v25890_v62 = vand.u32 4294901760, %v25635_v11  ;;  %v25896_v11 = vld [vmem:[#allocation125_spill] sm:$0xff]  ;;  %v25908_v2 = vand.u32 4294901760, %v25661_v14  ;;  %v25910_v40 = vand.u32 4294901760, %v25672_v39 }
 0x1fe   : > { %13551 = vmatprep.mubr.f32.mxu1 %v25863_v45  ;;  %v25911_v27 = vand.u32 4294901760, %v25662_v38  ;;  %v25913_v41 = vand.u32 4294901760, %v18759_v60  ;;  %v25914_v14 = vand.u32 4294901760, %v18761_v15  ;;  %v25916_v38 = vld [vmem:[#allocation135_spill] sm:$0xff]  ;;  %v25918_v60 = vand.u32 4294901760, %v18770_v3  ;;  %v25923_v3 = vld [vmem:[#allocation141_spill] sm:$0xff] }
 0x1ff   : > { %12976 = vmatmul.mubr.f32.gmra.mrb[8].mxu0 %v25863_v45  ;;  %v15099_v59 = vpack.c.bf16 %v25890_v62, %v25889_v46  ;;  %v15105_v23 = vpack.c.bf16 %v25908_v2, %v25907_v49  ;;  %v25920_v39 = vand.u32 4294901760, %v25677_v43  ;;  %v25925_v43 = vld [vmem:[#allocation70_spill] sm:$0xff]  ;;  %v25930_v57 = vld [vmem:[#allocation145_spill] sm:$0xff]  ;;  %v25937_v46 = vld [vmem:[#allocation155_spill] sm:$0xff] }
 0x200   : > { %12977 = vmatprep.mubr.f32.mxu0 %v25875_v51  ;;  %15090 = vmatpush3.bf16.xpose.msra.mxu0 %v15089_v16  ;;  %v15285_v16 = vpack.c.bf16 %v25882_v20, %v25881_v56  ;;  %v25921_v20 = vld [vmem:[#allocation138_spill] sm:$0xff]  ;;  %v25938_v62 = vld [vmem:[#allocation88_spill] sm:$0xff] }
 0x201   : > { %13552 = vmatmul.mubr.f32.gmra.mrb[8].mxu1 %v25863_v45  ;;  %15092 = vmatprep.subr.bf16.mxu0 %v15091_v54  ;;  %v15095_v45 = vpack.c.bf16 %v25880_v10, %v25879_v61  ;;  %v25891_v54 = vand.u32 4294901760, %v18600_v4  ;;  %v25897_v4 = vand.u32 4294901760, %v25644_v0  ;;  %v25903_v0 = vand.u32 4294901760, %v25656_v5  ;;  %v25963_v49 = vld [vmem:[#allocation56_spill] sm:$0xff] }
 0x202   : > { %13553 = vmatprep.mubr.f32.mxu1 %v25875_v51  ;;  %15282 = vmatpush3.bf16.xpose.msra.mxu1 %v15281_v26  ;;  %v15103_v26 = vpack.c.bf16 %v25900_v19, %v25899_v12  ;;  %v25909_v5 = vand.u32 4294901760, %v25671_v8  ;;  %v15299_v10 = vpack.c.bf16 %v25914_v14, %v25913_v41  ;;  %v25919_v8 = vand.u32 4294901760, %v18781_v33  ;;  %v25924_v33 = vld [vmem:[#allocation69_spill] sm:$0xff]  ;;  %v25964_v2 = vld [vmem:[#allocation60_spill] sm:$0xff]  ;;  %v25972_v41 = vld [vmem:[#allocation74_spill] sm:$0xff] }
 0x203   : > { %12978 = vmatmul.mubr.f32.gmra.mrb[10].mxu0 %v25875_v51  ;;  %15284 = vmatprep.subr.bf16.mxu1 %v15283_v52  ;;  %v15289_v30 = vpack.c.bf16 %v25892_v24, %v25891_v54  ;;  %v15101_v25 = vpack.c.bf16 %v25898_v21, %v25897_v4  ;;  %v15293_v52 = vpack.c.bf16 %v25902_v36, %v25901_v1  ;;  %v25940_v54 = vld [vmem:[#allocation20_spill] sm:$0xff]  ;;  %v25941_v24 = vld [vmem:[#allocation18_spill] sm:$0xff]  ;;  %v25949_v4 = vld [vmem:[#allocation97_spill] sm:$0xff] }
 0x204   : > { %12979 = vmatprep.mubr.f32.mxu0 %v25876_v37  ;;  %v15107_v9 = vpack.c.bf16 %v25910_v40, %v25909_v5  ;;  %v15301_v56 = vpack.c.bf16 %v25920_v39, %v25919_v8  ;;  %v25950_v21 = vld [vmem:[#allocation105_spill] sm:$0xff]  ;;  %v25955_v1 = vld [vmem:[#allocation106_spill] sm:$0xff]  ;;  %v25967_v40 = vld [vmem:[#allocation119_spill] sm:$0xff] }
 0x205   : > { %13554 = vmatmul.mubr.f32.gmra.mrb[10].mxu1 %v25875_v51  ;;  %v15295_v51 = vpack.c.bf16 %v25904_v55, %v25903_v0  ;;  %v25952_v12 = vld [vmem:[#allocation45_spill] sm:$0xff]  ;;  %v25958_v0 = vld [vmem:[#allocation54_spill] sm:$0xff]  ;;  %v25973_v14 = vld [vmem:[#allocation123_spill] sm:$0xff] }
 0x206   : > { %13555 = vmatprep.mubr.f32.mxu1 %v25876_v37  ;;  %v25953_v19 = vld [vmem:[#allocation41_spill] sm:$0xff]  ;;  %v25966_v5 = vld [vmem:[#allocation62_spill] sm:$0xff]  ;;  %v25981_v39 = vld [vmem:[#allocation136_spill] sm:$0xff] }
 0x207   : > { %12980 = vmatmul.mubr.f32.gmra.mrb[12].mxu0 %v25876_v37  ;;  %v25956_v36 = vld [vmem:[#allocation109_spill] sm:$0xff]  ;;  %v25980_v8 = vld [vmem:[#allocation134_spill] sm:$0xff] }
 0x208   : > { %12981 = vmatprep.mubr.f32.mxu0 %v25885_v53  ;;  %15094 = vmatpush3.bf16.xpose.msra.mxu0 %v15093_v13  ;;  %v25912_v13 = vand.u32 4294901760, %v25664_v50  ;;  %v25917_v50 = vand.u32 4294901760, %v18763_v17  ;;  %v25922_v17 = vld [vmem:[#allocation140_spill] sm:$0xff]  ;;  %v25959_v55 = vld [vmem:[#allocation53_spill] sm:$0xff] }
 0x209   : > { %13556 = vmatmul.mubr.f32.gmra.mrb[12].mxu1 %v25876_v37  ;;  %15096 = vmatprep.subr.bf16.mxu0 %v15095_v45  ;;  %v25905_v37 = vld [vmem:[#allocation127_spill] sm:$0xff]  ;;  %v25915_v45 = vld [vmem:[#allocation133_spill] sm:$0xff] }
 0x20a   : > { %13557 = vmatprep.mubr.f32.mxu1 %v25885_v53  ;;  %15286 = vmatpush3.bf16.xpose.msra.mxu1 %v15285_v16  ;;  %v15297_v61 = vpack.c.bf16 %v25912_v13, %v25911_v27  ;;  %v15109_v15 = vpack.c.bf16 %v25918_v60, %v25917_v50  ;;  %v25928_v16 = vld [vmem:[#allocation144_spill] sm:$0xff]  ;;  %v25969_v27 = vld [vmem:[#allocation66_spill] sm:$0xff] }
 0x20b   : > { %12982 = vmatmul.mubr.f32.gmra.mrb[14].mxu0 %v25885_v53  ;;  %15288 = vmatprep.subr.bf16.mxu1 %v15287_v7  ;;  %v25931_v7 = vld [vmem:[#allocation147_spill] sm:$0xff]  ;;  %v25970_v13 = vld [vmem:[#allocation72_spill] sm:$0xff]  ;;  %v25978_v60 = vld [vmem:[#allocation86_spill] sm:$0xff] }
 0x20c   : > { %12983 = vmatprep.mubr.f32.mxu0 %v25886_v28  ;;  %v25977_v50 = vld [vmem:[#allocation80_spill] sm:$0xff] }
 0x20d   : > { %13558 = vmatmul.mubr.f32.gmra.mrb[14].mxu1 %v25885_v53  ;;  %v25932_v53 = vld [vmem:[#allocation9_spill] sm:$0xff] }
 0x20e   : > { %13559 = vmatprep.mubr.f32.mxu1 %v25886_v28 }
 0x20f   : > { %12984 = vmatmul.mubr.f32.gmra.mrb[16].mxu0 %v25886_v28 }
 0x210   : > { %12985 = vmatprep.mubr.f32.mxu0 %v25895_v22  ;;  %15098 = vmatpush3.bf16.xpose.msra.mxu0 %v15097_v58  ;;  %v25936_v58 = vld [vmem:[#allocation153_spill] sm:$0xff] }
 0x211   : > { %13560 = vmatmul.mubr.f32.gmra.mrb[16].mxu1 %v25886_v28  ;;  %15100 = vmatprep.subr.bf16.mxu0 %v15099_v59  ;;  %v25933_v28 = vld [vmem:[#allocation11_spill] sm:$0xff]  ;;  %v25939_v59 = vld [vmem:[#allocation93_spill] sm:$0xff] }
 0x212   : > { %13561 = vmatprep.mubr.f32.mxu1 %v25895_v22  ;;  %15290 = vmatpush3.bf16.xpose.msra.mxu1 %v15289_v30  ;;  %v25942_v30 = vld [vmem:[#allocation24_spill] sm:$0xff] }
 0x213   : > { %12986 = vmatmul.mubr.f32.gmra.mrb[18].mxu0 %v25895_v22  ;;  %15292 = vmatprep.subr.bf16.mxu1 %v15291_v18  ;;  %v25946_v18 = vld [vmem:[#allocation32_spill] sm:$0xff] }
 0x214   : > { %12987 = vmatprep.mubr.f32.mxu0 %v25896_v11 }
 0x215   : > { %13562 = vmatmul.mubr.f32.gmra.mrb[18].mxu1 %v25895_v22  ;;  %v25947_v22 = vld [vmem:[#allocation29_spill] sm:$0xff] }
 0x216   : > { %13563 = vmatprep.mubr.f32.mxu1 %v25896_v11 }
 0x217   : > { %12988 = vmatmul.mubr.f32.gmra.mrb[20].mxu0 %v25896_v11 }
 0x218   : > { %12989 = vmatprep.mubr.f32.mxu0 %v25905_v37  ;;  %15102 = vmatpush3.bf16.xpose.msra.mxu0 %v15101_v25  ;;  %v25951_v25 = vld [vmem:[#allocation39_spill] sm:$0xff] }
 0x219   : > { %13564 = vmatmul.mubr.f32.gmra.mrb[20].mxu1 %v25896_v11  ;;  %15104 = vmatprep.subr.bf16.mxu0 %v15103_v26  ;;  %v25948_v11 = vld [vmem:[#allocation35_spill] sm:$0xff] }
 0x21a   : > { %13565 = vmatprep.mubr.f32.mxu1 %v25905_v37  ;;  %15294 = vmatpush3.bf16.xpose.msra.mxu1 %v15293_v52  ;;  %v25954_v26 = vld [vmem:[#allocation47_spill] sm:$0xff] }
 0x21b   : > { %12990 = vmatmul.mubr.f32.gmra.mrb[22].mxu0 %v25905_v37  ;;  %15296 = vmatprep.subr.bf16.mxu1 %v15295_v51  ;;  %v25957_v52 = vld [vmem:[#allocation51_spill] sm:$0xff] }
 0x21c   : > { %12991 = vmatprep.mubr.f32.mxu0 %v25906_v48  ;;  %v25960_v51 = vld [vmem:[#allocation55_spill] sm:$0xff] }
 0x21d   : > { %13566 = vmatmul.mubr.f32.gmra.mrb[22].mxu1 %v25905_v37  ;;  %v25961_v37 = vld [vmem:[#allocation111_spill] sm:$0xff] }
 0x21e   : > { %13567 = vmatprep.mubr.f32.mxu1 %v25906_v48 }
 0x21f   : > { %12992 = vmatmul.mubr.f32.gmra.mrb[24].mxu0 %v25906_v48 }
 0x220   : > { %12993 = vmatprep.mubr.f32.mxu0 %v25915_v45  ;;  %15106 = vmatpush3.bf16.xpose.msra.mxu0 %v15105_v23  ;;  %v25965_v23 = vld [vmem:[#allocation57_spill] sm:$0xff] }
 0x221   : > { %13568 = vmatmul.mubr.f32.gmra.mrb[24].mxu1 %v25906_v48  ;;  %15108 = vmatprep.subr.bf16.mxu0 %v15107_v9  ;;  %v25962_v48 = vld [vmem:[#allocation117_spill] sm:$0xff]  ;;  %v25968_v9 = vld [vmem:[#allocation120_spill] sm:$0xff] }
 0x222   : > { %13569 = vmatprep.mubr.f32.mxu1 %v25915_v45  ;;  %15298 = vmatpush3.bf16.xpose.msra.mxu1 %v15297_v61  ;;  %v25971_v61 = vld [vmem:[#allocation68_spill] sm:$0xff] }
 0x223   : > { %12994 = vmatmul.mubr.f32.gmra.mrb[26].mxu0 %v25915_v45  ;;  %15300 = vmatprep.subr.bf16.mxu1 %v15299_v10  ;;  %v25974_v10 = vld [vmem:[#allocation129_spill] sm:$0xff] }
 0x224   : > { %12995 = vmatprep.mubr.f32.mxu0 %v25916_v38 }
 0x225   : > { %13570 = vmatmul.mubr.f32.gmra.mrb[26].mxu1 %v25915_v45  ;;  %v25975_v45 = vld [vmem:[#allocation78_spill] sm:$0xff] }
 0x226   : > { %13571 = vmatprep.mubr.f32.mxu1 %v25916_v38 }
 0x227   : > { %12996 = vmatmul.mubr.f32.gmra.mrb[28].mxu0 %v25916_v38 }
 0x228   : > { %12997 = vmatprep.mubr.f32.mxu0 %v25921_v20  ;;  %15110 = vmatpush3.bf16.xpose.msra.mxu0 %v15109_v15  ;;  %v25979_v15 = vld [vmem:[#allocation130_spill] sm:$0xff] }
 0x229   : > { %13572 = vmatmul.mubr.f32.gmra.mrb[28].mxu1 %v25916_v38  ;;  %15112 = vmatprep.subr.bf16.mxu0 %v25753_v47  ;;  %v25927_v47 = vld [vmem:[#allocation77_spill] sm:$0xff]  ;;  %v25976_v38 = vld [vmem:[#allocation84_spill] sm:$0xff] }
 0x22a   : > { %13573 = vmatprep.mubr.f32.mxu1 %v25921_v20  ;;  %15302 = vmatpush3.bf16.xpose.msra.mxu1 %v15301_v56  ;;  %v25982_v56 = vld [vmem:[#allocation139_spill] sm:$0xff] }
 0x22b   : > { %12998 = vmatmul.mubr.f32.gmra.mrb[30].mxu0 %v25921_v20  ;;  %15304 = vmatprep.subr.bf16.mxu1 %v25755_v44  ;;  %v25926_v44 = vld [vmem:[#allocation143_spill] sm:$0xff] }
 0x22c   : > { %12999 = vmatprep.mubr.f32.mxu0 %v25922_v17 }
 0x22d   : > { %13574 = vmatmul.mubr.f32.gmra.mrb[30].mxu1 %v25921_v20  ;;  %v25985_v20 = vld [vmem:[#allocation64_spill] sm:$0xff] }
 0x22e   : > { %13575 = vmatprep.mubr.f32.mxu1 %v25922_v17 }
 0x22f   : > { %13000 = vmatmul.mubr.f32.gmra.mrb[32].mxu0 %v25922_v17 }
 0x230   : > { %13001 = vmatprep.mubr.f32.mxu0 %v25923_v3 }
 0x231   : > { %13576 = vmatmul.mubr.f32.gmra.mrb[32].mxu1 %v25922_v17  ;;  %v25986_v17 = vld [vmem:[#allocation71_spill] sm:$0xff] }
 0x232   : > { %13577 = vmatprep.mubr.f32.mxu1 %v25923_v3 }
 0x233   : > { %13002 = vmatmul.mubr.f32.gmra.mrb[34].mxu0 %v25923_v3 }
 0x234   : > { %13003 = vmatprep.mubr.f32.mxu0 %v25924_v33 }
 0x235   : > { %13578 = vmatmul.mubr.f32.gmra.mrb[34].mxu1 %v25923_v3  ;;  %v25987_v3 = vld [vmem:[#allocation73_spill] sm:$0xff] }
 0x236   : > { %13579 = vmatprep.mubr.f32.mxu1 %v25924_v33 }
 0x237   : > { %13004 = vmatmul.mubr.f32.gmra.mrb[36].mxu0 %v25924_v33 }
 0x238   : > { %13005 = vmatprep.mubr.f32.mxu0 %v25925_v43 }
 0x239   : > { %13580 = vmatmul.mubr.f32.gmra.mrb[36].mxu1 %v25924_v33  ;;  %v25988_v33 = vld [vmem:[#allocation76_spill] sm:$0xff] }
 0x23a   : > { %13581 = vmatprep.mubr.f32.mxu1 %v25925_v43 }
 0x23b   : > { %13006 = vmatmul.mubr.f32.gmra.mrb[38].mxu0 %v25925_v43 }
 0x23c   : > { %13007 = vmatprep.mubr.f32.mxu0 %v25926_v44 }
 0x23d   : > { %13582 = vmatmul.mubr.f32.gmra.mrb[38].mxu1 %v25925_v43  ;;  %v25989_v43 = vld [vmem:[#allocation81_spill] sm:$0xff] }
 0x23e   : > { %13583 = vmatprep.mubr.f32.mxu1 %v25926_v44 }
 0x23f   : > { %13008 = vmatmul.mubr.f32.gmra.mrb[40].mxu0 %v25926_v44 }
 0x240   : > { %13009 = vmatprep.mubr.f32.mxu0 %v25927_v47 }
 0x241   : > { %13584 = vmatmul.mubr.f32.gmra.mrb[40].mxu1 %v25926_v44  ;;  %v25990_v44 = vld [vmem:[#allocation83_spill] sm:$0xff] }
 0x242   : > { %13585 = vmatprep.mubr.f32.mxu1 %v25927_v47 }
 0x243   : > { %13010 = vmatmul.mubr.f32.gmra.mrb[42].mxu0 %v25927_v47 }
 0x244   : > { %13011 = vmatprep.mubr.f32.mxu0 %v25928_v16 }
 0x245   : > { %13586 = vmatmul.mubr.f32.gmra.mrb[42].mxu1 %v25927_v47  ;;  %v25991_v47 = vld [vmem:[#allocation146_spill] sm:$0xff] }
 0x246   : > { %13587 = vmatprep.mubr.f32.mxu1 %v25928_v16 }
 0x247   : > { %13012 = vmatmul.mubr.f32.gmra.mrb[44].mxu0 %v25928_v16 }
 0x248   : > { %13013 = vmatprep.mubr.f32.mxu0 %v25929_v35 }
 0x249   : > { %13588 = vmatmul.mubr.f32.gmra.mrb[44].mxu1 %v25928_v16  ;;  %v25992_v16 = vld [vmem:[#allocation90_spill] sm:$0xff] }
 0x24a   : > { %13589 = vmatprep.mubr.f32.mxu1 %v25929_v35 }
 0x24b   : > { %13014 = vmatmul.mubr.f32.gmra.mrb[46].mxu0 %v25929_v35 }
 0x24c   : > { %13015 = vmatprep.mubr.f32.mxu0 %v25930_v57 }
 0x24d   : > { %13590 = vmatmul.mubr.f32.gmra.mrb[46].mxu1 %v25929_v35  ;;  %v25993_v35 = vld [vmem:[#allocation10_spill] sm:$0xff] }
 0x24e   : > { %13591 = vmatprep.mubr.f32.mxu1 %v25930_v57 }
 0x24f   : > { %13016 = vmatmul.mubr.f32.gmra.mrb[48].mxu0 %v25930_v57 }
 0x250   : > { %13017 = vmatprep.mubr.f32.mxu0 %v25931_v7 }
 0x251   : > { %13592 = vmatmul.mubr.f32.gmra.mrb[48].mxu1 %v25930_v57  ;;  %v25994_v57 = vld [vmem:[#allocation13_spill] sm:$0xff] }
 0x252   : > { %13593 = vmatprep.mubr.f32.mxu1 %v25931_v7 }
 0x253   : > { %13018 = vmatmul.mubr.f32.gmra.mrb[50].mxu0 %v25931_v7 }
 0x254   : > { %13019 = vmatprep.mubr.f32.mxu0 %v25932_v53 }
 0x255   : > { %13594 = vmatmul.mubr.f32.gmra.mrb[50].mxu1 %v25931_v7  ;;  %v25995_v7 = vld [vmem:[#allocation149_spill] sm:$0xff] }
 0x256   : > { %13595 = vmatprep.mubr.f32.mxu1 %v25932_v53 }
 0x257   : > { %13020 = vmatmul.mubr.f32.gmra.mrb[52].mxu0 %v25932_v53 }
 0x258   : > { %13021 = vmatprep.mubr.f32.mxu0 %v25933_v28 }
 0x259   : > { %13596 = vmatmul.mubr.f32.gmra.mrb[52].mxu1 %v25932_v53  ;;  %v25996_v53 = vld [vmem:[#allocation152_spill] sm:$0xff] }
 0x25a   : > { %13597 = vmatprep.mubr.f32.mxu1 %v25933_v28 }
 0x25b   : > { %13022 = vmatmul.mubr.f32.gmra.mrb[54].mxu0 %v25933_v28 }
 0x25c   : > { %13023 = vmatprep.mubr.f32.mxu0 %v25934_v31 }
 0x25d   : > { %13598 = vmatmul.mubr.f32.gmra.mrb[54].mxu1 %v25933_v28 }
 0x25e   : > { %13599 = vmatprep.mubr.f32.mxu1 %v25934_v31 }
 0x25f   : > { %13024 = vmatmul.mubr.f32.gmra.mrb[56].mxu0 %v25934_v31 }
 0x260   : > { %13025 = vmatprep.mubr.f32.mxu0 %v25935_v29 }
 0x261   : > { %13600 = vmatmul.mubr.f32.gmra.mrb[56].mxu1 %v25934_v31 }
 0x262   : > { %13601 = vmatprep.mubr.f32.mxu1 %v25935_v29 }
 0x263   : > { %13026 = vmatmul.mubr.f32.gmra.mrb[58].mxu0 %v25935_v29 }
 0x264   : > { %13027 = vmatprep.mubr.f32.mxu0 %v25936_v58 }
 0x265   : > { %13602 = vmatmul.mubr.f32.gmra.mrb[58].mxu1 %v25935_v29 }
 0x266   : > { %13603 = vmatprep.mubr.f32.mxu1 %v25936_v58 }
 0x267   : > { %13028 = vmatmul.mubr.f32.gmra.mrb[60].mxu0 %v25936_v58 }
 0x268   : > { %13029 = vmatprep.mubr.f32.mxu0 %v25937_v46 }
 0x269   : > { %13604 = vmatmul.mubr.f32.gmra.mrb[60].mxu1 %v25936_v58 }
 0x26a   : > { %13605 = vmatprep.mubr.f32.mxu1 %v25937_v46 }
 0x26b   : > { %13030 = vmatmul.mubr.f32.gmra.mrb[62].mxu0 %v25937_v46 }
 0x26c   : > { %13063 = vmatprep.mubr.f32.mxu0 %v25938_v62 }
 0x26d   : > { %13606 = vmatmul.mubr.f32.gmra.mrb[62].mxu1 %v25937_v46 }
 0x26e   : > { %13639 = vmatprep.mubr.f32.mxu1 %v25938_v62 }
 0x26f   : > { %13064 = vmatmul.mubr.f32.vlgmr.msra.gmra.mrb[0].mxu0 %v25938_v62 }
 0x270   : > { %15114 = vmatpush3.bf16.xpose.msra.mxu0 %v25768_v34  ;;  %13065 = vmatprep.mubr.f32.mxu0 %v25939_v59  ;;  %v25944_v34 = vld [vmem:[#allocation96_spill] sm:$0xff] }
 0x271   : > { %13640 = vmatmul.mubr.f32.vlgmr.msra.gmra.mrb[0].mxu1 %v25938_v62  ;;  %15116 = vmatprep.subr.bf16.mxu0 %v25940_v54 }
 0x272   : > { %15306 = vmatpush3.bf16.xpose.msra.mxu1 %v25941_v24  ;;  %13641 = vmatprep.mubr.f32.mxu1 %v25939_v59 }
 0x273   : > { %13066 = vmatmul.mubr.f32.gmra.mrb[2].mxu0 %v25939_v59  ;;  %15308 = vmatprep.subr.bf16.mxu1 %v25942_v30 }
 0x274   : > { %13067 = vmatprep.mubr.f32.mxu0 %v25943_v32 }
 0x275   : > { %13642 = vmatmul.mubr.f32.gmra.mrb[2].mxu1 %v25939_v59 }
 0x276   : > { %13643 = vmatprep.mubr.f32.mxu1 %v25943_v32 }
 0x277   : > { %13068 = vmatmul.mubr.f32.gmra.mrb[4].mxu0 %v25943_v32 }
 0x278   : > { %13069 = vmatprep.mubr.f32.mxu0 %v25944_v34  ;;  %15118 = vmatpush3.bf16.xpose.msra.mxu0 %v25945_v63 }
 0x279   : > { %13644 = vmatmul.mubr.f32.gmra.mrb[4].mxu1 %v25943_v32  ;;  %15120 = vmatprep.subr.bf16.mxu0 %v25946_v18 }
 0x27a   : > { %13645 = vmatprep.mubr.f32.mxu1 %v25944_v34  ;;  %15310 = vmatpush3.bf16.xpose.msra.mxu1 %v25947_v22 }
 0x27b   : > { %13070 = vmatmul.mubr.f32.gmra.mrb[6].mxu0 %v25944_v34  ;;  %15312 = vmatprep.subr.bf16.mxu1 %v25948_v11 }
 0x27c   : > { %13071 = vmatprep.mubr.f32.mxu0 %v25949_v4 }
 0x27d   : > { %13646 = vmatmul.mubr.f32.gmra.mrb[6].mxu1 %v25944_v34 }
 0x27e   : > { %13647 = vmatprep.mubr.f32.mxu1 %v25949_v4 }
 0x27f   : > { %13072 = vmatmul.mubr.f32.gmra.mrb[8].mxu0 %v25949_v4 }
 0x280   : > { %13073 = vmatprep.mubr.f32.mxu0 %v25950_v21  ;;  %15122 = vmatpush3.bf16.xpose.msra.mxu0 %v25951_v25 }
 0x281   : > { %13648 = vmatmul.mubr.f32.gmra.mrb[8].mxu1 %v25949_v4  ;;  %15124 = vmatprep.subr.bf16.mxu0 %v25952_v12 }
 0x282   : > { %13649 = vmatprep.mubr.f32.mxu1 %v25950_v21  ;;  %15314 = vmatpush3.bf16.xpose.msra.mxu1 %v25953_v19 }
 0x283   : > { %13074 = vmatmul.mubr.f32.gmra.mrb[10].mxu0 %v25950_v21  ;;  %15316 = vmatprep.subr.bf16.mxu1 %v25954_v26 }
 0x284   : > { %13075 = vmatprep.mubr.f32.mxu0 %v25955_v1 }
 0x285   : > { %13650 = vmatmul.mubr.f32.gmra.mrb[10].mxu1 %v25950_v21 }
 0x286   : > { %13651 = vmatprep.mubr.f32.mxu1 %v25955_v1 }
 0x287   : > { %13076 = vmatmul.mubr.f32.gmra.mrb[12].mxu0 %v25955_v1 }
 0x288   : > { %13077 = vmatprep.mubr.f32.mxu0 %v25956_v36  ;;  %15126 = vmatpush3.bf16.xpose.msra.mxu0 %v25957_v52 }
 0x289   : > { %13652 = vmatmul.mubr.f32.gmra.mrb[12].mxu1 %v25955_v1  ;;  %15128 = vmatprep.subr.bf16.mxu0 %v25958_v0 }
 0x28a   : > { %13653 = vmatprep.mubr.f32.mxu1 %v25956_v36  ;;  %15318 = vmatpush3.bf16.xpose.msra.mxu1 %v25959_v55 }
 0x28b   : > { %13078 = vmatmul.mubr.f32.gmra.mrb[14].mxu0 %v25956_v36  ;;  %15320 = vmatprep.subr.bf16.mxu1 %v25960_v51 }
 0x28c   : > { %13079 = vmatprep.mubr.f32.mxu0 %v25961_v37 }
 0x28d   : > { %13654 = vmatmul.mubr.f32.gmra.mrb[14].mxu1 %v25956_v36 }
 0x28e   : > { %13655 = vmatprep.mubr.f32.mxu1 %v25961_v37 }
 0x28f   : > { %13080 = vmatmul.mubr.f32.gmra.mrb[16].mxu0 %v25961_v37 }
 0x290   : > { %13081 = vmatprep.mubr.f32.mxu0 %v25962_v48  ;;  %15130 = vmatpush3.bf16.xpose.msra.mxu0 %v25963_v49 }
 0x291   : > { %13656 = vmatmul.mubr.f32.gmra.mrb[16].mxu1 %v25961_v37  ;;  %15132 = vmatprep.subr.bf16.mxu0 %v25964_v2 }
 0x292   : > { %13657 = vmatprep.mubr.f32.mxu1 %v25962_v48  ;;  %15322 = vmatpush3.bf16.xpose.msra.mxu1 %v25965_v23 }
 0x293   : > { %13082 = vmatmul.mubr.f32.gmra.mrb[18].mxu0 %v25962_v48  ;;  %15324 = vmatprep.subr.bf16.mxu1 %v25966_v5 }
 0x294   : > { %13083 = vmatprep.mubr.f32.mxu0 %v25967_v40 }
 0x295   : > { %13658 = vmatmul.mubr.f32.gmra.mrb[18].mxu1 %v25962_v48 }
 0x296   : > { %13659 = vmatprep.mubr.f32.mxu1 %v25967_v40 }
 0x297   : > { %13084 = vmatmul.mubr.f32.gmra.mrb[20].mxu0 %v25967_v40 }
 0x298   : > { %13085 = vmatprep.mubr.f32.mxu0 %v25968_v9  ;;  %15134 = vmatpush3.bf16.xpose.msra.mxu0 %v25969_v27 }
 0x299   : > { %13660 = vmatmul.mubr.f32.gmra.mrb[20].mxu1 %v25967_v40  ;;  %15136 = vmatprep.subr.bf16.mxu0 %v25970_v13 }
 0x29a   : > { %13661 = vmatprep.mubr.f32.mxu1 %v25968_v9  ;;  %15326 = vmatpush3.bf16.xpose.msra.mxu1 %v25971_v61 }
 0x29b   : > { %13086 = vmatmul.mubr.f32.gmra.mrb[22].mxu0 %v25968_v9  ;;  %15328 = vmatprep.subr.bf16.mxu1 %v25972_v41 }
 0x29c   : > { %13087 = vmatprep.mubr.f32.mxu0 %v25973_v14 }
 0x29d   : > { %13662 = vmatmul.mubr.f32.gmra.mrb[22].mxu1 %v25968_v9 }
 0x29e   : > { %13663 = vmatprep.mubr.f32.mxu1 %v25973_v14 }
 0x29f   : > { %13088 = vmatmul.mubr.f32.gmra.mrb[24].mxu0 %v25973_v14 }
 0x2a0   : > { %13089 = vmatprep.mubr.f32.mxu0 %v25974_v10  ;;  %15138 = vmatpush3.bf16.xpose.msra.mxu0 %v25975_v45 }
 0x2a1   : > { %13664 = vmatmul.mubr.f32.gmra.mrb[24].mxu1 %v25973_v14  ;;  %15140 = vmatprep.subr.bf16.mxu0 %v25976_v38 }
 0x2a2   : > { %13665 = vmatprep.mubr.f32.mxu1 %v25974_v10  ;;  %15330 = vmatpush3.bf16.xpose.msra.mxu1 %v25977_v50 }
 0x2a3   : > { %13090 = vmatmul.mubr.f32.gmra.mrb[26].mxu0 %v25974_v10  ;;  %15332 = vmatprep.subr.bf16.mxu1 %v25978_v60 }
 0x2a4   : > { %13091 = vmatprep.mubr.f32.mxu0 %v25979_v15 }
 0x2a5   : > { %13666 = vmatmul.mubr.f32.gmra.mrb[26].mxu1 %v25974_v10 }
 0x2a6   : > { %13667 = vmatprep.mubr.f32.mxu1 %v25979_v15 }
 0x2a7   : > { %13092 = vmatmul.mubr.f32.gmra.mrb[28].mxu0 %v25979_v15 }
 0x2a8   : > { %13093 = vmatprep.mubr.f32.mxu0 %v25980_v8  ;;  %15142 = vmatpush3.bf16.xpose.msra.mxu0 %v25815_v42  ;;  %v25983_v42 = vld [vmem:[#allocation61_spill] sm:$0xff] }
 0x2a9   : > { %13668 = vmatmul.mubr.f32.gmra.mrb[28].mxu1 %v25979_v15 }
 0x2aa   : > { %13669 = vmatprep.mubr.f32.mxu1 %v25980_v8  ;;  %15334 = vmatpush3.bf16.xpose.msra.mxu1 %v25816_v6  ;;  %v25984_v6 = vld [vmem:[#allocation63_spill] sm:$0xff] }
 0x2ab   : > { %13094 = vmatmul.mubr.f32.gmra.mrb[30].mxu0 %v25980_v8 }
 0x2ac   : > { %13095 = vmatprep.mubr.f32.mxu0 %v25981_v39 }
 0x2ad   : > { %13670 = vmatmul.mubr.f32.gmra.mrb[30].mxu1 %v25980_v8 }
 0x2ae   : > { %13671 = vmatprep.mubr.f32.mxu1 %v25981_v39 }
 0x2af   : > { %13096 = vmatmul.mubr.f32.gmra.mrb[32].mxu0 %v25981_v39 }
 0x2b0   : > { %13097 = vmatprep.mubr.f32.mxu0 %v25982_v56 }
 0x2b1   : > { %13672 = vmatmul.mubr.f32.gmra.mrb[32].mxu1 %v25981_v39 }
 0x2b2   : > { %13673 = vmatprep.mubr.f32.mxu1 %v25982_v56 }
 0x2b3   : > { %13098 = vmatmul.mubr.f32.gmra.mrb[34].mxu0 %v25982_v56 }
 0x2b4   : > { %13099 = vmatprep.mubr.f32.mxu0 %v25983_v42 }
 0x2b5   : > { %13674 = vmatmul.mubr.f32.gmra.mrb[34].mxu1 %v25982_v56 }
 0x2b6   : > { %13675 = vmatprep.mubr.f32.mxu1 %v25983_v42 }
 0x2b7   : > { %13100 = vmatmul.mubr.f32.gmra.mrb[36].mxu0 %v25983_v42 }
 0x2b8   : > { %13101 = vmatprep.mubr.f32.mxu0 %v25984_v6 }
 0x2b9   : > { %13676 = vmatmul.mubr.f32.gmra.mrb[36].mxu1 %v25983_v42 }
 0x2ba   : > { %13677 = vmatprep.mubr.f32.mxu1 %v25984_v6 }
 0x2bb   : > { %13102 = vmatmul.mubr.f32.gmra.mrb[38].mxu0 %v25984_v6 }
 0x2bc   : > { %13103 = vmatprep.mubr.f32.mxu0 %v25985_v20 }
 0x2bd   : > { %13678 = vmatmul.mubr.f32.gmra.mrb[38].mxu1 %v25984_v6 }
 0x2be   : > { %13679 = vmatprep.mubr.f32.mxu1 %v25985_v20 }
 0x2bf   : > { %13104 = vmatmul.mubr.f32.gmra.mrb[40].mxu0 %v25985_v20 }
 0x2c0   : > { %13105 = vmatprep.mubr.f32.mxu0 %v25986_v17 }
 0x2c1   : > { %13680 = vmatmul.mubr.f32.gmra.mrb[40].mxu1 %v25985_v20 }
 0x2c2   : > { %13681 = vmatprep.mubr.f32.mxu1 %v25986_v17 }
 0x2c3   : > { %13106 = vmatmul.mubr.f32.gmra.mrb[42].mxu0 %v25986_v17 }
 0x2c4   : > { %13107 = vmatprep.mubr.f32.mxu0 %v25987_v3 }
 0x2c5   : > { %13682 = vmatmul.mubr.f32.gmra.mrb[42].mxu1 %v25986_v17 }
 0x2c6   : > { %13683 = vmatprep.mubr.f32.mxu1 %v25987_v3 }
 0x2c7   : > { %13108 = vmatmul.mubr.f32.gmra.mrb[44].mxu0 %v25987_v3 }
 0x2c8   : > { %13109 = vmatprep.mubr.f32.mxu0 %v25988_v33 }
 0x2c9   : > { %13684 = vmatmul.mubr.f32.gmra.mrb[44].mxu1 %v25987_v3 }
 0x2ca   : > { %13685 = vmatprep.mubr.f32.mxu1 %v25988_v33 }
 0x2cb   : > { %13110 = vmatmul.mubr.f32.gmra.mrb[46].mxu0 %v25988_v33 }
 0x2cc   : > { %13111 = vmatprep.mubr.f32.mxu0 %v25989_v43 }
 0x2cd   : > { %13686 = vmatmul.mubr.f32.gmra.mrb[46].mxu1 %v25988_v33 }
 0x2ce   : > { %13687 = vmatprep.mubr.f32.mxu1 %v25989_v43 }
 0x2cf   : > { %13112 = vmatmul.mubr.f32.gmra.mrb[48].mxu0 %v25989_v43 }
 0x2d0   : > { %13113 = vmatprep.mubr.f32.mxu0 %v25990_v44 }
 0x2d1   : > { %13688 = vmatmul.mubr.f32.gmra.mrb[48].mxu1 %v25989_v43 }
 0x2d2   : > { %13689 = vmatprep.mubr.f32.mxu1 %v25990_v44 }
 0x2d3   : > { %13114 = vmatmul.mubr.f32.gmra.mrb[50].mxu0 %v25990_v44 }
 0x2d4   : > { %13115 = vmatprep.mubr.f32.mxu0 %v25991_v47 }
 0x2d5   : > { %13690 = vmatmul.mubr.f32.gmra.mrb[50].mxu1 %v25990_v44 }
 0x2d6   : > { %13691 = vmatprep.mubr.f32.mxu1 %v25991_v47 }
 0x2d7   : > { %13116 = vmatmul.mubr.f32.gmra.mrb[52].mxu0 %v25991_v47 }
 0x2d8   : > { %13117 = vmatprep.mubr.f32.mxu0 %v25992_v16 }
 0x2d9   : > { %13692 = vmatmul.mubr.f32.gmra.mrb[52].mxu1 %v25991_v47 }
 0x2da   : > { %13693 = vmatprep.mubr.f32.mxu1 %v25992_v16 }
 0x2db   : > { %13118 = vmatmul.mubr.f32.gmra.mrb[54].mxu0 %v25992_v16 }
 0x2dc   : > { %13119 = vmatprep.mubr.f32.mxu0 %v25993_v35 }
 0x2dd   : > { %13694 = vmatmul.mubr.f32.gmra.mrb[54].mxu1 %v25992_v16 }
 0x2de   : > { %13695 = vmatprep.mubr.f32.mxu1 %v25993_v35 }
 0x2df   : > { %13120 = vmatmul.mubr.f32.gmra.mrb[56].mxu0 %v25993_v35 }
 0x2e0   : > { %13121 = vmatprep.mubr.f32.mxu0 %v25994_v57 }
 0x2e1   : > { %13696 = vmatmul.mubr.f32.gmra.mrb[56].mxu1 %v25993_v35 }
 0x2e2   : > { %13697 = vmatprep.mubr.f32.mxu1 %v25994_v57 }
 0x2e3   : > { %13122 = vmatmul.mubr.f32.gmra.mrb[58].mxu0 %v25994_v57 }
 0x2e4   : > { %13123 = vmatprep.mubr.f32.mxu0 %v25995_v7 }
 0x2e5   : > { %13698 = vmatmul.mubr.f32.gmra.mrb[58].mxu1 %v25994_v57 }
 0x2e6   : > { %13699 = vmatprep.mubr.f32.mxu1 %v25995_v7 }
 0x2e7   : > { %13124 = vmatmul.mubr.f32.gmra.mrb[60].mxu0 %v25995_v7 }
 0x2e8   : > { %13125 = vmatprep.mubr.f32.mxu0 %v25996_v53 }
 0x2e9   : > { %13700 = vmatmul.mubr.f32.gmra.mrb[60].mxu1 %v25995_v7 }
 0x2ea   : > { %13701 = vmatprep.mubr.f32.mxu1 %v25996_v53 }
 0x2eb   : > { %13126 = vmatmul.mubr.f32.gmra.mrb[62].mxu0 %v25996_v53 }
 0x2ec   : > { %13159 = vmatprep.mubr.f32.mxu0 %v25938_v62 }
 0x2ed   : > { %13702 = vmatmul.mubr.f32.gmra.mrb[62].mxu1 %v25996_v53 }
 0x2ee   : > { %13735 = vmatprep.mubr.f32.mxu1 %v25938_v62 }
 0x2ef   : > { %13160 = vmatmul.mubr.f32.vlgmr.msra.gmra.mrb[0].mxu0 %v25938_v62 }
 0x2f0   : > { %13161 = vmatprep.mubr.f32.mxu0 %v25939_v59 }
 0x2f1   : > { %13736 = vmatmul.mubr.f32.vlgmr.msra.gmra.mrb[0].mxu1 %v25938_v62 }
 0x2f2   : > { %13737 = vmatprep.mubr.f32.mxu1 %v25939_v59 }
 0x2f3   : > { %13162 = vmatmul.mubr.f32.gmra.mrb[2].mxu0 %v25939_v59 }
 0x2f4   : > { %13163 = vmatprep.mubr.f32.mxu0 %v25943_v32 }
 0x2f5   : > { %13738 = vmatmul.mubr.f32.gmra.mrb[2].mxu1 %v25939_v59 }
 0x2f6   : > { %13739 = vmatprep.mubr.f32.mxu1 %v25943_v32 }
 0x2f7   : > { %13164 = vmatmul.mubr.f32.gmra.mrb[4].mxu0 %v25943_v32 }
 0x2f8   : > { %13165 = vmatprep.mubr.f32.mxu0 %v25944_v34 }
 0x2f9   : > { %13740 = vmatmul.mubr.f32.gmra.mrb[4].mxu1 %v25943_v32 }
 0x2fa   : > { %13741 = vmatprep.mubr.f32.mxu1 %v25944_v34 }
 0x2fb   : > { %13166 = vmatmul.mubr.f32.gmra.mrb[6].mxu0 %v25944_v34 }
 0x2fc   : > { %13167 = vmatprep.mubr.f32.mxu0 %v25949_v4 }
 0x2fd   : > { %13742 = vmatmul.mubr.f32.gmra.mrb[6].mxu1 %v25944_v34 }
 0x2fe   : > { %13743 = vmatprep.mubr.f32.mxu1 %v25949_v4 }
 0x2ff   : > { %13168 = vmatmul.mubr.f32.gmra.mrb[8].mxu0 %v25949_v4 }
 0x300   : > { %13169 = vmatprep.mubr.f32.mxu0 %v25950_v21 }
 0x301   : > { %13744 = vmatmul.mubr.f32.gmra.mrb[8].mxu1 %v25949_v4 }
 0x302   : > { %13745 = vmatprep.mubr.f32.mxu1 %v25950_v21 }
 0x303   : > { %13170 = vmatmul.mubr.f32.gmra.mrb[10].mxu0 %v25950_v21 }
 0x304   : > { %13171 = vmatprep.mubr.f32.mxu0 %v25955_v1 }
 0x305   : > { %13746 = vmatmul.mubr.f32.gmra.mrb[10].mxu1 %v25950_v21 }
 0x306   : > { %13747 = vmatprep.mubr.f32.mxu1 %v25955_v1 }
 0x307   : > { %13172 = vmatmul.mubr.f32.gmra.mrb[12].mxu0 %v25955_v1 }
 0x308   : > { %13173 = vmatprep.mubr.f32.mxu0 %v25956_v36 }
 0x309   : > { %13748 = vmatmul.mubr.f32.gmra.mrb[12].mxu1 %v25955_v1 }
 0x30a   : > { %13749 = vmatprep.mubr.f32.mxu1 %v25956_v36 }
 0x30b   : > { %13174 = vmatmul.mubr.f32.gmra.mrb[14].mxu0 %v25956_v36 }
 0x30c   : > { %13175 = vmatprep.mubr.f32.mxu0 %v25961_v37 }
 0x30d   : > { %13750 = vmatmul.mubr.f32.gmra.mrb[14].mxu1 %v25956_v36 }
 0x30e   : > { %13751 = vmatprep.mubr.f32.mxu1 %v25961_v37 }
 0x30f   : > { %13176 = vmatmul.mubr.f32.gmra.mrb[16].mxu0 %v25961_v37 }
 0x310   : > { %13177 = vmatprep.mubr.f32.mxu0 %v25962_v48 }
 0x311   : > { %13752 = vmatmul.mubr.f32.gmra.mrb[16].mxu1 %v25961_v37 }
 0x312   : > { %13753 = vmatprep.mubr.f32.mxu1 %v25962_v48 }
 0x313   : > { %13178 = vmatmul.mubr.f32.gmra.mrb[18].mxu0 %v25962_v48 }
 0x314   : > { %13179 = vmatprep.mubr.f32.mxu0 %v25967_v40 }
 0x315   : > { %13754 = vmatmul.mubr.f32.gmra.mrb[18].mxu1 %v25962_v48 }
 0x316   : > { %13755 = vmatprep.mubr.f32.mxu1 %v25967_v40 }
 0x317   : > { %13180 = vmatmul.mubr.f32.gmra.mrb[20].mxu0 %v25967_v40 }
 0x318   : > { %13181 = vmatprep.mubr.f32.mxu0 %v25968_v9 }
 0x319   : > { %13756 = vmatmul.mubr.f32.gmra.mrb[20].mxu1 %v25967_v40 }
 0x31a   : > { %13757 = vmatprep.mubr.f32.mxu1 %v25968_v9 }
 0x31b   : > { %13182 = vmatmul.mubr.f32.gmra.mrb[22].mxu0 %v25968_v9 }
 0x31c   : > { %13183 = vmatprep.mubr.f32.mxu0 %v25973_v14 }
 0x31d   : > { %13758 = vmatmul.mubr.f32.gmra.mrb[22].mxu1 %v25968_v9 }
 0x31e   : > { %13759 = vmatprep.mubr.f32.mxu1 %v25973_v14 }
 0x31f   : > { %13184 = vmatmul.mubr.f32.gmra.mrb[24].mxu0 %v25973_v14 }
 0x320   : > { %13185 = vmatprep.mubr.f32.mxu0 %v25974_v10 }
 0x321   : > { %13760 = vmatmul.mubr.f32.gmra.mrb[24].mxu1 %v25973_v14 }
 0x322   : > { %13761 = vmatprep.mubr.f32.mxu1 %v25974_v10 }
 0x323   : > { %13186 = vmatmul.mubr.f32.gmra.mrb[26].mxu0 %v25974_v10 }
 0x324   : > { %13187 = vmatprep.mubr.f32.mxu0 %v25979_v15 }
 0x325   : > { %13762 = vmatmul.mubr.f32.gmra.mrb[26].mxu1 %v25974_v10 }
 0x326   : > { %13763 = vmatprep.mubr.f32.mxu1 %v25979_v15 }
 0x327   : > { %13188 = vmatmul.mubr.f32.gmra.mrb[28].mxu0 %v25979_v15 }
 0x328   : > { %13189 = vmatprep.mubr.f32.mxu0 %v25980_v8 }
 0x329   : > { %13764 = vmatmul.mubr.f32.gmra.mrb[28].mxu1 %v25979_v15 }
 0x32a   : > { %13765 = vmatprep.mubr.f32.mxu1 %v25980_v8 }
 0x32b   : > { %13190 = vmatmul.mubr.f32.gmra.mrb[30].mxu0 %v25980_v8 }
 0x32c   : > { %13191 = vmatprep.mubr.f32.mxu0 %v25981_v39 }
 0x32d   : > { %13766 = vmatmul.mubr.f32.gmra.mrb[30].mxu1 %v25980_v8 }
 0x32e   : > { %13767 = vmatprep.mubr.f32.mxu1 %v25981_v39 }
 0x32f   : > { %13192 = vmatmul.mubr.f32.gmra.mrb[32].mxu0 %v25981_v39 }
 0x330   : > { %13193 = vmatprep.mubr.f32.mxu0 %v25982_v56 }
 0x331   : > { %13768 = vmatmul.mubr.f32.gmra.mrb[32].mxu1 %v25981_v39 }
 0x332   : > { %13769 = vmatprep.mubr.f32.mxu1 %v25982_v56 }
 0x333   : > { %13194 = vmatmul.mubr.f32.gmra.mrb[34].mxu0 %v25982_v56 }
 0x334   : > { %13195 = vmatprep.mubr.f32.mxu0 %v25983_v42 }
 0x335   : > { %13770 = vmatmul.mubr.f32.gmra.mrb[34].mxu1 %v25982_v56 }
 0x336   : > { %13771 = vmatprep.mubr.f32.mxu1 %v25983_v42 }
 0x337   : > { %13196 = vmatmul.mubr.f32.gmra.mrb[36].mxu0 %v25983_v42 }
 0x338   : > { %13197 = vmatprep.mubr.f32.mxu0 %v25984_v6 }
 0x339   : > { %13772 = vmatmul.mubr.f32.gmra.mrb[36].mxu1 %v25983_v42 }
 0x33a   : > { %13773 = vmatprep.mubr.f32.mxu1 %v25984_v6 }
 0x33b   : > { %13198 = vmatmul.mubr.f32.gmra.mrb[38].mxu0 %v25984_v6 }
 0x33c   : > { %13199 = vmatprep.mubr.f32.mxu0 %v25985_v20 }
 0x33d   : > { %13774 = vmatmul.mubr.f32.gmra.mrb[38].mxu1 %v25984_v6 }
 0x33e   : > { %13775 = vmatprep.mubr.f32.mxu1 %v25985_v20 }
 0x33f   : > { %13200 = vmatmul.mubr.f32.gmra.mrb[40].mxu0 %v25985_v20 }
 0x340   : > { %13201 = vmatprep.mubr.f32.mxu0 %v25986_v17 }
 0x341   : > { %13776 = vmatmul.mubr.f32.gmra.mrb[40].mxu1 %v25985_v20 }
 0x342   : > { %13777 = vmatprep.mubr.f32.mxu1 %v25986_v17 }
 0x343   : > { %13202 = vmatmul.mubr.f32.gmra.mrb[42].mxu0 %v25986_v17 }
 0x344   : > { %13203 = vmatprep.mubr.f32.mxu0 %v25987_v3 }
 0x345   : > { %13778 = vmatmul.mubr.f32.gmra.mrb[42].mxu1 %v25986_v17 }
 0x346   : > { %13779 = vmatprep.mubr.f32.mxu1 %v25987_v3 }
 0x347   : > { %13204 = vmatmul.mubr.f32.gmra.mrb[44].mxu0 %v25987_v3 }
 0x348   : > { %13205 = vmatprep.mubr.f32.mxu0 %v25988_v33 }
 0x349   : > { %13780 = vmatmul.mubr.f32.gmra.mrb[44].mxu1 %v25987_v3 }
 0x34a   : > { %13781 = vmatprep.mubr.f32.mxu1 %v25988_v33 }
 0x34b   : > { %13206 = vmatmul.mubr.f32.gmra.mrb[46].mxu0 %v25988_v33 }
 0x34c   : > { %13207 = vmatprep.mubr.f32.mxu0 %v25989_v43 }
 0x34d   : > { %13782 = vmatmul.mubr.f32.gmra.mrb[46].mxu1 %v25988_v33 }
 0x34e   : > { %13783 = vmatprep.mubr.f32.mxu1 %v25989_v43 }
 0x34f   : > { %13208 = vmatmul.mubr.f32.gmra.mrb[48].mxu0 %v25989_v43 }
 0x350   : > { %13209 = vmatprep.mubr.f32.mxu0 %v25990_v44 }
 0x351   : > { %13784 = vmatmul.mubr.f32.gmra.mrb[48].mxu1 %v25989_v43 }
 0x352   : > { %13785 = vmatprep.mubr.f32.mxu1 %v25990_v44 }
 0x353   : > { %13210 = vmatmul.mubr.f32.gmra.mrb[50].mxu0 %v25990_v44 }
 0x354   : > { %13211 = vmatprep.mubr.f32.mxu0 %v25991_v47 }
 0x355   : > { %13786 = vmatmul.mubr.f32.gmra.mrb[50].mxu1 %v25990_v44 }
 0x356   : > { %13787 = vmatprep.mubr.f32.mxu1 %v25991_v47 }
 0x357   : > { %13212 = vmatmul.mubr.f32.gmra.mrb[52].mxu0 %v25991_v47 }
 0x358   : > { %13213 = vmatprep.mubr.f32.mxu0 %v25992_v16 }
 0x359   : > { %13788 = vmatmul.mubr.f32.gmra.mrb[52].mxu1 %v25991_v47 }
 0x35a   : > { %13789 = vmatprep.mubr.f32.mxu1 %v25992_v16 }
 0x35b   : > { %13214 = vmatmul.mubr.f32.gmra.mrb[54].mxu0 %v25992_v16 }
 0x35c   : > { %13215 = vmatprep.mubr.f32.mxu0 %v25993_v35 }
 0x35d   : > { %13790 = vmatmul.mubr.f32.gmra.mrb[54].mxu1 %v25992_v16 }
 0x35e   : > { %13791 = vmatprep.mubr.f32.mxu1 %v25993_v35 }
 0x35f   : > { %13216 = vmatmul.mubr.f32.gmra.mrb[56].mxu0 %v25993_v35 }
 0x360   : > { %13217 = vmatprep.mubr.f32.mxu0 %v25994_v57 }
 0x361   : > { %13792 = vmatmul.mubr.f32.gmra.mrb[56].mxu1 %v25993_v35 }
 0x362   : > { %13793 = vmatprep.mubr.f32.mxu1 %v25994_v57 }
 0x363   : > { %13218 = vmatmul.mubr.f32.gmra.mrb[58].mxu0 %v25994_v57 }
 0x364   : > { %13219 = vmatprep.mubr.f32.mxu0 %v25995_v7 }
 0x365   : > { %13794 = vmatmul.mubr.f32.gmra.mrb[58].mxu1 %v25994_v57 }
 0x366   : > { %13795 = vmatprep.mubr.f32.mxu1 %v25995_v7 }
 0x367   : > { %13220 = vmatmul.mubr.f32.gmra.mrb[60].mxu0 %v25995_v7 }
 0x368   : > { %13221 = vmatprep.mubr.f32.mxu0 %v25996_v53 }
 0x369   : > { %13796 = vmatmul.mubr.f32.gmra.mrb[60].mxu1 %v25995_v7 }
 0x36a   : > { %13797 = vmatprep.mubr.f32.mxu1 %v25996_v53 }
 0x36b   : > { %13222 = vmatmul.mubr.f32.gmra.mrb[62].mxu0 %v25996_v53 }
 0x36d   : > { %13798 = vmatmul.mubr.f32.gmra.mrb[62].mxu1 %v25996_v53 }
 0x3c2   : > { %v20396_v28 = vpop.f32.mrb[0].mxu0 }
 0x3c3   : > { %25997 = vst [vmem:[#allocation38_spill] sm:$0xff] %v20396_v28  ;;  %v20398_v31 = vpop.f32.mrb[1].mxu0 }
 0x3c4   : > { %25998 = vst [vmem:[#allocation40_spill] sm:$0xff] %v20398_v31  ;;  %v20400_v29 = vpop.f32.mrb[0].mxu1 }
 0x3c5   : > { %25999 = vst [vmem:[#allocation44_spill] sm:$0xff] %v20400_v29  ;;  %v20402_v58 = vpop.f32.mrb[1].mxu1 }
 0x3c6   : > { %26000 = vst [vmem:[#allocation48_spill] sm:$0xff] %v20402_v58  ;;  %v20404_v46 = vpop.f32.mrb[2].mxu0 }
 0x3c7   : > { %26001 = vst [vmem:[#allocation49_spill] sm:$0xff] %v20404_v46  ;;  %v20406_v62 = vpop.f32.mrb[3].mxu0 }
 0x3c8   : > { %26002 = vst [vmem:[#allocation50_spill] sm:$0xff] %v20406_v62  ;;  %v20408_v59 = vpop.f32.mrb[2].mxu1 }
 0x3c9   : > { %26003 = vst [vmem:[#allocation52_spill] sm:$0xff] %v20408_v59  ;;  %v20410_v54 = vpop.f32.mrb[3].mxu1 }
 0x3ca   : > { %26004 = vst [vmem:[#allocation8_spill] sm:$0xff] %v20410_v54  ;;  %v20412_v24 = vpop.f32.mrb[4].mxu0 }
 0x3cb   : > { %26005 = vst [vmem:[#allocation12_spill] sm:$0xff] %v20412_v24  ;;  %v20414_v30 = vpop.f32.mrb[5].mxu0 }
 0x3cc   : > { %26006 = vst [vmem:[#allocation91_spill] sm:$0xff] %v20414_v30  ;;  %v20416_v32 = vpop.f32.mrb[4].mxu1 }
 0x3cd   : > { %26007 = vst [vmem:[#allocation14_spill] sm:$0xff] %v20416_v32  ;;  %v20418_v34 = vpop.f32.mrb[5].mxu1 }
 0x3ce   : > { %26008 = vst [vmem:[#allocation95_spill] sm:$0xff] %v20418_v34  ;;  %v20420_v63 = vpop.f32.mrb[6].mxu0 }
 0x3cf   : > { %26009 = vst [vmem:[#allocation98_spill] sm:$0xff] %v20420_v63  ;;  %v20422_v18 = vpop.f32.mrb[7].mxu0 }
 0x3d0   : > { %26010 = vst [vmem:[#allocation100_spill] sm:$0xff] %v20422_v18  ;;  %v20424_v22 = vpop.f32.mrb[6].mxu1 }
 0x3d1   : > { %26011 = vst [vmem:[#allocation101_spill] sm:$0xff] %v20424_v22  ;;  %v20426_v11 = vpop.f32.mrb[7].mxu1 }
 0x3d2   : > { %26012 = vst [vmem:[#allocation107_spill] sm:$0xff] %v20426_v11  ;;  %v20428_v4 = vpop.f32.mrb[8].mxu0 }
 0x3d3   : > { %26013 = vst [vmem:[#allocation108_spill] sm:$0xff] %v20428_v4  ;;  %v20430_v21 = vpop.f32.mrb[9].mxu0 }
 0x3d4   : > { %26014 = vst [vmem:[#allocation113_spill] sm:$0xff] %v20430_v21  ;;  %v20432_v25 = vpop.f32.mrb[8].mxu1 }
 0x3d5   : > { %26015 = vst [vmem:[#allocation114_spill] sm:$0xff] %v20432_v25  ;;  %v20434_v12 = vpop.f32.mrb[9].mxu1 }
 0x3d6   : > { %26016 = vst [vmem:[#allocation118_spill] sm:$0xff] %v20434_v12  ;;  %v20436_v19 = vpop.f32.mrb[10].mxu0 }
 0x3d7   : > { %26017 = vst [vmem:[#allocation122_spill] sm:$0xff] %v20436_v19  ;;  %v20438_v26 = vpop.f32.mrb[11].mxu0 }
 0x3d8   : > { %26018 = vst [vmem:[#allocation124_spill] sm:$0xff] %v20438_v26  ;;  %v20440_v1 = vpop.f32.mrb[10].mxu1 }
 0x3d9   : > { %26019 = vst [vmem:[#allocation126_spill] sm:$0xff] %v20440_v1  ;;  %v20442_v36 = vpop.f32.mrb[11].mxu1 }
 0x3da   : > { %26020 = vst [vmem:[#allocation131_spill] sm:$0xff] %v20442_v36  ;;  %v20444_v52 = vpop.f32.mrb[12].mxu0 }
 0x3db   : > { %26021 = vst [vmem:[#allocation132_spill] sm:$0xff] %v20444_v52  ;;  %v20446_v0 = vpop.f32.mrb[13].mxu0 }
 0x3dc   : > { %26022 = vst [vmem:[#allocation137_spill] sm:$0xff] %v20446_v0  ;;  %v20448_v55 = vpop.f32.mrb[12].mxu1 }
 0x3dd   : > { %26023 = vst [vmem:[#allocation87_spill] sm:$0xff] %v20448_v55  ;;  %v20450_v51 = vpop.f32.mrb[13].mxu1 }
 0x3de   : > { %26024 = vst [vmem:[#allocation89_spill] sm:$0xff] %v20450_v51  ;;  %v20452_v37 = vpop.f32.mrb[14].mxu0 }
 0x3df   : > { %26025 = vst [vmem:[#allocation58_spill] sm:$0xff] %v20452_v37  ;;  %v20454_v48 = vpop.f32.mrb[15].mxu0 }
 0x3e0   : > { %26026 = vst [vmem:[#allocation59_spill] sm:$0xff] %v20454_v48  ;;  %v20456_v49 = vpop.f32.mrb[14].mxu1 }
 0x3e1   : > { %26027 = vst [vmem:[#allocation142_spill] sm:$0xff] %v20456_v49  ;;  %v20458_v2 = vpop.f32.mrb[15].mxu1 }
 0x3e2   : > { %26028 = vst [vmem:[#allocation65_spill] sm:$0xff] %v20458_v2  ;;  %v20460_v23 = vpop.f32.mrb[16].mxu0 }
 0x3e3   : > { %26029 = vst [vmem:[#allocation67_spill] sm:$0xff] %v20460_v23  ;;  %v20462_v5 = vpop.f32.mrb[17].mxu0 }
 0x3e4   : > { %26030 = vst [vmem:[#allocation75_spill] sm:$0xff] %v20462_v5  ;;  %v20464_v40 = vpop.f32.mrb[16].mxu1 }
 0x3e5   : > { %26031 = vst [vmem:[#allocation79_spill] sm:$0xff] %v20464_v40  ;;  %v20466_v9 = vpop.f32.mrb[17].mxu1 }
 0x3e6   : > { %26032 = vst [vmem:[#allocation82_spill] sm:$0xff] %v20466_v9  ;;  %v20468_v27 = vpop.f32.mrb[18].mxu0 }
 0x3e7   : > { %26033 = vst [vmem:[#allocation151_spill] sm:$0xff] %v20468_v27  ;;  %v20470_v13 = vpop.f32.mrb[19].mxu0 }
 0x3e8   : > { %26034 = vst [vmem:[#allocation154_spill] sm:$0xff] %v20470_v13  ;;  %v20472_v61 = vpop.f32.mrb[18].mxu1 }
 0x3e9   : > { %26035 = vst [vmem:[#allocation92_spill] sm:$0xff] %v20472_v61  ;;  %v20474_v41 = vpop.f32.mrb[19].mxu1 }
 0x3ea   : > { %26036 = vst [vmem:[#allocation15_spill] sm:$0xff] %v20474_v41  ;;  %v20476_v14 = vpop.f32.mrb[20].mxu0 }
 0x3eb   : > { %26037 = vst [vmem:[#allocation16_spill] sm:$0xff] %v20476_v14  ;;  %v20478_v10 = vpop.f32.mrb[21].mxu0 }
 0x3ec   : > { %26038 = vst [vmem:[#allocation21_spill] sm:$0xff] %v20478_v10  ;;  %v20480_v45 = vpop.f32.mrb[20].mxu1 }
 0x3ed   : > { %26039 = vst [vmem:[#allocation22_spill] sm:$0xff] %v20480_v45  ;;  %v20482_v38 = vpop.f32.mrb[21].mxu1 }
 0x3ee   : > { %26040 = vst [vmem:[#allocation17_spill] sm:$0xff] %v20482_v38  ;;  %v20484_v50 = vpop.f32.mrb[22].mxu0 }
 0x3ef   : > { %26041 = vst [vmem:[#allocation19_spill] sm:$0xff] %v20484_v50  ;;  %v20486_v60 = vpop.f32.mrb[23].mxu0 }
 0x3f0   : > { %26042 = vst [vmem:[#allocation23_spill] sm:$0xff] %v20486_v60  ;;  %v20488_v15 = vpop.f32.mrb[22].mxu1 }
 0x3f1   : > { %26043 = vst [vmem:[#allocation25_spill] sm:$0xff] %v20488_v15  ;;  %v20490_v8 = vpop.f32.mrb[23].mxu1 }
 0x3f2   : > { %26044 = vst [vmem:[#allocation99_spill] sm:$0xff] %v20490_v8  ;;  %v20492_v39 = vpop.f32.mrb[24].mxu0 }
 0x3f3   : > { %26045 = vst [vmem:[#allocation102_spill] sm:$0xff] %v20492_v39  ;;  %v20494_v56 = vpop.f32.mrb[25].mxu0 }
 0x3f4   : > { %26046 = vst [vmem:[#allocation27_spill] sm:$0xff] %v20494_v56  ;;  %v20496_v42 = vpop.f32.mrb[24].mxu1 }
 0x3f5   : > { %26047 = vst [vmem:[#allocation28_spill] sm:$0xff] %v20496_v42  ;;  %v20498_v6 = vpop.f32.mrb[25].mxu1 }
 0x3f6   : > { %26048 = vst [vmem:[#allocation33_spill] sm:$0xff] %v20498_v6  ;;  %v20500_v20 = vpop.f32.mrb[26].mxu0 }
 0x3f7   : > { %26049 = vst [vmem:[#allocation34_spill] sm:$0xff] %v20500_v20  ;;  %v20502_v17 = vpop.f32.mrb[27].mxu0  ;;  %v5416_v20 = vsub.f32 (!%p12377_p3), 0.0, %v20410_v54 }
 0x3f8   : > { %26050 = vst [vmem:[#allocation30_spill] sm:$0xff] %v20502_v17  ;;  %v20504_v3 = vpop.f32.mrb[26].mxu1 }
 0x3f9   : > { %26051 = vst [vmem:[#allocation31_spill] sm:$0xff] %v20504_v3  ;;  %v20506_v33 = vpop.f32.mrb[27].mxu1 }
 0x3fa   : > { %26052 = vst [vmem:[#allocation36_spill] sm:$0xff] %v20506_v33  ;;  %v20508_v43 = vpop.f32.mrb[28].mxu0 }
 0x3fb   : > { %26053 = vst [vmem:[#allocation37_spill] sm:$0xff] %v20508_v43  ;;  %v20510_v44 = vpop.f32.mrb[29].mxu0 }
 0x3fc   : > { %26054 = vst [vmem:[#allocation103_spill] sm:$0xff] %v20510_v44  ;;  %v20512_v47 = vpop.f32.mrb[28].mxu1 }
 0x3fd   : > { %26055 = vst [vmem:[#allocation104_spill] sm:$0xff] %v20512_v47  ;;  %v20514_v16 = vpop.f32.mrb[29].mxu1 }
 0x3fe   : > { %26056 = vst [vmem:[#allocation46_spill] sm:$0xff] %v20514_v16  ;;  %v20516_v35 = vpop.f32.mrb[30].mxu0 }
 0x3ff   : > { %26057 = vst [vmem:[#allocation42_spill] sm:$0xff] %v20516_v35  ;;  %v20518_v57 = vpop.f32.mrb[31].mxu0 }
 0x400   : > { %26058 = vst [vmem:[#allocation43_spill] sm:$0xff] %v20518_v57  ;;  %v20520_v7 = vpop.f32.mrb[30].mxu1 }
 0x401   : > { %26059 = vst [vmem:[#allocation110_spill] sm:$0xff] %v20520_v7  ;;  %v20522_v53 = vpop.f32.mrb[31].mxu1 }
 0x402   : > { %26060 = vst [vmem:[#allocation112_spill] sm:$0xff] %v20522_v53  ;;  %v20524_v17 = vpop.f32.mrb[32].mxu0 }
 0x403   : > { %26061 = vst [vmem:[#allocation115_spill] sm:$0xff] %v20524_v17  ;;  %v20526_v3 = vpop.f32.mrb[33].mxu0 }
 0x404   : > { %26062 = vst [vmem:[#allocation116_spill] sm:$0xff] %v20526_v3  ;;  %v20528_v33 = vpop.f32.mrb[32].mxu1 }
 0x405   : > { %26063 = vst [vmem:[#allocation121_spill] sm:$0xff] %v20528_v33  ;;  %v20530_v43 = vpop.f32.mrb[33].mxu1 }
 0x406   : > { %26064 = vst [vmem:[#allocation125_spill] sm:$0xff] %v20530_v43  ;;  %v20532_v44 = vpop.f32.mrb[34].mxu0 }
 0x407   : > { %26065 = vst [vmem:[#allocation127_spill] sm:$0xff] %v20532_v44  ;;  %v20534_v47 = vpop.f32.mrb[35].mxu0 }
 0x408   : > { %26066 = vst [vmem:[#allocation128_spill] sm:$0xff] %v20534_v47  ;;  %v20536_v16 = vpop.f32.mrb[34].mxu1 }
 0x409   : > { %26067 = vst [vmem:[#allocation133_spill] sm:$0xff] %v20536_v16  ;;  %v20538_v35 = vpop.f32.mrb[35].mxu1 }
 0x40a   : > { %26068 = vst [vmem:[#allocation135_spill] sm:$0xff] %v20538_v35  ;;  %v20540_v57 = vpop.f32.mrb[36].mxu0 }
 0x40b   : > { %26069 = vst [vmem:[#allocation138_spill] sm:$0xff] %v20540_v57  ;;  %v20542_v7 = vpop.f32.mrb[37].mxu0 }
 0x40c   : > { %26070 = vst [vmem:[#allocation140_spill] sm:$0xff] %v20542_v7  ;;  %v20544_v53 = vpop.f32.mrb[36].mxu1 }
 0x40d   : > { %26071 = vst [vmem:[#allocation141_spill] sm:$0xff] %v20544_v53  ;;  %v20546_v17 = vpop.f32.mrb[37].mxu1 }
 0x40e   : > { %26072 = vst [vmem:[#allocation69_spill] sm:$0xff] %v20546_v17  ;;  %v20548_v3 = vpop.f32.mrb[38].mxu0 }
 0x40f   : > { %26073 = vst [vmem:[#allocation70_spill] sm:$0xff] %v20548_v3  ;;  %v20550_v33 = vpop.f32.mrb[39].mxu0 }
 0x410   : > { %26074 = vst [vmem:[#allocation143_spill] sm:$0xff] %v20550_v33  ;;  %v20552_v43 = vpop.f32.mrb[38].mxu1 }
 0x411   : > { %26075 = vst [vmem:[#allocation77_spill] sm:$0xff] %v20552_v43  ;;  %v20554_v44 = vpop.f32.mrb[39].mxu1 }
 0x412   : > { %26076 = vst [vmem:[#allocation144_spill] sm:$0xff] %v20554_v44  ;;  %v20556_v47 = vpop.f32.mrb[40].mxu0 }
 0x413   : > { %26077 = vst [vmem:[#allocation85_spill] sm:$0xff] %v20556_v47  ;;  %v20558_v16 = vpop.f32.mrb[41].mxu0 }
 0x414   : > { %26078 = vst [vmem:[#allocation145_spill] sm:$0xff] %v20558_v16  ;;  %v20560_v35 = vpop.f32.mrb[40].mxu1 }
 0x415   : > { %26079 = vst [vmem:[#allocation147_spill] sm:$0xff] %v20560_v35  ;;  %v20562_v57 = vpop.f32.mrb[41].mxu1 }
 0x416   : > { %26080 = vst [vmem:[#allocation9_spill] sm:$0xff] %v20562_v57  ;;  %v20564_v7 = vpop.f32.mrb[42].mxu0 }
 0x417   : > { %26081 = vst [vmem:[#allocation11_spill] sm:$0xff] %v20564_v7  ;;  %v20566_v53 = vpop.f32.mrb[43].mxu0 }
 0x418   : > { %26082 = vst [vmem:[#allocation148_spill] sm:$0xff] %v20566_v53  ;;  %v20568_v17 = vpop.f32.mrb[42].mxu1 }
 0x419   : > { %26083 = vst [vmem:[#allocation150_spill] sm:$0xff] %v20568_v17  ;;  %v20570_v3 = vpop.f32.mrb[43].mxu1 }
 0x41a   : > { %26084 = vst [vmem:[#allocation153_spill] sm:$0xff] %v20570_v3  ;;  %v20572_v33 = vpop.f32.mrb[44].mxu0 }
 0x41b   : > { %26085 = vst [vmem:[#allocation155_spill] sm:$0xff] %v20572_v33  ;;  %v20574_v43 = vpop.f32.mrb[45].mxu0 }
 0x41c   : > { %26086 = vst [vmem:[#allocation88_spill] sm:$0xff] %v20574_v43  ;;  %v20576_v44 = vpop.f32.mrb[44].mxu1 }
 0x41d   : > { %26087 = vst [vmem:[#allocation93_spill] sm:$0xff] %v20576_v44  ;;  %v20578_v47 = vpop.f32.mrb[45].mxu1 }
 0x41e   : > { %26088 = vst [vmem:[#allocation20_spill] sm:$0xff] %v20578_v47  ;;  %v20580_v16 = vpop.f32.mrb[46].mxu0 }
 0x41f   : > { %26089 = vst [vmem:[#allocation18_spill] sm:$0xff] %v20580_v16  ;;  %v20582_v35 = vpop.f32.mrb[47].mxu0 }
 0x420   : > { %26090 = vst [vmem:[#allocation24_spill] sm:$0xff] %v20582_v35  ;;  %v20584_v57 = vpop.f32.mrb[46].mxu1 }
 0x421   : > { %26091 = vst [vmem:[#allocation94_spill] sm:$0xff] %v20584_v57  ;;  %v20586_v7 = vpop.f32.mrb[47].mxu1 }
 0x422   : > { %26092 = vst [vmem:[#allocation96_spill] sm:$0xff] %v20586_v7  ;;  %v20588_v53 = vpop.f32.mrb[48].mxu0 }
 0x423   : > { %26093 = vst [vmem:[#allocation26_spill] sm:$0xff] %v20588_v53  ;;  %v20590_v17 = vpop.f32.mrb[49].mxu0 }
 0x424   : > { %26094 = vst [vmem:[#allocation32_spill] sm:$0xff] %v20590_v17  ;;  %v20592_v3 = vpop.f32.mrb[48].mxu1 }
 0x425   : > { %26095 = vst [vmem:[#allocation29_spill] sm:$0xff] %v20592_v3  ;;  %v20594_v33 = vpop.f32.mrb[49].mxu1 }
 0x426   : > { %26096 = vst [vmem:[#allocation35_spill] sm:$0xff] %v20594_v33  ;;  %v20596_v43 = vpop.f32.mrb[50].mxu0 }
 0x427   : > { %26097 = vst [vmem:[#allocation97_spill] sm:$0xff] %v20596_v43  ;;  %v20598_v44 = vpop.f32.mrb[51].mxu0 }
 0x428   : > { %26098 = vst [vmem:[#allocation105_spill] sm:$0xff] %v20598_v44  ;;  %v20600_v47 = vpop.f32.mrb[50].mxu1 }
 0x429   : > { %26099 = vst [vmem:[#allocation39_spill] sm:$0xff] %v20600_v47  ;;  %v20602_v16 = vpop.f32.mrb[51].mxu1 }
 0x42a   : > { %26100 = vst [vmem:[#allocation45_spill] sm:$0xff] %v20602_v16  ;;  %v20604_v35 = vpop.f32.mrb[52].mxu0 }
 0x42b   : > { %26101 = vst [vmem:[#allocation41_spill] sm:$0xff] %v20604_v35  ;;  %v20606_v57 = vpop.f32.mrb[53].mxu0 }
 0x42c   : > { %26102 = vst [vmem:[#allocation47_spill] sm:$0xff] %v20606_v57  ;;  %v20608_v7 = vpop.f32.mrb[52].mxu1 }
 0x42d   : > { %26103 = vst [vmem:[#allocation106_spill] sm:$0xff] %v20608_v7  ;;  %v20610_v53 = vpop.f32.mrb[53].mxu1 }
 0x42e   : > { %26104 = vst [vmem:[#allocation109_spill] sm:$0xff] %v20610_v53  ;;  %v20612_v17 = vpop.f32.mrb[54].mxu0 }
 0x42f   : > { %26105 = vst [vmem:[#allocation51_spill] sm:$0xff] %v20612_v17  ;;  %v20614_v3 = vpop.f32.mrb[55].mxu0 }
 0x430   : > { %26106 = vst [vmem:[#allocation54_spill] sm:$0xff] %v20614_v3  ;;  %v20616_v33 = vpop.f32.mrb[54].mxu1 }
 0x431   : > { %26107 = vst [vmem:[#allocation53_spill] sm:$0xff] %v20616_v33  ;;  %v20618_v43 = vpop.f32.mrb[55].mxu1 }
 0x432   : > { %26108 = vst [vmem:[#allocation55_spill] sm:$0xff] %v20618_v43  ;;  %v20620_v44 = vpop.f32.mrb[56].mxu0 }
 0x433   : > { %26109 = vst [vmem:[#allocation111_spill] sm:$0xff] %v20620_v44  ;;  %v20622_v16 = vpop.f32.mrb[57].mxu0 }
 0x434   : > { %26110 = vst [vmem:[#allocation117_spill] sm:$0xff] %v20622_v16  ;;  %v20624_v35 = vpop.f32.mrb[56].mxu1 }
 0x435   : > { %26111 = vst [vmem:[#allocation56_spill] sm:$0xff] %v20624_v35  ;;  %v20626_v57 = vpop.f32.mrb[57].mxu1 }
 0x436   : > { %26112 = vst [vmem:[#allocation60_spill] sm:$0xff] %v20626_v57  ;;  %v20628_v7 = vpop.f32.mrb[58].mxu0 }
 0x437   : > { %26113 = vst [vmem:[#allocation57_spill] sm:$0xff] %v20628_v7  ;;  %v20630_v53 = vpop.f32.mrb[59].mxu0 }
 0x438   : > { %26114 = vst [vmem:[#allocation62_spill] sm:$0xff] %v20630_v53  ;;  %v20632_v17 = vpop.f32.mrb[58].mxu1 }
 0x439   : > { %26115 = vst [vmem:[#allocation119_spill] sm:$0xff] %v20632_v17  ;;  %v20634_v3 = vpop.f32.mrb[59].mxu1 }
 0x43a   : > { %26116 = vst [vmem:[#allocation120_spill] sm:$0xff] %v20634_v3  ;;  %v20636_v33 = vpop.f32.mrb[60].mxu0 }
 0x43b   : > { %26117 = vst [vmem:[#allocation66_spill] sm:$0xff] %v20636_v33  ;;  %v20638_v43 = vpop.f32.mrb[61].mxu0  ;;  %v5409_v33 = vsub.f32 (!%p12377_p3), 0.0, %v20396_v28 }
 0x43c   : > { %26118 = vst [vmem:[#allocation72_spill] sm:$0xff] %v20638_v43  ;;  %v20640_v44 = vpop.f32.mrb[60].mxu1  ;;  %5408 = sbr.rel (%p12377_p3) target bundleno = 1361 (0x551), region = 44  ;;  %v5410_v43 = vsub.f32 (!%p12377_p3), 0.0, %v20398_v31  ;;  %v5417_v31 = vsub.f32 (!%p12377_p3), 0.0, %v20412_v24 }
 0x43d   : > { %26119 = vst [vmem:[#allocation68_spill] sm:$0xff] %v20640_v44  ;;  %v20642_v47 = vpop.f32.mrb[61].mxu1  ;;  %v5411_v44 = vsub.f32 (!%p12377_p3), 0.0, %v20400_v29 }
 0x43e   : > { %26120 = vst [vmem:[#allocation74_spill] sm:$0xff] %v20642_v47  ;;  %v20644_v16 = vpop.f32.mrb[62].mxu0  ;;  %v5412_v47 = vsub.f32 (!%p12377_p3), 0.0, %v20402_v58  ;;  %v5539_v3 = vmul.f32 (!%p12377_p3), 1.442695, %v5410_v43  ;;  %v5418_v58 = vsub.f32 (!%p12377_p3), 0.0, %v20414_v30 }
 0x43f   : > { %26121 = vst [vmem:[#allocation123_spill] sm:$0xff] %v20644_v16  ;;  %v20646_v35 = vpop.f32.mrb[63].mxu0  ;;  %v5413_v16 = vsub.f32 (!%p12377_p3), 0.0, %v20404_v46  ;;  %v5541_v17 = vmul.f32 (!%p12377_p3), 1.442695, %v5411_v44  ;;  %v5421_v44 = vsub.f32 (!%p12377_p3), 0.0, %v20420_v63 }
 0x440   : > { %26122 = vst [vmem:[#allocation129_spill] sm:$0xff] %v20646_v35  ;;  %v20648_v57 = vpop.f32.mrb[62].mxu1  ;;  %v5414_v35 = vsub.f32 (!%p12377_p3), 0.0, %v20406_v62  ;;  %v5543_v53 = vmul.f32 (!%p12377_p3), 1.442695, %v5412_v47  ;;  %v5419_v62 = vsub.f32 (!%p12377_p3), 0.0, %v20416_v32 }
 0x441   : > { %26123 = vst [vmem:[#allocation78_spill] sm:$0xff] %v20648_v57  ;;  %v20650_v7 = vpop.f32.mrb[63].mxu1  ;;  %v5415_v57 = vsub.f32 (!%p12377_p3), 0.0, %v20408_v59  ;;  %v5545_v28 = vmul.f32 (!%p12377_p3), 1.442695, %v5413_v16 }
 0x442   : > { %26124 = vst [vmem:[#allocation84_spill] sm:$0xff] %v20650_v7  ;;  %v5537_v7 = vmul.f32 (!%p12377_p3), 1.442695, %v5409_v33  ;;  %v5547_v29 = vmul.f32 (!%p12377_p3), 1.442695, %v5414_v35  ;;  %v5420_v33 = vsub.f32 (!%p12377_p3), 0.0, %v20418_v34 }
 0x443   : > { %v5549_v46 = vmul.f32 1.442695, %v5415_v57  ;;  %v5551_v59 = vmul.f32 1.442695, %v5416_v20  ;;  %v5553_v43 = vmul.f32 1.442695, %v5417_v31 }
 0x444   : > { %17059 = vpow2.f32 %v5537_v7  ;;  %v5555_v47 = vmul.f32 1.442695, %v5418_v58  ;;  %v5557_v16 = vmul.f32 1.442695, %v5419_v62  ;;  %v5561_v35 = vmul.f32 1.442695, %v5421_v44 }
 0x445   : > { %17061 = vpow2.f32 %v5539_v3  ;;  %v5559_v3 = vmul.f32 1.442695, %v5420_v33 }
 0x446   : > { %17063 = vpow2.f32 %v5541_v17 }
 0x447   : > { %17065 = vpow2.f32 %v5543_v53 }
 0x448   : > { %17067 = vpow2.f32 %v5545_v28 }
 0x449   : > { %17069 = vpow2.f32 %v5547_v29 }
 0x44a   : > { %17071 = vpow2.f32 %v5549_v46 }
 0x44b   : > { %17073 = vpow2.f32 %v5551_v59 }
 0x44c   : > { %17075 = vpow2.f32 %v5553_v43 }
 0x44d   : > { %17077 = vpow2.f32 %v5555_v47 }
 0x44e   : > { %v17060_v17 = vpop.eup %17059  ;;  %17079 = vpow2.f32 %v5557_v16 }
 0x44f   : > { %v17062_v57 = vpop.eup %17061  ;;  %v5793_v7 = vadd.f32 1.0, %v17060_v17  ;;  %17081 = vpow2.f32 %v5559_v3  ;;  %v5422_v3 = vsub.f32 0.0, %v20422_v18 }
 0x450   : > { %v17064_v20 = vpop.eup %17063  ;;  %v5794_v53 = vadd.f32 1.0, %v17062_v57  ;;  %17083 = vpow2.f32 %v5561_v35  ;;  %v5423_v57 = vsub.f32 0.0, %v20424_v22 }
 0x451   : > { %v17066_v28 = vpop.eup %17065  ;;  %17085 = vrcp.f32 %v5793_v7  ;;  %v5795_v31 = vadd.f32 1.0, %v17064_v20 }
 0x452   : > { %v17068_v29 = vpop.eup %17067  ;;  %17087 = vrcp.f32 %v5794_v53  ;;  %v5796_v58 = vadd.f32 1.0, %v17066_v28  ;;  %v5424_v53 = vsub.f32 0.0, %v20426_v11 }
 0x453   : > { %v17070_v46 = vpop.eup %17069  ;;  %17089 = vrcp.f32 %v5795_v31  ;;  %v5797_v62 = vadd.f32 1.0, %v17068_v29  ;;  %v5425_v29 = vsub.f32 0.0, %v20428_v4 }
 0x454   : > { %v17072_v59 = vpop.eup %17071  ;;  %17091 = vrcp.f32 %v5796_v58  ;;  %v5798_v33 = vadd.f32 1.0, %v17070_v46 }
 0x455   : > { %v17074_v43 = vpop.eup %17073  ;;  %17093 = vrcp.f32 %v5797_v62  ;;  %v5799_v44 = vadd.f32 1.0, %v17072_v59  ;;  %v5563_v62 = vmul.f32 1.442695, %v5422_v3  ;;  %v5426_v59 = vsub.f32 0.0, %v20430_v21 }
 0x456   : > { %v17076_v47 = vpop.eup %17075  ;;  %17095 = vrcp.f32 %v5798_v33  ;;  %v5800_v16 = vadd.f32 1.0, %v17074_v43  ;;  %v5569_v3 = vmul.f32 1.442695, %v5425_v29 }
 0x457   : > { %v17078_v35 = vpop.eup %17077  ;;  %17097 = vrcp.f32 %v5799_v44  ;;  %v5801_v17 = vadd.f32 1.0, %v17076_v47  ;;  %v5565_v44 = vmul.f32 1.442695, %v5423_v57  ;;  %v5427_v47 = vsub.f32 0.0, %v20432_v25 }
 0x458   : > { %v17080_v7 = vpop.eup %17079  ;;  %17099 = vrcp.f32 %v5800_v16  ;;  %v5802_v20 = vadd.f32 1.0, %v17078_v35  ;;  %v5567_v35 = vmul.f32 1.442695, %v5424_v53  ;;  %v5571_v57 = vmul.f32 1.442695, %v5426_v59 }
 0x459   : > { %v17082_v28 = vpop.eup %17081  ;;  %17101 = vrcp.f32 %v5801_v17  ;;  %v5803_v31 = vadd.f32 1.0, %v17080_v7  ;;  %v5428_v17 = vsub.f32 0.0, %v20434_v12  ;;  %v5573_v53 = vmul.f32 1.442695, %v5427_v47 }
 0x45a   : > { %v17084_v58 = vpop.eup %17083  ;;  %17103 = vrcp.f32 %v5802_v20  ;;  %v5804_v46 = vadd.f32 1.0, %v17082_v28  ;;  %v5429_v20 = vsub.f32 0.0, %v20436_v19  ;;  %v5433_v59 = vsub.f32 0.0, %v20444_v52 }
 0x45b   : > { %v17086_v33 = vpop.eup %17085  ;;  %17105 = vrcp.f32 %v5803_v31  ;;  %v5805_v43 = vadd.f32 1.0, %v17084_v58  ;;  %v5430_v31 = vsub.f32 0.0, %v20438_v26  ;;  %v5575_v29 = vmul.f32 1.442695, %v5428_v17 }
 0x45c   : > { %v17088_v16 = vpop.eup %17087  ;;  %6049 = vst [vmem:[%s20653_s18] sm:$0xff] %v17086_v33  ;;  %17107 = vrcp.f32 %v5804_v46  ;;  %v5431_v46 = vsub.f32 0.0, %v20440_v1  ;;  %v5434_v47 = vsub.f32 0.0, %v20446_v0 }
 0x45d   : > { %v17090_v7 = vpop.eup %17089  ;;  %6050 = vst [vmem:[%s20653_s18 + $0x8] sm:$0xff] %v17088_v16  ;;  %17109 = vrcp.f32 %v5805_v43  ;;  %v5432_v43 = vsub.f32 0.0, %v20442_v36 }
 0x45e   : > { %v17092_v28 = vpop.eup %17091  ;;  %6051 = vst [vmem:[%s20653_s18 + $0x10] sm:$0xff] %v17090_v7  ;;  %17111 = vpow2.f32 %v5563_v62  ;;  %v5577_v62 = vmul.f32 1.442695, %v5429_v20 }
 0x45f   : > { %v17094_v58 = vpop.eup %17093  ;;  %6052 = vst [vmem:[%s20653_s18 + $0x18] sm:$0xff] %v17092_v28  ;;  %17113 = vpow2.f32 %v5565_v44  ;;  %v5579_v44 = vmul.f32 1.442695, %v5430_v31 }
 0x460   : > { %v17096_v33 = vpop.eup %17095  ;;  %6053 = vst [vmem:[%s20653_s18 + $0x20] sm:$0xff] %v17094_v58  ;;  %17115 = vpow2.f32 %v5567_v35  ;;  %v5581_v35 = vmul.f32 1.442695, %v5431_v46  ;;  %v5585_v58 = vmul.f32 1.442695, %v5433_v59 }
 0x461   : > { %v17098_v16 = vpop.eup %17097  ;;  %6054 = vst [vmem:[%s20653_s18 + $0x28] sm:$0xff] %v17096_v33  ;;  %17117 = vpow2.f32 %v5569_v3  ;;  %v5583_v3 = vmul.f32 1.442695, %v5432_v43 }
 0x462   : > { %v17100_v7 = vpop.eup %17099  ;;  %6055 = vst [vmem:[%s20653_s18 + $0x30] sm:$0xff] %v17098_v16  ;;  %17119 = vpow2.f32 %v5571_v57  ;;  %v5587_v57 = vmul.f32 1.442695, %v5434_v47 }
 0x463   : > { %v17102_v28 = vpop.eup %17101  ;;  %6056 = vst [vmem:[%s20653_s18 + $0x38] sm:$0xff] %v17100_v7  ;;  %17121 = vpow2.f32 %v5573_v53 }
 0x464   : > { %v17104_v17 = vpop.eup %17103  ;;  %6057 = vst [vmem:[%s20653_s18 + $0x40] sm:$0xff] %v17102_v28  ;;  %17123 = vpow2.f32 %v5575_v29 }
 0x465   : > { %v17106_v20 = vpop.eup %17105  ;;  %6058 = vst [vmem:[%s20653_s18 + $0x48] sm:$0xff] %v17104_v17  ;;  %17125 = vpow2.f32 %v5577_v62 }
 0x466   : > { %v17108_v33 = vpop.eup %17107  ;;  %6059 = vst [vmem:[%s20653_s18 + $0x50] sm:$0xff] %v17106_v20  ;;  %17127 = vpow2.f32 %v5579_v44 }
 0x467   : > { %v17110_v31 = vpop.eup %17109  ;;  %6060 = vst [vmem:[%s20653_s18 + $0x58] sm:$0xff] %v17108_v33  ;;  %17129 = vpow2.f32 %v5581_v35 }
 0x468   : > { %v17112_v16 = vpop.eup %17111  ;;  %6061 = vst [vmem:[%s20653_s18 + $0x60] sm:$0xff] %v17110_v31  ;;  %17131 = vpow2.f32 %v5583_v3 }
 0x469   : > { %v17114_v53 = vpop.eup %17113  ;;  %v5806_v46 = vadd.f32 1.0, %v17112_v16  ;;  %17133 = vpow2.f32 %v5585_v58 }
 0x46a   : > { %v17116_v7 = vpop.eup %17115  ;;  %v5807_v29 = vadd.f32 1.0, %v17114_v53  ;;  %17135 = vpow2.f32 %v5587_v57  ;;  %v5435_v57 = vsub.f32 0.0, %v20448_v55  ;;  %v5436_v53 = vsub.f32 0.0, %v20450_v51 }
 0x46b   : > { %v17118_v43 = vpop.eup %17117  ;;  %17137 = vrcp.f32 %v5806_v46  ;;  %v5808_v62 = vadd.f32 1.0, %v17116_v7 }
 0x46c   : > { %v17120_v59 = vpop.eup %17119  ;;  %17139 = vrcp.f32 %v5807_v29  ;;  %v5809_v28 = vadd.f32 1.0, %v17118_v43  ;;  %v5437_v29 = vsub.f32 0.0, %v20452_v37 }
 0x46d   : > { %v17122_v44 = vpop.eup %17121  ;;  %17141 = vrcp.f32 %v5808_v62  ;;  %v5810_v47 = vadd.f32 1.0, %v17120_v59  ;;  %v5438_v59 = vsub.f32 0.0, %v20454_v48 }
 0x46e   : > { %v17124_v17 = vpop.eup %17123  ;;  %17143 = vrcp.f32 %v5809_v28  ;;  %v5811_v35 = vadd.f32 1.0, %v17122_v44 }
 0x46f   : > { %v17126_v20 = vpop.eup %17125  ;;  %17145 = vrcp.f32 %v5810_v47  ;;  %v5812_v3 = vadd.f32 1.0, %v17124_v17  ;;  %v5589_v47 = vmul.f32 1.442695, %v5435_v57  ;;  %v5439_v17 = vsub.f32 0.0, %v20456_v49 }
 0x470   : > { %v17128_v33 = vpop.eup %17127  ;;  %17147 = vrcp.f32 %v5811_v35  ;;  %v5813_v58 = vadd.f32 1.0, %v17126_v20  ;;  %v5595_v57 = vmul.f32 1.442695, %v5438_v59 }
 0x471   : > { %v17130_v31 = vpop.eup %17129  ;;  %17149 = vrcp.f32 %v5812_v3  ;;  %v5814_v16 = vadd.f32 1.0, %v17128_v33  ;;  %v5591_v3 = vmul.f32 1.442695, %v5436_v53  ;;  %v5440_v33 = vsub.f32 0.0, %v20458_v2 }
 0x472   : > { %v17132_v46 = vpop.eup %17131  ;;  %17151 = vrcp.f32 %v5813_v58  ;;  %v5815_v7 = vadd.f32 1.0, %v17130_v31  ;;  %v5593_v31 = vmul.f32 1.442695, %v5437_v29  ;;  %v5597_v53 = vmul.f32 1.442695, %v5439_v17 }
 0x473   : > { %v17134_v43 = vpop.eup %17133  ;;  %17153 = vrcp.f32 %v5814_v16  ;;  %v5816_v62 = vadd.f32 1.0, %v17132_v46  ;;  %v5441_v16 = vsub.f32 0.0, %v20460_v23  ;;  %v5599_v29 = vmul.f32 1.442695, %v5440_v33 }
 0x474   : > { %v17136_v28 = vpop.eup %17135  ;;  %17155 = vrcp.f32 %v5815_v7  ;;  %v5817_v44 = vadd.f32 1.0, %v17134_v43  ;;  %v5442_v7 = vsub.f32 0.0, %v20462_v5  ;;  %v5446_v17 = vsub.f32 0.0, %v20470_v13 }
 0x475   : > { %v17138_v35 = vpop.eup %17137  ;;  %17157 = vrcp.f32 %v5816_v62  ;;  %v5818_v20 = vadd.f32 1.0, %v17136_v28  ;;  %v5443_v62 = vsub.f32 0.0, %v20464_v40  ;;  %v5601_v59 = vmul.f32 1.442695, %v5441_v16 }
 0x476   : > { %v17140_v58 = vpop.eup %17139  ;;  %6062 = vst [vmem:[%s20653_s18 + $0x68] sm:$0xff] %v17138_v35  ;;  %17159 = vrcp.f32 %v5817_v44  ;;  %v5444_v44 = vsub.f32 0.0, %v20466_v9  ;;  %v5447_v33 = vsub.f32 0.0, %v20472_v61 }
 0x477   : > { %v17142_v46 = vpop.eup %17141  ;;  %6063 = vst [vmem:[%s20653_s18 + $0x70] sm:$0xff] %v17140_v58  ;;  %17161 = vrcp.f32 %v5818_v20  ;;  %v5445_v20 = vsub.f32 0.0, %v20468_v27 }
 0x478   : > { %v17144_v43 = vpop.eup %17143  ;;  %6064 = vst [vmem:[%s20653_s18 + $0x78] sm:$0xff] %v17142_v46  ;;  %17163 = vpow2.f32 %v5589_v47  ;;  %v5603_v47 = vmul.f32 1.442695, %v5442_v7 }
 0x479   : > { %v17146_v28 = vpop.eup %17145  ;;  %6065 = vst [vmem:[%s20653_s18 + $0x80] sm:$0xff] %v17144_v43  ;;  %17165 = vpow2.f32 %v5591_v3  ;;  %v5605_v3 = vmul.f32 1.442695, %v5443_v62 }
 0x47a   : > { %v17148_v35 = vpop.eup %17147  ;;  %6066 = vst [vmem:[%s20653_s18 + $0x88] sm:$0xff] %v17146_v28  ;;  %17167 = vpow2.f32 %v5593_v31  ;;  %v5607_v31 = vmul.f32 1.442695, %v5444_v44  ;;  %v5611_v28 = vmul.f32 1.442695, %v5446_v17 }
 0x47b   : > { %v17150_v58 = vpop.eup %17149  ;;  %6067 = vst [vmem:[%s20653_s18 + $0x90] sm:$0xff] %v17148_v35  ;;  %17169 = vpow2.f32 %v5595_v57  ;;  %v5609_v57 = vmul.f32 1.442695, %v5445_v20 }
 0x47c   : > { %v17152_v46 = vpop.eup %17151  ;;  %6068 = vst [vmem:[%s20653_s18 + $0x98] sm:$0xff] %v17150_v58  ;;  %17171 = vpow2.f32 %v5597_v53  ;;  %v5613_v53 = vmul.f32 1.442695, %v5447_v33 }
 0x47d   : > { %v17154_v43 = vpop.eup %17153  ;;  %6069 = vst [vmem:[%s20653_s18 + $0xa0] sm:$0xff] %v17152_v46  ;;  %17173 = vpow2.f32 %v5599_v29 }
 0x47e   : > { %v17156_v16 = vpop.eup %17155  ;;  %6070 = vst [vmem:[%s20653_s18 + $0xa8] sm:$0xff] %v17154_v43  ;;  %17175 = vpow2.f32 %v5601_v59 }
 0x47f   : > { %v17158_v7 = vpop.eup %17157  ;;  %6071 = vst [vmem:[%s20653_s18 + $0xb0] sm:$0xff] %v17156_v16  ;;  %17177 = vpow2.f32 %v5603_v47 }
 0x480   : > { %v17160_v35 = vpop.eup %17159  ;;  %6072 = vst [vmem:[%s20653_s18 + $0xb8] sm:$0xff] %v17158_v7  ;;  %17179 = vpow2.f32 %v5605_v3 }
 0x481   : > { %v17162_v62 = vpop.eup %17161  ;;  %6073 = vst [vmem:[%s20653_s18 + $0xc0] sm:$0xff] %v17160_v35  ;;  %17181 = vpow2.f32 %v5607_v31 }
 0x482   : > { %v17164_v58 = vpop.eup %17163  ;;  %6074 = vst [vmem:[%s20653_s18 + $0xc8] sm:$0xff] %v17162_v62  ;;  %17183 = vpow2.f32 %v5609_v57 }
 0x483   : > { %v17166_v29 = vpop.eup %17165  ;;  %v5819_v44 = vadd.f32 1.0, %v17164_v58  ;;  %17185 = vpow2.f32 %v5611_v28 }
 0x484   : > { %v17168_v46 = vpop.eup %17167  ;;  %v5820_v59 = vadd.f32 1.0, %v17166_v29  ;;  %17187 = vpow2.f32 %v5613_v53  ;;  %v5448_v53 = vsub.f32 0.0, %v20474_v41  ;;  %v5449_v29 = vsub.f32 0.0, %v20476_v14 }
 0x485   : > { %v17170_v20 = vpop.eup %17169  ;;  %17189 = vrcp.f32 %v5819_v44  ;;  %v5821_v47 = vadd.f32 1.0, %v17168_v46 }
 0x486   : > { %v17172_v17 = vpop.eup %17171  ;;  %17191 = vrcp.f32 %v5820_v59  ;;  %v5822_v43 = vadd.f32 1.0, %v17170_v20  ;;  %v5450_v59 = vsub.f32 0.0, %v20478_v10 }
 0x487   : > { %v17174_v3 = vpop.eup %17173  ;;  %17193 = vrcp.f32 %v5821_v47  ;;  %v5823_v33 = vadd.f32 1.0, %v17172_v17  ;;  %v5451_v17 = vsub.f32 0.0, %v20480_v45 }
 0x488   : > { %v17176_v16 = vpop.eup %17175  ;;  %17195 = vrcp.f32 %v5822_v43  ;;  %v5824_v31 = vadd.f32 1.0, %v17174_v3 }
 0x489   : > { %v17178_v7 = vpop.eup %17177  ;;  %17197 = vrcp.f32 %v5823_v33  ;;  %v5825_v57 = vadd.f32 1.0, %v17176_v16  ;;  %v5615_v33 = vmul.f32 1.442695, %v5448_v53  ;;  %v5452_v16 = vsub.f32 0.0, %v20482_v38 }
 0x48a   : > { %v17180_v35 = vpop.eup %17179  ;;  %17199 = vrcp.f32 %v5824_v31  ;;  %v5826_v28 = vadd.f32 1.0, %v17178_v7  ;;  %v5621_v53 = vmul.f32 1.442695, %v5451_v17 }
 0x48b   : > { %v17182_v62 = vpop.eup %17181  ;;  %17201 = vrcp.f32 %v5825_v57  ;;  %v5827_v58 = vadd.f32 1.0, %v17180_v35  ;;  %v5617_v57 = vmul.f32 1.442695, %v5449_v29  ;;  %v5453_v35 = vsub.f32 0.0, %v20484_v50 }
 0x48c   : > { %v17184_v44 = vpop.eup %17183  ;;  %17203 = vrcp.f32 %v5826_v28  ;;  %v5828_v46 = vadd.f32 1.0, %v17182_v62  ;;  %v5619_v62 = vmul.f32 1.442695, %v5450_v59  ;;  %v5623_v29 = vmul.f32 1.442695, %v5452_v16 }
 0x48d   : > { %v17186_v20 = vpop.eup %17185  ;;  %17205 = vrcp.f32 %v5827_v58  ;;  %v5829_v47 = vadd.f32 1.0, %v17184_v44  ;;  %v5454_v58 = vsub.f32 0.0, %v20486_v60  ;;  %v5625_v59 = vmul.f32 1.442695, %v5453_v35 }
 0x48e   : > { %v17188_v43 = vpop.eup %17187  ;;  %17207 = vrcp.f32 %v5828_v46  ;;  %v5830_v3 = vadd.f32 1.0, %v17186_v20  ;;  %v5455_v46 = vsub.f32 0.0, %v20488_v15  ;;  %v5459_v16 = vsub.f32 0.0, %v20496_v42 }
 0x48f   : > { %v17190_v31 = vpop.eup %17189  ;;  %17209 = vrcp.f32 %v5829_v47  ;;  %v5831_v7 = vadd.f32 1.0, %v17188_v43  ;;  %v5456_v47 = vsub.f32 0.0, %v20490_v8  ;;  %v5627_v17 = vmul.f32 1.442695, %v5454_v58 }
 0x490   : > { %v17192_v28 = vpop.eup %17191  ;;  %6075 = vst [vmem:[%s20653_s18 + $0xd0] sm:$0xff] %v17190_v31  ;;  %17211 = vrcp.f32 %v5830_v3  ;;  %v5457_v3 = vsub.f32 0.0, %v20492_v39  ;;  %v5460_v35 = vsub.f32 0.0, %v20498_v6 }
 0x491   : > { %v17194_v44 = vpop.eup %17193  ;;  %6076 = vst [vmem:[%s20653_s18 + $0xd8] sm:$0xff] %v17192_v28  ;;  %17213 = vrcp.f32 %v5831_v7  ;;  %v5458_v7 = vsub.f32 0.0, %v20494_v56 }
 0x492   : > { %v17196_v20 = vpop.eup %17195  ;;  %6077 = vst [vmem:[%s20653_s18 + $0xe0] sm:$0xff] %v17194_v44  ;;  %17215 = vpow2.f32 %v5615_v33  ;;  %v5629_v33 = vmul.f32 1.442695, %v5455_v46 }
 0x493   : > { %v17198_v43 = vpop.eup %17197  ;;  %6078 = vst [vmem:[%s20653_s18 + $0xe8] sm:$0xff] %v17196_v20  ;;  %17217 = vpow2.f32 %v5617_v57  ;;  %v5631_v57 = vmul.f32 1.442695, %v5456_v47 }
 0x494   : > { %v17200_v31 = vpop.eup %17199  ;;  %6079 = vst [vmem:[%s20653_s18 + $0xf0] sm:$0xff] %v17198_v43  ;;  %17219 = vpow2.f32 %v5619_v62  ;;  %v5633_v62 = vmul.f32 1.442695, %v5457_v3  ;;  %v5637_v43 = vmul.f32 1.442695, %v5459_v16 }
 0x495   : > { %v17202_v28 = vpop.eup %17201  ;;  %6080 = vst [vmem:[%s20653_s18 + $0xf8] sm:$0xff] %v17200_v31  ;;  %17221 = vpow2.f32 %v5621_v53  ;;  %v5635_v53 = vmul.f32 1.442695, %v5458_v7 }
 0x496   : > { %v17204_v44 = vpop.eup %17203  ;;  %6081 = vst [vmem:[%s20653_s18 + $0x100] sm:$0xff] %v17202_v28  ;;  %17223 = vpow2.f32 %v5623_v29  ;;  %v5639_v29 = vmul.f32 1.442695, %v5460_v35 }
 0x497   : > { %v17206_v20 = vpop.eup %17205  ;;  %6082 = vst [vmem:[%s20653_s18 + $0x108] sm:$0xff] %v17204_v44  ;;  %17225 = vpow2.f32 %v5625_v59 }
 0x498   : > { %v17208_v58 = vpop.eup %17207  ;;  %6083 = vst [vmem:[%s20653_s18 + $0x110] sm:$0xff] %v17206_v20  ;;  %17227 = vpow2.f32 %v5627_v17 }
 0x499   : > { %v17210_v46 = vpop.eup %17209  ;;  %6084 = vst [vmem:[%s20653_s18 + $0x118] sm:$0xff] %v17208_v58  ;;  %17229 = vpow2.f32 %v5629_v33 }
 0x49a   : > { %v17212_v31 = vpop.eup %17211  ;;  %6085 = vst [vmem:[%s20653_s18 + $0x120] sm:$0xff] %v17210_v46  ;;  %17231 = vpow2.f32 %v5631_v57 }
 0x49b   : > { %v17214_v47 = vpop.eup %17213  ;;  %6086 = vst [vmem:[%s20653_s18 + $0x128] sm:$0xff] %v17212_v31  ;;  %17233 = vpow2.f32 %v5633_v62 }
 0x49c   : > { %v17216_v28 = vpop.eup %17215  ;;  %6087 = vst [vmem:[%s20653_s18 + $0x130] sm:$0xff] %v17214_v47  ;;  %17235 = vpow2.f32 %v5635_v53  ;;  %v26125_v47 = vld [vmem:[#allocation34_spill] sm:$0xff] }
 0x49d   : > { %v17218_v59 = vpop.eup %17217  ;;  %v5832_v3 = vadd.f32 1.0, %v17216_v28  ;;  %17237 = vpow2.f32 %v5637_v43 }
 0x49e   : > { %v17220_v44 = vpop.eup %17219  ;;  %v5833_v17 = vadd.f32 1.0, %v17218_v59  ;;  %17239 = vpow2.f32 %v5639_v29  ;;  %v5461_v29 = vsub.f32 0.0, %v26125_v47 }
 0x49f   : > { %v17222_v7 = vpop.eup %17221  ;;  %17241 = vrcp.f32 %v5832_v3  ;;  %v5834_v33 = vadd.f32 1.0, %v17220_v44  ;;  %v26126_v3 = vld [vmem:[#allocation30_spill] sm:$0xff] }
 0x4a0   : > { %v17224_v16 = vpop.eup %17223  ;;  %17243 = vrcp.f32 %v5833_v17  ;;  %v5835_v20 = vadd.f32 1.0, %v17222_v7  ;;  %v5462_v44 = vsub.f32 0.0, %v26126_v3  ;;  %v5641_v47 = vmul.f32 1.442695, %v5461_v29  ;;  %v26130_v3 = vld [vmem:[#allocation103_spill] sm:$0xff] }
 0x4a1   : > { %v17226_v57 = vpop.eup %17225  ;;  %17245 = vrcp.f32 %v5834_v33  ;;  %v5836_v35 = vadd.f32 1.0, %v17224_v16  ;;  %v26127_v33 = vld [vmem:[#allocation31_spill] sm:$0xff] }
 0x4a2   : > { %v17228_v58 = vpop.eup %17227  ;;  %17247 = vrcp.f32 %v5835_v20  ;;  %v5837_v62 = vadd.f32 1.0, %v17226_v57  ;;  %v5463_v16 = vsub.f32 0.0, %v26127_v33  ;;  %v5466_v33 = vsub.f32 0.0, %v26130_v3 }
 0x4a3   : > { %v17230_v46 = vpop.eup %17229  ;;  %17249 = vrcp.f32 %v5836_v35  ;;  %v5838_v53 = vadd.f32 1.0, %v17228_v58  ;;  %v26128_v35 = vld [vmem:[#allocation36_spill] sm:$0xff] }
 0x4a4   : > { %v17232_v31 = vpop.eup %17231  ;;  %17251 = vrcp.f32 %v5837_v62  ;;  %v5839_v43 = vadd.f32 1.0, %v17230_v46  ;;  %v5464_v58 = vsub.f32 0.0, %v26128_v35 }
 0x4a5   : > { %v17234_v28 = vpop.eup %17233  ;;  %17253 = vrcp.f32 %v5838_v53  ;;  %v5840_v59 = vadd.f32 1.0, %v17232_v31  ;;  %v26129_v53 = vld [vmem:[#allocation37_spill] sm:$0xff] }
 0x4a6   : > { %v17236_v17 = vpop.eup %17235  ;;  %17255 = vrcp.f32 %v5839_v43  ;;  %v5841_v7 = vadd.f32 1.0, %v17234_v28  ;;  %v5465_v31 = vsub.f32 0.0, %v26129_v53  ;;  %v5643_v28 = vmul.f32 1.442695, %v5462_v44 }
 0x4a7   : > { %v17238_v20 = vpop.eup %17237  ;;  %17257 = vrcp.f32 %v5840_v59  ;;  %v5842_v57 = vadd.f32 1.0, %v17236_v17  ;;  %v5645_v59 = vmul.f32 1.442695, %v5463_v16  ;;  %v26131_v17 = vld [vmem:[#allocation104_spill] sm:$0xff]  ;;  %v5647_v29 = vmul.f32 1.442695, %v5464_v58 }
 0x4a8   : > { %v17240_v62 = vpop.eup %17239  ;;  %17259 = vrcp.f32 %v5841_v7  ;;  %v5843_v46 = vadd.f32 1.0, %v17238_v20  ;;  %v5467_v35 = vsub.f32 0.0, %v26131_v17  ;;  %v26132_v7 = vld [vmem:[#allocation46_spill] sm:$0xff]  ;;  %v5649_v44 = vmul.f32 1.442695, %v5465_v31  ;;  %v26134_v16 = vld [vmem:[#allocation43_spill] sm:$0xff] }
 0x4a9   : > { %v17242_v6 = vpop.eup %17241  ;;  %17261 = vrcp.f32 %v5842_v57  ;;  %v5844_v43 = vadd.f32 1.0, %v17240_v62  ;;  %v5468_v20 = vsub.f32 0.0, %v26132_v7  ;;  %v26133_v57 = vld [vmem:[#allocation42_spill] sm:$0xff]  ;;  %v26136_v31 = vld [vmem:[#allocation112_spill] sm:$0xff] }
 0x4aa   : > { %v17244_v56 = vpop.eup %17243  ;;  %6088 = vst [vmem:[%s20653_s18 + $0x138] sm:$0xff] %v17242_v6  ;;  %17263 = vrcp.f32 %v5843_v46  ;;  %v5469_v62 = vsub.f32 0.0, %v26133_v57  ;;  %v5651_v6 = vmul.f32 1.442695, %v5466_v33  ;;  %v5470_v46 = vsub.f32 0.0, %v26134_v16  ;;  %v26135_v58 = vld [vmem:[#allocation110_spill] sm:$0xff] }
 0x4ab   : > { %v17246_v42 = vpop.eup %17245  ;;  %6089 = vst [vmem:[%s20653_s18 + $0x140] sm:$0xff] %v17244_v56  ;;  %17265 = vrcp.f32 %v5844_v43  ;;  %v5653_v56 = vmul.f32 1.442695, %v5467_v35  ;;  %v5471_v43 = vsub.f32 0.0, %v26135_v58  ;;  %v5472_v7 = vsub.f32 0.0, %v26136_v31  ;;  %v26137_v33 = vld [vmem:[#allocation115_spill] sm:$0xff] }
 0x4ac   : > { %v17248_v53 = vpop.eup %17247  ;;  %6090 = vst [vmem:[%s20653_s18 + $0x148] sm:$0xff] %v17246_v42  ;;  %17267 = vpow2.f32 %v5641_v47  ;;  %v5655_v47 = vmul.f32 1.442695, %v5468_v20  ;;  %v5473_v57 = vsub.f32 0.0, %v26137_v33 }
 0x4ad   : > { %v17250_v3 = vpop.eup %17249  ;;  %6091 = vst [vmem:[%s20653_s18 + $0x150] sm:$0xff] %v17248_v53  ;;  %17269 = vpow2.f32 %v5643_v28  ;;  %v5657_v28 = vmul.f32 1.442695, %v5469_v62  ;;  %v5663_v16 = vmul.f32 1.442695, %v5472_v7 }
 0x4ae   : > { %v17252_v17 = vpop.eup %17251  ;;  %6092 = vst [vmem:[%s20653_s18 + $0x158] sm:$0xff] %v17250_v3  ;;  %17271 = vpow2.f32 %v5645_v59  ;;  %v5659_v59 = vmul.f32 1.442695, %v5470_v46 }
 0x4af   : > { %v17254_v42 = vpop.eup %17253  ;;  %6093 = vst [vmem:[%s20653_s18 + $0x160] sm:$0xff] %v17252_v17  ;;  %17273 = vpow2.f32 %v5647_v29  ;;  %v5661_v29 = vmul.f32 1.442695, %v5471_v43 }
 0x4b0   : > { %v17256_v53 = vpop.eup %17255  ;;  %6094 = vst [vmem:[%s20653_s18 + $0x168] sm:$0xff] %v17254_v42  ;;  %17275 = vpow2.f32 %v5649_v44  ;;  %v5665_v44 = vmul.f32 1.442695, %v5473_v57 }
 0x4b1   : > { %v17258_v3 = vpop.eup %17257  ;;  %6095 = vst [vmem:[%s20653_s18 + $0x170] sm:$0xff] %v17256_v53  ;;  %17277 = vpow2.f32 %v5651_v6 }
 0x4b2   : > { %v17260_v35 = vpop.eup %17259  ;;  %6096 = vst [vmem:[%s20653_s18 + $0x178] sm:$0xff] %v17258_v3  ;;  %17279 = vpow2.f32 %v5653_v56 }
 0x4b3   : > { %v17262_v20 = vpop.eup %17261  ;;  %6097 = vst [vmem:[%s20653_s18 + $0x180] sm:$0xff] %v17260_v35  ;;  %17281 = vpow2.f32 %v5655_v47 }
 0x4b4   : > { %v17264_v17 = vpop.eup %17263  ;;  %6098 = vst [vmem:[%s20653_s18 + $0x188] sm:$0xff] %v17262_v20  ;;  %17283 = vpow2.f32 %v5657_v28  ;;  %v26138_v20 = vld [vmem:[#allocation116_spill] sm:$0xff] }
 0x4b5   : > { %v17266_v62 = vpop.eup %17265  ;;  %6099 = vst [vmem:[%s20653_s18 + $0x190] sm:$0xff] %v17264_v17  ;;  %17285 = vpow2.f32 %v5659_v59 }
 0x4b6   : > { %v17268_v58 = vpop.eup %17267  ;;  %6100 = vst [vmem:[%s20653_s18 + $0x198] sm:$0xff] %v17266_v62  ;;  %17287 = vpow2.f32 %v5661_v29  ;;  %v26139_v62 = vld [vmem:[#allocation121_spill] sm:$0xff] }
 0x4b7   : > { %v17270_v6 = vpop.eup %17269  ;;  %v5845_v46 = vadd.f32 1.0, %v17268_v58  ;;  %17289 = vpow2.f32 %v5663_v16  ;;  %v5474_v16 = vsub.f32 0.0, %v26138_v20  ;;  %v5475_v58 = vsub.f32 0.0, %v26139_v62  ;;  %v26143_v20 = vld [vmem:[#allocation133_spill] sm:$0xff] }
 0x4b8   : > { %v17272_v42 = vpop.eup %17271  ;;  %v5846_v56 = vadd.f32 1.0, %v17270_v6  ;;  %17291 = vpow2.f32 %v5665_v44 }
 0x4b9   : > { %v17274_v43 = vpop.eup %17273  ;;  %17293 = vrcp.f32 %v5845_v46  ;;  %v5847_v47 = vadd.f32 1.0, %v17272_v42  ;;  %v26140_v42 = vld [vmem:[#allocation125_spill] sm:$0xff] }
 0x4ba   : > { %v17276_v31 = vpop.eup %17275  ;;  %17295 = vrcp.f32 %v5846_v56  ;;  %v5848_v7 = vadd.f32 1.0, %v17274_v43  ;;  %v5476_v56 = vsub.f32 0.0, %v26140_v42 }
 0x4bb   : > { %v17278_v53 = vpop.eup %17277  ;;  %17297 = vrcp.f32 %v5847_v47  ;;  %v5849_v28 = vadd.f32 1.0, %v17276_v31  ;;  %v26141_v31 = vld [vmem:[#allocation127_spill] sm:$0xff] }
 0x4bc   : > { %v17280_v33 = vpop.eup %17279  ;;  %17299 = vrcp.f32 %v5848_v7  ;;  %v5850_v57 = vadd.f32 1.0, %v17278_v53  ;;  %v5477_v7 = vsub.f32 0.0, %v26141_v31 }
 0x4bd   : > { %v17282_v3 = vpop.eup %17281  ;;  %17301 = vrcp.f32 %v5849_v28  ;;  %v5851_v59 = vadd.f32 1.0, %v17280_v33  ;;  %v5667_v33 = vmul.f32 1.442695, %v5474_v16 }
 0x4be   : > { %v17284_v35 = vpop.eup %17283  ;;  %17303 = vrcp.f32 %v5850_v57  ;;  %v5852_v29 = vadd.f32 1.0, %v17282_v3  ;;  %v26142_v57 = vld [vmem:[#allocation128_spill] sm:$0xff]  ;;  %v5673_v16 = vmul.f32 1.442695, %v5477_v7 }
 0x4bf   : > { %v17286_v17 = vpop.eup %17285  ;;  %17305 = vrcp.f32 %v5851_v59  ;;  %v5853_v44 = vadd.f32 1.0, %v17284_v35  ;;  %v5478_v3 = vsub.f32 0.0, %v26142_v57 }
 0x4c0   : > { %v17288_v6 = vpop.eup %17287  ;;  %17307 = vrcp.f32 %v5852_v29  ;;  %v5854_v46 = vadd.f32 1.0, %v17286_v17  ;;  %v5669_v29 = vmul.f32 1.442695, %v5475_v58  ;;  %v5479_v17 = vsub.f32 0.0, %v26143_v20 }
 0x4c1   : > { %v17290_v43 = vpop.eup %17289  ;;  %17309 = vrcp.f32 %v5853_v44  ;;  %v5855_v47 = vadd.f32 1.0, %v17288_v6  ;;  %v5671_v44 = vmul.f32 1.442695, %v5476_v56  ;;  %v26144_v6 = vld [vmem:[#allocation135_spill] sm:$0xff]  ;;  %v5675_v58 = vmul.f32 1.442695, %v5478_v3 }
 0x4c2   : > { %v17292_v53 = vpop.eup %17291  ;;  %17311 = vrcp.f32 %v5854_v46  ;;  %v5856_v28 = vadd.f32 1.0, %v17290_v43  ;;  %v5480_v42 = vsub.f32 0.0, %v26144_v6  ;;  %v26145_v46 = vld [vmem:[#allocation138_spill] sm:$0xff]  ;;  %v5677_v56 = vmul.f32 1.442695, %v5479_v17  ;;  %v26150_v17 = vld [vmem:[#allocation143_spill] sm:$0xff] }
 0x4c3   : > { %v17294_v59 = vpop.eup %17293  ;;  %17313 = vrcp.f32 %v5855_v47  ;;  %v5857_v35 = vadd.f32 1.0, %v17292_v53  ;;  %v5481_v43 = vsub.f32 0.0, %v26145_v46  ;;  %v26146_v47 = vld [vmem:[#allocation140_spill] sm:$0xff]  ;;  %v26149_v3 = vld [vmem:[#allocation70_spill] sm:$0xff] }
 0x4c4   : > { %v17296_v62 = vpop.eup %17295  ;;  %6101 = vst [vmem:[%s20653_s18 + $0x1a0] sm:$0xff] %v17294_v59  ;;  %17315 = vrcp.f32 %v5856_v28  ;;  %v5482_v53 = vsub.f32 0.0, %v26146_v47  ;;  %v26147_v28 = vld [vmem:[#allocation141_spill] sm:$0xff]  ;;  %v5679_v7 = vmul.f32 1.442695, %v5480_v42  ;;  %v5485_v46 = vsub.f32 0.0, %v26149_v3 }
 0x4c5   : > { %v17298_v31 = vpop.eup %17297  ;;  %6102 = vst [vmem:[%s20653_s18 + $0x1a8] sm:$0xff] %v17296_v62  ;;  %17317 = vrcp.f32 %v5857_v35  ;;  %v5483_v59 = vsub.f32 0.0, %v26147_v28  ;;  %v26148_v35 = vld [vmem:[#allocation69_spill] sm:$0xff]  ;;  %v5486_v47 = vsub.f32 0.0, %v26150_v17 }
 0x4c6   : > { %v17300_v57 = vpop.eup %17299  ;;  %6103 = vst [vmem:[%s20653_s18 + $0x1b0] sm:$0xff] %v17298_v31  ;;  %17319 = vpow2.f32 %v5667_v33  ;;  %v5484_v62 = vsub.f32 0.0, %v26148_v35  ;;  %v5681_v33 = vmul.f32 1.442695, %v5481_v43  ;;  %v5689_v28 = vmul.f32 1.442695, %v5485_v46 }
 0x4c7   : > { %v17302_v20 = vpop.eup %17301  ;;  %6104 = vst [vmem:[%s20653_s18 + $0x1b8] sm:$0xff] %v17300_v57  ;;  %17321 = vpow2.f32 %v5669_v29  ;;  %v5683_v29 = vmul.f32 1.442695, %v5482_v53 }
 0x4c8   : > { %v17304_v6 = vpop.eup %17303  ;;  %6105 = vst [vmem:[%s20653_s18 + $0x1c0] sm:$0xff] %v17302_v20  ;;  %17323 = vpow2.f32 %v5671_v44  ;;  %v5685_v44 = vmul.f32 1.442695, %v5483_v59 }
 0x4c9   : > { %v17306_v31 = vpop.eup %17305  ;;  %6106 = vst [vmem:[%s20653_s18 + $0x1c8] sm:$0xff] %v17304_v6  ;;  %17325 = vpow2.f32 %v5673_v16  ;;  %v5687_v16 = vmul.f32 1.442695, %v5484_v62 }
 0x4ca   : > { %v17308_v57 = vpop.eup %17307  ;;  %6107 = vst [vmem:[%s20653_s18 + $0x1d0] sm:$0xff] %v17306_v31  ;;  %17327 = vpow2.f32 %v5675_v58  ;;  %v5691_v58 = vmul.f32 1.442695, %v5486_v47 }
 0x4cb   : > { %v17310_v20 = vpop.eup %17309  ;;  %6108 = vst [vmem:[%s20653_s18 + $0x1d8] sm:$0xff] %v17308_v57  ;;  %17329 = vpow2.f32 %v5677_v56 }
 0x4cc   : > { %v17312_v42 = vpop.eup %17311  ;;  %6109 = vst [vmem:[%s20653_s18 + $0x1e0] sm:$0xff] %v17310_v20  ;;  %17331 = vpow2.f32 %v5679_v7 }
 0x4cd   : > { %v17314_v43 = vpop.eup %17313  ;;  %6110 = vst [vmem:[%s20653_s18 + $0x1e8] sm:$0xff] %v17312_v42  ;;  %17333 = vpow2.f32 %v5681_v33 }
 0x4ce   : > { %v17316_v6 = vpop.eup %17315  ;;  %6111 = vst [vmem:[%s20653_s18 + $0x1f0] sm:$0xff] %v17314_v43  ;;  %17335 = vpow2.f32 %v5683_v29  ;;  %v26151_v43 = vld [vmem:[#allocation77_spill] sm:$0xff] }
 0x4cf   : > { %v17318_v53 = vpop.eup %17317  ;;  %6112 = vst [vmem:[%s20653_s18 + $0x1f8] sm:$0xff] %v17316_v6  ;;  %17337 = vpow2.f32 %v5685_v44 }
 0x4d0   : > { %v17320_v35 = vpop.eup %17319  ;;  %6113 = vst [vmem:[%s20653_s18 + $0x200] sm:$0xff] %v17318_v53  ;;  %17339 = vpow2.f32 %v5687_v16  ;;  %v26152_v53 = vld [vmem:[#allocation144_spill] sm:$0xff] }
 0x4d1   : > { %v17322_v56 = vpop.eup %17321  ;;  %v5858_v59 = vadd.f32 1.0, %v17320_v35  ;;  %17341 = vpow2.f32 %v5689_v28  ;;  %v5487_v28 = vsub.f32 0.0, %v26151_v43  ;;  %v5488_v35 = vsub.f32 0.0, %v26152_v53  ;;  %v26156_v43 = vld [vmem:[#allocation9_spill] sm:$0xff] }
 0x4d2   : > { %v17324_v31 = vpop.eup %17323  ;;  %v5859_v7 = vadd.f32 1.0, %v17322_v56  ;;  %17343 = vpow2.f32 %v5691_v58 }
 0x4d3   : > { %v17326_v62 = vpop.eup %17325  ;;  %17345 = vrcp.f32 %v5858_v59  ;;  %v5860_v33 = vadd.f32 1.0, %v17324_v31  ;;  %v26153_v31 = vld [vmem:[#allocation85_spill] sm:$0xff] }
 0x4d4   : > { %v17328_v3 = vpop.eup %17327  ;;  %17347 = vrcp.f32 %v5859_v7  ;;  %v5861_v46 = vadd.f32 1.0, %v17326_v62  ;;  %v5489_v7 = vsub.f32 0.0, %v26153_v31 }
 0x4d5   : > { %v17330_v57 = vpop.eup %17329  ;;  %17349 = vrcp.f32 %v5860_v33  ;;  %v5862_v29 = vadd.f32 1.0, %v17328_v3  ;;  %v26154_v3 = vld [vmem:[#allocation145_spill] sm:$0xff] }
 0x4d6   : > { %v17332_v17 = vpop.eup %17331  ;;  %17351 = vrcp.f32 %v5861_v46  ;;  %v5863_v47 = vadd.f32 1.0, %v17330_v57  ;;  %v5490_v46 = vsub.f32 0.0, %v26154_v3 }
 0x4d7   : > { %v17334_v20 = vpop.eup %17333  ;;  %17353 = vrcp.f32 %v5862_v29  ;;  %v5864_v44 = vadd.f32 1.0, %v17332_v17  ;;  %v5693_v17 = vmul.f32 1.442695, %v5487_v28 }
 0x4d8   : > { %v17336_v42 = vpop.eup %17335  ;;  %17355 = vrcp.f32 %v5863_v47  ;;  %v5865_v16 = vadd.f32 1.0, %v17334_v20  ;;  %v26155_v47 = vld [vmem:[#allocation147_spill] sm:$0xff]  ;;  %v5699_v28 = vmul.f32 1.442695, %v5490_v46 }
 0x4d9   : > { %v17338_v6 = vpop.eup %17337  ;;  %17357 = vrcp.f32 %v5864_v44  ;;  %v5866_v58 = vadd.f32 1.0, %v17336_v42  ;;  %v5491_v20 = vsub.f32 0.0, %v26155_v47 }
 0x4da   : > { %v17340_v56 = vpop.eup %17339  ;;  %17359 = vrcp.f32 %v5865_v16  ;;  %v5867_v59 = vadd.f32 1.0, %v17338_v6  ;;  %v5695_v16 = vmul.f32 1.442695, %v5488_v35  ;;  %v5492_v6 = vsub.f32 0.0, %v26156_v43 }
 0x4db   : > { %v17342_v62 = vpop.eup %17341  ;;  %17361 = vrcp.f32 %v5866_v58  ;;  %v5868_v33 = vadd.f32 1.0, %v17340_v56  ;;  %v5697_v58 = vmul.f32 1.442695, %v5489_v7  ;;  %v26157_v56 = vld [vmem:[#allocation11_spill] sm:$0xff]  ;;  %v5701_v35 = vmul.f32 1.442695, %v5491_v20 }
 0x4dc   : > { %v17344_v57 = vpop.eup %17343  ;;  %17363 = vrcp.f32 %v5867_v59  ;;  %v5869_v29 = vadd.f32 1.0, %v17342_v62  ;;  %v5493_v31 = vsub.f32 0.0, %v26157_v56  ;;  %v26158_v59 = vld [vmem:[#allocation148_spill] sm:$0xff]  ;;  %v5703_v7 = vmul.f32 1.442695, %v5492_v6  ;;  %v26163_v6 = vld [vmem:[#allocation93_spill] sm:$0xff] }
 0x4dd   : > { %v17346_v44 = vpop.eup %17345  ;;  %17365 = vrcp.f32 %v5868_v33  ;;  %v5870_v42 = vadd.f32 1.0, %v17344_v57  ;;  %v5494_v62 = vsub.f32 0.0, %v26158_v59  ;;  %v26159_v33 = vld [vmem:[#allocation150_spill] sm:$0xff]  ;;  %v26162_v20 = vld [vmem:[#allocation88_spill] sm:$0xff] }
 0x4de   : > { %v17348_v53 = vpop.eup %17347  ;;  %6114 = vst [vmem:[%s20653_s18 + $0x208] sm:$0xff] %v17346_v44  ;;  %17367 = vrcp.f32 %v5869_v29  ;;  %v5495_v57 = vsub.f32 0.0, %v26159_v33  ;;  %v26160_v29 = vld [vmem:[#allocation153_spill] sm:$0xff]  ;;  %v5705_v46 = vmul.f32 1.442695, %v5493_v31  ;;  %v5498_v59 = vsub.f32 0.0, %v26162_v20 }
 0x4df   : > { %v17350_v3 = vpop.eup %17349  ;;  %6115 = vst [vmem:[%s20653_s18 + $0x210] sm:$0xff] %v17348_v53  ;;  %17369 = vrcp.f32 %v5870_v42  ;;  %v5496_v44 = vsub.f32 0.0, %v26160_v29  ;;  %v26161_v42 = vld [vmem:[#allocation155_spill] sm:$0xff]  ;;  %v5499_v33 = vsub.f32 0.0, %v26163_v6 }
 0x4e0   : > { %v17352_v47 = vpop.eup %17351  ;;  %6116 = vst [vmem:[%s20653_s18 + $0x218] sm:$0xff] %v17350_v3  ;;  %17371 = vpow2.f32 %v5693_v17  ;;  %v5497_v53 = vsub.f32 0.0, %v26161_v42  ;;  %v5707_v17 = vmul.f32 1.442695, %v5494_v62  ;;  %v5715_v29 = vmul.f32 1.442695, %v5498_v59 }
 0x4e1   : > { %v17354_v43 = vpop.eup %17353  ;;  %6117 = vst [vmem:[%s20653_s18 + $0x220] sm:$0xff] %v17352_v47  ;;  %17373 = vpow2.f32 %v5695_v16  ;;  %v5709_v16 = vmul.f32 1.442695, %v5495_v57 }
 0x4e2   : > { %v17356_v56 = vpop.eup %17355  ;;  %6118 = vst [vmem:[%s20653_s18 + $0x228] sm:$0xff] %v17354_v43  ;;  %17375 = vpow2.f32 %v5697_v58  ;;  %v5711_v58 = vmul.f32 1.442695, %v5496_v44 }
 0x4e3   : > { %v17358_v3 = vpop.eup %17357  ;;  %6119 = vst [vmem:[%s20653_s18 + $0x230] sm:$0xff] %v17356_v56  ;;  %17377 = vpow2.f32 %v5699_v28  ;;  %v5713_v28 = vmul.f32 1.442695, %v5497_v53 }
 0x4e4   : > { %v17360_v47 = vpop.eup %17359  ;;  %6120 = vst [vmem:[%s20653_s18 + $0x238] sm:$0xff] %v17358_v3  ;;  %17379 = vpow2.f32 %v5701_v35  ;;  %v5717_v35 = vmul.f32 1.442695, %v5499_v33 }
 0x4e5   : > { %v17362_v43 = vpop.eup %17361  ;;  %6121 = vst [vmem:[%s20653_s18 + $0x240] sm:$0xff] %v17360_v47  ;;  %17381 = vpow2.f32 %v5703_v7 }
 0x4e6   : > { %v17364_v31 = vpop.eup %17363  ;;  %6122 = vst [vmem:[%s20653_s18 + $0x248] sm:$0xff] %v17362_v43  ;;  %17383 = vpow2.f32 %v5705_v46 }
 0x4e7   : > { %v17366_v62 = vpop.eup %17365  ;;  %6123 = vst [vmem:[%s20653_s18 + $0x250] sm:$0xff] %v17364_v31  ;;  %17385 = vpow2.f32 %v5707_v17 }
 0x4e8   : > { %v17368_v56 = vpop.eup %17367  ;;  %6124 = vst [vmem:[%s20653_s18 + $0x258] sm:$0xff] %v17366_v62  ;;  %17387 = vpow2.f32 %v5709_v16  ;;  %v26164_v62 = vld [vmem:[#allocation20_spill] sm:$0xff] }
 0x4e9   : > { %v17370_v57 = vpop.eup %17369  ;;  %6125 = vst [vmem:[%s20653_s18 + $0x260] sm:$0xff] %v17368_v56  ;;  %17389 = vpow2.f32 %v5711_v58 }
 0x4ea   : > { %v17372_v42 = vpop.eup %17371  ;;  %6126 = vst [vmem:[%s20653_s18 + $0x268] sm:$0xff] %v17370_v57  ;;  %17391 = vpow2.f32 %v5713_v28  ;;  %v26165_v57 = vld [vmem:[#allocation18_spill] sm:$0xff] }
 0x4eb   : > { %v17374_v7 = vpop.eup %17373  ;;  %v5871_v44 = vadd.f32 1.0, %v17372_v42  ;;  %17393 = vpow2.f32 %v5715_v29  ;;  %v5500_v29 = vsub.f32 0.0, %v26164_v62  ;;  %v5501_v42 = vsub.f32 0.0, %v26165_v57  ;;  %v26169_v62 = vld [vmem:[#allocation26_spill] sm:$0xff] }
 0x4ec   : > { %v17376_v3 = vpop.eup %17375  ;;  %v5872_v46 = vadd.f32 1.0, %v17374_v7  ;;  %17395 = vpow2.f32 %v5717_v35 }
 0x4ed   : > { %v17378_v53 = vpop.eup %17377  ;;  %17397 = vrcp.f32 %v5871_v44  ;;  %v5873_v17 = vadd.f32 1.0, %v17376_v3  ;;  %v26166_v3 = vld [vmem:[#allocation24_spill] sm:$0xff] }
 0x4ee   : > { %v17380_v20 = vpop.eup %17379  ;;  %17399 = vrcp.f32 %v5872_v46  ;;  %v5874_v59 = vadd.f32 1.0, %v17378_v53  ;;  %v5502_v46 = vsub.f32 0.0, %v26166_v3 }
 0x4ef   : > { %v17382_v47 = vpop.eup %17381  ;;  %17401 = vrcp.f32 %v5873_v17  ;;  %v5875_v16 = vadd.f32 1.0, %v17380_v20  ;;  %v26167_v20 = vld [vmem:[#allocation94_spill] sm:$0xff] }
 0x4f0   : > { %v17384_v6 = vpop.eup %17383  ;;  %17403 = vrcp.f32 %v5874_v59  ;;  %v5876_v33 = vadd.f32 1.0, %v17382_v47  ;;  %v5503_v59 = vsub.f32 0.0, %v26167_v20 }
 0x4f1   : > { %v17386_v43 = vpop.eup %17385  ;;  %17405 = vrcp.f32 %v5875_v16  ;;  %v5877_v58 = vadd.f32 1.0, %v17384_v6  ;;  %v5719_v6 = vmul.f32 1.442695, %v5500_v29 }
 0x4f2   : > { %v17388_v31 = vpop.eup %17387  ;;  %17407 = vrcp.f32 %v5876_v33  ;;  %v5878_v28 = vadd.f32 1.0, %v17386_v43  ;;  %v26168_v33 = vld [vmem:[#allocation96_spill] sm:$0xff]  ;;  %v5725_v29 = vmul.f32 1.442695, %v5503_v59 }
 0x4f3   : > { %v17390_v56 = vpop.eup %17389  ;;  %17409 = vrcp.f32 %v5877_v58  ;;  %v5879_v35 = vadd.f32 1.0, %v17388_v31  ;;  %v5504_v43 = vsub.f32 0.0, %v26168_v33 }
 0x4f4   : > { %v17392_v7 = vpop.eup %17391  ;;  %17411 = vrcp.f32 %v5878_v28  ;;  %v5880_v44 = vadd.f32 1.0, %v17390_v56  ;;  %v5721_v28 = vmul.f32 1.442695, %v5501_v42  ;;  %v5505_v56 = vsub.f32 0.0, %v26169_v62 }
 0x4f5   : > { %v17394_v53 = vpop.eup %17393  ;;  %17413 = vrcp.f32 %v5879_v35  ;;  %v5881_v17 = vadd.f32 1.0, %v17392_v7  ;;  %v5723_v35 = vmul.f32 1.442695, %v5502_v46  ;;  %v26170_v7 = vld [vmem:[#allocation32_spill] sm:$0xff]  ;;  %v5727_v42 = vmul.f32 1.442695, %v5504_v43 }
 0x4f6   : > { %v17396_v47 = vpop.eup %17395  ;;  %17415 = vrcp.f32 %v5880_v44  ;;  %v5882_v16 = vadd.f32 1.0, %v17394_v53  ;;  %v5506_v3 = vsub.f32 0.0, %v26170_v7  ;;  %v26171_v44 = vld [vmem:[#allocation29_spill] sm:$0xff]  ;;  %v5729_v46 = vmul.f32 1.442695, %v5505_v56  ;;  %v26175_v43 = vld [vmem:[#allocation39_spill] sm:$0xff] }
 0x4f7   : > { %v17398_v58 = vpop.eup %17397  ;;  %17417 = vrcp.f32 %v5881_v17  ;;  %v5883_v31 = vadd.f32 1.0, %v17396_v47  ;;  %v5507_v53 = vsub.f32 0.0, %v26171_v44  ;;  %v26172_v17 = vld [vmem:[#allocation35_spill] sm:$0xff]  ;;  %v5511_v44 = vsub.f32 0.0, %v26175_v43  ;;  %v26176_v56 = vld [vmem:[#allocation45_spill] sm:$0xff] }
 0x4f8   : > { %v17400_v57 = vpop.eup %17399  ;;  %6127 = vst [vmem:[%s20653_s18 + $0x270] sm:$0xff] %v17398_v58  ;;  %17419 = vrcp.f32 %v5882_v16  ;;  %v5508_v47 = vsub.f32 0.0, %v26172_v17  ;;  %v26173_v16 = vld [vmem:[#allocation97_spill] sm:$0xff]  ;;  %v5731_v59 = vmul.f32 1.442695, %v5506_v3  ;;  %v5512_v17 = vsub.f32 0.0, %v26176_v56 }
 0x4f9   : > { %v17402_v20 = vpop.eup %17401  ;;  %6128 = vst [vmem:[%s20653_s18 + $0x278] sm:$0xff] %v17400_v57  ;;  %17421 = vrcp.f32 %v5883_v31  ;;  %v5509_v58 = vsub.f32 0.0, %v26173_v16  ;;  %v26174_v31 = vld [vmem:[#allocation105_spill] sm:$0xff]  ;;  %v5741_v16 = vmul.f32 1.442695, %v5511_v44 }
 0x4fa   : > { %v17404_v33 = vpop.eup %17403  ;;  %6129 = vst [vmem:[%s20653_s18 + $0x280] sm:$0xff] %v17402_v20  ;;  %17423 = vpow2.f32 %v5719_v6  ;;  %v5510_v57 = vsub.f32 0.0, %v26174_v31  ;;  %v5733_v6 = vmul.f32 1.442695, %v5507_v53 }
 0x4fb   : > { %v17406_v62 = vpop.eup %17405  ;;  %6130 = vst [vmem:[%s20653_s18 + $0x288] sm:$0xff] %v17404_v33  ;;  %17425 = vpow2.f32 %v5721_v28  ;;  %v5735_v28 = vmul.f32 1.442695, %v5508_v47 }
 0x4fc   : > { %v17408_v7 = vpop.eup %17407  ;;  %6131 = vst [vmem:[%s20653_s18 + $0x290] sm:$0xff] %v17406_v62  ;;  %17427 = vpow2.f32 %v5723_v35  ;;  %v5737_v35 = vmul.f32 1.442695, %v5509_v58 }
 0x4fd   : > { %v17410_v20 = vpop.eup %17409  ;;  %6132 = vst [vmem:[%s20653_s18 + $0x298] sm:$0xff] %v17408_v7  ;;  %17429 = vpow2.f32 %v5725_v29  ;;  %v5739_v29 = vmul.f32 1.442695, %v5510_v57 }
 0x4fe   : > { %v17412_v33 = vpop.eup %17411  ;;  %6133 = vst [vmem:[%s20653_s18 + $0x2a0] sm:$0xff] %v17410_v20  ;;  %17431 = vpow2.f32 %v5727_v42  ;;  %v5743_v42 = vmul.f32 1.442695, %v5512_v17 }
 0x4ff   : > { %v17414_v62 = vpop.eup %17413  ;;  %6134 = vst [vmem:[%s20653_s18 + $0x2a8] sm:$0xff] %v17412_v33  ;;  %17433 = vpow2.f32 %v5729_v46 }
 0x500   : > { %v17416_v3 = vpop.eup %17415  ;;  %6135 = vst [vmem:[%s20653_s18 + $0x2b0] sm:$0xff] %v17414_v62  ;;  %17435 = vpow2.f32 %v5731_v59 }
 0x501   : > { %v17418_v53 = vpop.eup %17417  ;;  %6136 = vst [vmem:[%s20653_s18 + $0x2b8] sm:$0xff] %v17416_v3  ;;  %17437 = vpow2.f32 %v5733_v6 }
 0x502   : > { %v17420_v7 = vpop.eup %17419  ;;  %6137 = vst [vmem:[%s20653_s18 + $0x2c0] sm:$0xff] %v17418_v53  ;;  %17439 = vpow2.f32 %v5735_v28  ;;  %v26177_v53 = vld [vmem:[#allocation41_spill] sm:$0xff] }
 0x503   : > { %v17422_v47 = vpop.eup %17421  ;;  %6138 = vst [vmem:[%s20653_s18 + $0x2c8] sm:$0xff] %v17420_v7  ;;  %17441 = vpow2.f32 %v5737_v35 }
 0x504   : > { %v17424_v31 = vpop.eup %17423  ;;  %6139 = vst [vmem:[%s20653_s18 + $0x2d0] sm:$0xff] %v17422_v47  ;;  %17443 = vpow2.f32 %v5739_v29  ;;  %v26178_v47 = vld [vmem:[#allocation47_spill] sm:$0xff] }
 0x505   : > { %v17426_v46 = vpop.eup %17425  ;;  %v5884_v58 = vadd.f32 1.0, %v17424_v31  ;;  %17445 = vpow2.f32 %v5741_v16  ;;  %v5513_v16 = vsub.f32 0.0, %v26177_v53  ;;  %v5514_v31 = vsub.f32 0.0, %v26178_v47  ;;  %v26182_v53 = vld [vmem:[#allocation54_spill] sm:$0xff] }
 0x506   : > { %v17428_v20 = vpop.eup %17427  ;;  %v5885_v59 = vadd.f32 1.0, %v17426_v46  ;;  %17447 = vpow2.f32 %v5743_v42 }
 0x507   : > { %v17430_v57 = vpop.eup %17429  ;;  %17449 = vrcp.f32 %v5884_v58  ;;  %v5886_v6 = vadd.f32 1.0, %v17428_v20  ;;  %v26179_v20 = vld [vmem:[#allocation106_spill] sm:$0xff] }
 0x508   : > { %v17432_v43 = vpop.eup %17431  ;;  %17451 = vrcp.f32 %v5885_v59  ;;  %v5887_v44 = vadd.f32 1.0, %v17430_v57  ;;  %v5515_v59 = vsub.f32 0.0, %v26179_v20 }
 0x509   : > { %v17434_v33 = vpop.eup %17433  ;;  %17453 = vrcp.f32 %v5886_v6  ;;  %v5888_v28 = vadd.f32 1.0, %v17432_v43  ;;  %v26180_v43 = vld [vmem:[#allocation109_spill] sm:$0xff] }
 0x50a   : > { %v17436_v56 = vpop.eup %17435  ;;  %17455 = vrcp.f32 %v5887_v44  ;;  %v5889_v17 = vadd.f32 1.0, %v17434_v33  ;;  %v5516_v44 = vsub.f32 0.0, %v26180_v43 }
 0x50b   : > { %v17438_v62 = vpop.eup %17437  ;;  %17457 = vrcp.f32 %v5888_v28  ;;  %v5890_v35 = vadd.f32 1.0, %v17436_v56  ;;  %v5745_v56 = vmul.f32 1.442695, %v5513_v16 }
 0x50c   : > { %v17440_v3 = vpop.eup %17439  ;;  %17459 = vrcp.f32 %v5889_v17  ;;  %v5891_v29 = vadd.f32 1.0, %v17438_v62  ;;  %v26181_v17 = vld [vmem:[#allocation51_spill] sm:$0xff]  ;;  %v5751_v16 = vmul.f32 1.442695, %v5516_v44 }
 0x50d   : > { %v17442_v7 = vpop.eup %17441  ;;  %17461 = vrcp.f32 %v5890_v35  ;;  %v5892_v42 = vadd.f32 1.0, %v17440_v3  ;;  %v5517_v62 = vsub.f32 0.0, %v26181_v17 }
 0x50e   : > { %v17444_v46 = vpop.eup %17443  ;;  %17463 = vrcp.f32 %v5891_v29  ;;  %v5893_v58 = vadd.f32 1.0, %v17442_v7  ;;  %v5747_v29 = vmul.f32 1.442695, %v5514_v31  ;;  %v5518_v7 = vsub.f32 0.0, %v26182_v53 }
 0x50f   : > { %v17446_v57 = vpop.eup %17445  ;;  %17465 = vrcp.f32 %v5892_v42  ;;  %v5894_v6 = vadd.f32 1.0, %v17444_v46  ;;  %v5749_v42 = vmul.f32 1.442695, %v5515_v59  ;;  %v26183_v46 = vld [vmem:[#allocation53_spill] sm:$0xff]  ;;  %v5753_v31 = vmul.f32 1.442695, %v5517_v62 }
 0x510   : > { %v17448_v33 = vpop.eup %17447  ;;  %17467 = vrcp.f32 %v5893_v58  ;;  %v5895_v28 = vadd.f32 1.0, %v17446_v57  ;;  %v5519_v20 = vsub.f32 0.0, %v26183_v46  ;;  %v26184_v58 = vld [vmem:[#allocation55_spill] sm:$0xff]  ;;  %v5755_v59 = vmul.f32 1.442695, %v5518_v7  ;;  %v26188_v62 = vld [vmem:[#allocation60_spill] sm:$0xff] }
 0x511   : > { %v17450_v35 = vpop.eup %17449  ;;  %17469 = vrcp.f32 %v5894_v6  ;;  %v5896_v3 = vadd.f32 1.0, %v17448_v33  ;;  %v5520_v57 = vsub.f32 0.0, %v26184_v58  ;;  %v26185_v6 = vld [vmem:[#allocation111_spill] sm:$0xff]  ;;  %v5524_v58 = vsub.f32 0.0, %v26188_v62  ;;  %v26189_v7 = vld [vmem:[#allocation57_spill] sm:$0xff] }
 0x512   : > { %v17452_v47 = vpop.eup %17451  ;;  %6140 = vst [vmem:[%s20653_s18 + $0x2d8] sm:$0xff] %v17450_v35  ;;  %17471 = vrcp.f32 %v5895_v28  ;;  %v5521_v33 = vsub.f32 0.0, %v26185_v6  ;;  %v26186_v28 = vld [vmem:[#allocation117_spill] sm:$0xff]  ;;  %v5757_v44 = vmul.f32 1.442695, %v5519_v20  ;;  %v5525_v6 = vsub.f32 0.0, %v26189_v7 }
 0x513   : > { %v17454_v43 = vpop.eup %17453  ;;  %6141 = vst [vmem:[%s20653_s18 + $0x2e0] sm:$0xff] %v17452_v47  ;;  %17473 = vrcp.f32 %v5896_v3  ;;  %v5522_v35 = vsub.f32 0.0, %v26186_v28  ;;  %v26187_v3 = vld [vmem:[#allocation56_spill] sm:$0xff]  ;;  %v5767_v28 = vmul.f32 1.442695, %v5524_v58 }
 0x514   : > { %v17456_v17 = vpop.eup %17455  ;;  %6142 = vst [vmem:[%s20653_s18 + $0x2e8] sm:$0xff] %v17454_v43  ;;  %17475 = vpow2.f32 %v5745_v56  ;;  %v5523_v47 = vsub.f32 0.0, %v26187_v3  ;;  %v5759_v56 = vmul.f32 1.442695, %v5520_v57 }
 0x515   : > { %v17458_v53 = vpop.eup %17457  ;;  %6143 = vst [vmem:[%s20653_s18 + $0x2f0] sm:$0xff] %v17456_v17  ;;  %17477 = vpow2.f32 %v5747_v29  ;;  %v5761_v29 = vmul.f32 1.442695, %v5521_v33 }
 0x516   : > { %v17460_v46 = vpop.eup %17459  ;;  %6144 = vst [vmem:[%s20653_s18 + $0x2f8] sm:$0xff] %v17458_v53  ;;  %17479 = vpow2.f32 %v5749_v42  ;;  %v5763_v42 = vmul.f32 1.442695, %v5522_v35 }
 0x517   : > { %v17462_v43 = vpop.eup %17461  ;;  %6145 = vst [vmem:[%s20653_s18 + $0x300] sm:$0xff] %v17460_v46  ;;  %17481 = vpow2.f32 %v5751_v16  ;;  %v5765_v16 = vmul.f32 1.442695, %v5523_v47 }
 0x518   : > { %v17464_v17 = vpop.eup %17463  ;;  %6146 = vst [vmem:[%s20653_s18 + $0x308] sm:$0xff] %v17462_v43  ;;  %17483 = vpow2.f32 %v5753_v31  ;;  %v5769_v31 = vmul.f32 1.442695, %v5525_v6 }
 0x519   : > { %v17466_v53 = vpop.eup %17465  ;;  %6147 = vst [vmem:[%s20653_s18 + $0x310] sm:$0xff] %v17464_v17  ;;  %17485 = vpow2.f32 %v5755_v59 }
 0x51a   : > { %v17468_v20 = vpop.eup %17467  ;;  %6148 = vst [vmem:[%s20653_s18 + $0x318] sm:$0xff] %v17466_v53  ;;  %17487 = vpow2.f32 %v5757_v44 }
 0x51b   : > { %v17470_v57 = vpop.eup %17469  ;;  %6149 = vst [vmem:[%s20653_s18 + $0x320] sm:$0xff] %v17468_v20  ;;  %17489 = vpow2.f32 %v5759_v56 }
 0x51c   : > { %v17472_v46 = vpop.eup %17471  ;;  %6150 = vst [vmem:[%s20653_s18 + $0x328] sm:$0xff] %v17470_v57  ;;  %17491 = vpow2.f32 %v5761_v29  ;;  %v26190_v57 = vld [vmem:[#allocation62_spill] sm:$0xff] }
 0x51d   : > { %v17474_v33 = vpop.eup %17473  ;;  %6151 = vst [vmem:[%s20653_s18 + $0x330] sm:$0xff] %v17472_v46  ;;  %17493 = vpow2.f32 %v5763_v42 }
 0x51e   : > { %v17476_v3 = vpop.eup %17475  ;;  %6152 = vst [vmem:[%s20653_s18 + $0x338] sm:$0xff] %v17474_v33  ;;  %17495 = vpow2.f32 %v5765_v16  ;;  %v26191_v33 = vld [vmem:[#allocation119_spill] sm:$0xff] }
 0x51f   : > { %v17478_v59 = vpop.eup %17477  ;;  %v5897_v35 = vadd.f32 1.0, %v17476_v3  ;;  %17497 = vpow2.f32 %v5767_v28  ;;  %v5526_v28 = vsub.f32 0.0, %v26190_v57  ;;  %v5527_v3 = vsub.f32 0.0, %v26191_v33  ;;  %v26195_v57 = vld [vmem:[#allocation68_spill] sm:$0xff] }
 0x520   : > { %v17480_v43 = vpop.eup %17479  ;;  %v5898_v44 = vadd.f32 1.0, %v17478_v59  ;;  %17499 = vpow2.f32 %v5769_v31 }
 0x521   : > { %v17482_v47 = vpop.eup %17481  ;;  %17501 = vrcp.f32 %v5897_v35  ;;  %v5899_v56 = vadd.f32 1.0, %v17480_v43  ;;  %v26192_v43 = vld [vmem:[#allocation120_spill] sm:$0xff] }
 0x522   : > { %v17484_v62 = vpop.eup %17483  ;;  %17503 = vrcp.f32 %v5898_v44  ;;  %v5900_v58 = vadd.f32 1.0, %v17482_v47  ;;  %v5528_v44 = vsub.f32 0.0, %v26192_v43 }
 0x523   : > { %v17486_v17 = vpop.eup %17485  ;;  %17505 = vrcp.f32 %v5899_v56  ;;  %v5901_v29 = vadd.f32 1.0, %v17484_v62  ;;  %v26193_v62 = vld [vmem:[#allocation66_spill] sm:$0xff] }
 0x524   : > { %v17488_v7 = vpop.eup %17487  ;;  %17507 = vrcp.f32 %v5900_v58  ;;  %v5902_v6 = vadd.f32 1.0, %v17486_v17  ;;  %v5529_v58 = vsub.f32 0.0, %v26193_v62 }
 0x525   : > { %v17490_v53 = vpop.eup %17489  ;;  %17509 = vrcp.f32 %v5901_v29  ;;  %v5903_v42 = vadd.f32 1.0, %v17488_v7  ;;  %v5771_v7 = vmul.f32 1.442695, %v5526_v28 }
 0x526   : > { %v17492_v20 = vpop.eup %17491  ;;  %17511 = vrcp.f32 %v5902_v6  ;;  %v5904_v16 = vadd.f32 1.0, %v17490_v53  ;;  %v26194_v6 = vld [vmem:[#allocation72_spill] sm:$0xff]  ;;  %v5777_v28 = vmul.f32 1.442695, %v5529_v58 }
 0x527   : > { %v17494_v46 = vpop.eup %17493  ;;  %17513 = vrcp.f32 %v5903_v42  ;;  %v5905_v31 = vadd.f32 1.0, %v17492_v20  ;;  %v5530_v53 = vsub.f32 0.0, %v26194_v6 }
 0x528   : > { %v17496_v59 = vpop.eup %17495  ;;  %17515 = vrcp.f32 %v5904_v16  ;;  %v5906_v35 = vadd.f32 1.0, %v17494_v46  ;;  %v5773_v16 = vmul.f32 1.442695, %v5527_v3  ;;  %v5531_v46 = vsub.f32 0.0, %v26195_v57 }
 0x529   : > { %v17498_v47 = vpop.eup %17497  ;;  %17517 = vrcp.f32 %v5905_v31  ;;  %v5907_v56 = vadd.f32 1.0, %v17496_v59  ;;  %v5775_v31 = vmul.f32 1.442695, %v5528_v44  ;;  %v26196_v59 = vld [vmem:[#allocation74_spill] sm:$0xff]  ;;  %v5779_v3 = vmul.f32 1.442695, %v5530_v53 }
 0x52a   : > { %v17500_v17 = vpop.eup %17499  ;;  %17519 = vrcp.f32 %v5906_v35  ;;  %v5908_v29 = vadd.f32 1.0, %v17498_v47  ;;  %v5532_v43 = vsub.f32 0.0, %v26196_v59  ;;  %v26197_v35 = vld [vmem:[#allocation123_spill] sm:$0xff]  ;;  %v5781_v44 = vmul.f32 1.442695, %v5531_v46 }
 0x52b   : > { %v17502_v42 = vpop.eup %17501  ;;  %17521 = vrcp.f32 %v5907_v56  ;;  %v5909_v20 = vadd.f32 1.0, %v17500_v17  ;;  %v5533_v47 = vsub.f32 0.0, %v26197_v35  ;;  %v26198_v56 = vld [vmem:[#allocation129_spill] sm:$0xff] }
 0x52c   : > { %v17504_v33 = vpop.eup %17503  ;;  %6153 = vst [vmem:[%s20653_s18 + $0x340] sm:$0xff] %v17502_v42  ;;  %17523 = vrcp.f32 %v5908_v29  ;;  %v5534_v17 = vsub.f32 0.0, %v26198_v56  ;;  %v26199_v29 = vld [vmem:[#allocation78_spill] sm:$0xff]  ;;  %v5783_v58 = vmul.f32 1.442695, %v5532_v43 }
 0x52d   : > { %v17506_v62 = vpop.eup %17505  ;;  %6154 = vst [vmem:[%s20653_s18 + $0x348] sm:$0xff] %v17504_v33  ;;  %17525 = vrcp.f32 %v5909_v20  ;;  %v5535_v57 = vsub.f32 0.0, %v26199_v29  ;;  %v26200_v20 = vld [vmem:[#allocation84_spill] sm:$0xff] }
 0x52e   : > { %v17508_v6 = vpop.eup %17507  ;;  %6155 = vst [vmem:[%s20653_s18 + $0x350] sm:$0xff] %v17506_v62  ;;  %17527 = vpow2.f32 %v5771_v7  ;;  %v5536_v59 = vsub.f32 0.0, %v26200_v20  ;;  %v5785_v7 = vmul.f32 1.442695, %v5533_v47 }
 0x52f   : > { %v17510_v42 = vpop.eup %17509  ;;  %6156 = vst [vmem:[%s20653_s18 + $0x358] sm:$0xff] %v17508_v6  ;;  %17529 = vpow2.f32 %v5773_v16  ;;  %v5787_v16 = vmul.f32 1.442695, %v5534_v17 }
 0x530   : > { %v17512_v33 = vpop.eup %17511  ;;  %6157 = vst [vmem:[%s20653_s18 + $0x360] sm:$0xff] %v17510_v42  ;;  %17531 = vpow2.f32 %v5775_v31  ;;  %v5789_v31 = vmul.f32 1.442695, %v5535_v57  ;;  %v5791_v43 = vmul.f32 1.442695, %v5536_v59 }
 0x531   : > { %v17514_v62 = vpop.eup %17513  ;;  %6158 = vst [vmem:[%s20653_s18 + $0x368] sm:$0xff] %v17512_v33  ;;  %17533 = vpow2.f32 %v5777_v28 }
 0x532   : > { %v17516_v53 = vpop.eup %17515  ;;  %6159 = vst [vmem:[%s20653_s18 + $0x370] sm:$0xff] %v17514_v62  ;;  %17535 = vpow2.f32 %v5779_v3 }
 0x533   : > { %v17518_v46 = vpop.eup %17517  ;;  %6160 = vst [vmem:[%s20653_s18 + $0x378] sm:$0xff] %v17516_v53  ;;  %17537 = vpow2.f32 %v5781_v44 }
 0x534   : > { %v17520_v35 = vpop.eup %17519  ;;  %6161 = vst [vmem:[%s20653_s18 + $0x380] sm:$0xff] %v17518_v46  ;;  %17539 = vpow2.f32 %v5783_v58 }
 0x535   : > { %v17522_v6 = vpop.eup %17521  ;;  %6162 = vst [vmem:[%s20653_s18 + $0x388] sm:$0xff] %v17520_v35  ;;  %17541 = vpow2.f32 %v5785_v7 }
 0x536   : > { %v17524_v28 = vpop.eup %17523  ;;  %6163 = vst [vmem:[%s20653_s18 + $0x390] sm:$0xff] %v17522_v6  ;;  %17543 = vpow2.f32 %v5787_v16 }
 0x537   : > { %v17526_v47 = vpop.eup %17525  ;;  %6164 = vst [vmem:[%s20653_s18 + $0x398] sm:$0xff] %v17524_v28  ;;  %17545 = vpow2.f32 %v5789_v31 }
 0x538   : > { %v17528_v3 = vpop.eup %17527  ;;  %6165 = vst [vmem:[%s20653_s18 + $0x3a0] sm:$0xff] %v17526_v47  ;;  %17547 = vpow2.f32 %v5791_v43 }
 0x539   : > { %v17530_v56 = vpop.eup %17529  ;;  %v5910_v17 = vadd.f32 1.0, %v17528_v3 }
 0x53a   : > { %v17532_v42 = vpop.eup %17531  ;;  %v5911_v44 = vadd.f32 1.0, %v17530_v56 }
 0x53b   : > { %v17534_v29 = vpop.eup %17533  ;;  %17549 = vrcp.f32 %v5910_v17  ;;  %v5912_v57 = vadd.f32 1.0, %v17532_v42 }
 0x53c   : > { %v17536_v33 = vpop.eup %17535  ;;  %17551 = vrcp.f32 %v5911_v44  ;;  %v5913_v58 = vadd.f32 1.0, %v17534_v29 }
 0x53d   : > { %v17538_v20 = vpop.eup %17537  ;;  %17553 = vrcp.f32 %v5912_v57  ;;  %v5914_v59 = vadd.f32 1.0, %v17536_v33 }
 0x53e   : > { %v17540_v62 = vpop.eup %17539  ;;  %17555 = vrcp.f32 %v5913_v58  ;;  %v5915_v7 = vadd.f32 1.0, %v17538_v20 }
 0x53f   : > { %v17542_v53 = vpop.eup %17541  ;;  %17557 = vrcp.f32 %v5914_v59  ;;  %v5916_v16 = vadd.f32 1.0, %v17540_v62 }
 0x540   : > { %v17544_v46 = vpop.eup %17543  ;;  %17559 = vrcp.f32 %v5915_v7  ;;  %v5917_v31 = vadd.f32 1.0, %v17542_v53 }
 0x541   : > { %v17546_v35 = vpop.eup %17545  ;;  %17561 = vrcp.f32 %v5916_v16  ;;  %v5918_v43 = vadd.f32 1.0, %v17544_v46 }
 0x542   : > { %v17548_v6 = vpop.eup %17547  ;;  %17563 = vrcp.f32 %v5917_v31  ;;  %v5919_v28 = vadd.f32 1.0, %v17546_v35 }
 0x543   : > { %17565 = vrcp.f32 %v5918_v43  ;;  %v5920_v47 = vadd.f32 1.0, %v17548_v6 }
 0x544   : > { %17567 = vrcp.f32 %v5919_v28 }
 0x545   : > { %v17550_v3 = vpop.eup %17549  ;;  %17569 = vrcp.f32 %v5920_v47 }
 0x546   : > { %v17552_v56 = vpop.eup %17551  ;;  %6166 = vst [vmem:[%s20653_s18 + $0x3a8] sm:$0xff] %v17550_v3 }
 0x547   : > { %v17554_v17 = vpop.eup %17553  ;;  %6167 = vst [vmem:[%s20653_s18 + $0x3b0] sm:$0xff] %v17552_v56 }
 0x548   : > { %v17556_v42 = vpop.eup %17555  ;;  %6168 = vst [vmem:[%s20653_s18 + $0x3b8] sm:$0xff] %v17554_v17 }
 0x549   : > { %v17558_v44 = vpop.eup %17557  ;;  %6169 = vst [vmem:[%s20653_s18 + $0x3c0] sm:$0xff] %v17556_v42 }
 0x54a   : > { %v17560_v29 = vpop.eup %17559  ;;  %6170 = vst [vmem:[%s20653_s18 + $0x3c8] sm:$0xff] %v17558_v44 }
 0x54b   : > { %v17562_v57 = vpop.eup %17561  ;;  %6171 = vst [vmem:[%s20653_s18 + $0x3d0] sm:$0xff] %v17560_v29 }
 0x54c   : > { %v17564_v33 = vpop.eup %17563  ;;  %6172 = vst [vmem:[%s20653_s18 + $0x3d8] sm:$0xff] %v17562_v57 }
 0x54d   : > { %v17566_v58 = vpop.eup %17565  ;;  %6173 = vst [vmem:[%s20653_s18 + $0x3e0] sm:$0xff] %v17564_v33 }
 0x54e   : > { %v17568_v20 = vpop.eup %17567  ;;  %6174 = vst [vmem:[%s20653_s18 + $0x3e8] sm:$0xff] %v17566_v58 }
 0x54f   : > { %v17570_v59 = vpop.eup %17569  ;;  %6175 = vst [vmem:[%s20653_s18 + $0x3f0] sm:$0xff] %v17568_v20 }
 0x550   : > { %6176 = vst [vmem:[%s20653_s18 + $0x3f8] sm:$0xff] %v17570_v59 }
 0x551 PF: > { %p12378_p4 = scmp.le.s32.totalorder %s20394_s24, 0 }
 0x553   : > { %6180 = sbr.rel (%p12378_p4) target bundleno = 2630 (0xa46), region = 48 }
 0x55a   : > { %v6183_v62 = vlaneseq  ;;  %v20918_v53 = vld [vmem:[%s24518_s4] ss:$0 sm:$0xff]  ;;  %v26201_v43 = vmov 0  ;;  %v24942_v47 = vmov 1.0|1.0   ;;  %v26204_v3 = vmov 0 }
 0x55b   : > { %v26207_v17 = vmov 0  ;;  %v26210_v42 = vmov 0  ;;  %v26213_v33 = vmov 0  ;;  %v26219_v39 = vmov 1.0|1.0   ;;  %s12379_s25 = sshll.u32 %s18169_s28, 8 }
 0x55c   : > { %v20913_v7 = vshrl.u32 %v6183_v62, 7  ;;  %v26216_v62 = vmov 0  ;;  %v26220_v60 = vmov 0  ;;  %v26223_v15 = vmov 0  ;;  %v21175_v49 = vld [vmem:[%s24517_s3] ss:$0 sm:$0xff] }
 0x55d   : > { %v21114_v14 = vstv %s12379_s25  ;;  %v26226_v41 = vmov 0  ;;  %v26229_v5 = vmov 0  ;;  %v24981_v40 = vmov 0.0  }
 0x55e   : > { %v20921_v16 = vadd.s32 128, %v20913_v7  ;;  %v20924_v46 = vadd.s32 136, %v20913_v7  ;;  %v20927_v31 = vadd.s32 384, %v20913_v7  ;;  %v20930_v35 = vadd.s32 392, %v20913_v7 }
 0x55f   : > { %v20951_v6 = vadd.s32 8, %v20913_v7  ;;  %v20954_v28 = vadd.s32 256, %v20913_v7  ;;  %vm6427_vm7 = vcmp.eq.s32.totalorder %v20913_v7, %v20918_v53  ;;  %v20975_v56 = vadd.s32 264, %v20913_v7 }
 0x560   : > { %vm6443_vm1 = vcmp.eq.s32.totalorder %v20921_v16, %v20918_v53  ;;  %vm24964_vm2 = vcmp.eq.s32.totalorder %v20924_v46, %v20918_v53  ;;  %vm24946_vm4 = vcmp.eq.s32.totalorder %v20927_v31, %v20918_v53  ;;  %vm24945_vm5 = vcmp.eq.s32.totalorder %v20930_v35, %v20918_v53 }
 0x561   : > { %vm20942_vm3 = vmpackc.low %vm24964_vm2, %vm6443_vm1  ;;  %vm6428_vm8 = vcmp.eq.s32.totalorder %v20951_v6, %v20918_v53  ;;  %vm24963_vm9 = vcmp.eq.s32.totalorder %v20954_v28, %v20918_v53  ;;  %vm24951_vm11 = vcmp.eq.s32.totalorder %v20975_v56, %v20918_v53  ;;  %v21010_v44 = vadd.s32 144, %v20913_v7 }
 0x562   : > { %v26202_v43 = vsel %vm20942_vm3, 4294967295, %v26201_v43  ;;  %15336 = vmatprep.subr.msk.bf16.mxu0 %vm20942_vm3, %v24942_v47  ;;  %vm20965_vm6 = vmpackc.low %vm24945_vm5, %vm24946_vm4  ;;  %v21013_v29 = vadd.s32 152, %v20913_v7  ;;  %v21020_v57 = vadd.s32 400, %v20913_v7  ;;  %v21036_v58 = vadd.s32 408, %v20913_v7 }
 0x563   : > { %26203 = vst [vmem:[#allocation156_spill] sm:$0xff] %v26202_v43  ;;  %v26205_v3 = vsel %vm20965_vm6, 4294967295, %v26204_v3  ;;  %15528 = vmatprep.subr.msk.bf16.mxu1 %vm20965_vm6, %v24942_v47  ;;  %vm20987_vm10 = vmpackc.low %vm6428_vm8, %vm6427_vm7  ;;  %vm24941_vm13 = vcmp.eq.s32.totalorder %v21010_v44, %v20918_v53  ;;  %v21041_v20 = vadd.s32 16, %v20913_v7  ;;  %v21044_v59 = vadd.s32 24, %v20913_v7 }
 0x564   : > { %26206 = vst [vmem:[#allocation157_spill] sm:$0xff] %v26205_v3  ;;  %v26208_v17 = vsel %vm20987_vm10, 4294967295, %v26207_v17  ;;  %15338 = vmatpush3.bf16.xpose.msk.msra.mxu0 %vm20987_vm10, %v24942_v47  ;;  %vm21002_vm12 = vmpackc.low %vm24951_vm11, %vm24963_vm9  ;;  %vm24940_vm14 = vcmp.eq.s32.totalorder %v21013_v29, %v20918_v53  ;;  %vm24950_vm0 = vcmp.eq.s32.totalorder %v21020_v57, %v20918_v53  ;;  %v21069_v8 = vadd.s32 280, %v20913_v7 }
 0x565   : > { %26209 = vst [vmem:[#allocation158_spill] sm:$0xff] %v26208_v17  ;;  %v26211_v42 = vsel %vm21002_vm12, 4294967295, %v26210_v42  ;;  %15530 = vmatpush3.bf16.xpose.msk.msra.mxu1 %vm21002_vm12, %v24942_v47  ;;  %vm21028_vm15 = vmpackc.low %vm24940_vm14, %vm24941_vm13  ;;  %vm24948_vm14 = vcmp.eq.s32.totalorder %v21036_v58, %v20918_v53  ;;  %vm24961_vm5 = vcmp.eq.s32.totalorder %v21041_v20, %v20918_v53  ;;  %vm24952_vm4 = vcmp.eq.s32.totalorder %v21044_v59, %v20918_v53 }
 0x566   : > { %26212 = vst [vmem:[#allocation159_spill] sm:$0xff] %v26211_v42  ;;  %v26214_v33 = vsel %vm21028_vm15, 4294967295, %v26213_v33  ;;  %15340 = vmatprep.subr.msk.bf16.mxu0 %vm21028_vm15, %v24942_v47  ;;  %vm21054_vm13 = vmpackc.low %vm24948_vm14, %vm24950_vm0  ;;  %v21059_v47 = vadd.s32 272, %v20913_v7  ;;  %vm24959_vm11 = vcmp.eq.s32.totalorder %v21069_v8, %v20918_v53  ;;  %v21103_v50 = vadd.s32 160, %v20913_v7 }
 0x567   : > { %26215 = vst [vmem:[#allocation160_spill] sm:$0xff] %v26214_v33  ;;  %v26217_v62 = vsel %vm21054_vm13, 4294967295, %v26216_v62  ;;  %15532 = vmatprep.subr.msk.bf16.mxu1 %vm21054_vm13, %v26219_v39  ;;  %vm21077_vm14 = vmpackc.low %vm24952_vm4, %vm24961_vm5  ;;  %v21106_v38 = vadd.s32 168, %v20913_v7  ;;  %v21109_v10 = vadd.s32 416, %v20913_v7  ;;  %v21112_v45 = vadd.s32 424, %v20913_v7 }
 0x568   : > { %26218 = vst [vmem:[#allocation161_spill] sm:$0xff] %v26217_v62  ;;  %v26221_v60 = vsel %vm21077_vm14, 4294967295, %v26220_v60  ;;  %vm24960_vm0 = vcmp.eq.s32.totalorder %v21059_v47, %v20918_v53  ;;  %v21135_v13 = vadd.s32 32, %v20913_v7  ;;  %v21138_v61 = vadd.s32 40, %v20913_v7 }
 0x569   : > { %26222 = vst [vmem:[#allocation162_spill] sm:$0xff] %v26221_v60  ;;  %vm21094_vm4 = vmpackc.low %vm24959_vm11, %vm24960_vm0  ;;  %vm24979_vm11 = vcmp.eq.s32.totalorder %v21103_v50, %v20918_v53  ;;  %vm24969_vm0 = vcmp.eq.s32.totalorder %v21106_v38, %v20918_v53  ;;  %vm24978_vm9 = vcmp.eq.s32.totalorder %v21109_v10, %v20918_v53  ;;  %vm24976_vm2 = vcmp.eq.s32.totalorder %v21112_v45, %v20918_v53 }
 0x56a   : > { %v26224_v15 = vsel %vm21094_vm4, 4294967295, %v26223_v15  ;;  %vm21126_vm5 = vmpackc.low %vm24969_vm0, %vm24979_vm11  ;;  %v6233_v27 = vadd.s32 %v21114_v14, %v20921_v16  ;;  %v6234_v9 = vadd.s32 %v21114_v14, %v20924_v46  ;;  %v12399_v23 = vsel %vm6443_vm1, 1.0, %v24981_v40 }
 0x56b   : > { %26225 = vst [vmem:[#allocation163_spill] sm:$0xff] %v26224_v15  ;;  %v26227_v41 = vsel %vm21126_vm5, 4294967295, %v26226_v41  ;;  %vm21153_vm0 = vmpackc.low %vm24976_vm2, %vm24978_vm9  ;;  %v12383_v2 = vsel %vm6427_vm7, 1.0, %v24981_v40  ;;  %v12384_v48 = vsel %vm6428_vm8, 1.0, %v24981_v40  ;;  %vm26232_vm2 = vcmp.eq.s32.totalorder %v20924_v46, %v20918_v53 }
 0x56c   : > { %15342 = vmatpush3.bf16.xpose.msk.msra.mxu0 %vm21077_vm14, %v26219_v39  ;;  %26228 = vst [vmem:[#allocation164_spill] sm:$0xff] %v26227_v41  ;;  %v26230_v5 = vsel %vm21153_vm0, 4294967295, %v26229_v5  ;;  %v12400_v16 = vsel %vm26232_vm2, 1.0, %v24981_v40  ;;  %v6218_v37 = vadd.s32 %v21114_v14, %v20951_v6  ;;  %vm24988_vm1 = vcmp.eq.s32.totalorder %v21135_v13, %v20918_v53 }
 0x56d   : > { %15534 = vmatpush3.bf16.xpose.msk.msra.mxu1 %vm21094_vm4, %v26219_v39  ;;  %15344 = vmatprep.subr.msk.bf16.mxu0 %vm21126_vm5, %v26219_v39  ;;  %26231 = vst [vmem:[#allocation165_spill] sm:$0xff] %v26230_v5  ;;  %vm24986_vm7 = vcmp.eq.s32.totalorder %v21138_v61, %v20918_v53  ;;  %vm6369_vm8 = vcmp.eq.s32.totalorder %v6233_v27, %v21175_v49  ;;  %v26234_v46 = vmov 0  ;;  %v26241_v0 = vmov 0.0  }
 0x56e   : > { %15536 = vmatprep.subr.msk.bf16.mxu1 %vm21153_vm0, %v26219_v39  ;;  %vm6370_vm9 = vcmp.eq.s32.totalorder %v6234_v9, %v21175_v49  ;;  %vm26233_vm11 = vcmp.eq.s32.totalorder %v20954_v28, %v20918_v53  ;;  %vm21199_vm2 = vmpackc.low %vm24986_vm7, %vm24988_vm1  ;;  %v21203_v6 = vsub.f32 %v12399_v23, %v12399_v23  ;;  %v21205_v27 = vsub.f32 %v12383_v2, %v12383_v2  ;;  %v21215_v28 = vld [vmem:[%s24519_s5] ss:$0 sm:$0xff] }
 0x56f   : > { %v12415_v51 = vsel %vm26233_vm11, 1.0, %v24981_v40  ;;  %v26235_v46 = vsel %vm21199_vm2, 4294967295, %v26234_v46  ;;  %v21207_v9 = vsub.f32 %v12384_v48, %v12384_v48  ;;  %v21217_v40 = vsub.f32 %v12400_v16, %v12400_v16 }
 0x570   : > { %26236 = vst [vmem:[#allocation166_spill] sm:$0xff] %v26235_v46  ;;  %26237 = vst [vmem:[#allocation167_spill] sm:$0xff] %v21203_v6  ;;  %vm26242_vm11 = vcmp.eq.s32.totalorder %v20975_v56, %v20918_v53  ;;  %v21224_v2 = vadd.s32 288, %v20913_v7  ;;  %v21227_v48 = vadd.s32 296, %v20913_v7  ;;  %v6407_v55 = vsel %vm6369_vm8, %v21215_v28, 0.0 }
 0x571   : > { %26238 = vst [vmem:[#allocation168_spill] sm:$0xff] %v21205_v27  ;;  %26239 = vst [vmem:[#allocation169_spill] sm:$0xff] %v21207_v9  ;;  %v12416_v23 = vsel %vm26242_vm11, 1.0, %v26241_v0  ;;  %v6408_v52 = vsel %vm6370_vm9, %v21215_v28, 0.0  ;;  %vm6354_vm7 = vcmp.eq.s32.totalorder %v6218_v37, %v21175_v49  ;;  %v21232_v36 = vsub.f32 %v12415_v51, %v12415_v51 }
 0x572   : > { %26240 = vst [vmem:[#allocation170_spill] sm:$0xff] %v21217_v40  ;;  %vm24994_vm1 = vcmp.eq.s32.totalorder %v21224_v2, %v20918_v53  ;;  %vm24993_vm11 = vcmp.eq.s32.totalorder %v21227_v48, %v20918_v53  ;;  %v21239_v56 = vadd.s32 176, %v20913_v7  ;;  %v21242_v16 = vadd.s32 184, %v20913_v7 }
 0x573   : > { %26243 = vst [vmem:[#allocation171_spill] sm:$0xff] %v21232_v36  ;;  %vm26246_vm9 = vcmp.eq.s32.totalorder %v20927_v31, %v20918_v53  ;;  %v21250_v1 = vsub.f32 %v12416_v23, %v12416_v23  ;;  %vm21258_vm8 = vmpackc.low %vm24993_vm11, %vm24994_vm1  ;;  %v26248_v19 = vmov 0  ;;  %v21262_v12 = vand.u32 4294901760, %v6407_v55 }
 0x574   : > { %15346 = vmatpush3.bf16.xpose.msk.msra.mxu0 %vm21199_vm2, %v26219_v39  ;;  %26244 = vst [vmem:[#allocation172_spill] sm:$0xff] %v21239_v56  ;;  %26245 = vst [vmem:[#allocation173_spill] sm:$0xff] %v21242_v16  ;;  %v12431_v26 = vsel %vm26246_vm9, 1.0, %v26241_v0  ;;  %v26249_v19 = vsel %vm21258_vm8, 4294967295, %v26248_v19  ;;  %v21264_v31 = vand.u32 4294901760, %v6408_v52  ;;  %vm26253_vm9 = vcmp.eq.s32.totalorder %v20930_v35, %v20918_v53 }
 0x575   : > { %26247 = vst [vmem:[#allocation174_spill] sm:$0xff] %v21250_v1  ;;  %26250 = vst [vmem:[#allocation175_spill] sm:$0xff] %v26249_v19  ;;  %v12432_v23 = vsel %vm26253_vm9, 1.0, %v26241_v0  ;;  %v6392_v37 = vsel %vm6354_vm7, %v21215_v28, 0.0  ;;  %15538 = vmatpush3.bf16.xpose.msk.msra.mxu1 %vm21258_vm8, %v26219_v39  ;;  %vm25010_vm11 = vcmp.eq.s32.totalorder %v21239_v56, %v20918_v53  ;;  %vm25007_vm1 = vcmp.eq.s32.totalorder %v21242_v16, %v20918_v53 }
 0x576   : > { %26251 = vst [vmem:[#allocation176_spill] sm:$0xff] %v21262_v12  ;;  %26252 = vst [vmem:[#allocation177_spill] sm:$0xff] %v21264_v31  ;;  %v21279_v51 = vadd.s32 432, %v20913_v7  ;;  %v21282_v21 = vadd.s32 440, %v20913_v7  ;;  %v21284_v35 = vsub.f32 %v12431_v26, %v12431_v26  ;;  %v6235_v4 = vadd.s32 %v21114_v14, %v21010_v44 }
 0x577   : > { %v6236_v11 = vadd.s32 %v21114_v14, %v21013_v29  ;;  %vm21297_vm7 = vmpackc.low %vm25007_vm1, %vm25010_vm11  ;;  %v26255_v18 = vmov 0  ;;  %v21301_v26 = vand.u32 4294901760, %v6392_v37  ;;  %v26259_v25 = vand.u32 4294901760, %v21205_v27 }
 0x578   : > { %26254 = vst [vmem:[#allocation178_spill] sm:$0xff] %v21284_v35  ;;  %v26256_v18 = vsel %vm21297_vm7, 4294967295, %v26255_v18  ;;  %v26260_v63 = vand.u32 4294901760, %v21207_v9  ;;  %15348 = vmatprep.subr.msk.bf16.mxu0 %vm21297_vm7, %v26219_v39  ;;  %v21318_v32 = vsub.f32 %v6407_v55, %v21262_v12  ;;  %v21320_v24 = vsub.f32 %v12432_v23, %v12432_v23 }
 0x579   : > { %26257 = vst [vmem:[#allocation179_spill] sm:$0xff] %v26256_v18  ;;  %26258 = vst [vmem:[#allocation180_spill] sm:$0xff] %v21301_v26  ;;  %v21306_v22 = vsub.f32 %v21205_v27, %v26259_v25  ;;  %v6219_v25 = vadd.s32 %v21114_v14, %v21041_v20  ;;  %v6220_v54 = vadd.s32 %v21114_v14, %v21044_v59  ;;  %v21334_v55 = vadd.s32 56, %v20913_v7 }
 0x57a   : > { %v21311_v34 = vsub.f32 %v21207_v9, %v26260_v63  ;;  %26261 = vst [vmem:[#allocation181_spill] sm:$0xff] %v21318_v32  ;;  %26262 = vst [vmem:[#allocation182_spill] sm:$0xff] %v21320_v24  ;;  %v21331_v63 = vadd.s32 48, %v20913_v7  ;;  %v21337_v23 = vsub.f32 %v6408_v52, %v21264_v31  ;;  %v26264_v30 = vand.u32 4294901760, %v21232_v36 }
 0x57b   : > { %vm6371_vm11 = vcmp.eq.s32.totalorder %v6235_v4, %v21175_v49  ;;  %vm6372_vm9 = vcmp.eq.s32.totalorder %v6236_v11, %v21175_v49  ;;  %vm26265_vm1 = vcmp.eq.s32.totalorder %v21279_v51, %v20918_v53  ;;  %vm26266_vm7 = vcmp.eq.s32.totalorder %v21282_v21, %v20918_v53 }
 0x57c   : > { %26263 = vst [vmem:[#allocation183_spill] sm:$0xff] %v21337_v23  ;;  %v21342_v18 = vsub.f32 %v21232_v36, %v26264_v30  ;;  %vm21352_vm8 = vmpackc.low %vm26266_vm7, %vm26265_vm1  ;;  %v26267_v19 = vmov 0  ;;  %v21357_v52 = vsub.f32 %v6392_v37, %v21301_v26  ;;  %v26271_v4 = vand.u32 4294901760, %v21250_v1 }
 0x57d   : > { %v26268_v19 = vsel %vm21352_vm8, 4294967295, %v26267_v19  ;;  %15540 = vmatprep.subr.msk.bf16.mxu1 %vm21352_vm8, %v26219_v39  ;;  %vm25078_vm1 = vcmp.eq.s32.totalorder %v21331_v63, %v20918_v53  ;;  %vm25033_vm7 = vcmp.eq.s32.totalorder %v21334_v55, %v20918_v53  ;;  %v21374_v37 = vadd.s32 304, %v20913_v7 }
 0x57e   : > { %26269 = vst [vmem:[#allocation184_spill] sm:$0xff] %v26268_v19  ;;  %26270 = vst [vmem:[#allocation185_spill] sm:$0xff] %v21357_v52  ;;  %v21364_v11 = vsub.f32 %v21250_v1, %v26271_v4  ;;  %v21377_v46 = vadd.s32 312, %v20913_v7  ;;  %v6409_v30 = vsel %vm6371_vm11, %v21215_v28, 0.0  ;;  %v21381_v4 = vsel %vm6372_vm9, %v21215_v28, 0.0 }
 0x57f   : > { %26272 = vst [vmem:[#allocation186_spill] sm:$0xff] %v21381_v4  ;;  %vm6355_vm2 = vcmp.eq.s32.totalorder %v6219_v25, %v21175_v49  ;;  %vm6356_vm8 = vcmp.eq.s32.totalorder %v6220_v54, %v21175_v49  ;;  %vm21391_vm0 = vmpackc.low %vm25033_vm7, %vm25078_vm1  ;;  %v26273_v19 = vmov 0  ;;  %vm26276_vm11 = vcmp.eq.s32.totalorder %v21010_v44, %v20918_v53 }
 0x580   : > { %v26274_v19 = vsel %vm21391_vm0, 4294967295, %v26273_v19  ;;  %v12401_v41 = vsel %vm26276_vm11, 1.0, %v26241_v0  ;;  %vm26277_vm9 = vcmp.eq.s32.totalorder %v21041_v20, %v20918_v53  ;;  %vm26278_vm5 = vcmp.eq.s32.totalorder %v21044_v59, %v20918_v53  ;;  %15350 = vmatpush3.bf16.xpose.msk.msra.mxu0 %vm21391_vm0, %v26219_v39 }
 0x581   : > { %26275 = vst [vmem:[#allocation187_spill] sm:$0xff] %v26274_v19  ;;  %v12385_v54 = vsel %vm26277_vm9, 1.0, %v26241_v0  ;;  %v12386_v25 = vsel %vm26278_vm5, 1.0, %v26241_v0  ;;  %vm26279_vm11 = vcmp.eq.s32.totalorder %v21013_v29, %v20918_v53  ;;  %vm25057_vm7 = vcmp.eq.s32.totalorder %v21374_v37, %v20918_v53 }
 0x582   : > { %v12402_v44 = vsel %vm26279_vm11, 1.0, %v26241_v0  ;;  %vm25056_vm9 = vcmp.eq.s32.totalorder %v21377_v46, %v20918_v53  ;;  %v21420_v20 = vand.u32 4294901760, %v6409_v30  ;;  %v21423_v59 = vand.u32 4294901760, %v21381_v4 }
 0x583   : > { %v6393_v19 = vsel %vm6355_vm2, %v21215_v28, 0.0  ;;  %v6394_v5 = vsel %vm6356_vm8, %v21215_v28, 0.0  ;;  %vm21433_vm5 = vmpackc.low %vm25056_vm9, %vm25057_vm7  ;;  %v26282_v29 = vmov 0  ;;  %vm26285_vm11 = vcmp.eq.s32.totalorder %v21020_v57, %v20918_v53 }
 0x584   : > { %26280 = vst [vmem:[#allocation188_spill] sm:$0xff] %v21420_v20  ;;  %26281 = vst [vmem:[#allocation189_spill] sm:$0xff] %v21423_v59  ;;  %v26283_v29 = vsel %vm21433_vm5, 4294967295, %v26282_v29  ;;  %v12433_v15 = vsel %vm26285_vm11, 1.0, %v26241_v0  ;;  %vm26286_vm2 = vcmp.eq.s32.totalorder %v21036_v58, %v20918_v53  ;;  %v21445_v62 = vsub.f32 %v12385_v54, %v12385_v54  ;;  %15542 = vmatpush3.bf16.xpose.msk.msra.mxu1 %vm21433_vm5, %v26219_v39 }
 0x585   : > { %26284 = vst [vmem:[#allocation190_spill] sm:$0xff] %v26283_v29  ;;  %v12434_v60 = vsel %vm26286_vm2, 1.0, %v26241_v0  ;;  %v21447_v33 = vsub.f32 %v12386_v25, %v12386_v25  ;;  %v21453_v42 = vadd.s32 192, %v20913_v7  ;;  %v21456_v17 = vadd.s32 200, %v20913_v7 }
 0x586   : > { %26287 = vst [vmem:[#allocation191_spill] sm:$0xff] %v21445_v62  ;;  %v21459_v57 = vadd.s32 448, %v20913_v7  ;;  %v21462_v58 = vadd.s32 456, %v20913_v7  ;;  %v21464_v54 = vand.u32 4294901760, %v6393_v19  ;;  %v21466_v25 = vand.u32 4294901760, %v6394_v5 }
 0x587   : > { %26288 = vst [vmem:[#allocation192_spill] sm:$0xff] %v21447_v33  ;;  %26289 = vst [vmem:[#allocation193_spill] sm:$0xff] %v21453_v42  ;;  %vm26293_vm8 = vcmp.eq.s32.totalorder %v21059_v47, %v20918_v53  ;;  %v6221_v31 = vadd.s32 %v21114_v14, %v21135_v13  ;;  %vm26294_vm11 = vcmp.eq.s32.totalorder %v21069_v8, %v20918_v53  ;;  %v26295_v47 = vmov 0 }
 0x588   : > { %26290 = vst [vmem:[#allocation194_spill] sm:$0xff] %v21456_v17  ;;  %26291 = vst [vmem:[#allocation195_spill] sm:$0xff] %v21464_v54  ;;  %v12417_v29 = vsel %vm26293_vm8, 1.0, %v26241_v0  ;;  %v12418_v12 = vsel %vm26294_vm11, 1.0, %v26241_v0  ;;  %v6222_v3 = vadd.s32 %v21114_v14, %v21138_v61  ;;  %vm25071_vm2 = vcmp.eq.s32.totalorder %v21453_v42, %v20918_v53 }
 0x589   : > { %26292 = vst [vmem:[#allocation196_spill] sm:$0xff] %v21466_v25  ;;  %vm25068_vm9 = vcmp.eq.s32.totalorder %v21456_v17, %v20918_v53  ;;  %vm25077_vm11 = vcmp.eq.s32.totalorder %v21459_v57, %v20918_v53  ;;  %vm25076_vm7 = vcmp.eq.s32.totalorder %v21462_v58, %v20918_v53  ;;  %v21499_v8 = vadd.s32 64, %v20913_v7 }
 0x58a   : > { %vm21490_vm8 = vmpackc.low %vm25068_vm9, %vm25071_vm2  ;;  %v21502_v43 = vadd.s32 72, %v20913_v7  ;;  %v21505_v26 = vsub.f32 %v6409_v30, %v21420_v20  ;;  %v21507_v1 = vsub.f32 %v12401_v41, %v12401_v41  ;;  %v21509_v36 = vsub.f32 %v12402_v44, %v12402_v44 }
 0x58b   : > { %v26296_v47 = vsel %vm21490_vm8, 4294967295, %v26295_v47  ;;  %v21511_v9 = vsub.f32 %v12417_v29, %v12417_v29  ;;  %15352 = vmatprep.subr.msk.bf16.mxu0 %vm21490_vm8, %v26219_v39  ;;  %vm21522_vm9 = vmpackc.low %vm25076_vm7, %vm25077_vm11  ;;  %v26302_v27 = vmov 0  ;;  %v21526_v41 = vsub.f32 %v12433_v15, %v12433_v15 }
 0x58c   : > { %26297 = vst [vmem:[#allocation197_spill] sm:$0xff] %v26296_v47  ;;  %26298 = vst [vmem:[#allocation198_spill] sm:$0xff] %v21505_v26  ;;  %v26303_v27 = vsel %vm21522_vm9, 4294967295, %v26302_v27  ;;  %v21528_v30 = vsub.f32 %v12434_v60, %v12434_v60  ;;  %v21530_v44 = vsub.f32 %v12418_v12, %v12418_v12  ;;  %vm6357_vm2 = vcmp.eq.s32.totalorder %v6221_v31, %v21175_v49 }
 0x58d   : > { %26299 = vst [vmem:[#allocation199_spill] sm:$0xff] %v21507_v1  ;;  %26300 = vst [vmem:[#allocation200_spill] sm:$0xff] %v21509_v36  ;;  %15544 = vmatprep.subr.msk.bf16.mxu1 %vm21522_vm9, %v26219_v39  ;;  %v21537_v29 = vsub.f32 %v6393_v19, %v21464_v54  ;;  %v21540_v47 = vsub.f32 %v6394_v5, %v21466_v25  ;;  %vm26308_vm7 = vcmp.eq.s32.totalorder %v21103_v50, %v20918_v53  ;;  %v26311_v31 = vmov 0 }
 0x58e   : > { %26301 = vst [vmem:[#allocation201_spill] sm:$0xff] %v21511_v9  ;;  %26304 = vst [vmem:[#allocation202_spill] sm:$0xff] %v26303_v27  ;;  %v12403_v12 = vsel %vm26308_vm7, 1.0, %v26241_v0  ;;  %vm6358_vm11 = vcmp.eq.s32.totalorder %v6222_v3, %v21175_v49  ;;  %vm25107_vm1 = vcmp.eq.s32.totalorder %v21499_v8, %v20918_v53  ;;  %vm25098_vm9 = vcmp.eq.s32.totalorder %v21502_v43, %v20918_v53 }
 0x58f   : > { %26305 = vst [vmem:[#allocation203_spill] sm:$0xff] %v21530_v44  ;;  %26306 = vst [vmem:[#allocation204_spill] sm:$0xff] %v21537_v29  ;;  %v6395_v5 = vsel %vm6357_vm2, %v21215_v28, 0.0  ;;  %vm26309_vm8 = vcmp.eq.s32.totalorder %v21135_v13, %v20918_v53  ;;  %vm26310_vm7 = vcmp.eq.s32.totalorder %v21138_v61, %v20918_v53  ;;  %v21576_v13 = vadd.s32 %v21114_v14, %v21103_v50 }
 0x590   : > { %26307 = vst [vmem:[#allocation205_spill] sm:$0xff] %v21540_v47  ;;  %v12387_v60 = vsel %vm26309_vm8, 1.0, %v26241_v0  ;;  %v12388_v3 = vsel %vm26310_vm7, 1.0, %v26241_v0  ;;  %vm21569_vm5 = vmpackc.low %vm25098_vm9, %vm25107_vm1  ;;  %v21580_v61 = vadd.s32 %v21114_v14, %v21106_v38  ;;  %vm26316_vm2 = vcmp.eq.s32.totalorder %v21106_v38, %v20918_v53 }
 0x591   : > { %v26312_v31 = vsel %vm21569_vm5, 4294967295, %v26311_v31  ;;  %26314 = vst [vmem:[#allocation207_spill] sm:$0xff] %v21576_v13  ;;  %v12404_v15 = vsel %vm26316_vm2, 1.0, %v26241_v0  ;;  %15354 = vmatpush3.bf16.xpose.msk.msra.mxu0 %vm21569_vm5, %v26219_v39  ;;  %v21589_v20 = vsub.f32 %v12403_v12, %v12403_v12  ;;  %v6396_v19 = vsel %vm6358_vm11, %v21215_v28, 0.0 }
 0x592   : > { %26313 = vst [vmem:[#allocation206_spill] sm:$0xff] %v26312_v31  ;;  %26315 = vst [vmem:[#allocation208_spill] sm:$0xff] %v21580_v61  ;;  %v21593_v50 = vadd.s32 320, %v20913_v7  ;;  %v21596_v27 = vadd.s32 328, %v20913_v7  ;;  %vm26318_vm8 = vcmp.eq.s32.totalorder %v21109_v10, %v20918_v53  ;;  %v21602_v25 = vand.u32 4294901760, %v6395_v5 }
 0x593   : > { %26317 = vst [vmem:[#allocation209_spill] sm:$0xff] %v21589_v20  ;;  %v12435_v38 = vsel %vm26318_vm8, 1.0, %v26241_v0  ;;  %v21604_v54 = vsub.f32 %v12387_v60, %v12387_v60  ;;  %v21606_v31 = vsub.f32 %v12388_v3, %v12388_v3  ;;  %v21613_v12 = vadd.s32 208, %v20913_v7 }
 0x594   : > { %26319 = vst [vmem:[#allocation210_spill] sm:$0xff] %v21602_v25  ;;  %vm25101_vm11 = vcmp.eq.s32.totalorder %v21593_v50, %v20918_v53  ;;  %vm25100_vm7 = vcmp.eq.s32.totalorder %v21596_v27, %v20918_v53  ;;  %v21616_v26 = vadd.s32 216, %v20913_v7  ;;  %vm26324_vm2 = vcmp.eq.s32.totalorder %v21112_v45, %v20918_v53 }
 0x595   : > { %26320 = vst [vmem:[#allocation211_spill] sm:$0xff] %v21604_v54  ;;  %26321 = vst [vmem:[#allocation212_spill] sm:$0xff] %v21606_v31  ;;  %v12436_v10 = vsel %vm26324_vm2, 1.0, %v26241_v0  ;;  %v21622_v60 = vand.u32 4294901760, %v6396_v19  ;;  %v6223_v3 = vadd.s32 %v21114_v14, %v21331_v63  ;;  %v6224_v4 = vadd.s32 %v21114_v14, %v21334_v55 }
 0x596   : > { %26322 = vst [vmem:[#allocation213_spill] sm:$0xff] %v21613_v12  ;;  %26323 = vst [vmem:[#allocation214_spill] sm:$0xff] %v21616_v26  ;;  %v26326_v59 = vmov 0  ;;  %v21638_v45 = vsub.f32 %v12404_v15, %v12404_v15  ;;  %v21640_v23 = vsub.f32 %v12435_v38, %v12435_v38  ;;  %vm26331_vm2 = vcmp.eq.s32.totalorder %v21224_v2, %v20918_v53 }
 0x597   : > { %26325 = vst [vmem:[#allocation215_spill] sm:$0xff] %v21622_v60  ;;  %vm21634_vm8 = vmpackc.low %vm25100_vm7, %vm25101_vm11  ;;  %v12419_v32 = vsel %vm26331_vm2, 1.0, %v26241_v0  ;;  %vm26332_vm9 = vcmp.eq.s32.totalorder %v21227_v48, %v20918_v53  ;;  %vm25109_vm7 = vcmp.eq.s32.totalorder %v21613_v12, %v20918_v53  ;;  %vm25108_vm11 = vcmp.eq.s32.totalorder %v21616_v26, %v20918_v53 }
 0x598   : > { %v26327_v59 = vsel %vm21634_vm8, 4294967295, %v26326_v59  ;;  %26329 = vst [vmem:[#allocation217_spill] sm:$0xff] %v21638_v45  ;;  %26330 = vst [vmem:[#allocation218_spill] sm:$0xff] %v21640_v23  ;;  %v12420_v61 = vsel %vm26332_vm9, 1.0, %v26241_v0  ;;  %15546 = vmatpush3.bf16.xpose.msk.msra.mxu1 %vm21634_vm8, %v26219_v39  ;;  %v21658_v15 = vadd.s32 464, %v20913_v7  ;;  %v21661_v2 = vadd.s32 472, %v20913_v7 }
 0x599   : > { %26328 = vst [vmem:[#allocation216_spill] sm:$0xff] %v26327_v59  ;;  %v21663_v38 = vsub.f32 %v12436_v10, %v12436_v10  ;;  %v21666_v48 = vsub.f32 %v6395_v5, %v21602_v25  ;;  %vm21676_vm9 = vmpackc.low %vm25108_vm11, %vm25109_vm7  ;;  %v26335_v23 = vmov 0  ;;  %v21681_v10 = vsub.f32 %v6396_v19, %v21622_v60 }
 0x59a   : > { %v26336_v23 = vsel %vm21676_vm9, 4294967295, %v26335_v23  ;;  %vm6359_vm2 = vcmp.eq.s32.totalorder %v6223_v3, %v21175_v49  ;;  %vm6360_vm1 = vcmp.eq.s32.totalorder %v6224_v4, %v21175_v49  ;;  %15356 = vmatprep.subr.msk.bf16.mxu0 %vm21676_vm9, %v26219_v39  ;;  %v21690_v5 = vsub.f32 %v12420_v61, %v12420_v61 }
 0x59b   : > { %26333 = vst [vmem:[#allocation219_spill] sm:$0xff] %v21663_v38  ;;  %26334 = vst [vmem:[#allocation220_spill] sm:$0xff] %v21666_v48  ;;  %v21683_v38 = vsub.f32 %v12419_v32, %v12419_v32  ;;  %vm26341_vm11 = vcmp.eq.s32.totalorder %v21239_v56, %v20918_v53  ;;  %vm26342_vm7 = vcmp.eq.s32.totalorder %v21331_v63, %v20918_v53  ;;  %v21709_v19 = vadd.s32 80, %v20913_v7 }
 0x59c   : > { %26337 = vst [vmem:[#allocation221_spill] sm:$0xff] %v26336_v23  ;;  %26338 = vst [vmem:[#allocation222_spill] sm:$0xff] %v21681_v10  ;;  %v12405_v13 = vsel %vm26341_vm11, 1.0, %v26241_v0  ;;  %v12389_v32 = vsel %vm26342_vm7, 1.0, %v26241_v0  ;;  %vm26343_vm8 = vcmp.eq.s32.totalorder %v21334_v55, %v20918_v53  ;;  %vm25137_vm9 = vcmp.eq.s32.totalorder %v21658_v15, %v20918_v53 }
 0x59d   : > { %26339 = vst [vmem:[#allocation223_spill] sm:$0xff] %v21683_v38  ;;  %26340 = vst [vmem:[#allocation224_spill] sm:$0xff] %v21690_v5  ;;  %v12390_v4 = vsel %vm26343_vm8, 1.0, %v26241_v0  ;;  %vm25136_vm5 = vcmp.eq.s32.totalorder %v21661_v2, %v20918_v53  ;;  %v21712_v61 = vadd.s32 88, %v20913_v7  ;;  %vm26344_vm11 = vcmp.eq.s32.totalorder %v21242_v16, %v20918_v53 }
 0x59e   : > { %v12406_v63 = vsel %vm26344_vm11, 1.0, %v26241_v0  ;;  %vm26345_vm7 = vcmp.eq.s32.totalorder %v21279_v51, %v20918_v53  ;;  %v6397_v3 = vsel %vm6359_vm2, %v21215_v28, 0.0  ;;  %v6398_v59 = vsel %vm6360_vm1, %v21215_v28, 0.0  ;;  %vm21730_vm8 = vmpackc.low %vm25136_vm5, %vm25137_vm9 }
 0x59f   : > { %v12437_v55 = vsel %vm26345_vm7, 1.0, %v26241_v0  ;;  %v26346_v23 = vmov 0  ;;  %vm26349_vm11 = vcmp.eq.s32.totalorder %v21282_v21, %v20918_v53  ;;  %v21738_v60 = vsub.f32 %v12389_v32, %v12389_v32  ;;  %15548 = vmatprep.subr.msk.bf16.mxu1 %vm21730_vm8, %v26219_v39 }
 0x5a0   : > { %v26347_v23 = vsel %vm21730_vm8, 4294967295, %v26346_v23  ;;  %v12438_v51 = vsel %vm26349_vm11, 1.0, %v26241_v0  ;;  %v21740_v25 = vsub.f32 %v12390_v4, %v12390_v4  ;;  %v6225_v16 = vadd.s32 %v21114_v14, %v21499_v8 }
 0x5a1   : > { %26348 = vst [vmem:[#allocation225_spill] sm:$0xff] %v26347_v23  ;;  %26350 = vst [vmem:[#allocation226_spill] sm:$0xff] %v21738_v60  ;;  %vm25139_vm1 = vcmp.eq.s32.totalorder %v21709_v19, %v20918_v53  ;;  %vm25138_vm2 = vcmp.eq.s32.totalorder %v21712_v61, %v20918_v53  ;;  %v21752_v21 = vadd.s32 336, %v20913_v7  ;;  %v21755_v32 = vadd.s32 344, %v20913_v7 }
 0x5a2   : > { %26351 = vst [vmem:[#allocation227_spill] sm:$0xff] %v21740_v25  ;;  %v21758_v56 = vand.u32 4294901760, %v6397_v3  ;;  %v21760_v31 = vand.u32 4294901760, %v6398_v59  ;;  %v6226_v23 = vadd.s32 %v21114_v14, %v21502_v43  ;;  %vm21770_vm7 = vmpackc.low %vm25138_vm2, %vm25139_vm1  ;;  %v26354_v54 = vmov 0 }
 0x5a3   : > { %v26355_v54 = vsel %vm21770_vm7, 4294967295, %v26354_v54  ;;  %v21775_v4 = vsub.f32 %v12405_v13, %v12405_v13  ;;  %v21777_v38 = vsub.f32 %v12406_v63, %v12406_v63  ;;  %vm26358_vm11 = vcmp.eq.s32.totalorder %v21374_v37, %v20918_v53  ;;  %15358 = vmatpush3.bf16.xpose.msk.msra.mxu0 %vm21770_vm7, %v26219_v39 }
 0x5a4   : > { %26352 = vst [vmem:[#allocation228_spill] sm:$0xff] %v21758_v56  ;;  %26353 = vst [vmem:[#allocation229_spill] sm:$0xff] %v21760_v31  ;;  %v12421_v45 = vsel %vm26358_vm11, 1.0, %v26241_v0  ;;  %v21786_v20 = vsub.f32 %v12437_v55, %v12437_v55  ;;  %v21788_v48 = vsub.f32 %v12438_v51, %v12438_v51  ;;  %vm25141_vm5 = vcmp.eq.s32.totalorder %v21752_v21, %v20918_v53 }
 0x5a5   : > { %26356 = vst [vmem:[#allocation230_spill] sm:$0xff] %v26355_v54  ;;  %26357 = vst [vmem:[#allocation231_spill] sm:$0xff] %v21777_v38  ;;  %vm25140_vm9 = vcmp.eq.s32.totalorder %v21755_v32, %v20918_v53  ;;  %vm26361_vm11 = vcmp.eq.s32.totalorder %v21377_v46, %v20918_v53  ;;  %vm6361_vm2 = vcmp.eq.s32.totalorder %v6225_v16, %v21175_v49  ;;  %v26362_v55 = vmov 0 }
 0x5a6   : > { %26359 = vst [vmem:[#allocation232_spill] sm:$0xff] %v21786_v20  ;;  %26360 = vst [vmem:[#allocation233_spill] sm:$0xff] %v21788_v48  ;;  %v12422_v37 = vsel %vm26361_vm11, 1.0, %v26241_v0  ;;  %v21812_v51 = vsub.f32 %v6397_v3, %v21758_v56  ;;  %v21815_v63 = vsub.f32 %v6398_v59, %v21760_v31  ;;  %v21817_v46 = vsub.f32 %v12421_v45, %v12421_v45 }
 0x5a7   : > { %vm21807_vm1 = vmpackc.low %vm25140_vm9, %vm25141_vm5  ;;  %vm6362_vm11 = vcmp.eq.s32.totalorder %v6226_v23, %v21175_v49  ;;  %v21824_v16 = vadd.s32 224, %v20913_v7  ;;  %v21827_v13 = vadd.s32 232, %v20913_v7  ;;  %v21830_v3 = vadd.s32 480, %v20913_v7 }
 0x5a8   : > { %v26363_v55 = vsel %vm21807_vm1, 4294967295, %v26362_v55  ;;  %26365 = vst [vmem:[#allocation235_spill] sm:$0xff] %v21812_v51  ;;  %26366 = vst [vmem:[#allocation236_spill] sm:$0xff] %v21815_v63  ;;  %15550 = vmatpush3.bf16.xpose.msk.msra.mxu1 %vm21807_vm1, %v26219_v39  ;;  %v21833_v59 = vadd.s32 488, %v20913_v7  ;;  %v21835_v45 = vsub.f32 %v12422_v37, %v12422_v37  ;;  %v6399_v23 = vsel %vm6361_vm2, %v21215_v28, 0.0 }
 0x5a9   : > { %26364 = vst [vmem:[#allocation234_spill] sm:$0xff] %v26363_v55  ;;  %26367 = vst [vmem:[#allocation237_spill] sm:$0xff] %v21817_v46  ;;  %vm26371_vm9 = vcmp.eq.s32.totalorder %v21499_v8, %v20918_v53  ;;  %vm26372_vm5 = vcmp.eq.s32.totalorder %v21502_v43, %v20918_v53  ;;  %v6400_v54 = vsel %vm6362_vm11, %v21215_v28, 0.0  ;;  %vm26373_vm1 = vcmp.eq.s32.totalorder %v21593_v50, %v20918_v53 }
 0x5aa   : > { %26368 = vst [vmem:[#allocation238_spill] sm:$0xff] %v21824_v16  ;;  %26369 = vst [vmem:[#allocation239_spill] sm:$0xff] %v21827_v13  ;;  %v12391_v10 = vsel %vm26371_vm9, 1.0, %v26241_v0  ;;  %v12392_v55 = vsel %vm26372_vm5, 1.0, %v26241_v0  ;;  %v12423_v37 = vsel %vm26373_vm1, 1.0, %v26241_v0  ;;  %vm25157_vm2 = vcmp.eq.s32.totalorder %v21824_v16, %v20918_v53 }
 0x5ab   : > { %26370 = vst [vmem:[#allocation240_spill] sm:$0xff] %v21835_v45  ;;  %vm25154_vm7 = vcmp.eq.s32.totalorder %v21827_v13, %v20918_v53  ;;  %v26374_v43 = vmov 0  ;;  %vm25173_vm9 = vcmp.eq.s32.totalorder %v21830_v3, %v20918_v53  ;;  %vm25168_vm1 = vcmp.eq.s32.totalorder %v21833_v59, %v20918_v53 }
 0x5ac   : > { %vm21861_vm5 = vmpackc.low %vm25154_vm7, %vm25157_vm2  ;;  %v21870_v8 = vadd.s32 96, %v20913_v7  ;;  %v21873_v50 = vadd.s32 104, %v20913_v7  ;;  %vm26377_vm11 = vcmp.eq.s32.totalorder %v21453_v42, %v20918_v53  ;;  %vm26378_vm7 = vcmp.eq.s32.totalorder %v21456_v17, %v20918_v53 }
 0x5ad   : > { %v26375_v43 = vsel %vm21861_vm5, 4294967295, %v26374_v43  ;;  %v12407_v56 = vsel %vm26377_vm11, 1.0, %v26241_v0  ;;  %v12408_v25 = vsel %vm26378_vm7, 1.0, %v26241_v0  ;;  %vm26379_vm2 = vcmp.eq.s32.totalorder %v21596_v27, %v20918_v53  ;;  %15360 = vmatprep.subr.msk.bf16.mxu0 %vm21861_vm5, %v26219_v39  ;;  %vm21897_vm11 = vmpackc.low %vm25168_vm1, %vm25173_vm9 }
 0x5ae   : > { %26376 = vst [vmem:[#allocation241_spill] sm:$0xff] %v26375_v43  ;;  %v12424_v60 = vsel %vm26379_vm2, 1.0, %v26241_v0  ;;  %v26380_v31 = vmov 0  ;;  %vm26383_vm7 = vcmp.eq.s32.totalorder %v21459_v57, %v20918_v53  ;;  %v21905_v17 = vand.u32 4294901760, %v6399_v23  ;;  %15552 = vmatprep.subr.msk.bf16.mxu1 %vm21897_vm11, %v26219_v39 }
 0x5af   : > { %v26381_v31 = vsel %vm21897_vm11, 4294967295, %v26380_v31  ;;  %v12439_v27 = vsel %vm26383_vm7, 1.0, %v26241_v0  ;;  %v21907_v42 = vsub.f32 %v12391_v10, %v12391_v10  ;;  %v21909_v43 = vsub.f32 %v12392_v55, %v12392_v55 }
 0x5b0   : > { %26382 = vst [vmem:[#allocation242_spill] sm:$0xff] %v26381_v31  ;;  %26384 = vst [vmem:[#allocation243_spill] sm:$0xff] %v21905_v17  ;;  %vm26387_vm2 = vcmp.eq.s32.totalorder %v21462_v58, %v20918_v53  ;;  %v21918_v48 = vand.u32 4294901760, %v6400_v54  ;;  %v21920_v20 = vsub.f32 %v12423_v37, %v12423_v37  ;;  %v6227_v57 = vadd.s32 %v21114_v14, %v21709_v19 }
 0x5b1   : > { %26385 = vst [vmem:[#allocation244_spill] sm:$0xff] %v21907_v42  ;;  %26386 = vst [vmem:[#allocation245_spill] sm:$0xff] %v21909_v43  ;;  %v12440_v46 = vsel %vm26387_vm2, 1.0, %v26241_v0  ;;  %v21924_v10 = vsub.f32 %v12424_v60, %v12424_v60  ;;  %v6228_v55 = vadd.s32 %v21114_v14, %v21712_v61  ;;  %vm25176_vm7 = vcmp.eq.s32.totalorder %v21870_v8, %v20918_v53 }
 0x5b2   : > { %26388 = vst [vmem:[#allocation246_spill] sm:$0xff] %v21918_v48  ;;  %26389 = vst [vmem:[#allocation247_spill] sm:$0xff] %v21920_v20  ;;  %vm25175_vm1 = vcmp.eq.s32.totalorder %v21873_v50, %v20918_v53  ;;  %v21933_v31 = vsub.f32 %v12407_v56, %v12407_v56  ;;  %v21935_v37 = vsub.f32 %v12408_v25, %v12408_v25  ;;  %v26392_v60 = vmov 0 }
 0x5b3   : > { %26390 = vst [vmem:[#allocation248_spill] sm:$0xff] %v21924_v10  ;;  %v21937_v38 = vsub.f32 %v12439_v27, %v12439_v27  ;;  %vm21945_vm2 = vmpackc.low %vm25175_vm1, %vm25176_vm7  ;;  %v21949_v63 = vsub.f32 %v12440_v46, %v12440_v46  ;;  %v21952_v58 = vsub.f32 %v6399_v23, %v21905_v17  ;;  %v21960_v27 = vsub.f32 %v6400_v54, %v21918_v48 }
 0x5b4   : > { %v26393_v60 = vsel %vm21945_vm2, 4294967295, %v26392_v60  ;;  %15362 = vmatpush3.bf16.xpose.msk.msra.mxu0 %vm21945_vm2, %v26219_v39  ;;  %vm6363_vm9 = vcmp.eq.s32.totalorder %v6227_v57, %v21175_v49  ;;  %v21967_v46 = vadd.s32 360, %v20913_v7  ;;  %vm6364_vm1 = vcmp.eq.s32.totalorder %v6228_v55, %v21175_v49 }
 0x5b5   : > { %26391 = vst [vmem:[#allocation249_spill] sm:$0xff] %v21937_v38  ;;  %26394 = vst [vmem:[#allocation250_spill] sm:$0xff] %v26393_v60  ;;  %v21964_v38 = vadd.s32 352, %v20913_v7  ;;  %vm26397_vm7 = vcmp.eq.s32.totalorder %v21709_v19, %v20918_v53  ;;  %v21981_v57 = vadd.s32 240, %v20913_v7  ;;  %v21984_v23 = vadd.s32 248, %v20913_v7 }
 0x5b6   : > { %26395 = vst [vmem:[#allocation251_spill] sm:$0xff] %v21952_v58  ;;  %26396 = vst [vmem:[#allocation252_spill] sm:$0xff] %v21960_v27  ;;  %v12393_v54 = vsel %vm26397_vm7, 1.0, %v26241_v0  ;;  %vm26400_vm5 = vcmp.eq.s32.totalorder %v21613_v12, %v20918_v53  ;;  %vm26401_vm7 = vcmp.eq.s32.totalorder %v21616_v26, %v20918_v53  ;;  %v6401_v56 = vsel %vm6363_vm9, %v21215_v28, 0.0 }
 0x5b7   : > { %vm25214_vm2 = vcmp.eq.s32.totalorder %v21964_v38, %v20918_v53  ;;  %26398 = vst [vmem:[#allocation253_spill] sm:$0xff] %v21981_v57  ;;  %26399 = vst [vmem:[#allocation254_spill] sm:$0xff] %v21984_v23  ;;  %v12409_v55 = vsel %vm26400_vm5, 1.0, %v26241_v0  ;;  %v12410_v19 = vsel %vm26401_vm7, 1.0, %v26241_v0  ;;  %vm26402_vm11 = vcmp.eq.s32.totalorder %v21712_v61, %v20918_v53 }
 0x5b8   : > { %v12394_v25 = vsel %vm26402_vm11, 1.0, %v26241_v0  ;;  %vm26403_vm8 = vcmp.eq.s32.totalorder %v21967_v46, %v20918_v53  ;;  %v26404_v60 = vmov 0  ;;  %vm26407_vm5 = vcmp.eq.s32.totalorder %v21658_v15, %v20918_v53 }
 0x5b9   : > { %vm22005_vm0 = vmpackc.low %vm26403_vm8, %vm25214_vm2  ;;  %v12441_v48 = vsel %vm26407_vm5, 1.0, %v26241_v0  ;;  %vm26408_vm9 = vcmp.eq.s32.totalorder %v21661_v2, %v20918_v53  ;;  %v6402_v17 = vsel %vm6364_vm1, %v21215_v28, 0.0  ;;  %v22018_v26 = vsub.f32 %v12393_v54, %v12393_v54 }
 0x5ba   : > { %v26405_v60 = vsel %vm22005_vm0, 4294967295, %v26404_v60  ;;  %v12442_v61 = vsel %vm26408_vm9, 1.0, %v26241_v0  ;;  %15554 = vmatpush3.bf16.xpose.msk.msra.mxu1 %vm22005_vm0, %v26219_v39  ;;  %vm25213_vm8 = vcmp.eq.s32.totalorder %v21981_v57, %v20918_v53  ;;  %vm25212_vm11 = vcmp.eq.s32.totalorder %v21984_v23, %v20918_v53 }
 0x5bb   : > { %26406 = vst [vmem:[#allocation255_spill] sm:$0xff] %v26405_v60  ;;  %26409 = vst [vmem:[#allocation256_spill] sm:$0xff] %v22018_v26  ;;  %v22028_v15 = vadd.s32 496, %v20913_v7  ;;  %v22031_v2 = vadd.s32 504, %v20913_v7  ;;  %v22033_v12 = vsub.f32 %v12409_v55, %v12409_v55  ;;  %v22035_v54 = vsub.f32 %v12410_v19, %v12410_v19 }
 0x5bc   : > { %v22037_v10 = vand.u32 4294901760, %v6401_v56  ;;  %v22039_v60 = vsub.f32 %v12394_v25, %v12394_v25  ;;  %vm22047_vm1 = vmpackc.low %vm25212_vm11, %vm25213_vm8  ;;  %v26414_v20 = vmov 0  ;;  %vm26417_vm7 = vcmp.eq.s32.totalorder %v21752_v21, %v20918_v53 }
 0x5bd   : > { %26410 = vst [vmem:[#allocation257_spill] sm:$0xff] %v22033_v12  ;;  %26411 = vst [vmem:[#allocation258_spill] sm:$0xff] %v22035_v54  ;;  %v26415_v20 = vsel %vm22047_vm1, 4294967295, %v26414_v20  ;;  %v12425_v55 = vsel %vm26417_vm7, 1.0, %v26241_v0  ;;  %vm26418_vm5 = vcmp.eq.s32.totalorder %v21755_v32, %v20918_v53  ;;  %v6229_v19 = vadd.s32 %v21114_v14, %v21870_v8  ;;  %15364 = vmatprep.subr.msk.bf16.mxu0 %vm22047_vm1, %v26219_v39 }
 0x5be   : > { %26412 = vst [vmem:[#allocation259_spill] sm:$0xff] %v22037_v10  ;;  %26413 = vst [vmem:[#allocation260_spill] sm:$0xff] %v22039_v60  ;;  %v12426_v25 = vsel %vm26418_vm5, 1.0, %v26241_v0  ;;  %v6230_v54 = vadd.s32 %v21114_v14, %v21873_v50  ;;  %v22066_v12 = vsub.f32 %v12441_v48, %v12441_v48  ;;  %v22068_v43 = vsub.f32 %v12442_v61, %v12442_v61 }
 0x5bf   : > { %26416 = vst [vmem:[#allocation261_spill] sm:$0xff] %v26415_v20  ;;  %v22070_v21 = vand.u32 4294901760, %v6402_v17  ;;  %vm25218_vm9 = vcmp.eq.s32.totalorder %v22028_v15, %v20918_v53  ;;  %vm25217_vm7 = vcmp.eq.s32.totalorder %v22031_v2, %v20918_v53  ;;  %v22078_v32 = vadd.s32 112, %v20913_v7 }
 0x5c0   : > { %26419 = vst [vmem:[#allocation262_spill] sm:$0xff] %v22068_v43  ;;  %v22081_v20 = vadd.s32 120, %v20913_v7  ;;  %v22084_v48 = vsub.f32 %v6401_v56, %v22037_v10  ;;  %v22087_v43 = vsub.f32 %v12425_v55, %v12425_v55  ;;  %v22089_v42 = vsub.f32 %v12426_v25, %v12426_v25  ;;  %vm22097_vm5 = vmpackc.low %vm25217_vm7, %vm25218_vm9 }
 0x5c1   : > { %26420 = vst [vmem:[#allocation263_spill] sm:$0xff] %v22070_v21  ;;  %v26424_v26 = vmov 0  ;;  %vm26427_vm2 = vcmp.eq.s32.totalorder %v21870_v8, %v20918_v53  ;;  %vm26428_vm1 = vcmp.eq.s32.totalorder %v21873_v50, %v20918_v53  ;;  %15556 = vmatprep.subr.msk.bf16.mxu1 %vm22097_vm5, %v26219_v39  ;;  %vm6441_vm7 = vcmp.eq.s32.totalorder %v22078_v32, %v20918_v53 }
 0x5c2   : > { %26421 = vst [vmem:[#allocation264_spill] sm:$0xff] %v22084_v48  ;;  %26422 = vst [vmem:[#allocation265_spill] sm:$0xff] %v22087_v43  ;;  %v26425_v26 = vsel %vm22097_vm5, 4294967295, %v26424_v26  ;;  %v12395_v56 = vsel %vm26427_vm2, 1.0, %v26241_v0  ;;  %v12396_v55 = vsel %vm26428_vm1, 1.0, %v26241_v0  ;;  %vm25229_vm9 = vcmp.eq.s32.totalorder %v22081_v20, %v20918_v53 }
 0x5c3   : > { %26423 = vst [vmem:[#allocation266_spill] sm:$0xff] %v22089_v42  ;;  %26426 = vst [vmem:[#allocation267_spill] sm:$0xff] %v26425_v26  ;;  %v22119_v25 = vadd.s32 368, %v20913_v7  ;;  %v22122_v8 = vadd.s32 376, %v20913_v7  ;;  %v22125_v61 = vsub.f32 %v6402_v17, %v22070_v21  ;;  %vm26430_vm2 = vcmp.eq.s32.totalorder %v21824_v16, %v20918_v53 }
 0x5c4   : > { %v12411_v50 = vsel %vm26430_vm2, 1.0, %v26241_v0  ;;  %vm26431_vm1 = vcmp.eq.s32.totalorder %v21827_v13, %v20918_v53  ;;  %vm26432_vm8 = vcmp.eq.s32.totalorder %v21830_v3, %v20918_v53  ;;  %vm22145_vm11 = vmpackc.low %vm25229_vm9, %vm6441_vm7  ;;  %v26433_v17 = vmov 0 }
 0x5c5   : > { %26429 = vst [vmem:[#allocation268_spill] sm:$0xff] %v22125_v61  ;;  %v12412_v26 = vsel %vm26431_vm1, 1.0, %v26241_v0  ;;  %v12443_v10 = vsel %vm26432_vm8, 1.0, %v26241_v0  ;;  %v26434_v17 = vsel %vm22145_vm11, 4294967295, %v26433_v17  ;;  %vm26436_vm2 = vcmp.eq.s32.totalorder %v21833_v59, %v20918_v53  ;;  %15366 = vmatpush3.bf16.xpose.msk.msra.mxu0 %vm22145_vm11, %v26219_v39 }
 0x5c6   : > { %26435 = vst [vmem:[#allocation269_spill] sm:$0xff] %v26434_v17  ;;  %v12444_v13 = vsel %vm26436_vm2, 1.0, %v26241_v0  ;;  %vm26437_vm8 = vcmp.eq.s32.totalorder %v6229_v19, %v21175_v49  ;;  %vm26438_vm1 = vcmp.eq.s32.totalorder %v6230_v54, %v21175_v49  ;;  %v22163_v60 = vsub.f32 %v12395_v56, %v12395_v56 }
 0x5c7   : > { %v6403_v3 = vsel %vm26437_vm8, %v21215_v28, 0.0  ;;  %v6404_v16 = vsel %vm26438_vm1, %v21215_v28, 0.0  ;;  %v22165_v21 = vsub.f32 %v12396_v55, %v12396_v55  ;;  %vm6473_vm9 = vcmp.eq.s32.totalorder %v22119_v25, %v20918_v53 }
 0x5c8   : > { %26439 = vst [vmem:[#allocation270_spill] sm:$0xff] %v22163_v60  ;;  %vm25239_vm2 = vcmp.eq.s32.totalorder %v22122_v8, %v20918_v53  ;;  %v22172_v19 = vsub.f32 %v12411_v50, %v12411_v50  ;;  %v22174_v54 = vsub.f32 %v12412_v26, %v12412_v26  ;;  %v22176_v43 = vsub.f32 %v12443_v10, %v12443_v10 }
 0x5c9   : > { %26440 = vst [vmem:[#allocation271_spill] sm:$0xff] %v22165_v21  ;;  %vm22184_vm8 = vmpackc.low %vm25239_vm2, %vm6473_vm9  ;;  %v26443_v56 = vmov 0  ;;  %v22188_v55 = vsub.f32 %v12444_v13, %v12444_v13  ;;  %v22190_v17 = vand.u32 4294901760, %v6403_v3  ;;  %v22192_v50 = vand.u32 4294901760, %v6404_v16 }
 0x5ca   : > { %26441 = vst [vmem:[#allocation272_spill] sm:$0xff] %v22174_v54  ;;  %26442 = vst [vmem:[#allocation273_spill] sm:$0xff] %v22176_v43  ;;  %v26444_v56 = vsel %vm22184_vm8, 4294967295, %v26443_v56  ;;  %vm26449_vm1 = vcmp.eq.s32.totalorder %v21964_v38, %v20918_v53  ;;  %15558 = vmatpush3.bf16.xpose.msk.msra.mxu1 %vm22184_vm8, %v26219_v39  ;;  %v6217_v10 = vadd.s32 %v21114_v14, %v20913_v7  ;;  %v25243_v59 = vand.u32 4294901760, %v21203_v6 }
 0x5cb   : > { %26445 = vst [vmem:[#allocation274_spill] sm:$0xff] %v26444_v56  ;;  %26446 = vst [vmem:[#allocation275_spill] sm:$0xff] %v22188_v55  ;;  %v12427_v26 = vsel %vm26449_vm1, 1.0, %v26241_v0  ;;  %v25248_v13 = vand.u32 4294901760, %v21217_v40  ;;  %vm26450_vm1 = vcmp.eq.s32.totalorder %v21967_v46, %v20918_v53  ;;  %v26451_v43 = vand.u32 4294901760, %v21284_v35 }
 0x5cc   : > { %26447 = vst [vmem:[#allocation276_spill] sm:$0xff] %v22190_v17  ;;  %26448 = vst [vmem:[#allocation277_spill] sm:$0xff] %v22192_v50  ;;  %v12428_v38 = vsel %vm26450_vm1, 1.0, %v26241_v0  ;;  %vm6353_vm2 = vcmp.eq.s32.totalorder %v6217_v10, %v21175_v49  ;;  %v7184_v7 = vsub.f32 %v21203_v6, %v25243_v59  ;;  %v22224_v39 = vsub.f32 %v6403_v3, %v22190_v17 }
 0x5cd   : > { %v7191_v55 = vsub.f32 %v21217_v40, %v25248_v13  ;;  %v9558_v54 = vsub.f32 %v21284_v35, %v26451_v43  ;;  %v22226_v46 = vsub.f32 %v12427_v26, %v12427_v26  ;;  %v6391_v56 = vsel %vm6353_vm2, %v21215_v28, 0.0 }
 0x5ce   : > { %26452 = vst [vmem:[#allocation278_spill] sm:$0xff] %v22224_v39  ;;  %v26453_v10 = vand.u32 4294901760, %v21320_v24  ;;  %v22232_v59 = vand.u32 4294901760, %v6391_v56  ;;  %v7185_v6 = vand.u32 4294901760, %v7184_v7  ;;  %v22235_v40 = vsub.f32 %v6404_v16, %v22192_v50 }
 0x5cf   : > { %v7192_v60 = vand.u32 4294901760, %v7191_v55  ;;  %v9559_v13 = vand.u32 4294901760, %v9558_v54  ;;  %v22237_v43 = vsub.f32 %v12428_v38, %v12428_v38  ;;  %v22240_v26 = vand.u32 4294901760, %v21357_v52 }
 0x5d0   : > { %v9565_v21 = vsub.f32 %v21320_v24, %v26453_v10  ;;  %26454 = vst [vmem:[#allocation279_spill] sm:$0xff] %v22232_v59  ;;  %26455 = vst [vmem:[#allocation280_spill] sm:$0xff] %v22235_v40  ;;  %v22243_v17 = vsub.f32 %v6391_v56, %v22232_v59  ;;  %v22246_v10 = vand.u32 4294901760, %v21537_v29  ;;  %vm26460_vm2 = vcmp.eq.s32.totalorder %v21981_v57, %v20918_v53  ;;  %v26487_v57 = vld [vmem:[#allocation223_spill] sm:$0xff] }
 0x5d1   : > { %26456 = vst [vmem:[#allocation281_spill] sm:$0xff] %v22237_v43  ;;  %26457 = vst [vmem:[#allocation282_spill] sm:$0xff] %v22240_v26  ;;  %v15367_v35 = vpack.c.bf16 %v7192_v60, %v7185_v6  ;;  %v12413_v16 = vsel %vm26460_vm2, 1.0, %v26241_v0  ;;  %v26461_v55 = vand.u32 4294901760, %v21306_v22  ;;  %v26462_v38 = vand.u32 4294901760, %v21311_v34 }
 0x5d2   : > { %v9566_v3 = vand.u32 4294901760, %v9565_v21  ;;  %26458 = vst [vmem:[#allocation283_spill] sm:$0xff] %v22243_v17  ;;  %26459 = vst [vmem:[#allocation284_spill] sm:$0xff] %v22246_v10  ;;  %v22259_v6 = vand.u32 4294901760, %v22243_v17  ;;  %v26464_v60 = vand.u32 4294901760, %v21342_v18  ;;  %v26465_v7 = vand.u32 4294901760, %v21364_v11 }
 0x5d3   : > { %v15369_v56 = vpack.c.bf16 %v26462_v38, %v26461_v55  ;;  %15368 = vmatprep.subr.bf16.mxu0 %v15367_v35  ;;  %v26466_v50 = vand.u32 4294901760, %v21507_v1  ;;  %v6730_v34 = vsub.f32 %v21357_v52, %v22240_v26  ;;  %v22272_v22 = vand.u32 4294901760, %v21540_v47 }
 0x5d4   : > { %v15559_v21 = vpack.c.bf16 %v9566_v3, %v9559_v13  ;;  %26463 = vst [vmem:[#allocation285_spill] sm:$0xff] %v22259_v6  ;;  %v15561_v54 = vpack.c.bf16 %v26465_v7, %v26464_v60  ;;  %v25265_v13 = vand.u32 4294901760, %v21509_v36  ;;  %v25268_v35 = vand.u32 4294901760, %v21526_v41 }
 0x5d5   : > { %v7198_v59 = vsub.f32 %v21507_v1, %v26466_v50  ;;  %26467 = vst [vmem:[#allocation286_spill] sm:$0xff] %v22272_v22  ;;  %v25271_v18 = vand.u32 4294901760, %v21528_v30  ;;  %v6719_v11 = vsub.f32 %v22243_v17, %v22259_v6  ;;  %v6741_v3 = vsub.f32 %v21537_v29, %v22246_v10 }
 0x5d6   : > { %15560 = vmatprep.subr.bf16.mxu1 %v15559_v21  ;;  %v7205_v7 = vsub.f32 %v21509_v36, %v25265_v13  ;;  %v9572_v21 = vsub.f32 %v21526_v41, %v25268_v35  ;;  %v26468_v38 = vand.u32 4294901760, %v21445_v62  ;;  %v26469_v26 = vand.u32 4294901760, %v21447_v33 }
 0x5d7   : > { %v7199_v50 = vand.u32 4294901760, %v7198_v59  ;;  %v9579_v55 = vsub.f32 %v21528_v30, %v25271_v18  ;;  %v6720_v10 = vand.u32 4294901760, %v6719_v11  ;;  %v26470_v13 = vand.u32 4294901760, %v21511_v9 }
 0x5d8   : > { %v7086_v60 = vsub.f32 %v21445_v62, %v26468_v38  ;;  %v7093_v59 = vsub.f32 %v21447_v33, %v26469_v26  ;;  %v7206_v6 = vand.u32 4294901760, %v7205_v7  ;;  %v26471_v35 = vand.u32 4294901760, %v21530_v44  ;;  %v26476_v33 = vld [vmem:[#allocation209_spill] sm:$0xff] }
 0x5d9   : > { %v9460_v29 = vsub.f32 %v21511_v9, %v26470_v13  ;;  %v6731_v17 = vand.u32 4294901760, %v6730_v34  ;;  %v9573_v36 = vand.u32 4294901760, %v9572_v21  ;;  %v9580_v1 = vand.u32 4294901760, %v9579_v55  ;;  %13831 = vmatprep.mubr.f32.mxu0 %v6720_v10  ;;  %14407 = vmatprep.mubr.f32.mxu1 %v6720_v10  ;;  %v26473_v13 = vld [vmem:[#allocation220_spill] sm:$0xff] }
 0x5da   : > { %v9467_v52 = vsub.f32 %v21530_v44, %v26471_v35  ;;  %vm26472_vm1 = vcmp.eq.s32.totalorder %v21984_v23, %v20918_v53  ;;  %v6752_v11 = vsub.f32 %v21540_v47, %v22272_v22  ;;  %v22309_v7 = vand.u32 4294901760, %v26473_v13  ;;  %13832 = vmatmul.mubr.f32.vlgmr.msra.gmra.mrb[0].mxu0 %v6720_v10  ;;  %14408 = vmatmul.mubr.f32.vlgmr.msra.gmra.mrb[0].mxu1 %v6720_v10 }
 0x5db   : > { %v12414_v26 = vsel %vm26472_vm1, 1.0, %v26241_v0  ;;  %v15371_v38 = vpack.c.bf16 %v7206_v6, %v7199_v50  ;;  %v22311_v35 = vsub.f32 %v12413_v16, %v12413_v16  ;;  %v15563_v34 = vpack.c.bf16 %v9580_v1, %v9573_v36  ;;  %15370 = vmatpush3.bf16.xpose.msra.mxu0 %v15369_v56  ;;  %15562 = vmatpush3.bf16.xpose.msra.mxu1 %v15561_v54  ;;  %v26478_v16 = vld [vmem:[#allocation217_spill] sm:$0xff]  ;;  %v26479_v1 = vld [vmem:[#allocation218_spill] sm:$0xff] }
 0x5dc   : > { %26474 = vst [vmem:[#allocation287_spill] sm:$0xff] %v22309_v7  ;;  %v7087_v21 = vand.u32 4294901760, %v7086_v60  ;;  %v7094_v55 = vand.u32 4294901760, %v7093_v59  ;;  %v6742_v18 = vand.u32 4294901760, %v6741_v3  ;;  %v9461_v44 = vand.u32 4294901760, %v9460_v29  ;;  %13833 = vmatprep.mubr.f32.mxu0 %v6731_v17  ;;  %14409 = vmatprep.mubr.f32.mxu1 %v6731_v17  ;;  %v26480_v29 = vld [vmem:[#allocation219_spill] sm:$0xff] }
 0x5dd   : > { %26475 = vst [vmem:[#allocation288_spill] sm:$0xff] %v22311_v35  ;;  %v9468_v9 = vand.u32 4294901760, %v9467_v52  ;;  %v25289_v62 = vand.u32 4294901760, %v26476_v33  ;;  %v22314_v23 = vsub.f32 %v12414_v26, %v12414_v26  ;;  %v22318_v22 = vadd.s32 %v21114_v14, %v22078_v32  ;;  %15372 = vmatprep.subr.bf16.mxu0 %v15371_v38  ;;  %15564 = vmatprep.subr.bf16.mxu1 %v15563_v34  ;;  %v26481_v50 = vld [vmem:[#allocation222_spill] sm:$0xff]  ;;  %v26483_v34 = vld [vmem:[#allocation211_spill] sm:$0xff] }
 0x5de   : > { %v25293_v10 = vand.u32 4294901760, %v26478_v16  ;;  %v25297_v36 = vand.u32 4294901760, %v26479_v1  ;;  %v6753_v6 = vand.u32 4294901760, %v6752_v11  ;;  %v6763_v54 = vsub.f32 %v26473_v13, %v22309_v7  ;;  %13834 = vmatmul.mubr.f32.gmra.mrb[2].mxu0 %v6731_v17  ;;  %14410 = vmatmul.mubr.f32.gmra.mrb[2].mxu1 %v6731_v17  ;;  %v26485_v13 = vld [vmem:[#allocation212_spill] sm:$0xff] }
 0x5df   : > { %26477 = vst [vmem:[#allocation209_spill] sm:$0xff] %v22314_v23  ;;  %v7212_v52 = vsub.f32 %v26476_v33, %v25289_v62  ;;  %v25299_v56 = vand.u32 4294901760, %v26480_v29  ;;  %v15373_v3 = vpack.c.bf16 %v7094_v55, %v7087_v21  ;;  %v22329_v60 = vand.u32 4294901760, %v26481_v50  ;;  %13835 = vmatprep.mubr.f32.mxu0 %v6742_v18  ;;  %14411 = vmatprep.mubr.f32.mxu1 %v6742_v18 }
 0x5e0   : > { %v7219_v59 = vsub.f32 %v26478_v16, %v25293_v10  ;;  %v9586_v26 = vsub.f32 %v26479_v1, %v25297_v36  ;;  %v15565_v11 = vpack.c.bf16 %v9468_v9, %v9461_v44  ;;  %v26484_v21 = vand.u32 4294901760, %v26483_v34 }
 0x5e1   : > { %26482 = vst [vmem:[#allocation217_spill] sm:$0xff] %v22329_v60  ;;  %v7213_v38 = vand.u32 4294901760, %v7212_v52  ;;  %v9593_v17 = vsub.f32 %v26480_v29, %v25299_v56  ;;  %v26486_v10 = vand.u32 4294901760, %v26485_v13  ;;  %v26488_v36 = vand.u32 4294901760, %v26487_v57 }
 0x5e2   : > { %v7100_v55 = vsub.f32 %v26483_v34, %v26484_v21  ;;  %v7220_v62 = vand.u32 4294901760, %v7219_v59  ;;  %v9587_v7 = vand.u32 4294901760, %v9586_v26  ;;  %vm26489_vm2 = vcmp.eq.s32.totalorder %v22028_v15, %v20918_v53  ;;  %13836 = vmatmul.mubr.f32.gmra.mrb[4].mxu0 %v6742_v18  ;;  %14412 = vmatmul.mubr.f32.gmra.mrb[4].mxu1 %v6742_v18 }
 0x5e3   : > { %v7107_v47 = vsub.f32 %v26485_v13, %v26486_v10  ;;  %v9474_v1 = vsub.f32 %v26487_v57, %v26488_v36  ;;  %v12445_v9 = vsel %vm26489_vm2, 1.0, %v26241_v0  ;;  %v22355_v44 = vadd.s32 %v21114_v14, %v22081_v20  ;;  %13837 = vmatprep.mubr.f32.mxu0 %v6753_v6  ;;  %14413 = vmatprep.mubr.f32.mxu1 %v6753_v6 }
 0x5e4   : > { %v9594_v52 = vand.u32 4294901760, %v9593_v17  ;;  %v26490_v59 = vand.u32 4294901760, %v21690_v5  ;;  %vm26491_vm1 = vcmp.eq.s32.totalorder %v22031_v2, %v20918_v53  ;;  %v6774_v15 = vsub.f32 %v26481_v50, %v22329_v60  ;;  %15374 = vmatpush3.bf16.xpose.msra.mxu0 %v15373_v3  ;;  %15566 = vmatpush3.bf16.xpose.msra.mxu1 %v15565_v11  ;;  %v26500_v50 = vld [vmem:[#allocation227_spill] sm:$0xff] }
 0x5e5   : > { %v22364_v10 = vsel %vm26491_vm1, 1.0, %v26241_v0  ;;  %v22369_v36 = vand.u32 4294901760, %v21812_v51  ;;  %v15375_v21 = vpack.c.bf16 %v7220_v62, %v7213_v38  ;;  %v6764_v17 = vand.u32 4294901760, %v6763_v54 }
 0x5e6   : > { %v9481_v26 = vsub.f32 %v21690_v5, %v26490_v59  ;;  %v15567_v56 = vpack.c.bf16 %v9594_v52, %v9587_v7  ;;  %v7101_v59 = vand.u32 4294901760, %v7100_v55  ;;  %v7108_v5 = vand.u32 4294901760, %v7107_v47  ;;  %v26493_v7 = vld [vmem:[#allocation236_spill] sm:$0xff]  ;;  %v26495_v47 = vld [vmem:[#allocation231_spill] sm:$0xff]  ;;  %13838 = vmatmul.mubr.f32.gmra.mrb[6].mxu0 %v6753_v6  ;;  %14414 = vmatmul.mubr.f32.gmra.mrb[6].mxu1 %v6753_v6  ;;  %v26498_v6 = vld [vmem:[#allocation226_spill] sm:$0xff] }
 0x5e7   : > { %26492 = vst [vmem:[#allocation219_spill] sm:$0xff] %v22369_v36  ;;  %vm6367_vm2 = vcmp.eq.s32.totalorder %v22318_v22, %v21175_v49  ;;  %v9475_v2 = vand.u32 4294901760, %v9474_v1  ;;  %v25309_v57 = vand.u32 4294901760, %v21775_v4  ;;  %vm6368_vm1 = vcmp.eq.s32.totalorder %v22355_v44, %v21175_v49  ;;  %15376 = vmatprep.subr.bf16.mxu0 %v15375_v21  ;;  %v26496_v55 = vld [vmem:[#allocation232_spill] sm:$0xff]  ;;  %13839 = vmatprep.mubr.f32.mxu0 %v6764_v17  ;;  %v26508_v49 = vld [vmem:[#allocation249_spill] sm:$0xff] }
 0x5e8   : > { %v9482_v18 = vand.u32 4294901760, %v9481_v26  ;;  %v12397_v62 = vsel %vm6441_vm7, 1.0, %v26241_v0  ;;  %v22381_v54 = vand.u32 4294901760, %v26493_v7  ;;  %15568 = vmatprep.subr.bf16.mxu1 %v15567_v56  ;;  %v25312_v3 = vand.u32 4294901760, %v26495_v47  ;;  %14415 = vmatprep.mubr.f32.mxu1 %v6764_v17  ;;  %v26497_v26 = vld [vmem:[#allocation233_spill] sm:$0xff] }
 0x5e9   : > { %v6775_v1 = vand.u32 4294901760, %v6774_v15  ;;  %v6785_v11 = vsub.f32 %v21812_v51, %v22369_v36  ;;  %v7226_v38 = vsub.f32 %v21775_v4, %v25309_v57  ;;  %v25315_v32 = vand.u32 4294901760, %v26496_v55 }
 0x5ea   : > { %26494 = vst [vmem:[#allocation289_spill] sm:$0xff] %v22381_v54  ;;  %v15377_v52 = vpack.c.bf16 %v7108_v5, %v7101_v59  ;;  %v7233_v56 = vsub.f32 %v26495_v47, %v25312_v3  ;;  %v25318_v21 = vand.u32 4294901760, %v26497_v26  ;;  %v26499_v15 = vand.u32 4294901760, %v26498_v6  ;;  %v26503_v47 = vld [vmem:[#allocation237_spill] sm:$0xff]  ;;  %13840 = vmatmul.mubr.f32.gmra.mrb[8].mxu0 %v6764_v17  ;;  %14416 = vmatmul.mubr.f32.gmra.mrb[8].mxu1 %v6764_v17 }
 0x5eb   : > { %v15569_v36 = vpack.c.bf16 %v9482_v18, %v9475_v2  ;;  %v7227_v51 = vand.u32 4294901760, %v7226_v38  ;;  %v9600_v57 = vsub.f32 %v26496_v55, %v25315_v32  ;;  %v26501_v13 = vand.u32 4294901760, %v26500_v50  ;;  %13841 = vmatprep.mubr.f32.mxu0 %v6775_v1  ;;  %14417 = vmatprep.mubr.f32.mxu1 %v6775_v1 }
 0x5ec   : > { %v7114_v60 = vsub.f32 %v26498_v6, %v26499_v15  ;;  %v22404_v59 = vand.u32 4294901760, %v21952_v58  ;;  %v7234_v3 = vand.u32 4294901760, %v7233_v56  ;;  %v9607_v34 = vsub.f32 %v26497_v26, %v25318_v21  ;;  %15378 = vmatpush3.bf16.xpose.msra.mxu0 %v15377_v52 }
 0x5ed   : > { %v7121_v5 = vsub.f32 %v26500_v50, %v26501_v13  ;;  %v26504_v15 = vand.u32 4294901760, %v26503_v47  ;;  %v6786_v18 = vand.u32 4294901760, %v6785_v11  ;;  %v6796_v38 = vsub.f32 %v26493_v7, %v22381_v54  ;;  %15570 = vmatpush3.bf16.xpose.msra.mxu1 %v15569_v36 }
 0x5ee   : > { %26502 = vst [vmem:[#allocation290_spill] sm:$0xff] %v22404_v59  ;;  %v9601_v32 = vand.u32 4294901760, %v9600_v57  ;;  %v26505_v13 = vand.u32 4294901760, %v21835_v45  ;;  %v15379_v56 = vpack.c.bf16 %v7234_v3, %v7227_v51  ;;  %v9608_v6 = vand.u32 4294901760, %v9607_v34  ;;  %13842 = vmatmul.mubr.f32.gmra.mrb[10].mxu0 %v6775_v1  ;;  %14418 = vmatmul.mubr.f32.gmra.mrb[10].mxu1 %v6775_v1 }
 0x5ef   : > { %v9488_v2 = vsub.f32 %v26503_v47, %v26504_v15  ;;  %v7115_v21 = vand.u32 4294901760, %v7114_v60  ;;  %v7122_v26 = vand.u32 4294901760, %v7121_v5  ;;  %v22417_v55 = vsub.f32 %v12445_v9, %v12445_v9  ;;  %13843 = vmatprep.mubr.f32.mxu0 %v6786_v18  ;;  %14419 = vmatprep.mubr.f32.mxu1 %v6786_v18 }
 0x5f0   : > { %v9495_v50 = vsub.f32 %v21835_v45, %v26505_v13  ;;  %vm26506_vm7 = vcmp.eq.s32.totalorder %v22081_v20, %v20918_v53  ;;  %v22427_v15 = vsel %vm6367_vm2, %v21215_v28, 0.0  ;;  %v6807_v51 = vsub.f32 %v21952_v58, %v22404_v59  ;;  %15380 = vmatprep.subr.bf16.mxu0 %v15379_v56  ;;  %v22435_v20 = vld [vmem:[%s24519_s5] ss:$0 sm:$0xff]  ;;  %v26511_v13 = vld [vmem:[#allocation245_spill] sm:$0xff] }
 0x5f1   : > { %v12398_v17 = vsel %vm26506_vm7, 1.0, %v26241_v0  ;;  %v9489_v57 = vand.u32 4294901760, %v9488_v2  ;;  %v15571_v60 = vpack.c.bf16 %v9608_v6, %v9601_v32  ;;  %v25323_v34 = vand.u32 4294901760, %v21933_v31  ;;  %v26509_v6 = vld [vmem:[#allocation244_spill] sm:$0xff] }
 0x5f2   : > { %v9496_v11 = vand.u32 4294901760, %v9495_v50  ;;  %v22441_v50 = vsel %vm6368_vm1, %v22435_v20, 0.0  ;;  %v22443_v28 = vsub.f32 %v12397_v62, %v12397_v62  ;;  %v6797_v22 = vand.u32 4294901760, %v6796_v38  ;;  %13844 = vmatmul.mubr.f32.gmra.mrb[12].mxu0 %v6786_v18  ;;  %14420 = vmatmul.mubr.f32.gmra.mrb[12].mxu1 %v6786_v18  ;;  %v26516_v18 = vld [vmem:[#allocation248_spill] sm:$0xff] }
 0x5f3   : > { %v25321_v9 = vand.u32 4294901760, %v21935_v37  ;;  %v22447_v36 = vand.u32 4294901760, %v21960_v27  ;;  %v15381_v3 = vpack.c.bf16 %v7122_v26, %v7115_v21  ;;  %v7240_v32 = vsub.f32 %v21933_v31, %v25323_v34  ;;  %15572 = vmatprep.subr.bf16.mxu1 %v15571_v60 }
 0x5f4   : > { %v25322_v44 = vand.u32 4294901760, %v26508_v49  ;;  %v15573_v62 = vpack.c.bf16 %v9496_v11, %v9489_v57  ;;  %v25330_v52 = vand.u32 4294901760, %v21949_v63  ;;  %v26510_v5 = vand.u32 4294901760, %v26509_v6  ;;  %13845 = vmatprep.mubr.f32.mxu0 %v6797_v22  ;;  %14421 = vmatprep.mubr.f32.mxu1 %v6797_v22 }
 0x5f5   : > { %26507 = vst [vmem:[#allocation291_spill] sm:$0xff] %v22447_v36  ;;  %v7247_v1 = vsub.f32 %v21935_v37, %v25321_v9  ;;  %v6808_v38 = vand.u32 4294901760, %v6807_v51  ;;  %v7241_v26 = vand.u32 4294901760, %v7240_v32  ;;  %v26512_v56 = vand.u32 4294901760, %v26511_v13  ;;  %v26514_v51 = vld [vmem:[#allocation247_spill] sm:$0xff]  ;;  %15382 = vmatpush3.bf16.xpose.msra.mxu0 %v15381_v3 }
 0x5f6   : > { %v7128_v2 = vsub.f32 %v26509_v6, %v26510_v5  ;;  %v9614_v21 = vsub.f32 %v26508_v49, %v25322_v44  ;;  %v22467_v11 = vand.u32 4294901760, %v22084_v48  ;;  %v9621_v5 = vsub.f32 %v21949_v63, %v25330_v52  ;;  %15574 = vmatpush3.bf16.xpose.msra.mxu1 %v15573_v62  ;;  %13846 = vmatmul.mubr.f32.gmra.mrb[14].mxu0 %v6797_v22 }
 0x5f7   : > { %v7135_v57 = vsub.f32 %v26511_v13, %v26512_v56  ;;  %v7248_v60 = vand.u32 4294901760, %v7247_v1  ;;  %v26515_v32 = vand.u32 4294901760, %v26514_v51  ;;  %v6818_v44 = vsub.f32 %v21960_v27, %v22447_v36  ;;  %14422 = vmatmul.mubr.f32.gmra.mrb[14].mxu1 %v6797_v22  ;;  %13847 = vmatprep.mubr.f32.mxu0 %v6808_v38 }
 0x5f8   : > { %26513 = vst [vmem:[#allocation249_spill] sm:$0xff] %v22467_v11  ;;  %v9615_v56 = vand.u32 4294901760, %v9614_v21  ;;  %v7129_v34 = vand.u32 4294901760, %v7128_v2  ;;  %v26517_v59 = vand.u32 4294901760, %v26516_v18  ;;  %v9622_v58 = vand.u32 4294901760, %v9621_v5  ;;  %14423 = vmatprep.mubr.f32.mxu1 %v6808_v38 }
 0x5f9   : > { %v9502_v9 = vsub.f32 %v26514_v51, %v26515_v32  ;;  %v15383_v1 = vpack.c.bf16 %v7248_v60, %v7241_v26  ;;  %v7136_v52 = vand.u32 4294901760, %v7135_v57  ;;  %v22482_v32 = vsub.f32 %v22364_v10, %v22364_v10  ;;  %v26525_v10 = vld [vmem:[#allocation262_spill] sm:$0xff] }
 0x5fa   : > { %v9509_v54 = vsub.f32 %v26516_v18, %v26517_v59  ;;  %v22485_v51 = vand.u32 4294901760, %v22427_v15  ;;  %v22487_v36 = vsub.f32 %v12398_v17, %v12398_v17  ;;  %v22490_v21 = vand.u32 4294901760, %v22441_v50  ;;  %13848 = vmatmul.mubr.f32.gmra.mrb[16].mxu0 %v6808_v38 }
 0x5fb   : > { %v9503_v7 = vand.u32 4294901760, %v9502_v9  ;;  %v22493_v59 = vand.u32 4294901760, %v22125_v61  ;;  %v15575_v3 = vpack.c.bf16 %v9622_v58, %v9615_v56  ;;  %v26522_v9 = vld [vmem:[#allocation257_spill] sm:$0xff]  ;;  %v6819_v26 = vand.u32 4294901760, %v6818_v44  ;;  %15384 = vmatprep.subr.bf16.mxu0 %v15383_v1  ;;  %14424 = vmatmul.mubr.f32.gmra.mrb[16].mxu1 %v6808_v38 }
 0x5fc   : > { %26518 = vst [vmem:[#allocation292_spill] sm:$0xff] %v22485_v51  ;;  %26519 = vst [vmem:[#allocation293_spill] sm:$0xff] %v22487_v36  ;;  %v9510_v2 = vand.u32 4294901760, %v9509_v54  ;;  %v25339_v62 = vand.u32 4294901760, %v26522_v9  ;;  %v6829_v17 = vsub.f32 %v22084_v48, %v22467_v11  ;;  %v26523_v54 = vld [vmem:[#allocation258_spill] sm:$0xff]  ;;  %v15385_v60 = vpack.c.bf16 %v7136_v52, %v7129_v34  ;;  %v26526_v48 = vld [vmem:[#allocation256_spill] sm:$0xff] }
 0x5fd   : > { %26520 = vst [vmem:[#allocation294_spill] sm:$0xff] %v22490_v21  ;;  %26521 = vst [vmem:[#allocation295_spill] sm:$0xff] %v22493_v59  ;;  %v25340_v57 = vand.u32 4294901760, %v26523_v54  ;;  %15576 = vmatprep.subr.bf16.mxu1 %v15575_v3  ;;  %v25347_v5 = vand.u32 4294901760, %v22066_v12  ;;  %v22505_v56 = vand.u32 4294901760, %v22224_v39  ;;  %v26527_v1 = vand.u32 4294901760, %v26526_v48  ;;  %13849 = vmatprep.mubr.f32.mxu0 %v6819_v26 }
 0x5fe   : > { %v15577_v22 = vpack.c.bf16 %v9510_v2, %v9503_v7  ;;  %v7254_v58 = vsub.f32 %v26522_v9, %v25339_v62  ;;  %v6840_v7 = vsub.f32 %v22125_v61, %v22493_v59  ;;  %v26528_v3 = vld [vmem:[#allocation260_spill] sm:$0xff]  ;;  %14425 = vmatprep.mubr.f32.mxu1 %v6819_v26  ;;  %v6830_v11 = vand.u32 4294901760, %v6829_v17  ;;  %15386 = vmatpush3.bf16.xpose.msra.mxu0 %v15385_v60 }
 0x5ff   : > { %26524 = vst [vmem:[#allocation257_spill] sm:$0xff] %v22505_v56  ;;  %v7261_v44 = vsub.f32 %v26523_v54, %v25340_v57  ;;  %v7142_v34 = vsub.f32 %v26526_v48, %v26527_v1  ;;  %v9628_v2 = vsub.f32 %v22066_v12, %v25347_v5  ;;  %v26529_v62 = vand.u32 4294901760, %v26528_v3  ;;  %v26531_v48 = vld [vmem:[#allocation265_spill] sm:$0xff]  ;;  %13850 = vmatmul.mubr.f32.gmra.mrb[18].mxu0 %v6819_v26 }
 0x600   : > { %v7255_v52 = vand.u32 4294901760, %v7254_v58  ;;  %v26530_v1 = vand.u32 4294901760, %v26525_v10  ;;  %v26532_v18 = vand.u32 4294901760, %v26531_v48  ;;  %15578 = vmatpush3.bf16.xpose.msra.mxu1 %v15577_v22  ;;  %v26533_v13 = vand.u32 4294901760, %v22089_v42  ;;  %13851 = vmatprep.mubr.f32.mxu0 %v6830_v11 }
 0x601   : > { %v7149_v57 = vsub.f32 %v26528_v3, %v26529_v62  ;;  %v7262_v27 = vand.u32 4294901760, %v7261_v44  ;;  %v9629_v59 = vand.u32 4294901760, %v9628_v2  ;;  %v7143_v5 = vand.u32 4294901760, %v7142_v34  ;;  %14426 = vmatmul.mubr.f32.gmra.mrb[18].mxu1 %v6819_v26 }
 0x602   : > { %v9635_v38 = vsub.f32 %v26525_v10, %v26530_v1  ;;  %v9516_v58 = vsub.f32 %v26531_v48, %v26532_v18  ;;  %v9523_v62 = vsub.f32 %v22089_v42, %v26533_v13  ;;  %v6851_v17 = vsub.f32 %v22224_v39, %v22505_v56  ;;  %v22536_v1 = vld [vmem:[%s24517_s3] ss:$0 sm:$0xff]  ;;  %v26534_v18 = vld [vmem:[#allocation207_spill] sm:$0xff]  ;;  %14427 = vmatprep.mubr.f32.mxu1 %v6830_v11 }
 0x603   : > { %v7150_v61 = vand.u32 4294901760, %v7149_v57  ;;  %v15387_v44 = vpack.c.bf16 %v7262_v27, %v7255_v52  ;;  %vm6373_vm2 = vcmp.eq.s32.totalorder %v26534_v18, %v22536_v1  ;;  %v22542_v57 = vsub.f32 %v22427_v15, %v22485_v51  ;;  %13852 = vmatmul.mubr.f32.gmra.mrb[20].mxu0 %v6830_v11 }
 0x604   : > { %v9636_v3 = vand.u32 4294901760, %v9635_v38  ;;  %v9517_v6 = vand.u32 4294901760, %v9516_v58  ;;  %v12429_v13 = vsel %vm6473_vm9, 1.0, %v26241_v0  ;;  %vm26536_vm1 = vcmp.eq.s32.totalorder %v22122_v8, %v20918_v53  ;;  %v26544_v58 = vld [vmem:[#allocation270_spill] sm:$0xff] }
 0x605   : > { %26535 = vst [vmem:[#allocation258_spill] sm:$0xff] %v22542_v57  ;;  %v12430_v27 = vsel %vm26536_vm1, 1.0, %v26241_v0  ;;  %v9524_v60 = vand.u32 4294901760, %v9523_v62  ;;  %v6841_v22 = vand.u32 4294901760, %v6840_v7  ;;  %v22553_v34 = vand.u32 4294901760, %v22235_v40  ;;  %15388 = vmatprep.subr.bf16.mxu0 %v15387_v44  ;;  %v26539_v0 = vld [vmem:[#allocation272_spill] sm:$0xff]  ;;  %14428 = vmatmul.mubr.f32.gmra.mrb[20].mxu1 %v6830_v11 }
 0x606   : > { %v15579_v15 = vpack.c.bf16 %v9636_v3, %v9629_v59  ;;  %v25354_v52 = vand.u32 4294901760, %v22172_v19  ;;  %v22558_v25 = vsub.f32 %v22441_v50, %v22490_v21  ;;  %v15389_v2 = vpack.c.bf16 %v7150_v61, %v7143_v5  ;;  %v26541_v59 = vld [vmem:[#allocation273_spill] sm:$0xff] }
 0x607   : > { %26537 = vst [vmem:[#allocation262_spill] sm:$0xff] %v22553_v34  ;;  %v15581_v53 = vpack.c.bf16 %v9524_v60, %v9517_v6  ;;  %v25353_v8 = vand.u32 4294901760, %v26539_v0  ;;  %v22561_v26 = vsub.f32 %v12429_v13, %v12429_v13  ;;  %v6852_v38 = vand.u32 4294901760, %v6851_v17  ;;  %v26543_v6 = vld [vmem:[#allocation275_spill] sm:$0xff]  ;;  %13853 = vmatprep.mubr.f32.mxu0 %v6841_v22  ;;  %14429 = vmatprep.mubr.f32.mxu1 %v6841_v22 }
 0x608   : > { %26538 = vst [vmem:[#allocation265_spill] sm:$0xff] %v22558_v25  ;;  %15580 = vmatprep.subr.bf16.mxu1 %v15579_v15  ;;  %v7268_v7 = vsub.f32 %v22172_v19, %v25354_v52  ;;  %v25363_v3 = vand.u32 4294901760, %v26541_v59  ;;  %v22568_v50 = vand.u32 4294901760, %v22542_v57  ;;  %v25366_v5 = vand.u32 4294901760, %v26543_v6  ;;  %v26546_v60 = vld [vmem:[#allocation271_spill] sm:$0xff]  ;;  %15390 = vmatpush3.bf16.xpose.msra.mxu0 %v15389_v2 }
 0x609   : > { %26540 = vst [vmem:[#allocation207_spill] sm:$0xff] %v22561_v26  ;;  %v7275_v61 = vsub.f32 %v26539_v0, %v25353_v8  ;;  %v26545_v62 = vand.u32 4294901760, %v26544_v58  ;;  %v6862_v44 = vsub.f32 %v22235_v40, %v22553_v34  ;;  %v26547_v15 = vand.u32 4294901760, %v26546_v60  ;;  %15582 = vmatpush3.bf16.xpose.msra.mxu1 %v15581_v53  ;;  %13854 = vmatmul.mubr.f32.gmra.mrb[22].mxu0 %v6841_v22 }
 0x60a   : > { %26542 = vst [vmem:[#allocation272_spill] sm:$0xff] %v22568_v50  ;;  %v7269_v13 = vand.u32 4294901760, %v7268_v7  ;;  %v9642_v11 = vsub.f32 %v26541_v59, %v25363_v3  ;;  %v26548_v39 = vand.u32 4294901760, %v22226_v46  ;;  %v22591_v34 = vsub.f32 %v12430_v27, %v12430_v27  ;;  %14430 = vmatmul.mubr.f32.gmra.mrb[22].mxu1 %v6841_v22  ;;  %13855 = vmatprep.mubr.f32.mxu0 %v6852_v38 }
 0x60b   : > { %v7156_v17 = vsub.f32 %v26544_v58, %v26545_v62  ;;  %v7163_v8 = vsub.f32 %v26546_v60, %v26547_v15  ;;  %v7276_v52 = vand.u32 4294901760, %v7275_v61  ;;  %v9649_v62 = vsub.f32 %v26543_v6, %v25366_v5  ;;  %v26552_v5 = vld [vmem:[#allocation208_spill] sm:$0xff]  ;;  %14431 = vmatprep.mubr.f32.mxu1 %v6852_v38 }
 0x60c   : > { %v9530_v7 = vsub.f32 %v22226_v46, %v26548_v39  ;;  %26549 = vst [vmem:[#allocation273_spill] sm:$0xff] %v22591_v34  ;;  %v9643_v40 = vand.u32 4294901760, %v9642_v11  ;;  %v26550_v21 = vand.u32 4294901760, %v22237_v43  ;;  %v22597_v2 = vand.u32 4294901760, %v22558_v25  ;;  %v26553_v11 = vld [vmem:[#allocation181_spill] sm:$0xff] }
 0x60d   : > { %v7157_v56 = vand.u32 4294901760, %v7156_v17  ;;  %v7164_v3 = vand.u32 4294901760, %v7163_v8  ;;  %v15391_v53 = vpack.c.bf16 %v7276_v52, %v7269_v13  ;;  %v9650_v61 = vand.u32 4294901760, %v9649_v62  ;;  %13856 = vmatmul.mubr.f32.gmra.mrb[24].mxu0 %v6852_v38 }
 0x60e   : > { %v9537_v15 = vsub.f32 %v22237_v43, %v26550_v21  ;;  %26551 = vst [vmem:[#allocation275_spill] sm:$0xff] %v22597_v2  ;;  %v9531_v17 = vand.u32 4294901760, %v9530_v7  ;;  %vm6374_vm9 = vcmp.eq.s32.totalorder %v26552_v5, %v22536_v1  ;;  %v6863_v27 = vand.u32 4294901760, %v6862_v44  ;;  %14432 = vmatmul.mubr.f32.gmra.mrb[24].mxu1 %v6852_v38 }
 0x60f   : > { %v6873_v8 = vsub.f32 %v22542_v57, %v22568_v50  ;;  %v22605_v22 = vand.u32 4294901760, %v26553_v11  ;;  %15392 = vmatprep.subr.bf16.mxu0 %v15391_v53  ;;  %v15583_v51 = vpack.c.bf16 %v9650_v61, %v9643_v40  ;;  %v15393_v52 = vpack.c.bf16 %v7164_v3, %v7157_v56 }
 0x610   : > { %v9538_v21 = vand.u32 4294901760, %v9537_v15  ;;  %v25369_v13 = vand.u32 4294901760, %v22311_v35  ;;  %v22612_v62 = vsel %vm6373_vm2, %v22435_v20, 0.0  ;;  %v25370_v39 = vand.u32 4294901760, %v22314_v23  ;;  %13857 = vmatprep.mubr.f32.mxu0 %v6863_v27  ;;  %14433 = vmatprep.mubr.f32.mxu1 %v6863_v27 }
 0x611   : > { %26554 = vst [vmem:[#allocation270_spill] sm:$0xff] %v22605_v22  ;;  %v6884_v40 = vsub.f32 %v22558_v25, %v22597_v2  ;;  %v25375_v18 = vand.u32 4294901760, %v22417_v55  ;;  %v6874_v3 = vand.u32 4294901760, %v6873_v8  ;;  %v25378_v61 = vand.u32 4294901760, %v22482_v32  ;;  %15584 = vmatprep.subr.bf16.mxu1 %v15583_v51  ;;  %15394 = vmatpush3.bf16.xpose.msra.mxu0 %v15393_v52  ;;  %v26561_v25 = vld [vmem:[#allocation172_spill] sm:$0xff] }
 0x612   : > { %v15585_v7 = vpack.c.bf16 %v9538_v21, %v9531_v17  ;;  %v7282_v56 = vsub.f32 %v22311_v35, %v25369_v13  ;;  %v7289_v53 = vsub.f32 %v22314_v23, %v25370_v39  ;;  %v26555_v38 = vand.u32 4294901760, %v22443_v28  ;;  %13858 = vmatmul.mubr.f32.gmra.mrb[26].mxu0 %v6863_v27  ;;  %14434 = vmatmul.mubr.f32.gmra.mrb[26].mxu1 %v6863_v27 }
 0x613   : > { %v6895_v21 = vsub.f32 %v26553_v11, %v22605_v22  ;;  %v9656_v8 = vsub.f32 %v22417_v55, %v25375_v18  ;;  %v26556_v15 = vand.u32 4294901760, %v22487_v36  ;;  %v26557_v22 = vand.u32 4294901760, %v22561_v26  ;;  %13859 = vmatprep.mubr.f32.mxu0 %v6874_v3  ;;  %14435 = vmatprep.mubr.f32.mxu1 %v6874_v3 }
 0x614   : > { %v7170_v17 = vsub.f32 %v22443_v28, %v26555_v38  ;;  %v7283_v13 = vand.u32 4294901760, %v7282_v56  ;;  %15586 = vmatpush3.bf16.xpose.msra.mxu1 %v15585_v7  ;;  %v7290_v44 = vand.u32 4294901760, %v7289_v53  ;;  %v9663_v38 = vsub.f32 %v22482_v32, %v25378_v61  ;;  %v26559_v7 = vld [vmem:[#allocation183_spill] sm:$0xff] }
 0x615   : > { %v7177_v39 = vsub.f32 %v22487_v36, %v26556_v15  ;;  %v9544_v51 = vsub.f32 %v22561_v26, %v26557_v22  ;;  %v6885_v52 = vand.u32 4294901760, %v6884_v40  ;;  %v9657_v56 = vand.u32 4294901760, %v9656_v8  ;;  %v26562_v40 = vld [vmem:[#allocation189_spill] sm:$0xff]  ;;  %v26563_v8 = vld [vmem:[#allocation186_spill] sm:$0xff] }
 0x616   : > { %v7171_v2 = vand.u32 4294901760, %v7170_v17  ;;  %v26558_v50 = vand.u32 4294901760, %v22591_v34  ;;  %v22648_v53 = vand.u32 4294901760, %v26559_v7  ;;  %v15395_v61 = vpack.c.bf16 %v7290_v44, %v7283_v13  ;;  %13860 = vmatmul.mubr.f32.gmra.mrb[28].mxu0 %v6874_v3  ;;  %14436 = vmatmul.mubr.f32.gmra.mrb[28].mxu1 %v6874_v3 }
 0x617   : > { %v7178_v18 = vand.u32 4294901760, %v7177_v39  ;;  %v9664_v17 = vand.u32 4294901760, %v9663_v38  ;;  %v9545_v11 = vand.u32 4294901760, %v9544_v51  ;;  %v6239_v22 = vadd.s32 %v21114_v14, %v26561_v25  ;;  %v26568_v25 = vld [vmem:[#allocation173_spill] sm:$0xff]  ;;  %13861 = vmatprep.mubr.f32.mxu0 %v6885_v52  ;;  %14437 = vmatprep.mubr.f32.mxu1 %v6885_v52  ;;  %v26569_v51 = vld [vmem:[#allocation198_spill] sm:$0xff] }
 0x618   : > { %v9551_v15 = vsub.f32 %v22591_v34, %v26558_v50  ;;  %26560 = vst [vmem:[#allocation271_spill] sm:$0xff] %v22648_v53  ;;  %v22654_v39 = vsub.f32 %v26563_v8, %v26562_v40  ;;  %15396 = vmatprep.subr.bf16.mxu0 %v15395_v61  ;;  %v26565_v50 = vld [vmem:[#allocation167_spill] sm:$0xff]  ;;  %v26566_v34 = vld [vmem:[#allocation170_spill] sm:$0xff]  ;;  %v6412_v13 = vsel %vm6374_vm9, %v22435_v20, 0.0  ;;  %v22663_v44 = vand.u32 4294901760, %v22612_v62 }
 0x619   : > { %v15397_v57 = vpack.c.bf16 %v7178_v18, %v7171_v2  ;;  %v15587_v26 = vpack.c.bf16 %v9664_v17, %v9657_v56  ;;  %v15399_v36 = vpack.c.bf16 %v26566_v34, %v26565_v50  ;;  %v6240_v2 = vadd.s32 %v21114_v14, %v26568_v25  ;;  %v26573_v17 = vld [vmem:[#allocation218_spill] sm:$0xff]  ;;  %v26577_v25 = vld [vmem:[#allocation233_spill] sm:$0xff] }
 0x61a   : > { %v9552_v27 = vand.u32 4294901760, %v9551_v15  ;;  %26564 = vst [vmem:[#allocation208_spill] sm:$0xff] %v22654_v39  ;;  %26567 = vst [vmem:[#allocation172_spill] sm:$0xff] %v22663_v44  ;;  %v6896_v61 = vand.u32 4294901760, %v6895_v21  ;;  %v6906_v38 = vsub.f32 %v26559_v7, %v22648_v53  ;;  %v22670_v56 = vand.u32 4294901760, %v26569_v51  ;;  %v26571_v15 = vld [vmem:[#allocation178_spill] sm:$0xff]  ;;  %13862 = vmatmul.mubr.f32.gmra.mrb[30].mxu0 %v6885_v52  ;;  %14438 = vmatmul.mubr.f32.gmra.mrb[30].mxu1 %v6885_v52 }
 0x61b   : > { %vm6375_vm7 = vcmp.eq.s32.totalorder %v6239_v22, %v22536_v1  ;;  %15588 = vmatprep.subr.bf16.mxu1 %v15587_v26  ;;  %15398 = vmatpush3.bf16.xpose.msra.mxu0 %v15397_v57  ;;  %v15591_v3 = vpack.c.bf16 %v21320_v24, %v26571_v15  ;;  %v22679_v21 = vand.u32 4294901760, %v6412_v13  ;;  %v22685_v8 = vsub.f32 %v22612_v62, %v22663_v44  ;;  %v26575_v57 = vld [vmem:[#allocation231_spill] sm:$0xff]  ;;  %v26576_v22 = vld [vmem:[#allocation232_spill] sm:$0xff]  ;;  %v26579_v62 = vld [vmem:[#allocation193_spill] sm:$0xff] }
 0x61c   : > { %v15589_v18 = vpack.c.bf16 %v9552_v27, %v9545_v11  ;;  %26570 = vst [vmem:[#allocation186_spill] sm:$0xff] %v22670_v56  ;;  %15400 = vmatprep.subr.bf16.mxu0 %v15399_v36  ;;  %v6413_v11 = vsel %vm6375_vm7, %v22435_v20, 0.0  ;;  %13863 = vmatprep.mubr.f32.mxu0 %v6896_v61  ;;  %v6907_v36 = vand.u32 4294901760, %v6906_v38  ;;  %v22695_v27 = vand.u32 4294901760, %v22654_v39  ;;  %v26582_v53 = vld [vmem:[#allocation194_spill] sm:$0xff]  ;;  %v26597_v15 = vld [vmem:[#allocation239_spill] sm:$0xff] }
 0x61d   : > { %26572 = vst [vmem:[#allocation173_spill] sm:$0xff] %v22679_v21  ;;  %26574 = vst [vmem:[#allocation218_spill] sm:$0xff] %v22685_v8  ;;  %14439 = vmatprep.mubr.f32.mxu1 %v6896_v61  ;;  %vm6376_vm2 = vcmp.eq.s32.totalorder %v6240_v2, %v22536_v1  ;;  %v6241_v52 = vadd.s32 %v21114_v14, %v26579_v62  ;;  %v22701_v26 = vsub.f32 %v6412_v13, %v22679_v21  ;;  %v26603_v50 = vld [vmem:[#allocation254_spill] sm:$0xff] }
 0x61e   : > { %15590 = vmatpush3.bf16.xpose.msra.mxu1 %v15589_v18  ;;  %v6917_v18 = vsub.f32 %v26569_v51, %v22670_v56  ;;  %26578 = vst [vmem:[#allocation231_spill] sm:$0xff] %v22695_v27  ;;  %v22703_v5 = vand.u32 4294901760, %v6413_v11  ;;  %v6242_v38 = vadd.s32 %v21114_v14, %v26582_v53  ;;  %13864 = vmatmul.mubr.f32.gmra.mrb[32].mxu0 %v6896_v61  ;;  %v6414_v51 = vsel %vm6376_vm2, %v22435_v20, 0.0 }
 0x61f   : > { %15592 = vmatprep.subr.bf16.mxu1 %v15591_v3  ;;  %26580 = vst [vmem:[#allocation232_spill] sm:$0xff] %v22701_v26  ;;  %14440 = vmatmul.mubr.f32.gmra.mrb[32].mxu1 %v6896_v61  ;;  %v6928_v13 = vsub.f32 %v22654_v39, %v22695_v27  ;;  %v22715_v62 = vand.u32 4294901760, %v22685_v8  ;;  %vm6377_vm1 = vcmp.eq.s32.totalorder %v6241_v52, %v22536_v1  ;;  %v22721_v61 = vand.u32 4294901760, %v6414_v51  ;;  %v26587_v52 = vld [vmem:[#allocation213_spill] sm:$0xff] }
 0x620   : > { %26581 = vst [vmem:[#allocation233_spill] sm:$0xff] %v22703_v5  ;;  %13865 = vmatprep.mubr.f32.mxu0 %v6907_v36  ;;  %14441 = vmatprep.mubr.f32.mxu1 %v6907_v36  ;;  %v6918_v3 = vand.u32 4294901760, %v6917_v18  ;;  %v22719_v53 = vsub.f32 %v6413_v11, %v22703_v5  ;;  %vm6378_vm9 = vcmp.eq.s32.totalorder %v6242_v38, %v22536_v1  ;;  %v6415_v2 = vsel %vm6377_vm1, %v22435_v20, 0.0 }
 0x621   : > { %26583 = vst [vmem:[#allocation193_spill] sm:$0xff] %v22715_v62  ;;  %26585 = vst [vmem:[#allocation296_spill] sm:$0xff] %v22721_v61  ;;  %v6929_v18 = vand.u32 4294901760, %v6928_v13  ;;  %v6939_v56 = vsub.f32 %v22685_v8, %v22715_v62  ;;  %v22728_v27 = vand.u32 4294901760, %v22701_v26  ;;  %v6243_v11 = vadd.s32 %v21114_v14, %v26587_v52  ;;  %v26591_v8 = vld [vmem:[#allocation214_spill] sm:$0xff] }
 0x622   : > { %26584 = vst [vmem:[#allocation194_spill] sm:$0xff] %v22719_v53  ;;  %13866 = vmatmul.mubr.f32.gmra.mrb[34].mxu0 %v6907_v36  ;;  %v6416_v39 = vsel %vm6378_vm9, %v22435_v20, 0.0  ;;  %v22733_v7 = vand.u32 4294901760, %v6415_v2  ;;  %v22741_v62 = vand.u32 4294901760, %v22719_v53  ;;  %v6244_v52 = vadd.s32 %v21114_v14, %v26591_v8  ;;  %v26595_v8 = vld [vmem:[#allocation238_spill] sm:$0xff] }
 0x623   : > { %14442 = vmatmul.mubr.f32.gmra.mrb[34].mxu1 %v6907_v36  ;;  %13867 = vmatprep.mubr.f32.mxu0 %v6918_v3  ;;  %26586 = vst [vmem:[#allocation297_spill] sm:$0xff] %v22728_v27  ;;  %v22736_v36 = vsub.f32 %v6414_v51, %v22721_v61  ;;  %v6940_v38 = vand.u32 4294901760, %v6939_v56  ;;  %v6950_v13 = vsub.f32 %v22701_v26, %v22728_v27  ;;  %v22746_v24 = vand.u32 4294901760, %v6416_v39 }
 0x624   : > { %14443 = vmatprep.mubr.f32.mxu1 %v6918_v3  ;;  %26588 = vst [vmem:[#allocation213_spill] sm:$0xff] %v22733_v7  ;;  %26590 = vst [vmem:[#allocation299_spill] sm:$0xff] %v22741_v62  ;;  %vm6379_vm7 = vcmp.eq.s32.totalorder %v6243_v11, %v22536_v1  ;;  %v6961_v27 = vsub.f32 %v22719_v53, %v22741_v62  ;;  %vm6380_vm2 = vcmp.eq.s32.totalorder %v6244_v52, %v22536_v1 }
 0x625   : > { %26589 = vst [vmem:[#allocation298_spill] sm:$0xff] %v22736_v36  ;;  %26592 = vst [vmem:[#allocation214_spill] sm:$0xff] %v22746_v24  ;;  %v6417_v51 = vsel %vm6379_vm7, %v22435_v20, 0.0  ;;  %v6951_v56 = vand.u32 4294901760, %v6950_v13  ;;  %v22755_v26 = vand.u32 4294901760, %v22736_v36  ;;  %v6245_v11 = vadd.s32 %v21114_v14, %v26595_v8 }
 0x626   : > { %13868 = vmatmul.mubr.f32.gmra.mrb[36].mxu0 %v6918_v3  ;;  %v6246_v34 = vadd.s32 %v21114_v14, %v26597_v15  ;;  %v6418_v52 = vsel %vm6380_vm2, %v22435_v20, 0.0  ;;  %v6962_v8 = vand.u32 4294901760, %v6961_v27 }
 0x627   : > { %14444 = vmatmul.mubr.f32.gmra.mrb[36].mxu1 %v6918_v3  ;;  %13869 = vmatprep.mubr.f32.mxu0 %v6929_v18  ;;  %v22749_v3 = vsub.f32 %v6415_v2, %v22733_v7  ;;  %26594 = vst [vmem:[#allocation301_spill] sm:$0xff] %v22755_v26  ;;  %v22761_v2 = vsub.f32 %v6416_v39, %v22746_v24 }
 0x628   : > { %14445 = vmatprep.mubr.f32.mxu1 %v6929_v18  ;;  %v6972_v39 = vsub.f32 %v22736_v36, %v22755_v26  ;;  %vm6381_vm1 = vcmp.eq.s32.totalorder %v6245_v11, %v22536_v1  ;;  %vm6382_vm9 = vcmp.eq.s32.totalorder %v6246_v34, %v22536_v1  ;;  %v26601_v11 = vld [vmem:[#allocation253_spill] sm:$0xff] }
 0x629   : > { %26593 = vst [vmem:[#allocation300_spill] sm:$0xff] %v22749_v3  ;;  %v22775_v53 = vand.u32 4294901760, %v22749_v3  ;;  %v6419_v62 = vsel %vm6381_vm1, %v22435_v20, 0.0  ;;  %v22788_v26 = vand.u32 4294901760, %v22761_v2  ;;  %v6420_v34 = vsel %vm6382_vm9, %v22435_v20, 0.0 }
 0x62a   : > { %13870 = vmatmul.mubr.f32.gmra.mrb[38].mxu0 %v6929_v18  ;;  %v6973_v27 = vand.u32 4294901760, %v6972_v39  ;;  %v6248_v39 = vadd.s32 %v21114_v14, %v26603_v50 }
 0x62b   : > { %14446 = vmatmul.mubr.f32.gmra.mrb[38].mxu1 %v6929_v18  ;;  %13871 = vmatprep.mubr.f32.mxu0 %v6940_v38  ;;  %v22763_v18 = vand.u32 4294901760, %v6417_v51  ;;  %26598 = vst [vmem:[#allocation239_spill] sm:$0xff] %v22775_v53  ;;  %v6983_v13 = vsub.f32 %v22749_v3, %v22775_v53  ;;  %26600 = vst [vmem:[#allocation303_spill] sm:$0xff] %v22788_v26  ;;  %v6994_v3 = vsub.f32 %v22761_v2, %v22788_v26 }
 0x62c   : > { %14447 = vmatprep.mubr.f32.mxu1 %v6940_v38  ;;  %vm6384_vm2 = vcmp.eq.s32.totalorder %v6248_v39, %v22536_v1 }
 0x62d   : > { %26596 = vst [vmem:[#allocation238_spill] sm:$0xff] %v22763_v18  ;;  %v22779_v15 = vsub.f32 %v6417_v51, %v22763_v18  ;;  %v6247_v51 = vadd.s32 %v21114_v14, %v26601_v11  ;;  %v6984_v53 = vand.u32 4294901760, %v6983_v13  ;;  %v6995_v14 = vand.u32 4294901760, %v6994_v3 }
 0x62e   : > { %13872 = vmatmul.mubr.f32.gmra.mrb[40].mxu0 %v6940_v38 }
 0x62f   : > { %14448 = vmatmul.mubr.f32.gmra.mrb[40].mxu1 %v6940_v38  ;;  %13873 = vmatprep.mubr.f32.mxu0 %v6951_v56  ;;  %v22781_v38 = vand.u32 4294901760, %v6418_v52  ;;  %v22803_v11 = vand.u32 4294901760, %v22779_v15  ;;  %vm6383_vm7 = vcmp.eq.s32.totalorder %v6247_v51, %v22536_v1  ;;  %v6422_v51 = vsel %vm6384_vm2, %v22435_v20, 0.0 }
 0x630   : > { %14449 = vmatprep.mubr.f32.mxu1 %v6951_v56 }
 0x631   : > { %26599 = vst [vmem:[#allocation302_spill] sm:$0xff] %v22781_v38  ;;  %v22793_v36 = vsub.f32 %v6418_v52, %v22781_v38  ;;  %26604 = vst [vmem:[#allocation254_spill] sm:$0xff] %v22803_v11  ;;  %v22809_v38 = vand.u32 4294901760, %v6420_v34  ;;  %v7005_v50 = vsub.f32 %v22779_v15, %v22803_v11 }
 0x632   : > { %13874 = vmatmul.mubr.f32.gmra.mrb[42].mxu0 %v6951_v56 }
 0x633   : > { %14450 = vmatmul.mubr.f32.gmra.mrb[42].mxu1 %v6951_v56  ;;  %13875 = vmatprep.mubr.f32.mxu0 %v6962_v8  ;;  %v22796_v56 = vand.u32 4294901760, %v6419_v62  ;;  %26605 = vst [vmem:[#allocation304_spill] sm:$0xff] %v22809_v38  ;;  %v22815_v13 = vand.u32 4294901760, %v22793_v36  ;;  %v7006_v39 = vand.u32 4294901760, %v7005_v50 }
 0x634   : > { %14451 = vmatprep.mubr.f32.mxu1 %v6962_v8 }
 0x635   : > { %26602 = vst [vmem:[#allocation253_spill] sm:$0xff] %v22796_v56  ;;  %v22807_v52 = vsub.f32 %v6419_v62, %v22796_v56  ;;  %26606 = vst [vmem:[#allocation305_spill] sm:$0xff] %v22815_v13  ;;  %v22819_v62 = vsub.f32 %v6420_v34, %v22809_v38  ;;  %v7016_v11 = vsub.f32 %v22793_v36, %v22815_v13 }
 0x636   : > { %13876 = vmatmul.mubr.f32.gmra.mrb[44].mxu0 %v6962_v8 }
 0x637   : > { %14452 = vmatmul.mubr.f32.gmra.mrb[44].mxu1 %v6962_v8  ;;  %13877 = vmatprep.mubr.f32.mxu0 %v6973_v27  ;;  %v6421_v8 = vsel %vm6383_vm7, %v22435_v20, 0.0  ;;  %26607 = vst [vmem:[#allocation306_spill] sm:$0xff] %v22819_v62  ;;  %v22831_v34 = vand.u32 4294901760, %v22807_v52  ;;  %v22833_v20 = vand.u32 4294901760, %v6422_v51  ;;  %v7017_v3 = vand.u32 4294901760, %v7016_v11 }
 0x638   : > { %14453 = vmatprep.mubr.f32.mxu1 %v6973_v27  ;;  %v22841_v50 = vand.u32 4294901760, %v22819_v62 }
 0x639   : > { %26609 = vst [vmem:[#allocation308_spill] sm:$0xff] %v22831_v34  ;;  %26610 = vst [vmem:[#allocation309_spill] sm:$0xff] %v22833_v20  ;;  %v7027_v1 = vsub.f32 %v22807_v52, %v22831_v34  ;;  %v22844_v13 = vsub.f32 %v6422_v51, %v22833_v20  ;;  %v26619_v34 = vld [vmem:[#allocation171_spill] sm:$0xff] }
 0x63a   : > { %13878 = vmatmul.mubr.f32.gmra.mrb[46].mxu0 %v6973_v27  ;;  %26612 = vst [vmem:[#allocation311_spill] sm:$0xff] %v22841_v50 }
 0x63b   : > { %14454 = vmatmul.mubr.f32.gmra.mrb[46].mxu1 %v6973_v27  ;;  %13879 = vmatprep.mubr.f32.mxu0 %v6984_v53  ;;  %v22826_v27 = vand.u32 4294901760, %v6421_v8  ;;  %26613 = vst [vmem:[#allocation312_spill] sm:$0xff] %v22844_v13  ;;  %v22854_v51 = vand.u32 4294901760, %v22844_v13 }
 0x63c   : > { %14455 = vmatprep.mubr.f32.mxu1 %v6984_v53 }
 0x63d   : > { %26608 = vst [vmem:[#allocation307_spill] sm:$0xff] %v22826_v27  ;;  %26615 = vst [vmem:[#allocation314_spill] sm:$0xff] %v22854_v51 }
 0x63e   : > { %13880 = vmatmul.mubr.f32.gmra.mrb[48].mxu0 %v6984_v53 }
 0x63f   : > { %14456 = vmatmul.mubr.f32.gmra.mrb[48].mxu1 %v6984_v53  ;;  %13881 = vmatprep.mubr.f32.mxu0 %v6995_v14  ;;  %v22836_v53 = vsub.f32 %v6421_v8, %v22826_v27  ;;  %v7038_v8 = vsub.f32 %v22819_v62, %v22841_v50 }
 0x640   : > { %14457 = vmatprep.mubr.f32.mxu1 %v6995_v14 }
 0x641   : > { %26611 = vst [vmem:[#allocation310_spill] sm:$0xff] %v22836_v53  ;;  %v22849_v26 = vand.u32 4294901760, %v22836_v53  ;;  %v7039_v11 = vand.u32 4294901760, %v7038_v8 }
 0x642   : > { %13882 = vmatmul.mubr.f32.gmra.mrb[50].mxu0 %v6995_v14 }
 0x643   : > { %14458 = vmatmul.mubr.f32.gmra.mrb[50].mxu1 %v6995_v14  ;;  %13883 = vmatprep.mubr.f32.mxu0 %v7006_v39  ;;  %v7028_v14 = vand.u32 4294901760, %v7027_v1  ;;  %26614 = vst [vmem:[#allocation313_spill] sm:$0xff] %v22849_v26  ;;  %v26617_v1 = vld [vmem:[#allocation168_spill] sm:$0xff] }
 0x644   : > { %14459 = vmatprep.mubr.f32.mxu1 %v7006_v39 }
 0x646   : > { %13884 = vmatmul.mubr.f32.gmra.mrb[52].mxu0 %v7006_v39 }
 0x647   : > { %14460 = vmatmul.mubr.f32.gmra.mrb[52].mxu1 %v7006_v39  ;;  %13885 = vmatprep.mubr.f32.mxu0 %v7017_v3  ;;  %v7049_v39 = vsub.f32 %v22836_v53, %v22849_v26  ;;  %v26622_v53 = vld [vmem:[#allocation200_spill] sm:$0xff] }
 0x648   : > { %14461 = vmatprep.mubr.f32.mxu1 %v7017_v3 }
 0x649   : > { %v7050_v50 = vand.u32 4294901760, %v7049_v39  ;;  %v26618_v39 = vld [vmem:[#allocation169_spill] sm:$0xff] }
 0x64a   : > { %13886 = vmatmul.mubr.f32.gmra.mrb[54].mxu0 %v7017_v3  ;;  %v15401_v26 = vpack.c.bf16 %v26618_v39, %v26617_v1 }
 0x64b   : > { %14462 = vmatmul.mubr.f32.gmra.mrb[54].mxu1 %v7017_v3  ;;  %13887 = vmatprep.mubr.f32.mxu0 %v7028_v14  ;;  %v7060_v3 = vsub.f32 %v22844_v13, %v22854_v51  ;;  %v26620_v51 = vld [vmem:[#allocation174_spill] sm:$0xff] }
 0x64c   : > { %14463 = vmatprep.mubr.f32.mxu1 %v7028_v14  ;;  %v15593_v13 = vpack.c.bf16 %v26620_v51, %v26619_v34 }
 0x64d   : > { %v7061_v8 = vand.u32 4294901760, %v7060_v3  ;;  %v26624_v3 = vpack.c.bf16 %v21528_v30, %v21526_v41 }
 0x64e   : > { %13888 = vmatmul.mubr.f32.gmra.mrb[56].mxu0 %v7028_v14 }
 0x64f   : > { %14464 = vmatmul.mubr.f32.gmra.mrb[56].mxu1 %v7028_v14  ;;  %13889 = vmatprep.mubr.f32.mxu0 %v7039_v11  ;;  %v26616_v14 = vld [vmem:[#allocation279_spill] sm:$0xff] }
 0x650   : > { %14465 = vmatprep.mubr.f32.mxu1 %v7039_v11 }
 0x652   : > { %13890 = vmatmul.mubr.f32.gmra.mrb[58].mxu0 %v7039_v11 }
 0x653   : > { %14466 = vmatmul.mubr.f32.gmra.mrb[58].mxu1 %v7039_v11  ;;  %13891 = vmatprep.mubr.f32.mxu0 %v7050_v50  ;;  %v26621_v11 = vld [vmem:[#allocation199_spill] sm:$0xff] }
 0x654   : > { %14467 = vmatprep.mubr.f32.mxu1 %v7050_v50  ;;  %v15403_v62 = vpack.c.bf16 %v26622_v53, %v26621_v11  ;;  %v26628_v53 = vld [vmem:[#allocation201_spill] sm:$0xff]  ;;  %v26629_v11 = vld [vmem:[#allocation203_spill] sm:$0xff] }
 0x655   : > { %v15597_v51 = vpack.c.bf16 %v26629_v11, %v26628_v53  ;;  %v26633_v11 = vld [vmem:[#allocation210_spill] sm:$0xff]  ;;  %v26635_v53 = vld [vmem:[#allocation212_spill] sm:$0xff] }
 0x656   : > { %13892 = vmatmul.mubr.f32.gmra.mrb[60].mxu0 %v7050_v50 }
 0x657   : > { %14468 = vmatmul.mubr.f32.gmra.mrb[60].mxu1 %v7050_v50  ;;  %13893 = vmatprep.mubr.f32.mxu0 %v7061_v8  ;;  %v26623_v50 = vld [vmem:[#allocation180_spill] sm:$0xff] }
 0x658   : > { %14469 = vmatprep.mubr.f32.mxu1 %v7061_v8 }
 0x65a   : > { %13894 = vmatmul.mubr.f32.gmra.mrb[62].mxu0 %v7061_v8 }
 0x65b   : > { %14470 = vmatmul.mubr.f32.gmra.mrb[62].mxu1 %v7061_v8  ;;  %13927 = vmatprep.mubr.f32.mxu0 %v26616_v14  ;;  %v26625_v8 = vld [vmem:[#allocation195_spill] sm:$0xff] }
 0x65c   : > { %14503 = vmatprep.mubr.f32.mxu1 %v26616_v14 }
 0x65e   : > { %13928 = vmatmul.mubr.f32.vlgmr.msra.gmra.mrb[0].mxu0 %v26616_v14 }
 0x65f   : > { %14504 = vmatmul.mubr.f32.vlgmr.msra.gmra.mrb[0].mxu1 %v26616_v14  ;;  %15402 = vmatpush3.bf16.xpose.msra.mxu0 %v15401_v26  ;;  %v26626_v14 = vld [vmem:[#allocation191_spill] sm:$0xff]  ;;  %v26627_v26 = vld [vmem:[#allocation192_spill] sm:$0xff] }
 0x660   : > { %15594 = vmatpush3.bf16.xpose.msra.mxu1 %v15593_v13  ;;  %13929 = vmatprep.mubr.f32.mxu0 %v26623_v50  ;;  %v15405_v13 = vpack.c.bf16 %v26627_v26, %v26626_v14  ;;  %v26637_v26 = vld [vmem:[#allocation224_spill] sm:$0xff] }
 0x661   : > { %14505 = vmatprep.mubr.f32.mxu1 %v26623_v50  ;;  %15404 = vmatprep.subr.bf16.mxu0 %v15403_v62  ;;  %v26630_v62 = vld [vmem:[#allocation196_spill] sm:$0xff] }
 0x662   : > { %15596 = vmatprep.subr.bf16.mxu1 %v26624_v3  ;;  %13930 = vmatmul.mubr.f32.gmra.mrb[2].mxu0 %v26623_v50  ;;  %v26631_v3 = vpack.c.bf16 %v26478_v16, %v26476_v33 }
 0x663   : > { %14506 = vmatmul.mubr.f32.gmra.mrb[2].mxu1 %v26623_v50  ;;  %13931 = vmatprep.mubr.f32.mxu0 %v26625_v8  ;;  %v26632_v50 = vpack.c.bf16 %v26480_v29, %v26573_v17 }
 0x664   : > { %14507 = vmatprep.mubr.f32.mxu1 %v26625_v8 }
 0x666   : > { %13932 = vmatmul.mubr.f32.gmra.mrb[4].mxu0 %v26625_v8 }
 0x667   : > { %14508 = vmatmul.mubr.f32.gmra.mrb[4].mxu1 %v26625_v8  ;;  %13933 = vmatprep.mubr.f32.mxu0 %v26630_v62  ;;  %v26634_v8 = vld [vmem:[#allocation211_spill] sm:$0xff] }
 0x668   : > { %14509 = vmatprep.mubr.f32.mxu1 %v26630_v62  ;;  %15406 = vmatpush3.bf16.xpose.msra.mxu0 %v15405_v13  ;;  %v15409_v13 = vpack.c.bf16 %v26635_v53, %v26634_v8 }
 0x669   : > { %15598 = vmatpush3.bf16.xpose.msra.mxu1 %v15597_v51  ;;  %15408 = vmatprep.subr.bf16.mxu0 %v26631_v3  ;;  %v26636_v51 = vld [vmem:[#allocation223_spill] sm:$0xff] }
 0x66a   : > { %15600 = vmatprep.subr.bf16.mxu1 %v26632_v50  ;;  %13934 = vmatmul.mubr.f32.gmra.mrb[6].mxu0 %v26630_v62  ;;  %v15601_v14 = vpack.c.bf16 %v26637_v26, %v26636_v51  ;;  %v26638_v3 = vld [vmem:[#allocation215_spill] sm:$0xff]  ;;  %v26639_v50 = vpack.c.bf16 %v26575_v57, %v21775_v4  ;;  %v26641_v26 = vld [vmem:[#allocation228_spill] sm:$0xff] }
 0x66b   : > { %14510 = vmatmul.mubr.f32.gmra.mrb[6].mxu1 %v26630_v62  ;;  %13935 = vmatprep.mubr.f32.mxu0 %v26633_v11  ;;  %v26640_v62 = vpack.c.bf16 %v26577_v25, %v26576_v22  ;;  %v26643_v51 = vld [vmem:[#allocation227_spill] sm:$0xff] }
 0x66c   : > { %14511 = vmatprep.mubr.f32.mxu1 %v26633_v11 }
 0x66e   : > { %13936 = vmatmul.mubr.f32.gmra.mrb[8].mxu0 %v26633_v11 }
 0x66f   : > { %14512 = vmatmul.mubr.f32.gmra.mrb[8].mxu1 %v26633_v11  ;;  %13937 = vmatprep.mubr.f32.mxu0 %v26638_v3  ;;  %v26642_v11 = vld [vmem:[#allocation226_spill] sm:$0xff] }
 0x670   : > { %14513 = vmatprep.mubr.f32.mxu1 %v26638_v3  ;;  %15410 = vmatpush3.bf16.xpose.msra.mxu0 %v15409_v13  ;;  %v15413_v13 = vpack.c.bf16 %v26643_v51, %v26642_v11  ;;  %v26651_v51 = vld [vmem:[#allocation248_spill] sm:$0xff] }
 0x671   : > { %15602 = vmatpush3.bf16.xpose.msra.mxu1 %v15601_v14  ;;  %15412 = vmatprep.subr.bf16.mxu0 %v26639_v50  ;;  %v15605_v14 = vpack.c.bf16 %v21835_v45, %v26503_v47  ;;  %v26644_v50 = vld [vmem:[#allocation229_spill] sm:$0xff]  ;;  %v26647_v45 = vld [vmem:[#allocation243_spill] sm:$0xff] }
 0x672   : > { %15604 = vmatprep.subr.bf16.mxu1 %v26640_v62  ;;  %13938 = vmatmul.mubr.f32.gmra.mrb[10].mxu0 %v26638_v3  ;;  %v26645_v62 = vpack.c.bf16 %v21935_v37, %v21933_v31  ;;  %v26649_v47 = vld [vmem:[#allocation245_spill] sm:$0xff] }
 0x673   : > { %14514 = vmatmul.mubr.f32.gmra.mrb[10].mxu1 %v26638_v3  ;;  %13939 = vmatprep.mubr.f32.mxu0 %v26641_v26  ;;  %v26646_v3 = vpack.c.bf16 %v21949_v63, %v26508_v49 }
 0x674   : > { %14515 = vmatprep.mubr.f32.mxu1 %v26641_v26 }
 0x676   : > { %13940 = vmatmul.mubr.f32.gmra.mrb[12].mxu0 %v26641_v26 }
 0x677   : > { %14516 = vmatmul.mubr.f32.gmra.mrb[12].mxu1 %v26641_v26  ;;  %13941 = vmatprep.mubr.f32.mxu0 %v26644_v50  ;;  %v26648_v26 = vld [vmem:[#allocation244_spill] sm:$0xff] }
 0x678   : > { %14517 = vmatprep.mubr.f32.mxu1 %v26644_v50  ;;  %15414 = vmatpush3.bf16.xpose.msra.mxu0 %v15413_v13  ;;  %v15417_v13 = vpack.c.bf16 %v26649_v47, %v26648_v26 }
 0x679   : > { %15606 = vmatpush3.bf16.xpose.msra.mxu1 %v15605_v14  ;;  %15416 = vmatprep.subr.bf16.mxu0 %v26645_v62  ;;  %v26650_v14 = vld [vmem:[#allocation247_spill] sm:$0xff]  ;;  %v26652_v62 = vld [vmem:[#allocation246_spill] sm:$0xff] }
 0x67a   : > { %15608 = vmatprep.subr.bf16.mxu1 %v26646_v3  ;;  %13942 = vmatmul.mubr.f32.gmra.mrb[14].mxu0 %v26644_v50  ;;  %v15609_v11 = vpack.c.bf16 %v26651_v51, %v26650_v14  ;;  %v26653_v3 = vpack.c.bf16 %v26523_v54, %v26522_v9  ;;  %v26655_v51 = vld [vmem:[#allocation259_spill] sm:$0xff]  ;;  %v26657_v14 = vld [vmem:[#allocation260_spill] sm:$0xff] }
 0x67b   : > { %14518 = vmatmul.mubr.f32.gmra.mrb[14].mxu1 %v26644_v50  ;;  %13943 = vmatprep.mubr.f32.mxu0 %v26647_v45  ;;  %v26654_v50 = vpack.c.bf16 %v26525_v10, %v22066_v12 }
 0x67c   : > { %14519 = vmatprep.mubr.f32.mxu1 %v26647_v45 }
 0x67e   : > { %13944 = vmatmul.mubr.f32.gmra.mrb[16].mxu0 %v26647_v45 }
 0x67f   : > { %14520 = vmatmul.mubr.f32.gmra.mrb[16].mxu1 %v26647_v45  ;;  %13945 = vmatprep.mubr.f32.mxu0 %v26652_v62  ;;  %v26656_v45 = vld [vmem:[#allocation256_spill] sm:$0xff] }
 0x680   : > { %14521 = vmatprep.mubr.f32.mxu1 %v26652_v62  ;;  %15418 = vmatpush3.bf16.xpose.msra.mxu0 %v15417_v13  ;;  %v15421_v13 = vpack.c.bf16 %v26657_v14, %v26656_v45 }
 0x681   : > { %15610 = vmatpush3.bf16.xpose.msra.mxu1 %v15609_v11  ;;  %15420 = vmatprep.subr.bf16.mxu0 %v26653_v3  ;;  %v15613_v11 = vpack.c.bf16 %v22089_v42, %v26531_v48  ;;  %v26658_v3 = vld [vmem:[#allocation263_spill] sm:$0xff]  ;;  %v26661_v42 = vld [vmem:[#allocation276_spill] sm:$0xff] }
 0x682   : > { %15612 = vmatprep.subr.bf16.mxu1 %v26654_v50  ;;  %13946 = vmatmul.mubr.f32.gmra.mrb[18].mxu0 %v26652_v62  ;;  %v26659_v50 = vpack.c.bf16 %v26539_v0, %v22172_v19 }
 0x683   : > { %14522 = vmatmul.mubr.f32.gmra.mrb[18].mxu1 %v26652_v62  ;;  %13947 = vmatprep.mubr.f32.mxu0 %v26655_v51  ;;  %v26660_v62 = vpack.c.bf16 %v26543_v6, %v26541_v59 }
 0x684   : > { %14523 = vmatprep.mubr.f32.mxu1 %v26655_v51 }
 0x686   : > { %13948 = vmatmul.mubr.f32.gmra.mrb[20].mxu0 %v26655_v51 }
 0x687   : > { %14524 = vmatmul.mubr.f32.gmra.mrb[20].mxu1 %v26655_v51  ;;  %13949 = vmatprep.mubr.f32.mxu0 %v26658_v3  ;;  %v26664_v51 = vld [vmem:[#allocation292_spill] sm:$0xff] }
 0x688   : > { %14525 = vmatprep.mubr.f32.mxu1 %v26658_v3  ;;  %15422 = vmatpush3.bf16.xpose.msra.mxu0 %v15421_v13  ;;  %v15425_v13 = vpack.c.bf16 %v26546_v60, %v26544_v58 }
 0x689   : > { %15614 = vmatpush3.bf16.xpose.msra.mxu1 %v15613_v11  ;;  %15424 = vmatprep.subr.bf16.mxu0 %v26659_v50  ;;  %v15617_v11 = vpack.c.bf16 %v22237_v43, %v22226_v46  ;;  %v15427_v50 = vpack.c.bf16 %v22314_v23, %v22311_v35  ;;  %v26666_v35 = vld [vmem:[#allocation207_spill] sm:$0xff]  ;;  %v26667_v43 = vld [vmem:[#allocation273_spill] sm:$0xff] }
 0x68a   : > { %15616 = vmatprep.subr.bf16.mxu1 %v26660_v62  ;;  %13950 = vmatmul.mubr.f32.gmra.mrb[22].mxu0 %v26658_v3  ;;  %v26662_v62 = vld [vmem:[#allocation277_spill] sm:$0xff] }
 0x68b   : > { %14526 = vmatmul.mubr.f32.gmra.mrb[22].mxu1 %v26658_v3  ;;  %13951 = vmatprep.mubr.f32.mxu0 %v26661_v42  ;;  %v26663_v3 = vpack.c.bf16 %v22482_v32, %v22417_v55 }
 0x68c   : > { %14527 = vmatprep.mubr.f32.mxu1 %v26661_v42 }
 0x68e   : > { %13952 = vmatmul.mubr.f32.gmra.mrb[24].mxu0 %v26661_v42 }
 0x68f   : > { %14528 = vmatmul.mubr.f32.gmra.mrb[24].mxu1 %v26661_v42  ;;  %13953 = vmatprep.mubr.f32.mxu0 %v26662_v62  ;;  %v26665_v42 = vld [vmem:[#allocation293_spill] sm:$0xff] }
 0x690   : > { %14529 = vmatprep.mubr.f32.mxu1 %v26662_v62  ;;  %15426 = vmatpush3.bf16.xpose.msra.mxu0 %v15425_v13  ;;  %v15429_v23 = vpack.c.bf16 %v26665_v42, %v22443_v28  ;;  %v15621_v13 = vpack.c.bf16 %v26667_v43, %v26666_v35  ;;  %v26672_v43 = vld [vmem:[#allocation176_spill] sm:$0xff] }
 0x691   : > { %15618 = vmatpush3.bf16.xpose.msra.mxu1 %v15617_v11  ;;  %15428 = vmatprep.subr.bf16.mxu0 %v15427_v50  ;;  %v26668_v11 = vld [vmem:[#allocation294_spill] sm:$0xff]  ;;  %v26862_v50 = vld [vmem:[#allocation193_spill] sm:$0xff] }
 0x692   : > { %15620 = vmatprep.subr.bf16.mxu1 %v26663_v3  ;;  %13954 = vmatmul.mubr.f32.gmra.mrb[26].mxu0 %v26662_v62  ;;  %v26669_v3 = vmov 1.0|1.0  }
 0x693   : > { %14530 = vmatmul.mubr.f32.gmra.mrb[26].mxu1 %v26662_v62  ;;  %13955 = vmatprep.mubr.f32.mxu0 %v26664_v51  ;;  %v26861_v62 = vld [vmem:[#allocation231_spill] sm:$0xff] }
 0x694   : > { %14531 = vmatprep.mubr.f32.mxu1 %v26664_v51 }
 0x696   : > { %13956 = vmatmul.mubr.f32.gmra.mrb[28].mxu0 %v26664_v51 }
 0x697   : > { %14532 = vmatmul.mubr.f32.gmra.mrb[28].mxu1 %v26664_v51  ;;  %13957 = vmatprep.mubr.f32.mxu0 %v26668_v11  ;;  %v26704_v51 = vld [vmem:[#allocation190_spill] sm:$0xff] }
 0x698   : > { %14533 = vmatprep.mubr.f32.mxu1 %v26668_v11  ;;  %15430 = vmatpush3.bf16.xpose.msra.mxu0 %v15429_v23  ;;  %v26673_v23 = vld [vmem:[#allocation177_spill] sm:$0xff] }
 0x699   : > { %15622 = vmatpush3.bf16.xpose.msra.mxu1 %v15621_v13  ;;  %15432 = vmatprep.subr.msk.bf16.mxu0 %vm20942_vm3, %v26669_v3  ;;  %v26674_v13 = vld [vmem:[#allocation188_spill] sm:$0xff] }
 0x69a   : > { %15624 = vmatprep.subr.msk.bf16.mxu1 %vm20965_vm6, %v26669_v3  ;;  %13958 = vmatmul.mubr.f32.gmra.mrb[30].mxu0 %v26668_v11 }
 0x69b   : > { %14534 = vmatmul.mubr.f32.gmra.mrb[30].mxu1 %v26668_v11  ;;  %13959 = vmatprep.mubr.f32.mxu0 %v26672_v43  ;;  %v26702_v11 = vld [vmem:[#allocation187_spill] sm:$0xff] }
 0x69c   : > { %14535 = vmatprep.mubr.f32.mxu1 %v26672_v43 }
 0x69e   : > { %13960 = vmatmul.mubr.f32.gmra.mrb[32].mxu0 %v26672_v43 }
 0x69f   : > { %14536 = vmatmul.mubr.f32.gmra.mrb[32].mxu1 %v26672_v43  ;;  %13961 = vmatprep.mubr.f32.mxu0 %v26673_v23  ;;  %v26701_v43 = vld [vmem:[#allocation236_spill] sm:$0xff] }
 0x6a0   : > { %14537 = vmatprep.mubr.f32.mxu1 %v26673_v23 }
 0x6a2   : > { %13962 = vmatmul.mubr.f32.gmra.mrb[34].mxu0 %v26673_v23 }
 0x6a3   : > { %14538 = vmatmul.mubr.f32.gmra.mrb[34].mxu1 %v26673_v23  ;;  %13963 = vmatprep.mubr.f32.mxu0 %v26674_v13  ;;  %v26698_v23 = vld [vmem:[#allocation184_spill] sm:$0xff] }
 0x6a4   : > { %14539 = vmatprep.mubr.f32.mxu1 %v26674_v13 }
 0x6a6   : > { %13964 = vmatmul.mubr.f32.gmra.mrb[36].mxu0 %v26674_v13 }
 0x6a7   : > { %14540 = vmatmul.mubr.f32.gmra.mrb[36].mxu1 %v26674_v13  ;;  %13965 = vmatprep.mubr.f32.mxu0 %v26562_v40  ;;  %v26694_v13 = vld [vmem:[#allocation175_spill] sm:$0xff] }
 0x6a8   : > { %14541 = vmatprep.mubr.f32.mxu1 %v26562_v40  ;;  %vm26695_vm2 = vnez %v26694_v13 }
 0x6aa   : > { %13966 = vmatmul.mubr.f32.gmra.mrb[38].mxu0 %v26562_v40 }
 0x6ab   : > { %14542 = vmatmul.mubr.f32.gmra.mrb[38].mxu1 %v26562_v40  ;;  %13967 = vmatprep.mubr.f32.mxu0 %v22663_v44  ;;  %v26692_v40 = vld [vmem:[#allocation166_spill] sm:$0xff] }
 0x6ac   : > { %14543 = vmatprep.mubr.f32.mxu1 %v22663_v44  ;;  %vm26693_vm7 = vnez %v26692_v40 }
 0x6ae   : > { %13968 = vmatmul.mubr.f32.gmra.mrb[40].mxu0 %v22663_v44 }
 0x6af   : > { %14544 = vmatmul.mubr.f32.gmra.mrb[40].mxu1 %v22663_v44  ;;  %13969 = vmatprep.mubr.f32.mxu0 %v22679_v21  ;;  %v26691_v44 = vld [vmem:[#allocation222_spill] sm:$0xff] }
 0x6b0   : > { %14545 = vmatprep.mubr.f32.mxu1 %v22679_v21 }
 0x6b2   : > { %13970 = vmatmul.mubr.f32.gmra.mrb[42].mxu0 %v22679_v21 }
 0x6b3   : > { %14546 = vmatmul.mubr.f32.gmra.mrb[42].mxu1 %v22679_v21  ;;  %13971 = vmatprep.mubr.f32.mxu0 %v22703_v5  ;;  %v26688_v21 = vld [vmem:[#allocation165_spill] sm:$0xff] }
 0x6b4   : > { %14547 = vmatprep.mubr.f32.mxu1 %v22703_v5  ;;  %vm26689_vm9 = vnez %v26688_v21  ;;  %v26743_v21 = vld [vmem:[#allocation178_spill] sm:$0xff] }
 0x6b6   : > { %13972 = vmatmul.mubr.f32.gmra.mrb[44].mxu0 %v22703_v5 }
 0x6b7   : > { %14548 = vmatmul.mubr.f32.gmra.mrb[44].mxu1 %v22703_v5  ;;  %13973 = vmatprep.mubr.f32.mxu0 %v22721_v61 }
 0x6b8   : > { %14549 = vmatprep.mubr.f32.mxu1 %v22721_v61 }
 0x6ba   : > { %13974 = vmatmul.mubr.f32.gmra.mrb[46].mxu0 %v22721_v61 }
 0x6bb   : > { %14550 = vmatmul.mubr.f32.gmra.mrb[46].mxu1 %v22721_v61  ;;  %13975 = vmatprep.mubr.f32.mxu0 %v22733_v7  ;;  %v26675_v61 = vld [vmem:[#allocation302_spill] sm:$0xff] }
 0x6bc   : > { %14551 = vmatprep.mubr.f32.mxu1 %v22733_v7 }
 0x6be   : > { %13976 = vmatmul.mubr.f32.gmra.mrb[48].mxu0 %v22733_v7 }
 0x6bf   : > { %14552 = vmatmul.mubr.f32.gmra.mrb[48].mxu1 %v22733_v7  ;;  %13977 = vmatprep.mubr.f32.mxu0 %v22746_v24 }
 0x6c0   : > { %14553 = vmatprep.mubr.f32.mxu1 %v22746_v24 }
 0x6c2   : > { %13978 = vmatmul.mubr.f32.gmra.mrb[50].mxu0 %v22746_v24 }
 0x6c3   : > { %14554 = vmatmul.mubr.f32.gmra.mrb[50].mxu1 %v22746_v24  ;;  %13979 = vmatprep.mubr.f32.mxu0 %v22763_v18  ;;  %v26683_v24 = vld [vmem:[#allocation205_spill] sm:$0xff] }
 0x6c4   : > { %14555 = vmatprep.mubr.f32.mxu1 %v22763_v18 }
 0x6c6   : > { %13980 = vmatmul.mubr.f32.gmra.mrb[52].mxu0 %v22763_v18 }
 0x6c7   : > { %14556 = vmatmul.mubr.f32.gmra.mrb[52].mxu1 %v22763_v18  ;;  %13981 = vmatprep.mubr.f32.mxu0 %v26675_v61 }
 0x6c8   : > { %14557 = vmatprep.mubr.f32.mxu1 %v26675_v61 }
 0x6ca   : > { %13982 = vmatmul.mubr.f32.gmra.mrb[54].mxu0 %v26675_v61 }
 0x6cb   : > { %14558 = vmatmul.mubr.f32.gmra.mrb[54].mxu1 %v26675_v61  ;;  %13983 = vmatprep.mubr.f32.mxu0 %v22796_v56  ;;  %v26679_v61 = vld [vmem:[#allocation185_spill] sm:$0xff] }
 0x6cc   : > { %14559 = vmatprep.mubr.f32.mxu1 %v22796_v56 }
 0x6ce   : > { %13984 = vmatmul.mubr.f32.gmra.mrb[56].mxu0 %v22796_v56 }
 0x6cf   : > { %14560 = vmatmul.mubr.f32.gmra.mrb[56].mxu1 %v22796_v56  ;;  %13985 = vmatprep.mubr.f32.mxu0 %v22809_v38  ;;  %v26676_v56 = vld [vmem:[#allocation283_spill] sm:$0xff] }
 0x6d0   : > { %14561 = vmatprep.mubr.f32.mxu1 %v22809_v38 }
 0x6d2   : > { %13986 = vmatmul.mubr.f32.gmra.mrb[58].mxu0 %v22809_v38 }
 0x6d3   : > { %14562 = vmatmul.mubr.f32.gmra.mrb[58].mxu1 %v22809_v38  ;;  %13987 = vmatprep.mubr.f32.mxu0 %v22826_v27  ;;  %v26876_v38 = vld [vmem:[#allocation195_spill] sm:$0xff] }
 0x6d4   : > { %14563 = vmatprep.mubr.f32.mxu1 %v22826_v27 }
 0x6d6   : > { %13988 = vmatmul.mubr.f32.gmra.mrb[60].mxu0 %v22826_v27 }
 0x6d7   : > { %14564 = vmatmul.mubr.f32.gmra.mrb[60].mxu1 %v22826_v27  ;;  %13989 = vmatprep.mubr.f32.mxu0 %v22833_v20  ;;  %v26877_v27 = vld [vmem:[#allocation196_spill] sm:$0xff] }
 0x6d8   : > { %14565 = vmatprep.mubr.f32.mxu1 %v22833_v20 }
 0x6da   : > { %13990 = vmatmul.mubr.f32.gmra.mrb[62].mxu0 %v22833_v20 }
 0x6db   : > { %14566 = vmatmul.mubr.f32.gmra.mrb[62].mxu1 %v22833_v20  ;;  %14023 = vmatprep.mubr.f32.mxu0 %v26676_v56 }
 0x6dc   : > { %14599 = vmatprep.mubr.f32.mxu1 %v26676_v56 }
 0x6de   : > { %14024 = vmatmul.mubr.f32.vlgmr.msra.gmra.mrb[0].mxu0 %v26676_v56 }
 0x6df   : > { %14600 = vmatmul.mubr.f32.vlgmr.msra.gmra.mrb[0].mxu1 %v26676_v56  ;;  %15434 = vmatpush3.bf16.xpose.msk.msra.mxu0 %vm20987_vm10, %v26669_v3  ;;  %v26682_v56 = vld [vmem:[#allocation204_spill] sm:$0xff] }
 0x6e0   : > { %15626 = vmatpush3.bf16.xpose.msk.msra.mxu1 %vm21002_vm12, %v26669_v3  ;;  %14025 = vmatprep.mubr.f32.mxu0 %v26679_v61 }
 0x6e1   : > { %14601 = vmatprep.mubr.f32.mxu1 %v26679_v61  ;;  %15436 = vmatprep.subr.msk.bf16.mxu0 %vm21028_vm15, %v26669_v3 }
 0x6e2   : > { %15628 = vmatprep.subr.msk.bf16.mxu1 %vm21054_vm13, %v26669_v3  ;;  %14026 = vmatmul.mubr.f32.gmra.mrb[2].mxu0 %v26679_v61 }
 0x6e3   : > { %14602 = vmatmul.mubr.f32.gmra.mrb[2].mxu1 %v26679_v61  ;;  %14027 = vmatprep.mubr.f32.mxu0 %v26682_v56  ;;  %v26686_v61 = vld [vmem:[#allocation164_spill] sm:$0xff] }
 0x6e4   : > { %14603 = vmatprep.mubr.f32.mxu1 %v26682_v56  ;;  %vm26687_vm1 = vnez %v26686_v61  ;;  %v26745_v61 = vld [vmem:[#allocation182_spill] sm:$0xff] }
 0x6e5   : > { %v26746_v5 = vand.u32 4294901760, %v26745_v61  ;;  %v26755_v61 = vld [vmem:[#allocation232_spill] sm:$0xff] }
 0x6e6   : > { %14028 = vmatmul.mubr.f32.gmra.mrb[4].mxu0 %v26682_v56 }
 0x6e7   : > { %14604 = vmatmul.mubr.f32.gmra.mrb[4].mxu1 %v26682_v56  ;;  %14029 = vmatprep.mubr.f32.mxu0 %v26683_v24  ;;  %v26690_v56 = vld [vmem:[#allocation220_spill] sm:$0xff] }
 0x6e8   : > { %14605 = vmatprep.mubr.f32.mxu1 %v26683_v24  ;;  %15438 = vmatpush3.bf16.xpose.msk.msra.mxu0 %vm21077_vm14, %v26669_v3 }
 0x6e9   : > { %15630 = vmatpush3.bf16.xpose.msk.msra.mxu1 %vm21094_vm4, %v26669_v3  ;;  %15440 = vmatprep.subr.msk.bf16.mxu0 %vm26687_vm1, %v26669_v3  ;;  %vm26699_vm1 = vnez %v26698_v23  ;;  %v26708_v23 = vld [vmem:[#allocation202_spill] sm:$0xff] }
 0x6ea   : > { %15632 = vmatprep.subr.msk.bf16.mxu1 %vm26689_vm9, %v26669_v3  ;;  %14030 = vmatmul.mubr.f32.gmra.mrb[6].mxu0 %v26683_v24 }
 0x6eb   : > { %14606 = vmatmul.mubr.f32.gmra.mrb[6].mxu1 %v26683_v24  ;;  %14031 = vmatprep.mubr.f32.mxu0 %v26690_v56  ;;  %v26696_v24 = vld [vmem:[#allocation179_spill] sm:$0xff] }
 0x6ec   : > { %14607 = vmatprep.mubr.f32.mxu1 %v26690_v56  ;;  %vm26697_vm9 = vnez %v26696_v24 }
 0x6ee   : > { %14032 = vmatmul.mubr.f32.gmra.mrb[8].mxu0 %v26690_v56 }
 0x6ef   : > { %14608 = vmatmul.mubr.f32.gmra.mrb[8].mxu1 %v26690_v56  ;;  %14033 = vmatprep.mubr.f32.mxu0 %v26691_v44  ;;  %v26700_v56 = vld [vmem:[#allocation235_spill] sm:$0xff] }
 0x6f0   : > { %14609 = vmatprep.mubr.f32.mxu1 %v26691_v44  ;;  %15442 = vmatpush3.bf16.xpose.msk.msra.mxu0 %vm26693_vm7, %v26669_v3  ;;  %vm26709_vm7 = vnez %v26708_v23  ;;  %v26714_v23 = vld [vmem:[#allocation216_spill] sm:$0xff] }
 0x6f1   : > { %15634 = vmatpush3.bf16.xpose.msk.msra.mxu1 %vm26695_vm2, %v26669_v3  ;;  %15444 = vmatprep.subr.msk.bf16.mxu0 %vm26697_vm9, %v26669_v3  ;;  %vm26703_vm9 = vnez %v26702_v11  ;;  %v26718_v11 = vld [vmem:[#allocation225_spill] sm:$0xff] }
 0x6f2   : > { %15636 = vmatprep.subr.msk.bf16.mxu1 %vm26699_vm1, %v26669_v3  ;;  %14034 = vmatmul.mubr.f32.gmra.mrb[10].mxu0 %v26691_v44  ;;  %vm26705_vm1 = vnez %v26704_v51  ;;  %v26711_v51 = vld [vmem:[#allocation252_spill] sm:$0xff] }
 0x6f3   : > { %14610 = vmatmul.mubr.f32.gmra.mrb[10].mxu1 %v26691_v44  ;;  %14035 = vmatprep.mubr.f32.mxu0 %v26700_v56  ;;  %v26706_v44 = vld [vmem:[#allocation197_spill] sm:$0xff] }
 0x6f4   : > { %14611 = vmatprep.mubr.f32.mxu1 %v26700_v56  ;;  %vm26707_vm2 = vnez %v26706_v44  ;;  %v26712_v44 = vld [vmem:[#allocation206_spill] sm:$0xff] }
 0x6f6   : > { %14036 = vmatmul.mubr.f32.gmra.mrb[12].mxu0 %v26700_v56 }
 0x6f7   : > { %14612 = vmatmul.mubr.f32.gmra.mrb[12].mxu1 %v26700_v56  ;;  %14037 = vmatprep.mubr.f32.mxu0 %v26701_v43  ;;  %v26710_v56 = vld [vmem:[#allocation251_spill] sm:$0xff] }
 0x6f8   : > { %14613 = vmatprep.mubr.f32.mxu1 %v26701_v43  ;;  %15446 = vmatpush3.bf16.xpose.msk.msra.mxu0 %vm26703_vm9, %v26669_v3  ;;  %vm26719_vm9 = vnez %v26718_v11  ;;  %v26724_v11 = vld [vmem:[#allocation234_spill] sm:$0xff] }
 0x6f9   : > { %15638 = vmatpush3.bf16.xpose.msk.msra.mxu1 %vm26705_vm1, %v26669_v3  ;;  %15448 = vmatprep.subr.msk.bf16.mxu0 %vm26707_vm2, %v26669_v3  ;;  %vm26713_vm2 = vnez %v26712_v44  ;;  %v26728_v44 = vld [vmem:[#allocation242_spill] sm:$0xff] }
 0x6fa   : > { %15640 = vmatprep.subr.msk.bf16.mxu1 %vm26709_vm7, %v26669_v3  ;;  %14038 = vmatmul.mubr.f32.gmra.mrb[14].mxu0 %v26701_v43  ;;  %vm26715_vm7 = vnez %v26714_v23  ;;  %v26721_v23 = vld [vmem:[#allocation268_spill] sm:$0xff] }
 0x6fb   : > { %14614 = vmatmul.mubr.f32.gmra.mrb[14].mxu1 %v26701_v43  ;;  %14039 = vmatprep.mubr.f32.mxu0 %v26710_v56  ;;  %v26716_v43 = vld [vmem:[#allocation221_spill] sm:$0xff] }
 0x6fc   : > { %14615 = vmatprep.mubr.f32.mxu1 %v26710_v56  ;;  %vm26717_vm1 = vnez %v26716_v43  ;;  %v26722_v43 = vld [vmem:[#allocation230_spill] sm:$0xff] }
 0x6fe   : > { %14040 = vmatmul.mubr.f32.gmra.mrb[16].mxu0 %v26710_v56 }
 0x6ff   : > { %14616 = vmatmul.mubr.f32.gmra.mrb[16].mxu1 %v26710_v56  ;;  %14041 = vmatprep.mubr.f32.mxu0 %v26711_v51  ;;  %v26720_v56 = vld [vmem:[#allocation264_spill] sm:$0xff] }
 0x700   : > { %14617 = vmatprep.mubr.f32.mxu1 %v26711_v51  ;;  %15450 = vmatpush3.bf16.xpose.msk.msra.mxu0 %vm26713_vm2, %v26669_v3  ;;  %vm26729_vm2 = vnez %v26728_v44  ;;  %v26741_v44 = vld [vmem:[#allocation170_spill] sm:$0xff] }
 0x701   : > { %15642 = vmatpush3.bf16.xpose.msk.msra.mxu1 %vm26715_vm7, %v26669_v3  ;;  %15452 = vmatprep.subr.msk.bf16.mxu0 %vm26717_vm1, %v26669_v3  ;;  %vm26723_vm1 = vnez %v26722_v43  ;;  %v26742_v13 = vand.u32 4294901760, %v26741_v44  ;;  %v26747_v43 = vld [vmem:[#allocation265_spill] sm:$0xff] }
 0x702   : > { %15644 = vmatprep.subr.msk.bf16.mxu1 %vm26719_vm9, %v26669_v3  ;;  %14042 = vmatmul.mubr.f32.gmra.mrb[18].mxu0 %v26711_v51  ;;  %vm26725_vm9 = vnez %v26724_v11  ;;  %v26731_v11 = vld [vmem:[#allocation280_spill] sm:$0xff] }
 0x703   : > { %14618 = vmatmul.mubr.f32.gmra.mrb[18].mxu1 %v26711_v51  ;;  %14043 = vmatprep.mubr.f32.mxu0 %v26720_v56  ;;  %v26726_v51 = vld [vmem:[#allocation241_spill] sm:$0xff] }
 0x704   : > { %14619 = vmatprep.mubr.f32.mxu1 %v26720_v56  ;;  %vm26727_vm7 = vnez %v26726_v51  ;;  %v26732_v51 = vld [vmem:[#allocation250_spill] sm:$0xff] }
 0x706   : > { %14044 = vmatmul.mubr.f32.gmra.mrb[20].mxu0 %v26720_v56 }
 0x707   : > { %14620 = vmatmul.mubr.f32.gmra.mrb[20].mxu1 %v26720_v56  ;;  %14045 = vmatprep.mubr.f32.mxu0 %v26721_v23  ;;  %v26730_v56 = vld [vmem:[#allocation278_spill] sm:$0xff] }
 0x708   : > { %14621 = vmatprep.mubr.f32.mxu1 %v26721_v23  ;;  %15454 = vmatpush3.bf16.xpose.msk.msra.mxu0 %vm26723_vm1, %v26669_v3 }
 0x709   : > { %15646 = vmatpush3.bf16.xpose.msk.msra.mxu1 %vm26725_vm9, %v26669_v3  ;;  %15456 = vmatprep.subr.msk.bf16.mxu0 %vm26727_vm7, %v26669_v3  ;;  %vm26733_vm7 = vnez %v26732_v51  ;;  %v26739_v51 = vld [vmem:[#allocation167_spill] sm:$0xff] }
 0x70a   : > { %15648 = vmatprep.subr.msk.bf16.mxu1 %vm26729_vm2, %v26669_v3  ;;  %14046 = vmatmul.mubr.f32.gmra.mrb[22].mxu0 %v26721_v23  ;;  %v26740_v24 = vand.u32 4294901760, %v26739_v51  ;;  %v26758_v51 = vld [vmem:[#allocation300_spill] sm:$0xff] }
 0x70b   : > { %14622 = vmatmul.mubr.f32.gmra.mrb[22].mxu1 %v26721_v23  ;;  %14047 = vmatprep.mubr.f32.mxu0 %v26730_v56  ;;  %v26735_v23 = vld [vmem:[#allocation261_spill] sm:$0xff] }
 0x70c   : > { %14623 = vmatprep.mubr.f32.mxu1 %v26730_v56  ;;  %vm26736_vm2 = vnez %v26735_v23  ;;  %v15463_v40 = vpack.c.bf16 %v26742_v13, %v26740_v24  ;;  %v26744_v23 = vand.u32 4294901760, %v26743_v21  ;;  %v26751_v21 = vld [vmem:[#allocation183_spill] sm:$0xff]  ;;  %v26754_v13 = vld [vmem:[#allocation218_spill] sm:$0xff] }
 0x70d   : > { %v26756_v24 = vld [vmem:[#allocation194_spill] sm:$0xff] }
 0x70e   : > { %14048 = vmatmul.mubr.f32.gmra.mrb[24].mxu0 %v26730_v56  ;;  %v15655_v7 = vpack.c.bf16 %v26746_v5, %v26744_v23  ;;  %v26750_v5 = vld [vmem:[#allocation181_spill] sm:$0xff]  ;;  %v26763_v23 = vand.u32 4294901760, %v26617_v1 }
 0x70f   : > { %14624 = vmatmul.mubr.f32.gmra.mrb[24].mxu1 %v26730_v56  ;;  %14049 = vmatprep.mubr.f32.mxu0 %v26731_v11  ;;  %v26738_v56 = vld [vmem:[#allocation258_spill] sm:$0xff] }
 0x710   : > { %14625 = vmatprep.mubr.f32.mxu1 %v26731_v11  ;;  %15458 = vmatpush3.bf16.xpose.msk.msra.mxu0 %vm26733_vm7, %v26669_v3 }
 0x711   : > { %15650 = vmatpush3.bf16.xpose.msk.msra.mxu1 %vm22005_vm0, %v26669_v3  ;;  %15460 = vmatprep.subr.msk.bf16.mxu0 %vm26736_vm2, %v26669_v3 }
 0x712   : > { %15652 = vmatprep.subr.msk.bf16.mxu1 %vm22097_vm5, %v26669_v3  ;;  %14050 = vmatmul.mubr.f32.gmra.mrb[26].mxu0 %v26731_v11 }
 0x713   : > { %14626 = vmatmul.mubr.f32.gmra.mrb[26].mxu1 %v26731_v11  ;;  %14051 = vmatprep.mubr.f32.mxu0 %v26738_v56  ;;  %v26934_v11 = vld [vmem:[#allocation189_spill] sm:$0xff] }
 0x714   : > { %14627 = vmatprep.mubr.f32.mxu1 %v26738_v56 }
 0x716   : > { %14052 = vmatmul.mubr.f32.gmra.mrb[28].mxu0 %v26738_v56 }
 0x717   : > { %14628 = vmatmul.mubr.f32.gmra.mrb[28].mxu1 %v26738_v56  ;;  %14053 = vmatprep.mubr.f32.mxu0 %v26747_v43  ;;  %v26764_v56 = vand.u32 4294901760, %v26618_v39  ;;  %v26778_v39 = vld [vmem:[#allocation192_spill] sm:$0xff] }
 0x718   : > { %14629 = vmatprep.mubr.f32.mxu1 %v26747_v43  ;;  %15462 = vmatpush3.bf16.xpose.msk.msra.mxu0 %vm22145_vm11, %v26669_v3 }
 0x719   : > { %15654 = vmatpush3.bf16.xpose.msk.msra.mxu1 %vm22184_vm8, %v26669_v3  ;;  %15464 = vmatprep.subr.bf16.mxu0 %v15463_v40  ;;  %v26753_v40 = vld [vmem:[#allocation208_spill] sm:$0xff] }
 0x71a   : > { %15656 = vmatprep.subr.bf16.mxu1 %v15655_v7  ;;  %14054 = vmatmul.mubr.f32.gmra.mrb[30].mxu0 %v26747_v43  ;;  %v26752_v7 = vld [vmem:[#allocation198_spill] sm:$0xff] }
 0x71b   : > { %14630 = vmatmul.mubr.f32.gmra.mrb[30].mxu1 %v26747_v43  ;;  %14055 = vmatprep.mubr.f32.mxu0 %v26750_v5  ;;  %v26757_v43 = vld [vmem:[#allocation298_spill] sm:$0xff] }
 0x71c   : > { %14631 = vmatprep.mubr.f32.mxu1 %v26750_v5 }
 0x71e   : > { %14056 = vmatmul.mubr.f32.gmra.mrb[32].mxu0 %v26750_v5 }
 0x71f   : > { %14632 = vmatmul.mubr.f32.gmra.mrb[32].mxu1 %v26750_v5  ;;  %14057 = vmatprep.mubr.f32.mxu0 %v26751_v21  ;;  %v15465_v5 = vpack.c.bf16 %v26764_v56, %v26763_v23  ;;  %v26780_v56 = vld [vmem:[#allocation201_spill] sm:$0xff] }
 0x720   : > { %14633 = vmatprep.mubr.f32.mxu1 %v26751_v21 }
 0x722   : > { %14058 = vmatmul.mubr.f32.gmra.mrb[34].mxu0 %v26751_v21 }
 0x723   : > { %14634 = vmatmul.mubr.f32.gmra.mrb[34].mxu1 %v26751_v21  ;;  %14059 = vmatprep.mubr.f32.mxu0 %v26752_v7  ;;  %v26765_v21 = vand.u32 4294901760, %v26619_v34  ;;  %v26774_v34 = vld [vmem:[#allocation282_spill] sm:$0xff] }
 0x724   : > { %14635 = vmatprep.mubr.f32.mxu1 %v26752_v7 }
 0x726   : > { %14060 = vmatmul.mubr.f32.gmra.mrb[36].mxu0 %v26752_v7 }
 0x727   : > { %14636 = vmatmul.mubr.f32.gmra.mrb[36].mxu1 %v26752_v7  ;;  %14061 = vmatprep.mubr.f32.mxu0 %v26753_v40  ;;  %v26766_v7 = vld [vmem:[#allocation174_spill] sm:$0xff] }
 0x728   : > { %14637 = vmatprep.mubr.f32.mxu1 %v26753_v40 }
 0x72a   : > { %14062 = vmatmul.mubr.f32.gmra.mrb[38].mxu0 %v26753_v40 }
 0x72b   : > { %14638 = vmatmul.mubr.f32.gmra.mrb[38].mxu1 %v26753_v40  ;;  %14063 = vmatprep.mubr.f32.mxu0 %v26754_v13  ;;  %v26767_v40 = vand.u32 4294901760, %v26766_v7 }
 0x72c   : > { %14639 = vmatprep.mubr.f32.mxu1 %v26754_v13 }
 0x72e   : > { %14064 = vmatmul.mubr.f32.gmra.mrb[40].mxu0 %v26754_v13 }
 0x72f   : > { %14640 = vmatmul.mubr.f32.gmra.mrb[40].mxu1 %v26754_v13  ;;  %14065 = vmatprep.mubr.f32.mxu0 %v26755_v61  ;;  %v15657_v13 = vpack.c.bf16 %v26767_v40, %v26765_v21  ;;  %v26782_v21 = vld [vmem:[#allocation203_spill] sm:$0xff] }
 0x730   : > { %14641 = vmatprep.mubr.f32.mxu1 %v26755_v61  ;;  %v26783_v7 = vand.u32 4294901760, %v26782_v21 }
 0x732   : > { %14066 = vmatmul.mubr.f32.gmra.mrb[42].mxu0 %v26755_v61 }
 0x733   : > { %14642 = vmatmul.mubr.f32.gmra.mrb[42].mxu1 %v26755_v61  ;;  %14067 = vmatprep.mubr.f32.mxu0 %v26756_v24  ;;  %v26768_v61 = vld [vmem:[#allocation199_spill] sm:$0xff] }
 0x734   : > { %14643 = vmatprep.mubr.f32.mxu1 %v26756_v24 }
 0x736   : > { %14068 = vmatmul.mubr.f32.gmra.mrb[44].mxu0 %v26756_v24 }
 0x737   : > { %14644 = vmatmul.mubr.f32.gmra.mrb[44].mxu1 %v26756_v24  ;;  %14069 = vmatprep.mubr.f32.mxu0 %v26757_v43  ;;  %v26769_v24 = vand.u32 4294901760, %v26768_v61 }
 0x738   : > { %14645 = vmatprep.mubr.f32.mxu1 %v26757_v43 }
 0x73a   : > { %14070 = vmatmul.mubr.f32.gmra.mrb[46].mxu0 %v26757_v43 }
 0x73b   : > { %14646 = vmatmul.mubr.f32.gmra.mrb[46].mxu1 %v26757_v43  ;;  %14071 = vmatprep.mubr.f32.mxu0 %v26758_v51  ;;  %v26770_v43 = vld [vmem:[#allocation200_spill] sm:$0xff] }
 0x73c   : > { %14647 = vmatprep.mubr.f32.mxu1 %v26758_v51 }
 0x73e   : > { %14072 = vmatmul.mubr.f32.gmra.mrb[48].mxu0 %v26758_v51 }
 0x73f   : > { %14648 = vmatmul.mubr.f32.gmra.mrb[48].mxu1 %v26758_v51  ;;  %14073 = vmatprep.mubr.f32.mxu0 %v22761_v2  ;;  %v26771_v51 = vand.u32 4294901760, %v26770_v43  ;;  %v26787_v43 = vand.u32 4294901760, %v26480_v29  ;;  %v26791_v29 = vand.u32 4294901760, %v26635_v53  ;;  %v26800_v53 = vld [vmem:[#allocation217_spill] sm:$0xff] }
 0x740   : > { %14649 = vmatprep.mubr.f32.mxu1 %v22761_v2 }
 0x742   : > { %14074 = vmatmul.mubr.f32.gmra.mrb[50].mxu0 %v22761_v2 }
 0x743   : > { %14650 = vmatmul.mubr.f32.gmra.mrb[50].mxu1 %v22761_v2  ;;  %14075 = vmatprep.mubr.f32.mxu0 %v22779_v15  ;;  %v26759_v2 = vld [vmem:[#allocation306_spill] sm:$0xff] }
 0x744   : > { %14651 = vmatprep.mubr.f32.mxu1 %v22779_v15 }
 0x746   : > { %14076 = vmatmul.mubr.f32.gmra.mrb[52].mxu0 %v22779_v15 }
 0x747   : > { %14652 = vmatmul.mubr.f32.gmra.mrb[52].mxu1 %v22779_v15  ;;  %14077 = vmatprep.mubr.f32.mxu0 %v22793_v36  ;;  %v26760_v15 = vld [vmem:[#allocation310_spill] sm:$0xff] }
 0x748   : > { %14653 = vmatprep.mubr.f32.mxu1 %v22793_v36 }
 0x74a   : > { %14078 = vmatmul.mubr.f32.gmra.mrb[54].mxu0 %v22793_v36 }
 0x74b   : > { %14654 = vmatmul.mubr.f32.gmra.mrb[54].mxu1 %v22793_v36  ;;  %14079 = vmatprep.mubr.f32.mxu0 %v22807_v52  ;;  %v26761_v36 = vld [vmem:[#allocation312_spill] sm:$0xff] }
 0x74c   : > { %14655 = vmatprep.mubr.f32.mxu1 %v22807_v52 }
 0x74e   : > { %14080 = vmatmul.mubr.f32.gmra.mrb[56].mxu0 %v22807_v52 }
 0x74f   : > { %14656 = vmatmul.mubr.f32.gmra.mrb[56].mxu1 %v22807_v52  ;;  %14081 = vmatprep.mubr.f32.mxu0 %v26759_v2  ;;  %v26762_v52 = vld [vmem:[#allocation285_spill] sm:$0xff] }
 0x750   : > { %14657 = vmatprep.mubr.f32.mxu1 %v26759_v2 }
 0x752   : > { %14082 = vmatmul.mubr.f32.gmra.mrb[58].mxu0 %v26759_v2 }
 0x753   : > { %14658 = vmatmul.mubr.f32.gmra.mrb[58].mxu1 %v26759_v2  ;;  %14083 = vmatprep.mubr.f32.mxu0 %v26760_v15  ;;  %v15467_v2 = vpack.c.bf16 %v26771_v51, %v26769_v24  ;;  %v26786_v24 = vand.u32 4294901760, %v26573_v17 }
 0x754   : > { %14659 = vmatprep.mubr.f32.mxu1 %v26760_v15 }
 0x755   : > { %v15663_v51 = vpack.c.bf16 %v26787_v43, %v26786_v24  ;;  %v26810_v24 = vand.u32 4294901760, %v21933_v31  ;;  %v26811_v43 = vand.u32 4294901760, %v21935_v37  ;;  %v26815_v31 = vld [vmem:[#allocation290_spill] sm:$0xff]  ;;  %v26817_v37 = vand.u32 4294901760, %v26649_v47  ;;  %v26826_v47 = vld [vmem:[#allocation291_spill] sm:$0xff] }
 0x756   : > { %14084 = vmatmul.mubr.f32.gmra.mrb[60].mxu0 %v26760_v15 }
 0x757   : > { %14660 = vmatmul.mubr.f32.gmra.mrb[60].mxu1 %v26760_v15  ;;  %14085 = vmatprep.mubr.f32.mxu0 %v26761_v36  ;;  %v26772_v15 = vand.u32 4294901760, %v21526_v41  ;;  %v26775_v41 = vld [vmem:[#allocation284_spill] sm:$0xff] }
 0x758   : > { %14661 = vmatprep.mubr.f32.mxu1 %v26761_v36 }
 0x75a   : > { %14086 = vmatmul.mubr.f32.gmra.mrb[62].mxu0 %v26761_v36 }
 0x75b   : > { %14662 = vmatmul.mubr.f32.gmra.mrb[62].mxu1 %v26761_v36  ;;  %14119 = vmatprep.mubr.f32.mxu0 %v26762_v52  ;;  %v26773_v36 = vand.u32 4294901760, %v21528_v30  ;;  %v26776_v30 = vld [vmem:[#allocation191_spill] sm:$0xff] }
 0x75c   : > { %14695 = vmatprep.mubr.f32.mxu1 %v26762_v52  ;;  %v26777_v1 = vand.u32 4294901760, %v26776_v30 }
 0x75d   : > { %v15659_v44 = vpack.c.bf16 %v26773_v36, %v26772_v15  ;;  %v26792_v15 = vld [vmem:[#allocation223_spill] sm:$0xff] }
 0x75e   : > { %14120 = vmatmul.mubr.f32.vlgmr.msra.gmra.mrb[0].mxu0 %v26762_v52  ;;  %v26793_v36 = vand.u32 4294901760, %v26792_v15 }
 0x75f   : > { %14696 = vmatmul.mubr.f32.vlgmr.msra.gmra.mrb[0].mxu1 %v26762_v52  ;;  %15466 = vmatpush3.bf16.xpose.msra.mxu0 %v15465_v5  ;;  %v26779_v52 = vand.u32 4294901760, %v26778_v39  ;;  %v26781_v5 = vand.u32 4294901760, %v26780_v56  ;;  %v26797_v39 = vand.u32 4294901760, %v26575_v57  ;;  %v26799_v56 = vand.u32 4294901760, %v26577_v25  ;;  %v26802_v57 = vld [vmem:[#allocation226_spill] sm:$0xff]  ;;  %v26804_v25 = vld [vmem:[#allocation227_spill] sm:$0xff] }
 0x760   : > { %15658 = vmatpush3.bf16.xpose.msra.mxu1 %v15657_v13  ;;  %14121 = vmatprep.mubr.f32.mxu0 %v26774_v34  ;;  %v26785_v13 = vand.u32 4294901760, %v26478_v16  ;;  %v26790_v16 = vand.u32 4294901760, %v26634_v8  ;;  %v26805_v8 = vand.u32 4294901760, %v26804_v25 }
 0x761   : > { %14697 = vmatprep.mubr.f32.mxu1 %v26774_v34  ;;  %15468 = vmatprep.subr.bf16.mxu0 %v15467_v2  ;;  %v15469_v23 = vpack.c.bf16 %v26779_v52, %v26777_v1  ;;  %v15661_v40 = vpack.c.bf16 %v26783_v7, %v26781_v5  ;;  %v26788_v2 = vld [vmem:[#allocation286_spill] sm:$0xff]  ;;  %v26796_v1 = vand.u32 4294901760, %v21775_v4  ;;  %v26801_v4 = vld [vmem:[#allocation219_spill] sm:$0xff]  ;;  %v26806_v7 = vld [vmem:[#allocation237_spill] sm:$0xff] }
 0x762   : > { %15660 = vmatprep.subr.bf16.mxu1 %v15659_v44  ;;  %14122 = vmatmul.mubr.f32.gmra.mrb[2].mxu0 %v26774_v34  ;;  %v26784_v44 = vand.u32 4294901760, %v26476_v33  ;;  %v26789_v33 = vld [vmem:[#allocation287_spill] sm:$0xff]  ;;  %v15473_v17 = vpack.c.bf16 %v26791_v29, %v26790_v16  ;;  %v26814_v29 = vld [vmem:[#allocation289_spill] sm:$0xff] }
 0x763   : > { %14698 = vmatmul.mubr.f32.gmra.mrb[2].mxu1 %v26774_v34  ;;  %14123 = vmatprep.mubr.f32.mxu0 %v26775_v41  ;;  %v26794_v34 = vld [vmem:[#allocation224_spill] sm:$0xff]  ;;  %v15475_v52 = vpack.c.bf16 %v26797_v39, %v26796_v1  ;;  %v26823_v1 = vand.u32 4294901760, %v26523_v54 }
 0x764   : > { %14699 = vmatprep.mubr.f32.mxu1 %v26775_v41  ;;  %v15471_v61 = vpack.c.bf16 %v26785_v13, %v26784_v44  ;;  %v26808_v44 = vld [vmem:[#allocation240_spill] sm:$0xff] }
 0x765   : > { %v26809_v13 = vand.u32 4294901760, %v26808_v44 }
 0x766   : > { %14124 = vmatmul.mubr.f32.gmra.mrb[4].mxu0 %v26775_v41 }
 0x767   : > { %14700 = vmatmul.mubr.f32.gmra.mrb[4].mxu1 %v26775_v41  ;;  %14125 = vmatprep.mubr.f32.mxu0 %v26788_v2  ;;  %v26795_v41 = vand.u32 4294901760, %v26794_v34 }
 0x768   : > { %14701 = vmatprep.mubr.f32.mxu1 %v26788_v2  ;;  %15470 = vmatpush3.bf16.xpose.msra.mxu0 %v15469_v23  ;;  %v26798_v23 = vand.u32 4294901760, %v26576_v22  ;;  %v26803_v22 = vand.u32 4294901760, %v26802_v57  ;;  %v26833_v57 = vand.u32 4294901760, %v22172_v19  ;;  %v26839_v19 = vand.u32 4294901760, %v26544_v58  ;;  %v26850_v58 = vld [vmem:[#allocation262_spill] sm:$0xff] }
 0x769   : > { %15662 = vmatpush3.bf16.xpose.msra.mxu1 %v15661_v40  ;;  %15472 = vmatprep.subr.bf16.mxu0 %v15471_v61  ;;  %v15665_v30 = vpack.c.bf16 %v26795_v41, %v26793_v36  ;;  %v26807_v40 = vand.u32 4294901760, %v26806_v7  ;;  %v26820_v36 = vld [vmem:[#allocation248_spill] sm:$0xff] }
 0x76a   : > { %15664 = vmatprep.subr.bf16.mxu1 %v15663_v51  ;;  %14126 = vmatmul.mubr.f32.gmra.mrb[6].mxu0 %v26788_v2  ;;  %v15667_v5 = vpack.c.bf16 %v26799_v56, %v26798_v23  ;;  %v15477_v21 = vpack.c.bf16 %v26805_v8, %v26803_v22  ;;  %v15479_v51 = vpack.c.bf16 %v26811_v43, %v26810_v24  ;;  %v26821_v34 = vand.u32 4294901760, %v26820_v36  ;;  %v26846_v24 = vld [vmem:[#allocation209_spill] sm:$0xff] }
 0x76b   : > { %14702 = vmatmul.mubr.f32.gmra.mrb[6].mxu1 %v26788_v2  ;;  %14127 = vmatprep.mubr.f32.mxu0 %v26789_v33  ;;  %v15669_v61 = vpack.c.bf16 %v26809_v13, %v26807_v40  ;;  %v26812_v2 = vand.u32 4294901760, %v26508_v49  ;;  %v26825_v23 = vand.u32 4294901760, %v26525_v10  ;;  %v26829_v10 = vand.u32 4294901760, %v26657_v14  ;;  %v26842_v14 = vld [vmem:[#allocation281_spill] sm:$0xff]  ;;  %v26844_v13 = vld [vmem:[#allocation288_spill] sm:$0xff] }
 0x76c   : > { %14703 = vmatprep.mubr.f32.mxu1 %v26789_v33  ;;  %v26834_v22 = vand.u32 4294901760, %v26539_v0  ;;  %v26835_v8 = vand.u32 4294901760, %v26541_v59  ;;  %v26840_v0 = vand.u32 4294901760, %v26546_v60  ;;  %v26843_v40 = vand.u32 4294901760, %v26842_v14  ;;  %v26865_v36 = vld [vmem:[#allocation301_spill] sm:$0xff] }
 0x76d   : > { %v26847_v43 = vand.u32 4294901760, %v26846_v24  ;;  %v26912_v14 = vld [vmem:[#allocation225_spill] sm:$0xff] }
 0x76e   : > { %14128 = vmatmul.mubr.f32.gmra.mrb[8].mxu0 %v26789_v33  ;;  %v15487_v25 = vpack.c.bf16 %v26834_v22, %v26833_v57  ;;  %v15489_v59 = vpack.c.bf16 %v26840_v0, %v26839_v19  ;;  %v26892_v57 = vld [vmem:[#allocation184_spill] sm:$0xff]  ;;  %v26905_v19 = vld [vmem:[#allocation246_spill] sm:$0xff]  ;;  %v26918_v24 = vld [vmem:[#allocation241_spill] sm:$0xff] }
 0x76f   : > { %14704 = vmatmul.mubr.f32.gmra.mrb[8].mxu1 %v26789_v33  ;;  %14129 = vmatprep.mubr.f32.mxu0 %v26800_v53  ;;  %v26813_v33 = vand.u32 4294901760, %v21949_v63  ;;  %v26816_v63 = vand.u32 4294901760, %v26648_v26  ;;  %v26830_v26 = vand.u32 4294901760, %v26531_v48  ;;  %v26838_v48 = vld [vmem:[#allocation257_spill] sm:$0xff]  ;;  %v26894_v22 = vld [vmem:[#allocation228_spill] sm:$0xff]  ;;  %v26906_v0 = vld [vmem:[#allocation206_spill] sm:$0xff] }
 0x770   : > { %14705 = vmatprep.mubr.f32.mxu1 %v26800_v53  ;;  %15474 = vmatpush3.bf16.xpose.msra.mxu0 %v15473_v17  ;;  %v26818_v17 = vld [vmem:[#allocation247_spill] sm:$0xff] }
 0x771   : > { %15666 = vmatpush3.bf16.xpose.msra.mxu1 %v15665_v30  ;;  %15476 = vmatprep.subr.bf16.mxu0 %v15475_v52  ;;  %v15671_v16 = vpack.c.bf16 %v26813_v33, %v26812_v2  ;;  %v15481_v49 = vpack.c.bf16 %v26817_v37, %v26816_v63  ;;  %v26819_v15 = vand.u32 4294901760, %v26818_v17  ;;  %v26822_v30 = vand.u32 4294901760, %v26522_v9  ;;  %v26863_v17 = vld [vmem:[#allocation297_spill] sm:$0xff] }
 0x772   : > { %15668 = vmatprep.subr.bf16.mxu1 %v15667_v5  ;;  %14130 = vmatmul.mubr.f32.gmra.mrb[10].mxu0 %v26800_v53  ;;  %v26824_v52 = vand.u32 4294901760, %v22066_v12  ;;  %v26827_v12 = vld [vmem:[#allocation249_spill] sm:$0xff]  ;;  %v26828_v9 = vand.u32 4294901760, %v26656_v45  ;;  %v26831_v5 = vld [vmem:[#allocation266_spill] sm:$0xff]  ;;  %v26837_v45 = vld [vmem:[#allocation295_spill] sm:$0xff]  ;;  %v26848_v2 = vand.u32 4294901760, %v22417_v55 }
 0x773   : > { %14706 = vmatmul.mubr.f32.gmra.mrb[10].mxu1 %v26800_v53  ;;  %14131 = vmatprep.mubr.f32.mxu0 %v26801_v4  ;;  %v15673_v41 = vpack.c.bf16 %v26821_v34, %v26819_v15  ;;  %v15483_v39 = vpack.c.bf16 %v26823_v1, %v26822_v30  ;;  %v26832_v53 = vand.u32 4294901760, %v26831_v5  ;;  %v26849_v33 = vand.u32 4294901760, %v22482_v32  ;;  %v26864_v15 = vld [vmem:[#allocation299_spill] sm:$0xff]  ;;  %v26868_v30 = vld [vmem:[#allocation254_spill] sm:$0xff]  ;;  %v26869_v1 = vld [vmem:[#allocation305_spill] sm:$0xff] }
 0x774   : > { %14707 = vmatprep.mubr.f32.mxu1 %v26801_v4  ;;  %v15675_v56 = vpack.c.bf16 %v26825_v23, %v26824_v52  ;;  %v15485_v54 = vpack.c.bf16 %v26829_v10, %v26828_v9  ;;  %v26852_v55 = vand.u32 4294901760, %v22443_v28  ;;  %v26853_v32 = vand.u32 4294901760, %v26665_v42  ;;  %v26858_v42 = vld [vmem:[#allocation270_spill] sm:$0xff]  ;;  %v26866_v34 = vld [vmem:[#allocation239_spill] sm:$0xff]  ;;  %v26872_v23 = vld [vmem:[#allocation313_spill] sm:$0xff] }
 0x775   : > { %v26860_v28 = vld [vmem:[#allocation186_spill] sm:$0xff]  ;;  %v26871_v52 = vld [vmem:[#allocation311_spill] sm:$0xff]  ;;  %v26880_v9 = vld [vmem:[#allocation164_spill] sm:$0xff] }
 0x776   : > { %14132 = vmatmul.mubr.f32.gmra.mrb[12].mxu0 %v26801_v4  ;;  %v15493_v60 = vpack.c.bf16 %v26853_v32, %v26852_v55  ;;  %v26882_v10 = vld [vmem:[#allocation165_spill] sm:$0xff]  ;;  %v26886_v5 = vld [vmem:[#allocation166_spill] sm:$0xff]  ;;  %v26928_v55 = vld [vmem:[#allocation292_spill] sm:$0xff] }
 0x777   : > { %14708 = vmatmul.mubr.f32.gmra.mrb[12].mxu1 %v26801_v4  ;;  %14133 = vmatprep.mubr.f32.mxu0 %v26814_v29  ;;  %v15677_v4 = vpack.c.bf16 %v26832_v53, %v26830_v26  ;;  %v26885_v26 = vld [vmem:[#allocation215_spill] sm:$0xff]  ;;  %v26929_v32 = vld [vmem:[#allocation294_spill] sm:$0xff] }
 0x778   : > { %14709 = vmatprep.mubr.f32.mxu1 %v26814_v29  ;;  %15478 = vmatpush3.bf16.xpose.msra.mxu0 %v15477_v21  ;;  %v26836_v21 = vand.u32 4294901760, %v26543_v6  ;;  %v26841_v6 = vand.u32 4294901760, %v22226_v46  ;;  %v26851_v46 = vld [vmem:[#allocation272_spill] sm:$0xff]  ;;  %v26888_v53 = vld [vmem:[#allocation175_spill] sm:$0xff] }
 0x779   : > { %15670 = vmatpush3.bf16.xpose.msra.mxu1 %v15669_v61  ;;  %15480 = vmatprep.subr.bf16.mxu0 %v15479_v51  ;;  %v26845_v61 = vand.u32 4294901760, %v26844_v13 }
 0x77a   : > { %15672 = vmatprep.subr.bf16.mxu1 %v15671_v16  ;;  %14134 = vmatmul.mubr.f32.gmra.mrb[14].mxu0 %v26814_v29  ;;  %v15679_v7 = vpack.c.bf16 %v26836_v21, %v26835_v8  ;;  %v15681_v44 = vpack.c.bf16 %v26843_v40, %v26841_v6  ;;  %v15683_v16 = vpack.c.bf16 %v26849_v33, %v26848_v2  ;;  %v26896_v8 = vld [vmem:[#allocation187_spill] sm:$0xff]  ;;  %v26898_v21 = vld [vmem:[#allocation190_spill] sm:$0xff]  ;;  %v26910_v6 = vld [vmem:[#allocation221_spill] sm:$0xff] }
 0x77b   : > { %14710 = vmatmul.mubr.f32.gmra.mrb[14].mxu1 %v26814_v29  ;;  %14135 = vmatprep.mubr.f32.mxu0 %v26815_v31  ;;  %v15491_v51 = vpack.c.bf16 %v26847_v43, %v26845_v61  ;;  %v26854_v29 = vand.u32 4294901760, %v26666_v35  ;;  %v26859_v35 = vld [vmem:[#allocation271_spill] sm:$0xff]  ;;  %v26920_v43 = vld [vmem:[#allocation242_spill] sm:$0xff]  ;;  %v26923_v2 = vld [vmem:[#allocation277_spill] sm:$0xff] }
 0x77c   : > { %14711 = vmatprep.mubr.f32.mxu1 %v26815_v31  ;;  %v26914_v40 = vld [vmem:[#allocation259_spill] sm:$0xff] }
 0x77e   : > { %14136 = vmatmul.mubr.f32.gmra.mrb[16].mxu0 %v26815_v31 }
 0x77f   : > { %14712 = vmatmul.mubr.f32.gmra.mrb[16].mxu1 %v26815_v31  ;;  %14137 = vmatprep.mubr.f32.mxu0 %v26826_v47  ;;  %v26855_v31 = vld [vmem:[#allocation273_spill] sm:$0xff] }
 0x780   : > { %14713 = vmatprep.mubr.f32.mxu1 %v26826_v47  ;;  %15482 = vmatpush3.bf16.xpose.msra.mxu0 %v15481_v49  ;;  %v26856_v63 = vand.u32 4294901760, %v26855_v31  ;;  %v26857_v49 = vld [vmem:[#allocation275_spill] sm:$0xff]  ;;  %v26932_v31 = vld [vmem:[#allocation177_spill] sm:$0xff] }
 0x781   : > { %15674 = vmatpush3.bf16.xpose.msra.mxu1 %v15673_v41  ;;  %15484 = vmatprep.subr.bf16.mxu0 %v15483_v39  ;;  %v26867_v41 = vld [vmem:[#allocation303_spill] sm:$0xff]  ;;  %v26870_v39 = vld [vmem:[#allocation308_spill] sm:$0xff] }
 0x782   : > { %15676 = vmatprep.subr.bf16.mxu1 %v15675_v56  ;;  %14138 = vmatmul.mubr.f32.gmra.mrb[18].mxu0 %v26826_v47  ;;  %v15685_v37 = vpack.c.bf16 %v26856_v63, %v26854_v29  ;;  %v26873_v56 = vld [vmem:[#allocation314_spill] sm:$0xff]  ;;  %v26931_v29 = vld [vmem:[#allocation176_spill] sm:$0xff] }
 0x783   : > { %14714 = vmatmul.mubr.f32.gmra.mrb[18].mxu1 %v26826_v47  ;;  %14139 = vmatprep.mubr.f32.mxu0 %v26827_v12  ;;  %v26874_v47 = vld [vmem:[#allocation279_spill] sm:$0xff]  ;;  %v26935_v63 = vld [vmem:[#allocation172_spill] sm:$0xff] }
 0x784   : > { %14715 = vmatprep.mubr.f32.mxu1 %v26827_v12 }
 0x786   : > { %14140 = vmatmul.mubr.f32.gmra.mrb[20].mxu0 %v26827_v12 }
 0x787   : > { %14716 = vmatmul.mubr.f32.gmra.mrb[20].mxu1 %v26827_v12  ;;  %14141 = vmatprep.mubr.f32.mxu0 %v26837_v45  ;;  %v26875_v12 = vld [vmem:[#allocation180_spill] sm:$0xff] }
 0x788   : > { %14717 = vmatprep.mubr.f32.mxu1 %v26837_v45  ;;  %15486 = vmatpush3.bf16.xpose.msra.mxu0 %v15485_v54  ;;  %v26884_v54 = vld [vmem:[#allocation210_spill] sm:$0xff] }
 0x789   : > { %15678 = vmatpush3.bf16.xpose.msra.mxu1 %v15677_v4  ;;  %15488 = vmatprep.subr.bf16.mxu0 %v15487_v25  ;;  %v26890_v4 = vld [vmem:[#allocation179_spill] sm:$0xff]  ;;  %v26895_v25 = vld [vmem:[#allocation229_spill] sm:$0xff] }
 0x78a   : > { %15680 = vmatprep.subr.bf16.mxu1 %v15679_v7  ;;  %14142 = vmatmul.mubr.f32.gmra.mrb[22].mxu0 %v26837_v45  ;;  %v26900_v7 = vld [vmem:[#allocation197_spill] sm:$0xff] }
 0x78b   : > { %14718 = vmatmul.mubr.f32.gmra.mrb[22].mxu1 %v26837_v45  ;;  %14143 = vmatprep.mubr.f32.mxu0 %v26838_v48  ;;  %v26902_v45 = vld [vmem:[#allocation202_spill] sm:$0xff] }
 0x78c   : > { %14719 = vmatprep.mubr.f32.mxu1 %v26838_v48 }
 0x78e   : > { %14144 = vmatmul.mubr.f32.gmra.mrb[24].mxu0 %v26838_v48 }
 0x78f   : > { %14720 = vmatmul.mubr.f32.gmra.mrb[24].mxu1 %v26838_v48  ;;  %14145 = vmatprep.mubr.f32.mxu0 %v26850_v58  ;;  %v26904_v48 = vld [vmem:[#allocation243_spill] sm:$0xff] }
 0x790   : > { %14721 = vmatprep.mubr.f32.mxu1 %v26850_v58  ;;  %15490 = vmatpush3.bf16.xpose.msra.mxu0 %v15489_v59  ;;  %v26908_v59 = vld [vmem:[#allocation216_spill] sm:$0xff] }
 0x791   : > { %15682 = vmatpush3.bf16.xpose.msra.mxu1 %v15681_v44  ;;  %15492 = vmatprep.subr.bf16.mxu0 %v15491_v51  ;;  %v26915_v44 = vld [vmem:[#allocation263_spill] sm:$0xff]  ;;  %v26922_v51 = vld [vmem:[#allocation276_spill] sm:$0xff] }
 0x792   : > { %15684 = vmatprep.subr.bf16.mxu1 %v15683_v16  ;;  %14146 = vmatmul.mubr.f32.gmra.mrb[26].mxu0 %v26850_v58 }
 0x793   : > { %14722 = vmatmul.mubr.f32.gmra.mrb[26].mxu1 %v26850_v58  ;;  %14147 = vmatprep.mubr.f32.mxu0 %v26851_v46 }
 0x794   : > { %14723 = vmatprep.mubr.f32.mxu1 %v26851_v46 }
 0x796   : > { %14148 = vmatmul.mubr.f32.gmra.mrb[28].mxu0 %v26851_v46 }
 0x797   : > { %14724 = vmatmul.mubr.f32.gmra.mrb[28].mxu1 %v26851_v46  ;;  %14149 = vmatprep.mubr.f32.mxu0 %v26857_v49 }
 0x798   : > { %14725 = vmatprep.mubr.f32.mxu1 %v26857_v49  ;;  %15494 = vmatpush3.bf16.xpose.msra.mxu0 %v15493_v60 }
 0x799   : > { %15686 = vmatpush3.bf16.xpose.msra.mxu1 %v15685_v37  ;;  %15496 = vmatprep.subr.msk.bf16.mxu0 %vm20942_vm3, %v26669_v3  ;;  %vm26881_vm3 = vnez %v26880_v9  ;;  %v26936_v37 = vld [vmem:[#allocation173_spill] sm:$0xff] }
 0x79a   : > { %15688 = vmatprep.subr.msk.bf16.mxu1 %vm20965_vm6, %v26669_v3  ;;  %14150 = vmatmul.mubr.f32.gmra.mrb[30].mxu0 %v26857_v49  ;;  %vm26883_vm6 = vnez %v26882_v10 }
 0x79b   : > { %14726 = vmatmul.mubr.f32.gmra.mrb[30].mxu1 %v26857_v49  ;;  %14151 = vmatprep.mubr.f32.mxu0 %v26858_v42  ;;  %v26937_v49 = vld [vmem:[#allocation233_spill] sm:$0xff] }
 0x79c   : > { %14727 = vmatprep.mubr.f32.mxu1 %v26858_v42 }
 0x79e   : > { %14152 = vmatmul.mubr.f32.gmra.mrb[32].mxu0 %v26858_v42 }
 0x79f   : > { %14728 = vmatmul.mubr.f32.gmra.mrb[32].mxu1 %v26858_v42  ;;  %14153 = vmatprep.mubr.f32.mxu0 %v26859_v35  ;;  %v26938_v42 = vld [vmem:[#allocation296_spill] sm:$0xff] }
 0x7a0   : > { %14729 = vmatprep.mubr.f32.mxu1 %v26859_v35 }
 0x7a2   : > { %14154 = vmatmul.mubr.f32.gmra.mrb[34].mxu0 %v26859_v35 }
 0x7a3   : > { %14730 = vmatmul.mubr.f32.gmra.mrb[34].mxu1 %v26859_v35  ;;  %14155 = vmatprep.mubr.f32.mxu0 %v26860_v28  ;;  %v26939_v35 = vld [vmem:[#allocation213_spill] sm:$0xff] }
 0x7a4   : > { %14731 = vmatprep.mubr.f32.mxu1 %v26860_v28 }
 0x7a6   : > { %14156 = vmatmul.mubr.f32.gmra.mrb[36].mxu0 %v26860_v28 }
 0x7a7   : > { %14732 = vmatmul.mubr.f32.gmra.mrb[36].mxu1 %v26860_v28  ;;  %14157 = vmatprep.mubr.f32.mxu0 %v26861_v62  ;;  %v26940_v28 = vld [vmem:[#allocation214_spill] sm:$0xff] }
 0x7a8   : > { %14733 = vmatprep.mubr.f32.mxu1 %v26861_v62 }
 0x7aa   : > { %14158 = vmatmul.mubr.f32.gmra.mrb[38].mxu0 %v26861_v62 }
 0x7ab   : > { %14734 = vmatmul.mubr.f32.gmra.mrb[38].mxu1 %v26861_v62  ;;  %14159 = vmatprep.mubr.f32.mxu0 %v26862_v50  ;;  %v26941_v62 = vld [vmem:[#allocation238_spill] sm:$0xff] }
 0x7ac   : > { %14735 = vmatprep.mubr.f32.mxu1 %v26862_v50 }
 0x7ae   : > { %14160 = vmatmul.mubr.f32.gmra.mrb[40].mxu0 %v26862_v50 }
 0x7af   : > { %14736 = vmatmul.mubr.f32.gmra.mrb[40].mxu1 %v26862_v50  ;;  %14161 = vmatprep.mubr.f32.mxu0 %v26863_v17  ;;  %v26942_v50 = vld [vmem:[#allocation302_spill] sm:$0xff] }
 0x7b0   : > { %14737 = vmatprep.mubr.f32.mxu1 %v26863_v17 }
 0x7b2   : > { %14162 = vmatmul.mubr.f32.gmra.mrb[42].mxu0 %v26863_v17 }
 0x7b3   : > { %14738 = vmatmul.mubr.f32.gmra.mrb[42].mxu1 %v26863_v17  ;;  %14163 = vmatprep.mubr.f32.mxu0 %v26864_v15  ;;  %v26943_v17 = vld [vmem:[#allocation253_spill] sm:$0xff] }
 0x7b4   : > { %14739 = vmatprep.mubr.f32.mxu1 %v26864_v15 }
 0x7b6   : > { %14164 = vmatmul.mubr.f32.gmra.mrb[44].mxu0 %v26864_v15 }
 0x7b7   : > { %14740 = vmatmul.mubr.f32.gmra.mrb[44].mxu1 %v26864_v15  ;;  %14165 = vmatprep.mubr.f32.mxu0 %v26865_v36  ;;  %v26944_v15 = vld [vmem:[#allocation304_spill] sm:$0xff] }
 0x7b8   : > { %14741 = vmatprep.mubr.f32.mxu1 %v26865_v36 }
 0x7ba   : > { %14166 = vmatmul.mubr.f32.gmra.mrb[46].mxu0 %v26865_v36 }
 0x7bb   : > { %14742 = vmatmul.mubr.f32.gmra.mrb[46].mxu1 %v26865_v36  ;;  %14167 = vmatprep.mubr.f32.mxu0 %v26866_v34  ;;  %v26945_v36 = vld [vmem:[#allocation307_spill] sm:$0xff] }
 0x7bc   : > { %14743 = vmatprep.mubr.f32.mxu1 %v26866_v34 }
 0x7be   : > { %14168 = vmatmul.mubr.f32.gmra.mrb[48].mxu0 %v26866_v34 }
 0x7bf   : > { %14744 = vmatmul.mubr.f32.gmra.mrb[48].mxu1 %v26866_v34  ;;  %14169 = vmatprep.mubr.f32.mxu0 %v26867_v41  ;;  %v26946_v34 = vld [vmem:[#allocation309_spill] sm:$0xff] }
 0x7c0   : > { %14745 = vmatprep.mubr.f32.mxu1 %v26867_v41 }
 0x7c2   : > { %14170 = vmatmul.mubr.f32.gmra.mrb[50].mxu0 %v26867_v41 }
 0x7c3   : > { %14746 = vmatmul.mubr.f32.gmra.mrb[50].mxu1 %v26867_v41  ;;  %14171 = vmatprep.mubr.f32.mxu0 %v26868_v30 }
 0x7c4   : > { %14747 = vmatprep.mubr.f32.mxu1 %v26868_v30 }
 0x7c6   : > { %14172 = vmatmul.mubr.f32.gmra.mrb[52].mxu0 %v26868_v30 }
 0x7c7   : > { %14748 = vmatmul.mubr.f32.gmra.mrb[52].mxu1 %v26868_v30  ;;  %14173 = vmatprep.mubr.f32.mxu0 %v26869_v1 }
 0x7c8   : > { %14749 = vmatprep.mubr.f32.mxu1 %v26869_v1 }
 0x7ca   : > { %14174 = vmatmul.mubr.f32.gmra.mrb[54].mxu0 %v26869_v1 }
 0x7cb   : > { %14750 = vmatmul.mubr.f32.gmra.mrb[54].mxu1 %v26869_v1  ;;  %14175 = vmatprep.mubr.f32.mxu0 %v26870_v39  ;;  %v26947_v1 = vld [vmem:[#allocation38_spill] sm:$0xff] }
 0x7cc   : > { %14751 = vmatprep.mubr.f32.mxu1 %v26870_v39 }
 0x7ce   : > { %14176 = vmatmul.mubr.f32.gmra.mrb[56].mxu0 %v26870_v39 }
 0x7cf   : > { %14752 = vmatmul.mubr.f32.gmra.mrb[56].mxu1 %v26870_v39  ;;  %14177 = vmatprep.mubr.f32.mxu0 %v26871_v52 }
 0x7d0   : > { %14753 = vmatprep.mubr.f32.mxu1 %v26871_v52 }
 0x7d2   : > { %14178 = vmatmul.mubr.f32.gmra.mrb[58].mxu0 %v26871_v52 }
 0x7d3   : > { %14754 = vmatmul.mubr.f32.gmra.mrb[58].mxu1 %v26871_v52  ;;  %14179 = vmatprep.mubr.f32.mxu0 %v26872_v23  ;;  %v26948_v52 = vld [vmem:[#allocation44_spill] sm:$0xff] }
 0x7d4   : > { %14755 = vmatprep.mubr.f32.mxu1 %v26872_v23 }
 0x7d6   : > { %14180 = vmatmul.mubr.f32.gmra.mrb[60].mxu0 %v26872_v23 }
 0x7d7   : > { %14756 = vmatmul.mubr.f32.gmra.mrb[60].mxu1 %v26872_v23  ;;  %14181 = vmatprep.mubr.f32.mxu0 %v26873_v56 }
 0x7d8   : > { %14757 = vmatprep.mubr.f32.mxu1 %v26873_v56 }
 0x7da   : > { %14182 = vmatmul.mubr.f32.gmra.mrb[62].mxu0 %v26873_v56 }
 0x7db   : > { %14758 = vmatmul.mubr.f32.gmra.mrb[62].mxu1 %v26873_v56  ;;  %14215 = vmatprep.mubr.f32.mxu0 %v26874_v47 }
 0x7dc   : > { %14791 = vmatprep.mubr.f32.mxu1 %v26874_v47 }
 0x7de   : > { %14216 = vmatmul.mubr.f32.vlgmr.msra.gmra.mrb[0].mxu0 %v26874_v47 }
 0x7df   : > { %14792 = vmatmul.mubr.f32.vlgmr.msra.gmra.mrb[0].mxu1 %v26874_v47  ;;  %15498 = vmatpush3.bf16.xpose.msk.msra.mxu0 %vm20987_vm10, %v26669_v3  ;;  %vm26889_vm10 = vnez %v26888_v53 }
 0x7e0   : > { %15690 = vmatpush3.bf16.xpose.msk.msra.mxu1 %vm21002_vm12, %v26669_v3  ;;  %14217 = vmatprep.mubr.f32.mxu0 %v26875_v12  ;;  %vm26891_vm12 = vnez %v26890_v4 }
 0x7e1   : > { %14793 = vmatprep.mubr.f32.mxu1 %v26875_v12  ;;  %15500 = vmatprep.subr.msk.bf16.mxu0 %vm21028_vm15, %v26669_v3  ;;  %vm26899_vm15 = vnez %v26898_v21 }
 0x7e2   : > { %15692 = vmatprep.subr.msk.bf16.mxu1 %vm21054_vm13, %v26669_v3  ;;  %14218 = vmatmul.mubr.f32.gmra.mrb[2].mxu0 %v26875_v12  ;;  %vm26893_vm13 = vnez %v26892_v57  ;;  %v26951_v57 = vld [vmem:[#allocation49_spill] sm:$0xff] }
 0x7e3   : > { %14794 = vmatmul.mubr.f32.gmra.mrb[2].mxu1 %v26875_v12  ;;  %14219 = vmatprep.mubr.f32.mxu0 %v26876_v38 }
 0x7e4   : > { %14795 = vmatprep.mubr.f32.mxu1 %v26876_v38 }
 0x7e6   : > { %14220 = vmatmul.mubr.f32.gmra.mrb[4].mxu0 %v26876_v38 }
 0x7e7   : > { %14796 = vmatmul.mubr.f32.gmra.mrb[4].mxu1 %v26876_v38  ;;  %14221 = vmatprep.mubr.f32.mxu0 %v26877_v27 }
 0x7e8   : > { %14797 = vmatprep.mubr.f32.mxu1 %v26877_v27  ;;  %15502 = vmatpush3.bf16.xpose.msk.msra.mxu0 %vm21077_vm14, %v26669_v3  ;;  %vm26897_vm14 = vnez %v26896_v8 }
 0x7e9   : > { %15694 = vmatpush3.bf16.xpose.msk.msra.mxu1 %vm21094_vm4, %v26669_v3  ;;  %15504 = vmatprep.subr.msk.bf16.mxu0 %vm26881_vm3, %v26669_v3  ;;  %vm26887_vm4 = vnez %v26886_v5  ;;  %vm26901_vm3 = vnez %v26900_v7 }
 0x7ea   : > { %15696 = vmatprep.subr.msk.bf16.mxu1 %vm26883_vm6, %v26669_v3  ;;  %14222 = vmatmul.mubr.f32.gmra.mrb[6].mxu0 %v26877_v27  ;;  %vm26903_vm6 = vnez %v26902_v45 }
 0x7eb   : > { %14798 = vmatmul.mubr.f32.gmra.mrb[6].mxu1 %v26877_v27  ;;  %14223 = vmatprep.mubr.f32.mxu0 %v26884_v54 }
 0x7ec   : > { %14799 = vmatprep.mubr.f32.mxu1 %v26884_v54 }
 0x7ee   : > { %14224 = vmatmul.mubr.f32.gmra.mrb[8].mxu0 %v26884_v54 }
 0x7ef   : > { %14800 = vmatmul.mubr.f32.gmra.mrb[8].mxu1 %v26884_v54  ;;  %14225 = vmatprep.mubr.f32.mxu0 %v26885_v26 }
 0x7f0   : > { %14801 = vmatprep.mubr.f32.mxu1 %v26885_v26  ;;  %15506 = vmatpush3.bf16.xpose.msk.msra.mxu0 %vm26887_vm4, %v26669_v3  ;;  %vm26907_vm4 = vnez %v26906_v0 }
 0x7f1   : > { %15698 = vmatpush3.bf16.xpose.msk.msra.mxu1 %vm26889_vm10, %v26669_v3  ;;  %15508 = vmatprep.subr.msk.bf16.mxu0 %vm26891_vm12, %v26669_v3  ;;  %vm26909_vm10 = vnez %v26908_v59  ;;  %vm26911_vm12 = vnez %v26910_v6  ;;  %v26954_v59 = vld [vmem:[#allocation8_spill] sm:$0xff] }
 0x7f2   : > { %15700 = vmatprep.subr.msk.bf16.mxu1 %vm26893_vm13, %v26669_v3  ;;  %14226 = vmatmul.mubr.f32.gmra.mrb[10].mxu0 %v26885_v26  ;;  %vm26913_vm13 = vnez %v26912_v14 }
 0x7f3   : > { %14802 = vmatmul.mubr.f32.gmra.mrb[10].mxu1 %v26885_v26  ;;  %14227 = vmatprep.mubr.f32.mxu0 %v26894_v22 }
 0x7f4   : > { %14803 = vmatprep.mubr.f32.mxu1 %v26894_v22 }
 0x7f6   : > { %14228 = vmatmul.mubr.f32.gmra.mrb[12].mxu0 %v26894_v22 }
 0x7f7   : > { %14804 = vmatmul.mubr.f32.gmra.mrb[12].mxu1 %v26894_v22  ;;  %14229 = vmatprep.mubr.f32.mxu0 %v26895_v25 }
 0x7f8   : > { %14805 = vmatprep.mubr.f32.mxu1 %v26895_v25  ;;  %15510 = vmatpush3.bf16.xpose.msk.msra.mxu0 %vm26897_vm14, %v26669_v3  ;;  %vm26919_vm14 = vnez %v26918_v24 }
 0x7f9   : > { %15702 = vmatpush3.bf16.xpose.msk.msra.mxu1 %vm26899_vm15, %v26669_v3  ;;  %15512 = vmatprep.subr.msk.bf16.mxu0 %vm26901_vm3, %v26669_v3  ;;  %vm26921_vm15 = vnez %v26920_v43 }
 0x7fa   : > { %15704 = vmatprep.subr.msk.bf16.mxu1 %vm26903_vm6, %v26669_v3  ;;  %14230 = vmatmul.mubr.f32.gmra.mrb[14].mxu0 %v26895_v25 }
 0x7fb   : > { %14806 = vmatmul.mubr.f32.gmra.mrb[14].mxu1 %v26895_v25  ;;  %14231 = vmatprep.mubr.f32.mxu0 %v26904_v48 }
 0x7fc   : > { %14807 = vmatprep.mubr.f32.mxu1 %v26904_v48 }
 0x7fe   : > { %14232 = vmatmul.mubr.f32.gmra.mrb[16].mxu0 %v26904_v48 }
 0x7ff   : > { %14808 = vmatmul.mubr.f32.gmra.mrb[16].mxu1 %v26904_v48  ;;  %14233 = vmatprep.mubr.f32.mxu0 %v26905_v19 }
 0x800   : > { %14809 = vmatprep.mubr.f32.mxu1 %v26905_v19  ;;  %15514 = vmatpush3.bf16.xpose.msk.msra.mxu0 %vm26907_vm4, %v26669_v3 }
 0x801   : > { %15706 = vmatpush3.bf16.xpose.msk.msra.mxu1 %vm26909_vm10, %v26669_v3  ;;  %15516 = vmatprep.subr.msk.bf16.mxu0 %vm26911_vm12, %v26669_v3 }
 0x802   : > { %15708 = vmatprep.subr.msk.bf16.mxu1 %vm26913_vm13, %v26669_v3  ;;  %14234 = vmatmul.mubr.f32.gmra.mrb[18].mxu0 %v26905_v19 }
 0x803   : > { %14810 = vmatmul.mubr.f32.gmra.mrb[18].mxu1 %v26905_v19  ;;  %14235 = vmatprep.mubr.f32.mxu0 %v26914_v40 }
 0x804   : > { %14811 = vmatprep.mubr.f32.mxu1 %v26914_v40 }
 0x806   : > { %14236 = vmatmul.mubr.f32.gmra.mrb[20].mxu0 %v26914_v40 }
 0x807   : > { %14812 = vmatmul.mubr.f32.gmra.mrb[20].mxu1 %v26914_v40  ;;  %14237 = vmatprep.mubr.f32.mxu0 %v26915_v44 }
 0x808   : > { %14813 = vmatprep.mubr.f32.mxu1 %v26915_v44  ;;  %15518 = vmatpush3.bf16.xpose.msk.msra.mxu0 %vm26723_vm1, %v26669_v3 }
 0x809   : > { %15710 = vmatpush3.bf16.xpose.msk.msra.mxu1 %vm26725_vm9, %v26669_v3  ;;  %15520 = vmatprep.subr.msk.bf16.mxu0 %vm26919_vm14, %v26669_v3 }
 0x80a   : > { %15712 = vmatprep.subr.msk.bf16.mxu1 %vm26921_vm15, %v26669_v3  ;;  %14238 = vmatmul.mubr.f32.gmra.mrb[22].mxu0 %v26915_v44 }
 0x80b   : > { %14814 = vmatmul.mubr.f32.gmra.mrb[22].mxu1 %v26915_v44  ;;  %14239 = vmatprep.mubr.f32.mxu0 %v26922_v51 }
 0x80c   : > { %14815 = vmatprep.mubr.f32.mxu1 %v26922_v51 }
 0x80e   : > { %14240 = vmatmul.mubr.f32.gmra.mrb[24].mxu0 %v26922_v51 }
 0x80f   : > { %14816 = vmatmul.mubr.f32.gmra.mrb[24].mxu1 %v26922_v51  ;;  %14241 = vmatprep.mubr.f32.mxu0 %v26923_v2 }
 0x810   : > { %14817 = vmatprep.mubr.f32.mxu1 %v26923_v2  ;;  %15522 = vmatpush3.bf16.xpose.msk.msra.mxu0 %vm26733_vm7, %v26669_v3 }
 0x811   : > { %15714 = vmatpush3.bf16.xpose.msk.msra.mxu1 %vm22005_vm0, %v26669_v3  ;;  %15524 = vmatprep.subr.msk.bf16.mxu0 %vm26736_vm2, %v26669_v3 }
 0x812   : > { %15716 = vmatprep.subr.msk.bf16.mxu1 %vm22097_vm5, %v26669_v3  ;;  %14242 = vmatmul.mubr.f32.gmra.mrb[26].mxu0 %v26923_v2 }
 0x813   : > { %14818 = vmatmul.mubr.f32.gmra.mrb[26].mxu1 %v26923_v2  ;;  %14243 = vmatprep.mubr.f32.mxu0 %v26928_v55 }
 0x814   : > { %14819 = vmatprep.mubr.f32.mxu1 %v26928_v55 }
 0x816   : > { %14244 = vmatmul.mubr.f32.gmra.mrb[28].mxu0 %v26928_v55 }
 0x817   : > { %14820 = vmatmul.mubr.f32.gmra.mrb[28].mxu1 %v26928_v55  ;;  %14245 = vmatprep.mubr.f32.mxu0 %v26929_v32 }
 0x818   : > { %14821 = vmatprep.mubr.f32.mxu1 %v26929_v32  ;;  %15526 = vmatpush3.bf16.xpose.msk.msra.mxu0 %vm22145_vm11, %v26669_v3 }
 0x819   : > { %15718 = vmatpush3.bf16.xpose.msk.msra.mxu1 %vm22184_vm8, %v26669_v3  ;;  %v26933_v3 = vld [vmem:[#allocation188_spill] sm:$0xff] }
 0x81a   : > { %14246 = vmatmul.mubr.f32.gmra.mrb[30].mxu0 %v26929_v32 }
 0x81b   : > { %14822 = vmatmul.mubr.f32.gmra.mrb[30].mxu1 %v26929_v32  ;;  %14247 = vmatprep.mubr.f32.mxu0 %v26931_v29 }
 0x81c   : > { %14823 = vmatprep.mubr.f32.mxu1 %v26931_v29 }
 0x81e   : > { %14248 = vmatmul.mubr.f32.gmra.mrb[32].mxu0 %v26931_v29 }
 0x81f   : > { %14824 = vmatmul.mubr.f32.gmra.mrb[32].mxu1 %v26931_v29  ;;  %14249 = vmatprep.mubr.f32.mxu0 %v26932_v31 }
 0x820   : > { %14825 = vmatprep.mubr.f32.mxu1 %v26932_v31 }
 0x822   : > { %14250 = vmatmul.mubr.f32.gmra.mrb[34].mxu0 %v26932_v31 }
 0x823   : > { %14826 = vmatmul.mubr.f32.gmra.mrb[34].mxu1 %v26932_v31  ;;  %14251 = vmatprep.mubr.f32.mxu0 %v26933_v3 }
 0x824   : > { %14827 = vmatprep.mubr.f32.mxu1 %v26933_v3 }
 0x826   : > { %14252 = vmatmul.mubr.f32.gmra.mrb[36].mxu0 %v26933_v3 }
 0x827   : > { %14828 = vmatmul.mubr.f32.gmra.mrb[36].mxu1 %v26933_v3  ;;  %14253 = vmatprep.mubr.f32.mxu0 %v26934_v11 }
 0x828   : > { %14829 = vmatprep.mubr.f32.mxu1 %v26934_v11 }
 0x82a   : > { %14254 = vmatmul.mubr.f32.gmra.mrb[38].mxu0 %v26934_v11 }
 0x82b   : > { %14830 = vmatmul.mubr.f32.gmra.mrb[38].mxu1 %v26934_v11  ;;  %14255 = vmatprep.mubr.f32.mxu0 %v26935_v63 }
 0x82c   : > { %14831 = vmatprep.mubr.f32.mxu1 %v26935_v63 }
 0x82e   : > { %14256 = vmatmul.mubr.f32.gmra.mrb[40].mxu0 %v26935_v63 }
 0x82f   : > { %14832 = vmatmul.mubr.f32.gmra.mrb[40].mxu1 %v26935_v63  ;;  %14257 = vmatprep.mubr.f32.mxu0 %v26936_v37 }
 0x830   : > { %14833 = vmatprep.mubr.f32.mxu1 %v26936_v37 }
 0x832   : > { %14258 = vmatmul.mubr.f32.gmra.mrb[42].mxu0 %v26936_v37 }
 0x833   : > { %14834 = vmatmul.mubr.f32.gmra.mrb[42].mxu1 %v26936_v37  ;;  %14259 = vmatprep.mubr.f32.mxu0 %v26937_v49 }
 0x834   : > { %14835 = vmatprep.mubr.f32.mxu1 %v26937_v49 }
 0x836   : > { %14260 = vmatmul.mubr.f32.gmra.mrb[44].mxu0 %v26937_v49 }
 0x837   : > { %14836 = vmatmul.mubr.f32.gmra.mrb[44].mxu1 %v26937_v49  ;;  %14261 = vmatprep.mubr.f32.mxu0 %v26938_v42 }
 0x838   : > { %14837 = vmatprep.mubr.f32.mxu1 %v26938_v42 }
 0x83a   : > { %14262 = vmatmul.mubr.f32.gmra.mrb[46].mxu0 %v26938_v42 }
 0x83b   : > { %14838 = vmatmul.mubr.f32.gmra.mrb[46].mxu1 %v26938_v42  ;;  %14263 = vmatprep.mubr.f32.mxu0 %v26939_v35 }
 0x83c   : > { %14839 = vmatprep.mubr.f32.mxu1 %v26939_v35 }
 0x83e   : > { %14264 = vmatmul.mubr.f32.gmra.mrb[48].mxu0 %v26939_v35 }
 0x83f   : > { %14840 = vmatmul.mubr.f32.gmra.mrb[48].mxu1 %v26939_v35  ;;  %14265 = vmatprep.mubr.f32.mxu0 %v26940_v28 }
 0x840   : > { %14841 = vmatprep.mubr.f32.mxu1 %v26940_v28 }
 0x842   : > { %14266 = vmatmul.mubr.f32.gmra.mrb[50].mxu0 %v26940_v28 }
 0x843   : > { %14842 = vmatmul.mubr.f32.gmra.mrb[50].mxu1 %v26940_v28  ;;  %14267 = vmatprep.mubr.f32.mxu0 %v26941_v62 }
 0x844   : > { %14843 = vmatprep.mubr.f32.mxu1 %v26941_v62 }
 0x846   : > { %14268 = vmatmul.mubr.f32.gmra.mrb[52].mxu0 %v26941_v62 }
 0x847   : > { %14844 = vmatmul.mubr.f32.gmra.mrb[52].mxu1 %v26941_v62  ;;  %14269 = vmatprep.mubr.f32.mxu0 %v26942_v50 }
 0x848   : > { %14845 = vmatprep.mubr.f32.mxu1 %v26942_v50 }
 0x84a   : > { %14270 = vmatmul.mubr.f32.gmra.mrb[54].mxu0 %v26942_v50 }
 0x84b   : > { %14846 = vmatmul.mubr.f32.gmra.mrb[54].mxu1 %v26942_v50  ;;  %14271 = vmatprep.mubr.f32.mxu0 %v26943_v17 }
 0x84c   : > { %14847 = vmatprep.mubr.f32.mxu1 %v26943_v17 }
 0x84e   : > { %14272 = vmatmul.mubr.f32.gmra.mrb[56].mxu0 %v26943_v17 }
 0x84f   : > { %14848 = vmatmul.mubr.f32.gmra.mrb[56].mxu1 %v26943_v17  ;;  %14273 = vmatprep.mubr.f32.mxu0 %v26944_v15 }
 0x850   : > { %14849 = vmatprep.mubr.f32.mxu1 %v26944_v15 }
 0x852   : > { %14274 = vmatmul.mubr.f32.gmra.mrb[58].mxu0 %v26944_v15 }
 0x853   : > { %14850 = vmatmul.mubr.f32.gmra.mrb[58].mxu1 %v26944_v15  ;;  %14275 = vmatprep.mubr.f32.mxu0 %v26945_v36 }
 0x854   : > { %14851 = vmatprep.mubr.f32.mxu1 %v26945_v36 }
 0x856   : > { %14276 = vmatmul.mubr.f32.gmra.mrb[60].mxu0 %v26945_v36 }
 0x857   : > { %14852 = vmatmul.mubr.f32.gmra.mrb[60].mxu1 %v26945_v36  ;;  %14277 = vmatprep.mubr.f32.mxu0 %v26946_v34 }
 0x858   : > { %14853 = vmatprep.mubr.f32.mxu1 %v26946_v34 }
 0x85a   : > { %14278 = vmatmul.mubr.f32.gmra.mrb[62].mxu0 %v26946_v34 }
 0x85b   : > { %14854 = vmatmul.mubr.f32.gmra.mrb[62].mxu1 %v26946_v34  ;;  %14311 = vmatprep.mubr.f32.mxu0 %v26874_v47 }
 0x85c   : > { %14887 = vmatprep.mubr.f32.mxu1 %v26874_v47 }
 0x85e   : > { %14312 = vmatmul.mubr.f32.vlgmr.msra.gmra.mrb[0].mxu0 %v26874_v47 }
 0x85f   : > { %14888 = vmatmul.mubr.f32.vlgmr.msra.gmra.mrb[0].mxu1 %v26874_v47  ;;  %14313 = vmatprep.mubr.f32.mxu0 %v26875_v12 }
 0x860   : > { %14889 = vmatprep.mubr.f32.mxu1 %v26875_v12 }
 0x862   : > { %14314 = vmatmul.mubr.f32.gmra.mrb[2].mxu0 %v26875_v12 }
 0x863   : > { %14890 = vmatmul.mubr.f32.gmra.mrb[2].mxu1 %v26875_v12  ;;  %14315 = vmatprep.mubr.f32.mxu0 %v26876_v38  ;;  %v26949_v12 = vld [vmem:[#allocation40_spill] sm:$0xff] }
 0x864   : > { %14891 = vmatprep.mubr.f32.mxu1 %v26876_v38 }
 0x866   : > { %14316 = vmatmul.mubr.f32.gmra.mrb[4].mxu0 %v26876_v38 }
 0x867   : > { %14892 = vmatmul.mubr.f32.gmra.mrb[4].mxu1 %v26876_v38  ;;  %14317 = vmatprep.mubr.f32.mxu0 %v26877_v27 }
 0x868   : > { %14893 = vmatprep.mubr.f32.mxu1 %v26877_v27 }
 0x86a   : > { %14318 = vmatmul.mubr.f32.gmra.mrb[6].mxu0 %v26877_v27 }
 0x86b   : > { %14894 = vmatmul.mubr.f32.gmra.mrb[6].mxu1 %v26877_v27  ;;  %14319 = vmatprep.mubr.f32.mxu0 %v26884_v54  ;;  %v26950_v27 = vld [vmem:[#allocation48_spill] sm:$0xff] }
 0x86c   : > { %14895 = vmatprep.mubr.f32.mxu1 %v26884_v54 }
 0x86e   : > { %14320 = vmatmul.mubr.f32.gmra.mrb[8].mxu0 %v26884_v54 }
 0x86f   : > { %14896 = vmatmul.mubr.f32.gmra.mrb[8].mxu1 %v26884_v54  ;;  %14321 = vmatprep.mubr.f32.mxu0 %v26885_v26 }
 0x870   : > { %14897 = vmatprep.mubr.f32.mxu1 %v26885_v26 }
 0x872   : > { %14322 = vmatmul.mubr.f32.gmra.mrb[10].mxu0 %v26885_v26 }
 0x873   : > { %14898 = vmatmul.mubr.f32.gmra.mrb[10].mxu1 %v26885_v26  ;;  %14323 = vmatprep.mubr.f32.mxu0 %v26894_v22 }
 0x874   : > { %14899 = vmatprep.mubr.f32.mxu1 %v26894_v22 }
 0x876   : > { %14324 = vmatmul.mubr.f32.gmra.mrb[12].mxu0 %v26894_v22 }
 0x877   : > { %14900 = vmatmul.mubr.f32.gmra.mrb[12].mxu1 %v26894_v22  ;;  %14325 = vmatprep.mubr.f32.mxu0 %v26895_v25 }
 0x878   : > { %14901 = vmatprep.mubr.f32.mxu1 %v26895_v25 }
 0x87a   : > { %14326 = vmatmul.mubr.f32.gmra.mrb[14].mxu0 %v26895_v25 }
 0x87b   : > { %14902 = vmatmul.mubr.f32.gmra.mrb[14].mxu1 %v26895_v25  ;;  %14327 = vmatprep.mubr.f32.mxu0 %v26904_v48  ;;  %v26952_v25 = vld [vmem:[#allocation52_spill] sm:$0xff] }
 0x87c   : > { %14903 = vmatprep.mubr.f32.mxu1 %v26904_v48 }
 0x87e   : > { %14328 = vmatmul.mubr.f32.gmra.mrb[16].mxu0 %v26904_v48 }
 0x87f   : > { %14904 = vmatmul.mubr.f32.gmra.mrb[16].mxu1 %v26904_v48  ;;  %14329 = vmatprep.mubr.f32.mxu0 %v26905_v19 }
 0x880   : > { %14905 = vmatprep.mubr.f32.mxu1 %v26905_v19 }
 0x882   : > { %14330 = vmatmul.mubr.f32.gmra.mrb[18].mxu0 %v26905_v19 }
 0x883   : > { %14906 = vmatmul.mubr.f32.gmra.mrb[18].mxu1 %v26905_v19  ;;  %14331 = vmatprep.mubr.f32.mxu0 %v26914_v40  ;;  %v26953_v19 = vld [vmem:[#allocation50_spill] sm:$0xff] }
 0x884   : > { %14907 = vmatprep.mubr.f32.mxu1 %v26914_v40 }
 0x886   : > { %14332 = vmatmul.mubr.f32.gmra.mrb[20].mxu0 %v26914_v40 }
 0x887   : > { %14908 = vmatmul.mubr.f32.gmra.mrb[20].mxu1 %v26914_v40  ;;  %14333 = vmatprep.mubr.f32.mxu0 %v26915_v44 }
 0x888   : > { %14909 = vmatprep.mubr.f32.mxu1 %v26915_v44 }
 0x88a   : > { %14334 = vmatmul.mubr.f32.gmra.mrb[22].mxu0 %v26915_v44 }
 0x88b   : > { %14910 = vmatmul.mubr.f32.gmra.mrb[22].mxu1 %v26915_v44  ;;  %14335 = vmatprep.mubr.f32.mxu0 %v26922_v51 }
 0x88c   : > { %14911 = vmatprep.mubr.f32.mxu1 %v26922_v51 }
 0x88e   : > { %14336 = vmatmul.mubr.f32.gmra.mrb[24].mxu0 %v26922_v51 }
 0x88f   : > { %14912 = vmatmul.mubr.f32.gmra.mrb[24].mxu1 %v26922_v51  ;;  %14337 = vmatprep.mubr.f32.mxu0 %v26923_v2 }
 0x890   : > { %14913 = vmatprep.mubr.f32.mxu1 %v26923_v2 }
 0x892   : > { %14338 = vmatmul.mubr.f32.gmra.mrb[26].mxu0 %v26923_v2 }
 0x893   : > { %14914 = vmatmul.mubr.f32.gmra.mrb[26].mxu1 %v26923_v2  ;;  %14339 = vmatprep.mubr.f32.mxu0 %v26928_v55  ;;  %v26955_v2 = vld [vmem:[#allocation12_spill] sm:$0xff] }
 0x894   : > { %14915 = vmatprep.mubr.f32.mxu1 %v26928_v55 }
 0x896   : > { %14340 = vmatmul.mubr.f32.gmra.mrb[28].mxu0 %v26928_v55 }
 0x897   : > { %14916 = vmatmul.mubr.f32.gmra.mrb[28].mxu1 %v26928_v55  ;;  %14341 = vmatprep.mubr.f32.mxu0 %v26929_v32 }
 0x898   : > { %14917 = vmatprep.mubr.f32.mxu1 %v26929_v32 }
 0x89a   : > { %14342 = vmatmul.mubr.f32.gmra.mrb[30].mxu0 %v26929_v32 }
 0x89b   : > { %14918 = vmatmul.mubr.f32.gmra.mrb[30].mxu1 %v26929_v32  ;;  %14343 = vmatprep.mubr.f32.mxu0 %v26931_v29  ;;  %v26956_v32 = vld [vmem:[#allocation14_spill] sm:$0xff] }
 0x89c   : > { %14919 = vmatprep.mubr.f32.mxu1 %v26931_v29 }
 0x89e   : > { %14344 = vmatmul.mubr.f32.gmra.mrb[32].mxu0 %v26931_v29 }
 0x89f   : > { %14920 = vmatmul.mubr.f32.gmra.mrb[32].mxu1 %v26931_v29  ;;  %14345 = vmatprep.mubr.f32.mxu0 %v26932_v31 }
 0x8a0   : > { %14921 = vmatprep.mubr.f32.mxu1 %v26932_v31 }
 0x8a2   : > { %14346 = vmatmul.mubr.f32.gmra.mrb[34].mxu0 %v26932_v31 }
 0x8a3   : > { %14922 = vmatmul.mubr.f32.gmra.mrb[34].mxu1 %v26932_v31  ;;  %14347 = vmatprep.mubr.f32.mxu0 %v26933_v3  ;;  %v26957_v31 = vld [vmem:[#allocation91_spill] sm:$0xff] }
 0x8a4   : > { %14923 = vmatprep.mubr.f32.mxu1 %v26933_v3 }
 0x8a6   : > { %14348 = vmatmul.mubr.f32.gmra.mrb[36].mxu0 %v26933_v3 }
 0x8a7   : > { %14924 = vmatmul.mubr.f32.gmra.mrb[36].mxu1 %v26933_v3  ;;  %14349 = vmatprep.mubr.f32.mxu0 %v26934_v11 }
 0x8a8   : > { %14925 = vmatprep.mubr.f32.mxu1 %v26934_v11 }
 0x8aa   : > { %14350 = vmatmul.mubr.f32.gmra.mrb[38].mxu0 %v26934_v11 }
 0x8ab   : > { %14926 = vmatmul.mubr.f32.gmra.mrb[38].mxu1 %v26934_v11  ;;  %14351 = vmatprep.mubr.f32.mxu0 %v26935_v63  ;;  %v26958_v11 = vld [vmem:[#allocation95_spill] sm:$0xff] }
 0x8ac   : > { %14927 = vmatprep.mubr.f32.mxu1 %v26935_v63 }
 0x8ae   : > { %14352 = vmatmul.mubr.f32.gmra.mrb[40].mxu0 %v26935_v63 }
 0x8af   : > { %14928 = vmatmul.mubr.f32.gmra.mrb[40].mxu1 %v26935_v63  ;;  %14353 = vmatprep.mubr.f32.mxu0 %v26936_v37 }
 0x8b0   : > { %14929 = vmatprep.mubr.f32.mxu1 %v26936_v37 }
 0x8b2   : > { %14354 = vmatmul.mubr.f32.gmra.mrb[42].mxu0 %v26936_v37 }
 0x8b3   : > { %14930 = vmatmul.mubr.f32.gmra.mrb[42].mxu1 %v26936_v37  ;;  %14355 = vmatprep.mubr.f32.mxu0 %v26937_v49 }
 0x8b4   : > { %14931 = vmatprep.mubr.f32.mxu1 %v26937_v49 }
 0x8b6   : > { %14356 = vmatmul.mubr.f32.gmra.mrb[44].mxu0 %v26937_v49 }
 0x8b7   : > { %14932 = vmatmul.mubr.f32.gmra.mrb[44].mxu1 %v26937_v49  ;;  %14357 = vmatprep.mubr.f32.mxu0 %v26938_v42 }
 0x8b8   : > { %14933 = vmatprep.mubr.f32.mxu1 %v26938_v42 }
 0x8ba   : > { %14358 = vmatmul.mubr.f32.gmra.mrb[46].mxu0 %v26938_v42 }
 0x8bb   : > { %14934 = vmatmul.mubr.f32.gmra.mrb[46].mxu1 %v26938_v42  ;;  %14359 = vmatprep.mubr.f32.mxu0 %v26939_v35 }
 0x8bc   : > { %14935 = vmatprep.mubr.f32.mxu1 %v26939_v35 }
 0x8be   : > { %14360 = vmatmul.mubr.f32.gmra.mrb[48].mxu0 %v26939_v35 }
 0x8bf   : > { %14936 = vmatmul.mubr.f32.gmra.mrb[48].mxu1 %v26939_v35  ;;  %14361 = vmatprep.mubr.f32.mxu0 %v26940_v28 }
 0x8c0   : > { %14937 = vmatprep.mubr.f32.mxu1 %v26940_v28 }
 0x8c2   : > { %14362 = vmatmul.mubr.f32.gmra.mrb[50].mxu0 %v26940_v28 }
 0x8c3   : > { %14938 = vmatmul.mubr.f32.gmra.mrb[50].mxu1 %v26940_v28  ;;  %14363 = vmatprep.mubr.f32.mxu0 %v26941_v62 }
 0x8c4   : > { %14939 = vmatprep.mubr.f32.mxu1 %v26941_v62 }
 0x8c6   : > { %14364 = vmatmul.mubr.f32.gmra.mrb[52].mxu0 %v26941_v62 }
 0x8c7   : > { %14940 = vmatmul.mubr.f32.gmra.mrb[52].mxu1 %v26941_v62  ;;  %14365 = vmatprep.mubr.f32.mxu0 %v26942_v50 }
 0x8c8   : > { %14941 = vmatprep.mubr.f32.mxu1 %v26942_v50 }
 0x8ca   : > { %14366 = vmatmul.mubr.f32.gmra.mrb[54].mxu0 %v26942_v50 }
 0x8cb   : > { %14942 = vmatmul.mubr.f32.gmra.mrb[54].mxu1 %v26942_v50  ;;  %14367 = vmatprep.mubr.f32.mxu0 %v26943_v17 }
 0x8cc   : > { %14943 = vmatprep.mubr.f32.mxu1 %v26943_v17 }
 0x8ce   : > { %14368 = vmatmul.mubr.f32.gmra.mrb[56].mxu0 %v26943_v17 }
 0x8cf   : > { %14944 = vmatmul.mubr.f32.gmra.mrb[56].mxu1 %v26943_v17  ;;  %14369 = vmatprep.mubr.f32.mxu0 %v26944_v15 }
 0x8d0   : > { %14945 = vmatprep.mubr.f32.mxu1 %v26944_v15 }
 0x8d2   : > { %14370 = vmatmul.mubr.f32.gmra.mrb[58].mxu0 %v26944_v15 }
 0x8d3   : > { %14946 = vmatmul.mubr.f32.gmra.mrb[58].mxu1 %v26944_v15  ;;  %14371 = vmatprep.mubr.f32.mxu0 %v26945_v36 }
 0x8d4   : > { %14947 = vmatprep.mubr.f32.mxu1 %v26945_v36 }
 0x8d6   : > { %14372 = vmatmul.mubr.f32.gmra.mrb[60].mxu0 %v26945_v36 }
 0x8d7   : > { %14948 = vmatmul.mubr.f32.gmra.mrb[60].mxu1 %v26945_v36  ;;  %14373 = vmatprep.mubr.f32.mxu0 %v26946_v34 }
 0x8d8   : > { %14949 = vmatprep.mubr.f32.mxu1 %v26946_v34 }
 0x8da   : > { %14374 = vmatmul.mubr.f32.gmra.mrb[62].mxu0 %v26946_v34 }
 0x8db   : > { %14950 = vmatmul.mubr.f32.gmra.mrb[62].mxu1 %v26946_v34 }
 0x931   : > { %v8771_v41 = vpop.f32.mrb[0].mxu0 }
 0x932   : > { %v11145_v30 = vpop.f32.mrb[0].mxu1  ;;  %v11367_v39 = vadd.f32 %v8771_v41, %v26947_v1  ;;  %v8773_v56 = vpop.f32.mrb[1].mxu0 }
 0x933   : > { %v11369_v23 = vadd.f32 %v11145_v30, %v26948_v52  ;;  %v11147_v47 = vpop.f32.mrb[1].mxu1  ;;  %v11368_v38 = vadd.f32 %v8773_v56, %v26949_v12 }
 0x934   : > { %v11370_v20 = vadd.f32 %v11147_v47, %v26950_v27  ;;  %v11495_v18 = vsub.f32 0.0, %v11367_v39  ;;  %v26959_v39 = vld [vmem:[#allocation98_spill] sm:$0xff] }
 0x935   : > { %v11497_v9 = vsub.f32 0.0, %v11369_v23  ;;  %v11496_v10 = vsub.f32 0.0, %v11368_v38  ;;  %v8778_v26 = vpop.f32.mrb[2].mxu0  ;;  %v26960_v38 = vld [vmem:[#allocation101_spill] sm:$0xff] }
 0x936   : > { %v11498_v54 = vsub.f32 0.0, %v11370_v20  ;;  %v11152_v5 = vpop.f32.mrb[2].mxu1  ;;  %v11623_v53 = vmul.f32 1.442695, %v11495_v18  ;;  %v11371_v22 = vadd.f32 %v8778_v26, %v26951_v57  ;;  %v8780_v21 = vpop.f32.mrb[3].mxu0 }
 0x937   : > { %v11627_v4 = vmul.f32 1.442695, %v11497_v9  ;;  %v11373_v8 = vadd.f32 %v11152_v5, %v26952_v25  ;;  %v11154_v7 = vpop.f32.mrb[3].mxu1  ;;  %v11625_v45 = vmul.f32 1.442695, %v11496_v10  ;;  %v11372_v0 = vadd.f32 %v8780_v21, %v26953_v19 }
 0x938   : > { %v11629_v48 = vmul.f32 1.442695, %v11498_v54  ;;  %v11374_v6 = vadd.f32 %v11154_v7, %v26954_v59  ;;  %17571 = vpow2.f32 %v11623_v53  ;;  %v11499_v14 = vsub.f32 0.0, %v11371_v22  ;;  %v26961_v54 = vld [vmem:[#allocation100_spill] sm:$0xff] }
 0x939   : > { %v11501_v40 = vsub.f32 0.0, %v11373_v8  ;;  %17573 = vpow2.f32 %v11627_v4  ;;  %v11500_v44 = vsub.f32 0.0, %v11372_v0  ;;  %v8785_v61 = vpop.f32.mrb[4].mxu0  ;;  %v26962_v0 = vld [vmem:[#allocation107_spill] sm:$0xff] }
 0x93a   : > { %v11502_v13 = vsub.f32 0.0, %v11374_v6  ;;  %v11159_v24 = vpop.f32.mrb[4].mxu1  ;;  %17575 = vpow2.f32 %v11625_v45  ;;  %v11631_v43 = vmul.f32 1.442695, %v11499_v14  ;;  %v11375_v33 = vadd.f32 %v8785_v61, %v26955_v2  ;;  %v8787_v16 = vpop.f32.mrb[5].mxu0 }
 0x93b   : > { %v11635_v51 = vmul.f32 1.442695, %v11501_v40  ;;  %v11161_v58 = vpop.f32.mrb[5].mxu1  ;;  %17577 = vpow2.f32 %v11629_v48  ;;  %v11633_v46 = vmul.f32 1.442695, %v11500_v44  ;;  %v11377_v60 = vadd.f32 %v11159_v24, %v26956_v32  ;;  %v26963_v44 = vld [vmem:[#allocation108_spill] sm:$0xff] }
 0x93c   : > { %v11637_v55 = vmul.f32 1.442695, %v11502_v13  ;;  %17579 = vpow2.f32 %v11631_v43  ;;  %v11503_v29 = vsub.f32 0.0, %v11375_v33  ;;  %v11376_v3 = vadd.f32 %v8787_v16, %v26957_v31  ;;  %v26964_v33 = vld [vmem:[#allocation114_spill] sm:$0xff] }
 0x93d   : > { %v11378_v63 = vadd.f32 %v11161_v58, %v26958_v11  ;;  %17581 = vpow2.f32 %v11635_v51  ;;  %v11505_v37 = vsub.f32 0.0, %v11377_v60  ;;  %v8792_v49 = vpop.f32.mrb[6].mxu0 }
 0x93e   : > { %v11166_v42 = vpop.f32.mrb[6].mxu1  ;;  %17583 = vpow2.f32 %v11633_v46  ;;  %v11639_v35 = vmul.f32 1.442695, %v11503_v29  ;;  %v11504_v28 = vsub.f32 0.0, %v11376_v3  ;;  %v8794_v50 = vpop.f32.mrb[7].mxu0  ;;  %v11379_v52 = vadd.f32 %v8792_v49, %v26959_v39  ;;  %v26965_v29 = vld [vmem:[#allocation113_spill] sm:$0xff] }
 0x93f   : > { %v11506_v62 = vsub.f32 0.0, %v11378_v63  ;;  %v11168_v17 = vpop.f32.mrb[7].mxu1  ;;  %17585 = vpow2.f32 %v11637_v55  ;;  %v11643_v15 = vmul.f32 1.442695, %v11505_v37  ;;  %v11381_v27 = vadd.f32 %v11166_v42, %v26960_v38  ;;  %v26966_v37 = vld [vmem:[#allocation118_spill] sm:$0xff] }
 0x940   : > { %17587 = vpow2.f32 %v11639_v35  ;;  %v11641_v36 = vmul.f32 1.442695, %v11504_v28  ;;  %v11380_v26 = vadd.f32 %v8794_v50, %v26961_v54  ;;  %v11507_v22 = vsub.f32 0.0, %v11379_v52 }
 0x941   : > { %v11645_v34 = vmul.f32 1.442695, %v11506_v62  ;;  %17589 = vpow2.f32 %v11643_v15  ;;  %v8799_v41 = vpop.f32.mrb[8].mxu0  ;;  %v11509_v7 = vsub.f32 0.0, %v11381_v27  ;;  %v11382_v59 = vadd.f32 %v11168_v17, %v26962_v0  ;;  %v26967_v62 = vld [vmem:[#allocation122_spill] sm:$0xff] }
 0x942   : > { %v11173_v30 = vpop.f32.mrb[8].mxu1  ;;  %v17572_v1 = vpop.eup %17571  ;;  %17591 = vpow2.f32 %v11641_v36  ;;  %v11508_v40 = vsub.f32 0.0, %v11380_v26  ;;  %v11383_v13 = vadd.f32 %v8799_v41, %v26963_v44  ;;  %v11647_v2 = vmul.f32 1.442695, %v11507_v22  ;;  %v26968_v41 = vld [vmem:[#allocation126_spill] sm:$0xff] }
 0x943   : > { %v8801_v23 = vpop.f32.mrb[9].mxu0  ;;  %v11175_v56 = vpop.f32.mrb[9].mxu1  ;;  %v11879_v12 = vadd.f32 1.0, %v17572_v1  ;;  %17593 = vpow2.f32 %v11645_v34  ;;  %v11385_v16 = vadd.f32 %v11173_v30, %v26964_v33  ;;  %v11651_v60 = vmul.f32 1.442695, %v11509_v7 }
 0x944   : > { %v17574_v47 = vpop.eup %17573  ;;  %v11384_v31 = vadd.f32 %v8801_v23, %v26965_v29  ;;  %v11510_v63 = vsub.f32 0.0, %v11382_v59  ;;  %v11386_v49 = vadd.f32 %v11175_v56, %v26966_v37  ;;  %v11511_v28 = vsub.f32 0.0, %v11383_v13 }
 0x945   : > { %v17576_v20 = vpop.eup %17575  ;;  %v11881_v18 = vadd.f32 1.0, %v17574_v47  ;;  %17595 = vrcp.f32 %v11879_v12  ;;  %v8806_v5 = vpop.f32.mrb[10].mxu0  ;;  %v11513_v34 = vsub.f32 0.0, %v11385_v16  ;;  %v11649_v23 = vmul.f32 1.442695, %v11508_v40  ;;  %v26969_v47 = vld [vmem:[#allocation124_spill] sm:$0xff] }
 0x946   : > { %v17578_v9 = vpop.eup %17577  ;;  %v11880_v10 = vadd.f32 1.0, %v17576_v20  ;;  %v11180_v53 = vpop.f32.mrb[10].mxu1  ;;  %v11387_v50 = vadd.f32 %v8806_v5, %v26967_v62  ;;  %v11512_v56 = vsub.f32 0.0, %v11384_v31  ;;  %v11653_v27 = vmul.f32 1.442695, %v11510_v63  ;;  %v26971_v5 = vld [vmem:[#allocation132_spill] sm:$0xff] }
 0x947   : > { %v17580_v4 = vpop.eup %17579  ;;  %17597 = vrcp.f32 %v11881_v18  ;;  %v11882_v57 = vadd.f32 1.0, %v17578_v9  ;;  %v8808_v25 = vpop.f32.mrb[11].mxu0  ;;  %v11389_v30 = vadd.f32 %v11180_v53, %v26968_v41  ;;  %v11514_v20 = vsub.f32 0.0, %v11386_v49  ;;  %v26970_v18 = vld [vmem:[#allocation131_spill] sm:$0xff]  ;;  %v26973_v41 = vld [vmem:[#allocation137_spill] sm:$0xff] }
 0x948   : > { %v17582_v8 = vpop.eup %17581  ;;  %17599 = vrcp.f32 %v11880_v10  ;;  %v11883_v21 = vadd.f32 1.0, %v17580_v4  ;;  %v11182_v45 = vpop.f32.mrb[11].mxu1  ;;  %v11388_v12 = vadd.f32 %v8808_v25, %v26969_v47  ;;  %v11655_v54 = vmul.f32 1.442695, %v11511_v28  ;;  %v26972_v62 = vld [vmem:[#allocation87_spill] sm:$0xff] }
 0x949   : > { %v17584_v48 = vpop.eup %17583  ;;  %17601 = vrcp.f32 %v11882_v57  ;;  %v11885_v19 = vadd.f32 1.0, %v17582_v8  ;;  %v8813_v61 = vpop.f32.mrb[12].mxu0  ;;  %v11390_v9 = vadd.f32 %v11182_v45, %v26970_v18  ;;  %v11515_v26 = vsub.f32 0.0, %v11387_v50 }
 0x94a   : > { %v17586_v6 = vpop.eup %17585  ;;  %17603 = vrcp.f32 %v11883_v21  ;;  %v11884_v14 = vadd.f32 1.0, %v17584_v48  ;;  %v23909_v24 = vpop.f32.mrb[12].mxu1  ;;  %v11391_v53 = vadd.f32 %v8813_v61, %v26971_v5  ;;  %v11659_v25 = vmul.f32 1.442695, %v11513_v34 }
 0x94b   : > { %v17588_v43 = vpop.eup %17587  ;;  %17605 = vrcp.f32 %v11885_v19  ;;  %v11886_v51 = vadd.f32 1.0, %v17586_v6  ;;  %v23912_v58 = vpop.f32.mrb[13].mxu0  ;;  %v11517_v8 = vsub.f32 0.0, %v11389_v30  ;;  %v11657_v45 = vmul.f32 1.442695, %v11512_v56 }
 0x94c   : > { %v23914_v46 = vpop.f32.mrb[13].mxu1  ;;  %v17590_v55 = vpop.eup %17589  ;;  %17607 = vrcp.f32 %v11884_v14  ;;  %v11887_v32 = vadd.f32 1.0, %v17588_v43  ;;  %v11516_v48 = vsub.f32 0.0, %v11388_v12  ;;  %v11661_v59 = vmul.f32 1.442695, %v11514_v20  ;;  %v26974_v20 = vld [vmem:[#allocation89_spill] sm:$0xff] }
 0x94d   : > { %v17592_v3 = vpop.eup %17591  ;;  %17609 = vrcp.f32 %v11886_v51  ;;  %v11889_v11 = vadd.f32 1.0, %v17590_v55  ;;  %v23919_v17 = vpop.f32.mrb[14].mxu0  ;;  %v11518_v6 = vsub.f32 0.0, %v11390_v9  ;;  %v11663_v40 = vmul.f32 1.442695, %v11515_v26 }
 0x94e   : > { %v17594_v42 = vpop.eup %17593  ;;  %17611 = vrcp.f32 %v11887_v32  ;;  %v11888_v35 = vadd.f32 1.0, %v17592_v3  ;;  %v23921_v15 = vpop.f32.mrb[14].mxu1  ;;  %v11519_v44 = vsub.f32 0.0, %v11391_v53  ;;  %v11667_v51 = vmul.f32 1.442695, %v11517_v8 }
 0x94f   : > { %17613 = vrcp.f32 %v11889_v11  ;;  %v11890_v36 = vadd.f32 1.0, %v17594_v42  ;;  %v23924_v1 = vpop.f32.mrb[15].mxu0  ;;  %v23926_v39 = vpop.f32.mrb[15].mxu1  ;;  %v11665_v55 = vmul.f32 1.442695, %v11516_v48  ;;  %v11393_v50 = vadd.f32 %v23909_v24, %v26972_v62 }
 0x950   : > { %v17596_v52 = vpop.eup %17595  ;;  %17615 = vrcp.f32 %v11888_v35  ;;  %v11671_v31 = vmul.f32 1.442695, %v11519_v44  ;;  %v11392_v30 = vadd.f32 %v23912_v58, %v26973_v41  ;;  %v11394_v24 = vadd.f32 %v23914_v46, %v26974_v20  ;;  %v26981_v20 = vld [vmem:[#allocation75_spill] sm:$0xff] }
 0x951   : > { %v17598_v38 = vpop.eup %17597  ;;  %12135 = vst [vmem:[%s20653_s18] sm:$0xff] %v17596_v52  ;;  %17617 = vrcp.f32 %v11890_v36  ;;  %v23933_v4 = vpop.f32.mrb[16].mxu0 }
 0x952   : > { %v17600_v10 = vpop.eup %17599  ;;  %12137 = vst [vmem:[%s20653_s18 + $0x10] sm:$0xff] %v17598_v38  ;;  %17619 = vpow2.f32 %v11647_v2  ;;  %v23935_v57 = vpop.f32.mrb[16].mxu1  ;;  %v11520_v5 = vsub.f32 0.0, %v11392_v30  ;;  %v26980_v30 = vld [vmem:[#allocation79_spill] sm:$0xff] }
 0x953   : > { %v17602_v22 = vpop.eup %17601  ;;  %12136 = vst [vmem:[%s20653_s18 + $0x8] sm:$0xff] %v17600_v10  ;;  %17621 = vpow2.f32 %v11651_v60  ;;  %v23938_v21 = vpop.f32.mrb[17].mxu0  ;;  %v11669_v60 = vmul.f32 1.442695, %v11518_v6  ;;  %v11521_v10 = vsub.f32 0.0, %v11393_v50  ;;  %v11522_v6 = vsub.f32 0.0, %v11394_v24 }
 0x954   : > { %v17604_v7 = vpop.eup %17603  ;;  %12138 = vst [vmem:[%s20653_s18 + $0x18] sm:$0xff] %v17602_v22  ;;  %17623 = vpow2.f32 %v11649_v23  ;;  %v23941_v19 = vpop.f32.mrb[17].mxu1 }
 0x955   : > { %v17606_v0 = vpop.eup %17605  ;;  %12139 = vst [vmem:[%s20653_s18 + $0x20] sm:$0xff] %v17604_v7  ;;  %17625 = vpow2.f32 %v11653_v27  ;;  %v23945_v13 = vpop.f32.mrb[18].mxu0  ;;  %v26975_v7 = vld [vmem:[#allocation58_spill] sm:$0xff] }
 0x956   : > { %v17608_v14 = vpop.eup %17607  ;;  %12141 = vst [vmem:[%s20653_s18 + $0x30] sm:$0xff] %v17606_v0  ;;  %17627 = vpow2.f32 %v11655_v54  ;;  %v23947_v61 = vpop.f32.mrb[18].mxu1  ;;  %v11395_v46 = vadd.f32 %v23919_v17, %v26975_v7 }
 0x957   : > { %v17610_v43 = vpop.eup %17609  ;;  %12140 = vst [vmem:[%s20653_s18 + $0x28] sm:$0xff] %v17608_v14  ;;  %17629 = vpow2.f32 %v11659_v25  ;;  %v23950_v2 = vpop.f32.mrb[19].mxu0  ;;  %v26976_v14 = vld [vmem:[#allocation142_spill] sm:$0xff] }
 0x958   : > { %v23952_v33 = vpop.f32.mrb[19].mxu1  ;;  %v17612_v16 = vpop.eup %17611  ;;  %12142 = vst [vmem:[%s20653_s18 + $0x38] sm:$0xff] %v17610_v43  ;;  %17631 = vpow2.f32 %v11657_v45 }
 0x959   : > { %v17614_v32 = vpop.eup %17613  ;;  %12143 = vst [vmem:[%s20653_s18 + $0x40] sm:$0xff] %v17612_v16  ;;  %17633 = vpow2.f32 %v11661_v59  ;;  %v23957_v3 = vpop.f32.mrb[20].mxu0  ;;  %v26977_v16 = vld [vmem:[#allocation59_spill] sm:$0xff] }
 0x95a   : > { %v17616_v29 = vpop.eup %17615  ;;  %12145 = vst [vmem:[%s20653_s18 + $0x50] sm:$0xff] %v17614_v32  ;;  %17635 = vpow2.f32 %v11663_v40  ;;  %v23960_v63 = vpop.f32.mrb[20].mxu1  ;;  %v11397_v40 = vadd.f32 %v23921_v15, %v26976_v14  ;;  %v11523_v15 = vsub.f32 0.0, %v11395_v46  ;;  %v26984_v14 = vld [vmem:[#allocation92_spill] sm:$0xff] }
 0x95b   : > { %v17618_v11 = vpop.eup %17617  ;;  %12144 = vst [vmem:[%s20653_s18 + $0x48] sm:$0xff] %v17616_v29  ;;  %17637 = vpow2.f32 %v11667_v51  ;;  %v23962_v37 = vpop.f32.mrb[21].mxu0  ;;  %v11675_v51 = vmul.f32 1.442695, %v11521_v10  ;;  %v26978_v29 = vld [vmem:[#allocation65_spill] sm:$0xff]  ;;  %v26982_v10 = vld [vmem:[#allocation82_spill] sm:$0xff] }
 0x95c   : > { %v17620_v49 = vpop.eup %17619  ;;  %12146 = vst [vmem:[%s20653_s18 + $0x58] sm:$0xff] %v17618_v11  ;;  %17639 = vpow2.f32 %v11665_v55  ;;  %v23965_v42 = vpop.f32.mrb[21].mxu1  ;;  %v11396_v55 = vadd.f32 %v23924_v1, %v26977_v16  ;;  %v11525_v41 = vsub.f32 0.0, %v11397_v40  ;;  %v11405_v40 = vadd.f32 %v23947_v61, %v26984_v14 }
 0x95d   : > { %v17622_v35 = vpop.eup %17621  ;;  %v11891_v28 = vadd.f32 1.0, %v17620_v49  ;;  %17641 = vpow2.f32 %v11669_v60  ;;  %v23971_v52 = vpop.f32.mrb[22].mxu0  ;;  %v11673_v60 = vmul.f32 1.442695, %v11520_v5 }
 0x95e   : > { %v17624_v36 = vpop.eup %17623  ;;  %v11893_v34 = vadd.f32 1.0, %v17622_v35  ;;  %17643 = vpow2.f32 %v11671_v31  ;;  %v23973_v23 = vpop.f32.mrb[22].mxu1  ;;  %v11398_v31 = vadd.f32 %v23926_v39, %v26978_v29  ;;  %v11401_v39 = vadd.f32 %v23935_v57, %v26980_v30 }
 0x95f   : > { %v17626_v56 = vpop.eup %17625  ;;  %17645 = vrcp.f32 %v11891_v28  ;;  %v11892_v47 = vadd.f32 1.0, %v17624_v36  ;;  %v23975_v12 = vpop.f32.mrb[23].mxu0  ;;  %v26979_v28 = vld [vmem:[#allocation67_spill] sm:$0xff] }
 0x960   : > { %v17628_v38 = vpop.eup %17627  ;;  %17647 = vrcp.f32 %v11893_v34  ;;  %v11894_v27 = vadd.f32 1.0, %v17626_v56  ;;  %v23979_v18 = vpop.f32.mrb[23].mxu1  ;;  %v11399_v62 = vadd.f32 %v23933_v4, %v26979_v28  ;;  %v11400_v4 = vadd.f32 %v23938_v21, %v26981_v20  ;;  %v26983_v21 = vld [vmem:[#allocation151_spill] sm:$0xff] }
 0x961   : > { %v17630_v9 = vpop.eup %17629  ;;  %17649 = vrcp.f32 %v11892_v47  ;;  %v11895_v58 = vadd.f32 1.0, %v17628_v38  ;;  %v23981_v53 = vpop.f32.mrb[24].mxu0  ;;  %v11403_v7 = vadd.f32 %v23945_v13, %v26983_v21  ;;  %v11533_v28 = vsub.f32 0.0, %v11405_v40 }
 0x962   : > { %v17632_v54 = vpop.eup %17631  ;;  %17651 = vrcp.f32 %v11894_v27  ;;  %v11897_v26 = vadd.f32 1.0, %v17630_v9  ;;  %v23983_v22 = vpop.f32.mrb[24].mxu1  ;;  %v11524_v27 = vsub.f32 0.0, %v11396_v55  ;;  %v11677_v9 = vmul.f32 1.442695, %v11522_v6 }
 0x963   : > { %v17634_v25 = vpop.eup %17633  ;;  %17653 = vrcp.f32 %v11895_v58  ;;  %v11896_v8 = vadd.f32 1.0, %v17632_v54  ;;  %v23987_v45 = vpop.f32.mrb[25].mxu0  ;;  %v11526_v58 = vsub.f32 0.0, %v11398_v31  ;;  %v11402_v54 = vadd.f32 %v23941_v19, %v26982_v10  ;;  %v26985_v10 = vld [vmem:[#allocation154_spill] sm:$0xff] }
 0x964   : > { %v23989_v48 = vpop.f32.mrb[25].mxu1  ;;  %v17636_v0 = vpop.eup %17635  ;;  %17655 = vrcp.f32 %v11897_v26  ;;  %v11898_v59 = vadd.f32 1.0, %v17634_v25  ;;  %v11679_v25 = vmul.f32 1.442695, %v11523_v15  ;;  %v11683_v19 = vmul.f32 1.442695, %v11525_v41 }
 0x965   : > { %v17638_v44 = vpop.eup %17637  ;;  %17657 = vrcp.f32 %v11896_v8  ;;  %v11899_v43 = vadd.f32 1.0, %v17636_v0  ;;  %v23997_v11 = vpop.f32.mrb[26].mxu0  ;;  %v11527_v8 = vsub.f32 0.0, %v11399_v62  ;;  %v11529_v6 = vsub.f32 0.0, %v11401_v39 }
 0x966   : > { %v17640_v32 = vpop.eup %17639  ;;  %17659 = vrcp.f32 %v11898_v59  ;;  %v11901_v17 = vadd.f32 1.0, %v17638_v44  ;;  %v24001_v50 = vpop.f32.mrb[26].mxu1  ;;  %v11528_v16 = vsub.f32 0.0, %v11400_v4  ;;  %v11685_v55 = vmul.f32 1.442695, %v11526_v58 }
 0x967   : > { %v17642_v49 = vpop.eup %17641  ;;  %17661 = vrcp.f32 %v11899_v43  ;;  %v11900_v35 = vadd.f32 1.0, %v17640_v32  ;;  %v24003_v1 = vpop.f32.mrb[27].mxu0  ;;  %v11681_v43 = vmul.f32 1.442695, %v11524_v27  ;;  %v11530_v32 = vsub.f32 0.0, %v11402_v54 }
 0x968   : > { %v17644_v36 = vpop.eup %17643  ;;  %17663 = vrcp.f32 %v11901_v17  ;;  %v11902_v34 = vadd.f32 1.0, %v17642_v49  ;;  %v24007_v56 = vpop.f32.mrb[27].mxu1  ;;  %v11687_v61 = vmul.f32 1.442695, %v11527_v8  ;;  %v11531_v31 = vsub.f32 0.0, %v11403_v7 }
 0x969   : > { %v17646_v47 = vpop.eup %17645  ;;  %17665 = vrcp.f32 %v11900_v35  ;;  %v11903_v38 = vadd.f32 1.0, %v17644_v36  ;;  %v24014_v57 = vpop.f32.mrb[28].mxu0  ;;  %v11691_v15 = vmul.f32 1.442695, %v11529_v6  ;;  %v11689_v36 = vmul.f32 1.442695, %v11528_v16 }
 0x96a   : > { %v17648_v24 = vpop.eup %17647  ;;  %12147 = vst [vmem:[%s20653_s18 + $0x60] sm:$0xff] %v17646_v47  ;;  %17667 = vrcp.f32 %v11902_v34  ;;  %v24016_v26 = vpop.f32.mrb[28].mxu1  ;;  %v11693_v41 = vmul.f32 1.442695, %v11530_v32  ;;  %v11695_v47 = vmul.f32 1.442695, %v11531_v31  ;;  %v11404_v54 = vadd.f32 %v23950_v2, %v26985_v10 }
 0x96b   : > { %v17650_v5 = vpop.eup %17649  ;;  %12149 = vst [vmem:[%s20653_s18 + $0x70] sm:$0xff] %v17648_v24  ;;  %17669 = vrcp.f32 %v11903_v38  ;;  %v24021_v46 = vpop.f32.mrb[29].mxu0  ;;  %v11699_v4 = vmul.f32 1.442695, %v11533_v28  ;;  %v26986_v16 = vld [vmem:[#allocation15_spill] sm:$0xff]  ;;  %v26987_v31 = vld [vmem:[#allocation16_spill] sm:$0xff] }
 0x96c   : > { %v24023_v0 = vpop.f32.mrb[29].mxu1  ;;  %v17652_v59 = vpop.eup %17651  ;;  %12148 = vst [vmem:[%s20653_s18 + $0x68] sm:$0xff] %v17650_v5  ;;  %17671 = vpow2.f32 %v11675_v51 }
 0x96d   : > { %v17654_v44 = vpop.eup %17653  ;;  %12150 = vst [vmem:[%s20653_s18 + $0x78] sm:$0xff] %v17652_v59  ;;  %17673 = vpow2.f32 %v11673_v60  ;;  %v24030_v17 = vpop.f32.mrb[30].mxu0 }
 0x96e   : > { %v17656_v13 = vpop.eup %17655  ;;  %12151 = vst [vmem:[%s20653_s18 + $0x80] sm:$0xff] %v17654_v44  ;;  %17675 = vpow2.f32 %v11677_v9  ;;  %v24032_v51 = vpop.f32.mrb[30].mxu1 }
 0x96f   : > { %v17658_v29 = vpop.eup %17657  ;;  %12153 = vst [vmem:[%s20653_s18 + $0x90] sm:$0xff] %v17656_v13  ;;  %17677 = vpow2.f32 %v11679_v25  ;;  %v24035_v60 = vpop.f32.mrb[31].mxu0  ;;  %v11406_v13 = vadd.f32 %v23952_v33, %v26986_v16 }
 0x970   : > { %v24037_v49 = vpop.f32.mrb[31].mxu1  ;;  %v17660_v35 = vpop.eup %17659  ;;  %12152 = vst [vmem:[%s20653_s18 + $0x88] sm:$0xff] %v17658_v29  ;;  %17679 = vpow2.f32 %v11683_v19 }
 0x971   : > { %v17662_v62 = vpop.eup %17661  ;;  %12154 = vst [vmem:[%s20653_s18 + $0x98] sm:$0xff] %v17660_v35  ;;  %17681 = vpow2.f32 %v11681_v43  ;;  %v24042_v30 = vpop.f32.mrb[32].mxu0  ;;  %v11532_v43 = vsub.f32 0.0, %v11404_v54  ;;  %v11407_v35 = vadd.f32 %v23957_v3, %v26987_v31  ;;  %v26992_v31 = vld [vmem:[#allocation25_spill] sm:$0xff] }
 0x972   : > { %v17664_v34 = vpop.eup %17663  ;;  %12155 = vst [vmem:[%s20653_s18 + $0xa0] sm:$0xff] %v17662_v62  ;;  %17683 = vpow2.f32 %v11685_v55  ;;  %v24045_v38 = vpop.f32.mrb[32].mxu1 }
 0x973   : > { %v17666_v39 = vpop.eup %17665  ;;  %12157 = vst [vmem:[%s20653_s18 + $0xb0] sm:$0xff] %v17664_v34  ;;  %17685 = vpow2.f32 %v11687_v61  ;;  %v24047_v27 = vpop.f32.mrb[33].mxu0  ;;  %v26988_v34 = vld [vmem:[#allocation22_spill] sm:$0xff]  ;;  %v11697_v3 = vmul.f32 1.442695, %v11532_v43 }
 0x974   : > { %v17668_v20 = vpop.eup %17667  ;;  %12156 = vst [vmem:[%s20653_s18 + $0xa8] sm:$0xff] %v17666_v39  ;;  %17687 = vpow2.f32 %v11691_v15  ;;  %v24050_v24 = vpop.f32.mrb[33].mxu1  ;;  %v11409_v33 = vadd.f32 %v23960_v63, %v26988_v34  ;;  %v26993_v34 = vld [vmem:[#allocation23_spill] sm:$0xff] }
 0x975   : > { %v17670_v9 = vpop.eup %17669  ;;  %12158 = vst [vmem:[%s20653_s18 + $0xb8] sm:$0xff] %v17668_v20  ;;  %17689 = vpow2.f32 %v11689_v36  ;;  %v24056_v5 = vpop.f32.mrb[34].mxu0 }
 0x976   : > { %v17672_v58 = vpop.eup %17671  ;;  %12159 = vst [vmem:[%s20653_s18 + $0xc0] sm:$0xff] %v17670_v9  ;;  %17691 = vpow2.f32 %v11693_v41  ;;  %v24058_v25 = vpop.f32.mrb[34].mxu1 }
 0x977   : > { %v17674_v8 = vpop.eup %17673  ;;  %v11905_v21 = vadd.f32 1.0, %v17672_v58  ;;  %17693 = vpow2.f32 %v11695_v47  ;;  %v24060_v7 = vpop.f32.mrb[35].mxu0  ;;  %v26989_v47 = vld [vmem:[#allocation21_spill] sm:$0xff]  ;;  %v11534_v58 = vsub.f32 0.0, %v11406_v13 }
 0x978   : > { %v17676_v59 = vpop.eup %17675  ;;  %v11904_v19 = vadd.f32 1.0, %v17674_v8  ;;  %17695 = vpow2.f32 %v11699_v4  ;;  %v24062_v6 = vpop.f32.mrb[35].mxu1  ;;  %v11408_v20 = vadd.f32 %v23962_v37, %v26989_v47 }
 0x979   : > { %v17678_v14 = vpop.eup %17677  ;;  %17697 = vrcp.f32 %v11905_v21  ;;  %v11906_v40 = vadd.f32 1.0, %v17676_v59  ;;  %v24066_v55 = vpop.f32.mrb[36].mxu0  ;;  %v11535_v21 = vsub.f32 0.0, %v11407_v35  ;;  %v26990_v59 = vld [vmem:[#allocation17_spill] sm:$0xff] }
 0x97a   : > { %v17680_v44 = vpop.eup %17679  ;;  %17699 = vrcp.f32 %v11904_v19  ;;  %v11907_v2 = vadd.f32 1.0, %v17678_v14  ;;  %v24068_v32 = vpop.f32.mrb[36].mxu1  ;;  %v11410_v63 = vadd.f32 %v23965_v42, %v26990_v59  ;;  %v11413_v42 = vadd.f32 %v23973_v23, %v26992_v31  ;;  %v26995_v59 = vld [vmem:[#allocation102_spill] sm:$0xff] }
 0x97b   : > { %v17682_v29 = vpop.eup %17681  ;;  %17701 = vrcp.f32 %v11906_v40  ;;  %v11909_v61 = vadd.f32 1.0, %v17680_v44  ;;  %v24072_v15 = vpop.f32.mrb[37].mxu0  ;;  %v11537_v44 = vsub.f32 0.0, %v11409_v33  ;;  %v11412_v33 = vadd.f32 %v23975_v12, %v26993_v34 }
 0x97c   : > { %v24074_v28 = vpop.f32.mrb[37].mxu1  ;;  %v17684_v62 = vpop.eup %17683  ;;  %17703 = vrcp.f32 %v11907_v2  ;;  %v11908_v36 = vadd.f32 1.0, %v17682_v29  ;;  %v26991_v2 = vld [vmem:[#allocation19_spill] sm:$0xff]  ;;  %v11703_v12 = vmul.f32 1.442695, %v11535_v21 }
 0x97d   : > { %v17686_v41 = vpop.eup %17685  ;;  %17705 = vrcp.f32 %v11909_v61  ;;  %v11910_v39 = vadd.f32 1.0, %v17684_v62  ;;  %v24080_v10 = vpop.f32.mrb[38].mxu0  ;;  %v11411_v43 = vadd.f32 %v23971_v52, %v26991_v2  ;;  %v11536_v61 = vsub.f32 0.0, %v11408_v20  ;;  %v26997_v21 = vld [vmem:[#allocation27_spill] sm:$0xff] }
 0x97e   : > { %v17688_v4 = vpop.eup %17687  ;;  %17707 = vrcp.f32 %v11908_v36  ;;  %v11911_v9 = vadd.f32 1.0, %v17686_v41  ;;  %v24084_v19 = vpop.f32.mrb[38].mxu1  ;;  %v11701_v36 = vmul.f32 1.442695, %v11534_v58  ;;  %v11538_v20 = vsub.f32 0.0, %v11410_v63 }
 0x97f   : > { %v17690_v54 = vpop.eup %17689  ;;  %17709 = vrcp.f32 %v11910_v39  ;;  %v11913_v8 = vadd.f32 1.0, %v17688_v4  ;;  %v24086_v14 = vpop.f32.mrb[39].mxu0  ;;  %v26994_v4 = vld [vmem:[#allocation99_spill] sm:$0xff]  ;;  %v11707_v63 = vmul.f32 1.442695, %v11537_v44  ;;  %v11541_v2 = vsub.f32 0.0, %v11413_v42 }
 0x980   : > { %v17692_v40 = vpop.eup %17691  ;;  %17711 = vrcp.f32 %v11911_v9  ;;  %v11912_v37 = vadd.f32 1.0, %v17690_v54  ;;  %v24090_v16 = vpop.f32.mrb[39].mxu1  ;;  %v11414_v23 = vadd.f32 %v23979_v18, %v26994_v4  ;;  %v26996_v18 = vld [vmem:[#allocation28_spill] sm:$0xff]  ;;  %v11705_v31 = vmul.f32 1.442695, %v11536_v61 }
 0x981   : > { %v17694_v13 = vpop.eup %17693  ;;  %17713 = vrcp.f32 %v11913_v8  ;;  %v11914_v29 = vadd.f32 1.0, %v17692_v40  ;;  %v24096_v41 = vpop.f32.mrb[40].mxu0  ;;  %v11539_v8 = vsub.f32 0.0, %v11411_v43  ;;  %v11415_v40 = vadd.f32 %v23981_v53, %v26995_v59 }
 0x982   : > { %v17696_v35 = vpop.eup %17695  ;;  %17715 = vrcp.f32 %v11912_v37  ;;  %v11915_v62 = vadd.f32 1.0, %v17694_v13  ;;  %v24098_v52 = vpop.f32.mrb[40].mxu1  ;;  %v11417_v13 = vadd.f32 %v23983_v22, %v26996_v18  ;;  %v11416_v43 = vadd.f32 %v23987_v45, %v26997_v21 }
 0x983   : > { %v17698_v39 = vpop.eup %17697  ;;  %17717 = vrcp.f32 %v11914_v29  ;;  %v11917_v47 = vadd.f32 1.0, %v17696_v35  ;;  %v24102_v9 = vpop.f32.mrb[41].mxu0  ;;  %v11540_v35 = vsub.f32 0.0, %v11412_v33  ;;  %v11709_v44 = vmul.f32 1.442695, %v11538_v20 }
 0x984   : > { %v24104_v54 = vpop.f32.mrb[41].mxu1  ;;  %v17700_v58 = vpop.eup %17699  ;;  %12161 = vst [vmem:[%s20653_s18 + $0xd0] sm:$0xff] %v17698_v39  ;;  %17719 = vrcp.f32 %v11915_v62  ;;  %v11542_v22 = vsub.f32 0.0, %v11414_v23  ;;  %v11711_v45 = vmul.f32 1.442695, %v11539_v8  ;;  %v11543_v61 = vsub.f32 0.0, %v11415_v40 }
 0x985   : > { %v17702_v37 = vpop.eup %17701  ;;  %12160 = vst [vmem:[%s20653_s18 + $0xc8] sm:$0xff] %v17700_v58  ;;  %17721 = vrcp.f32 %v11917_v47  ;;  %v24115_v53 = vpop.f32.mrb[42].mxu0  ;;  %v11715_v47 = vmul.f32 1.442695, %v11541_v2  ;;  %v11545_v4 = vsub.f32 0.0, %v11417_v13  ;;  %v11544_v23 = vsub.f32 0.0, %v11416_v43 }
 0x986   : > { %v17704_v29 = vpop.eup %17703  ;;  %12162 = vst [vmem:[%s20653_s18 + $0xd8] sm:$0xff] %v17702_v37  ;;  %17723 = vpow2.f32 %v11697_v3  ;;  %v24117_v62 = vpop.f32.mrb[42].mxu1  ;;  %v11713_v20 = vmul.f32 1.442695, %v11540_v35  ;;  %v11717_v8 = vmul.f32 1.442695, %v11542_v22 }
 0x987   : > { %v17706_v34 = vpop.eup %17705  ;;  %12163 = vst [vmem:[%s20653_s18 + $0xe0] sm:$0xff] %v17704_v29  ;;  %17725 = vpow2.f32 %v11701_v36  ;;  %v24120_v42 = vpop.f32.mrb[43].mxu0  ;;  %v11719_v2 = vmul.f32 1.442695, %v11543_v61  ;;  %v11723_v13 = vmul.f32 1.442695, %v11545_v4 }
 0x988   : > { %v24122_v39 = vpop.f32.mrb[43].mxu1  ;;  %v17708_v3 = vpop.eup %17707  ;;  %12165 = vst [vmem:[%s20653_s18 + $0xf0] sm:$0xff] %v17706_v34  ;;  %17727 = vpow2.f32 %v11703_v12 }
 0x989   : > { %v17710_v33 = vpop.eup %17709  ;;  %12164 = vst [vmem:[%s20653_s18 + $0xe8] sm:$0xff] %v17708_v3  ;;  %17729 = vpow2.f32 %v11707_v63  ;;  %v24127_v58 = vpop.f32.mrb[44].mxu0  ;;  %v26998_v3 = vld [vmem:[#allocation33_spill] sm:$0xff] }
 0x98a   : > { %v17712_v36 = vpop.eup %17711  ;;  %12166 = vst [vmem:[%s20653_s18 + $0xf8] sm:$0xff] %v17710_v33  ;;  %17731 = vpow2.f32 %v11705_v31  ;;  %v24129_v59 = vpop.f32.mrb[44].mxu1  ;;  %v11721_v31 = vmul.f32 1.442695, %v11544_v23 }
 0x98b   : > { %v17714_v12 = vpop.eup %17713  ;;  %12167 = vst [vmem:[%s20653_s18 + $0x100] sm:$0xff] %v17712_v36  ;;  %17733 = vpow2.f32 %v11709_v44  ;;  %v24132_v40 = vpop.f32.mrb[45].mxu0 }
 0x98c   : > { %v24134_v37 = vpop.f32.mrb[45].mxu1  ;;  %v17716_v63 = vpop.eup %17715  ;;  %12169 = vst [vmem:[%s20653_s18 + $0x110] sm:$0xff] %v17714_v12  ;;  %17735 = vpow2.f32 %v11711_v45  ;;  %v11418_v45 = vadd.f32 %v23989_v48, %v26998_v3 }
 0x98d   : > { %v17718_v18 = vpop.eup %17717  ;;  %12168 = vst [vmem:[%s20653_s18 + $0x108] sm:$0xff] %v17716_v63  ;;  %17737 = vpow2.f32 %v11715_v47  ;;  %v24139_v35 = vpop.f32.mrb[46].mxu0  ;;  %v26999_v47 = vld [vmem:[#allocation34_spill] sm:$0xff] }
 0x98e   : > { %v17720_v29 = vpop.eup %17719  ;;  %12170 = vst [vmem:[%s20653_s18 + $0x118] sm:$0xff] %v17718_v18  ;;  %17739 = vpow2.f32 %v11713_v20  ;;  %v24141_v21 = vpop.f32.mrb[46].mxu1  ;;  %v11419_v4 = vadd.f32 %v23997_v11, %v26999_v47 }
 0x98f   : > { %v17722_v43 = vpop.eup %17721  ;;  %12171 = vst [vmem:[%s20653_s18 + $0x120] sm:$0xff] %v17720_v29  ;;  %17741 = vpow2.f32 %v11717_v8  ;;  %v24144_v34 = vpop.f32.mrb[47].mxu0  ;;  %v11546_v29 = vsub.f32 0.0, %v11418_v45 }
 0x990   : > { %v24146_v44 = vpop.f32.mrb[47].mxu1  ;;  %v17724_v22 = vpop.eup %17723  ;;  %12173 = vst [vmem:[%s20653_s18 + $0x130] sm:$0xff] %v17722_v43  ;;  %17743 = vpow2.f32 %v11719_v2 }
 0x991   : > { %v17726_v61 = vpop.eup %17725  ;;  %v11916_v33 = vadd.f32 1.0, %v17724_v22  ;;  %17745 = vpow2.f32 %v11723_v13  ;;  %v24153_v23 = vpop.f32.mrb[48].mxu0  ;;  %v11547_v22 = vsub.f32 0.0, %v11419_v4 }
 0x992   : > { %v17728_v36 = vpop.eup %17727  ;;  %v11918_v20 = vadd.f32 1.0, %v17726_v61  ;;  %17747 = vpow2.f32 %v11721_v31  ;;  %v24155_v12 = vpop.f32.mrb[48].mxu1  ;;  %v27003_v61 = vld [vmem:[#allocation31_spill] sm:$0xff] }
 0x993   : > { %27000 = vst [vmem:[#allocation168_spill] sm:$0xff] %v24155_v12  ;;  %v17730_v8 = vpop.eup %17729  ;;  %17749 = vrcp.f32 %v11916_v33  ;;  %v11919_v63 = vadd.f32 1.0, %v17728_v36  ;;  %v24157_v2 = vpop.f32.mrb[49].mxu0  ;;  %v11421_v47 = vadd.f32 %v24001_v50, %v27003_v61 }
 0x994   : > { %27001 = vst [vmem:[#allocation169_spill] sm:$0xff] %v24157_v2  ;;  %v24159_v18 = vpop.f32.mrb[49].mxu1  ;;  %v17732_v48 = vpop.eup %17731  ;;  %17751 = vrcp.f32 %v11918_v20  ;;  %v11921_v13 = vadd.f32 1.0, %v17730_v8  ;;  %v27006_v20 = vld [vmem:[#allocation30_spill] sm:$0xff] }
 0x995   : > { %27002 = vst [vmem:[#allocation171_spill] sm:$0xff] %v24159_v18  ;;  %v17734_v43 = vpop.eup %17733  ;;  %17753 = vrcp.f32 %v11919_v63  ;;  %v11920_v11 = vadd.f32 1.0, %v17732_v48  ;;  %v24163_v33 = vpop.f32.mrb[50].mxu0  ;;  %v11420_v45 = vadd.f32 %v24003_v1, %v27006_v20  ;;  %v11549_v20 = vsub.f32 0.0, %v11421_v47 }
 0x996   : > { %v17736_v31 = vpop.eup %17735  ;;  %17755 = vrcp.f32 %v11921_v13  ;;  %v11922_v3 = vadd.f32 1.0, %v17734_v43  ;;  %27004 = vst [vmem:[#allocation211_spill] sm:$0xff] %v24163_v33  ;;  %v24165_v36 = vpop.f32.mrb[50].mxu1  ;;  %v11725_v13 = vmul.f32 1.442695, %v11546_v29  ;;  %v27009_v43 = vld [vmem:[#allocation36_spill] sm:$0xff] }
 0x997   : > { %27005 = vst [vmem:[#allocation212_spill] sm:$0xff] %v24165_v36  ;;  %v17738_v2 = vpop.eup %17737  ;;  %17757 = vrcp.f32 %v11920_v11  ;;  %v11923_v18 = vadd.f32 1.0, %v17736_v31  ;;  %v24169_v8 = vpop.f32.mrb[51].mxu0  ;;  %v11422_v50 = vadd.f32 %v24007_v56, %v27009_v43  ;;  %v11727_v33 = vmul.f32 1.442695, %v11547_v22  ;;  %v27010_v11 = vld [vmem:[#allocation37_spill] sm:$0xff] }
 0x998   : > { %27007 = vst [vmem:[#allocation244_spill] sm:$0xff] %v24169_v8  ;;  %v24171_v63 = vpop.f32.mrb[51].mxu1  ;;  %v17740_v4 = vpop.eup %17739  ;;  %17759 = vrcp.f32 %v11922_v3  ;;  %v11925_v48 = vadd.f32 1.0, %v17738_v2  ;;  %v11423_v31 = vadd.f32 %v24014_v57, %v27010_v11  ;;  %v27011_v8 = vld [vmem:[#allocation104_spill] sm:$0xff]  ;;  %v27013_v22 = vld [vmem:[#allocation103_spill] sm:$0xff] }
 0x999   : > { %27008 = vst [vmem:[#allocation245_spill] sm:$0xff] %v24171_v63  ;;  %v17742_v61 = vpop.eup %17741  ;;  %17761 = vrcp.f32 %v11923_v18  ;;  %v11924_v36 = vadd.f32 1.0, %v17740_v4  ;;  %v11425_v63 = vadd.f32 %v24016_v26, %v27011_v8  ;;  %v24179_v3 = vpop.f32.mrb[52].mxu0  ;;  %v11548_v18 = vsub.f32 0.0, %v11420_v45  ;;  %v27016_v8 = vld [vmem:[#allocation46_spill] sm:$0xff] }
 0x99a   : > { %v17744_v12 = vpop.eup %17743  ;;  %17763 = vrcp.f32 %v11925_v48  ;;  %v11926_v1 = vadd.f32 1.0, %v17742_v61  ;;  %v24181_v2 = vpop.f32.mrb[52].mxu1  ;;  %v11424_v4 = vadd.f32 %v24021_v46, %v27013_v22  ;;  %v11550_v26 = vsub.f32 0.0, %v11422_v50  ;;  %v27017_v45 = vld [vmem:[#allocation42_spill] sm:$0xff] }
 0x99b   : > { %27012 = vst [vmem:[#allocation256_spill] sm:$0xff] %v24181_v2  ;;  %v17746_v29 = vpop.eup %17745  ;;  %17765 = vrcp.f32 %v11924_v36  ;;  %v11927_v56 = vadd.f32 1.0, %v17744_v12  ;;  %v24185_v57 = vpop.f32.mrb[53].mxu0  ;;  %v11426_v61 = vadd.f32 %v24023_v0, %v27016_v8  ;;  %v11551_v36 = vsub.f32 0.0, %v11423_v31 }
 0x99c   : > { %27014 = vst [vmem:[#allocation260_spill] sm:$0xff] %v24185_v57  ;;  %v24187_v48 = vpop.f32.mrb[53].mxu1  ;;  %v17748_v47 = vpop.eup %17747  ;;  %17767 = vrcp.f32 %v11926_v1  ;;  %v11929_v43 = vadd.f32 1.0, %v17746_v29  ;;  %v11427_v2 = vadd.f32 %v24030_v17, %v27017_v45  ;;  %v11731_v22 = vmul.f32 1.442695, %v11549_v20  ;;  %v27018_v1 = vld [vmem:[#allocation110_spill] sm:$0xff] }
 0x99d   : > { %27015 = vst [vmem:[#allocation293_spill] sm:$0xff] %v24187_v48  ;;  %v17750_v11 = vpop.eup %17749  ;;  %17769 = vrcp.f32 %v11927_v56  ;;  %v11928_v12 = vadd.f32 1.0, %v17748_v47  ;;  %v11553_v48 = vsub.f32 0.0, %v11425_v63  ;;  %v11429_v50 = vadd.f32 %v24032_v51, %v27018_v1  ;;  %v24196_v29 = vpop.f32.mrb[54].mxu0  ;;  %v27019_v17 = vld [vmem:[#allocation43_spill] sm:$0xff] }
 0x99e   : > { %v17752_v46 = vpop.eup %17751  ;;  %12172 = vst [vmem:[%s20653_s18 + $0x128] sm:$0xff] %v17750_v11  ;;  %17771 = vrcp.f32 %v11929_v43  ;;  %v24198_v57 = vpop.f32.mrb[54].mxu1  ;;  %v11729_v31 = vmul.f32 1.442695, %v11548_v18  ;;  %v11552_v56 = vsub.f32 0.0, %v11424_v4  ;;  %v11428_v47 = vadd.f32 %v24035_v60, %v27019_v17  ;;  %v27020_v11 = vld [vmem:[#allocation112_spill] sm:$0xff] }
 0x99f   : > { %v17754_v0 = vpop.eup %17753  ;;  %12174 = vst [vmem:[%s20653_s18 + $0x138] sm:$0xff] %v17752_v46  ;;  %17773 = vrcp.f32 %v11928_v12  ;;  %v24203_v43 = vpop.f32.mrb[55].mxu0  ;;  %v11733_v51 = vmul.f32 1.442695, %v11550_v26  ;;  %v11554_v8 = vsub.f32 0.0, %v11426_v61  ;;  %v11430_v45 = vadd.f32 %v24037_v49, %v27020_v11 }
 0x9a0   : > { %v24205_v63 = vpop.f32.mrb[55].mxu1  ;;  %v17756_v20 = vpop.eup %17755  ;;  %12175 = vst [vmem:[%s20653_s18 + $0x140] sm:$0xff] %v17754_v0  ;;  %17775 = vpow2.f32 %v11725_v13  ;;  %v11735_v18 = vmul.f32 1.442695, %v11551_v36  ;;  %v11555_v4 = vsub.f32 0.0, %v11427_v2  ;;  %v11557_v1 = vsub.f32 0.0, %v11429_v50 }
 0x9a1   : > { %v17758_v12 = vpop.eup %17757  ;;  %12177 = vst [vmem:[%s20653_s18 + $0x150] sm:$0xff] %v17756_v20  ;;  %17777 = vpow2.f32 %v11727_v33  ;;  %v11739_v46 = vmul.f32 1.442695, %v11553_v48  ;;  %v24212_v0 = vpop.f32.mrb[56].mxu0  ;;  %v11737_v49 = vmul.f32 1.442695, %v11552_v56 }
 0x9a2   : > { %v17760_v60 = vpop.eup %17759  ;;  %12176 = vst [vmem:[%s20653_s18 + $0x148] sm:$0xff] %v17758_v12  ;;  %17779 = vpow2.f32 %v11731_v22  ;;  %v24214_v13 = vpop.f32.mrb[56].mxu1  ;;  %v11556_v61 = vsub.f32 0.0, %v11428_v47  ;;  %v11741_v48 = vmul.f32 1.442695, %v11554_v8  ;;  %v11558_v22 = vsub.f32 0.0, %v11430_v45 }
 0x9a3   : > { %v17762_v26 = vpop.eup %17761  ;;  %12178 = vst [vmem:[%s20653_s18 + $0x158] sm:$0xff] %v17760_v60  ;;  %17781 = vpow2.f32 %v11729_v31  ;;  %v24217_v33 = vpop.f32.mrb[57].mxu0  ;;  %v11743_v17 = vmul.f32 1.442695, %v11555_v4  ;;  %v11747_v31 = vmul.f32 1.442695, %v11557_v1 }
 0x9a4   : > { %v24219_v2 = vpop.f32.mrb[57].mxu1  ;;  %v17764_v36 = vpop.eup %17763  ;;  %12179 = vst [vmem:[%s20653_s18 + $0x160] sm:$0xff] %v17762_v26  ;;  %17783 = vpow2.f32 %v11733_v51  ;;  %v11745_v51 = vmul.f32 1.442695, %v11556_v61  ;;  %v27024_v61 = vld [vmem:[#allocation115_spill] sm:$0xff] }
 0x9a5   : > { %v17766_v50 = vpop.eup %17765  ;;  %12181 = vst [vmem:[%s20653_s18 + $0x170] sm:$0xff] %v17764_v36  ;;  %17785 = vpow2.f32 %v11735_v18  ;;  %v24224_v56 = vpop.f32.mrb[58].mxu0  ;;  %v11749_v18 = vmul.f32 1.442695, %v11558_v22  ;;  %v11431_v36 = vadd.f32 %v24042_v30, %v27024_v61 }
 0x9a6   : > { %v17768_v20 = vpop.eup %17767  ;;  %12180 = vst [vmem:[%s20653_s18 + $0x168] sm:$0xff] %v17766_v50  ;;  %17787 = vpow2.f32 %v11739_v46  ;;  %v24226_v47 = vpop.f32.mrb[58].mxu1 }
 0x9a7   : > { %v17770_v11 = vpop.eup %17769  ;;  %12182 = vst [vmem:[%s20653_s18 + $0x178] sm:$0xff] %v17768_v20  ;;  %17789 = vpow2.f32 %v11737_v49  ;;  %v24229_v8 = vpop.f32.mrb[59].mxu0 }
 0x9a8   : > { %v24231_v45 = vpop.f32.mrb[59].mxu1  ;;  %v17772_v12 = vpop.eup %17771  ;;  %12183 = vst [vmem:[%s20653_s18 + $0x180] sm:$0xff] %v17770_v11  ;;  %17791 = vpow2.f32 %v11741_v48 }
 0x9a9   : > { %27021 = vst [vmem:[#allocation207_spill] sm:$0xff] %v24231_v45  ;;  %v17774_v4 = vpop.eup %17773  ;;  %12185 = vst [vmem:[%s20653_s18 + $0x190] sm:$0xff] %v17772_v12  ;;  %17793 = vpow2.f32 %v11743_v17  ;;  %v24236_v46 = vpop.f32.mrb[60].mxu0  ;;  %v27027_v17 = vld [vmem:[#allocation121_spill] sm:$0xff]  ;;  %v27036_v45 = vld [vmem:[#allocation128_spill] sm:$0xff] }
 0x9aa   : > { %v17776_v60 = vpop.eup %17775  ;;  %12184 = vst [vmem:[%s20653_s18 + $0x188] sm:$0xff] %v17774_v4  ;;  %17795 = vpow2.f32 %v11747_v31  ;;  %27022 = vst [vmem:[#allocation156_spill] sm:$0xff] %v24236_v46  ;;  %v24238_v1 = vpop.f32.mrb[60].mxu1  ;;  %v11433_v31 = vadd.f32 %v24045_v38, %v27027_v17 }
 0x9ab   : > { %27023 = vst [vmem:[#allocation157_spill] sm:$0xff] %v24238_v1  ;;  %v17778_v26 = vpop.eup %17777  ;;  %v11930_v49 = vadd.f32 1.0, %v17776_v60  ;;  %17797 = vpow2.f32 %v11745_v51  ;;  %v24242_v50 = vpop.f32.mrb[61].mxu0  ;;  %v27028_v51 = vld [vmem:[#allocation116_spill] sm:$0xff] }
 0x9ac   : > { %27025 = vst [vmem:[#allocation283_spill] sm:$0xff] %v24242_v50  ;;  %v24244_v48 = vpop.f32.mrb[61].mxu1  ;;  %v17780_v22 = vpop.eup %17779  ;;  %v11931_v20 = vadd.f32 1.0, %v17778_v26  ;;  %17799 = vpow2.f32 %v11749_v18  ;;  %v11432_v1 = vadd.f32 %v24047_v27, %v27028_v51  ;;  %v11559_v18 = vsub.f32 0.0, %v11431_v36  ;;  %v27033_v27 = vld [vmem:[#allocation125_spill] sm:$0xff] }
 0x9ad   : > { %27026 = vst [vmem:[#allocation158_spill] sm:$0xff] %v24244_v48  ;;  %v17782_v11 = vpop.eup %17781  ;;  %17801 = vrcp.f32 %v11930_v49  ;;  %v11933_v12 = vadd.f32 1.0, %v17780_v22  ;;  %v24250_v30 = vpop.f32.mrb[62].mxu0  ;;  %v11434_v51 = vadd.f32 %v24050_v24, %v27033_v27  ;;  %v11436_v24 = vadd.f32 %v24060_v7, %v27036_v45  ;;  %v27038_v27 = vld [vmem:[#allocation138_spill] sm:$0xff]  ;;  %v27039_v45 = vld [vmem:[#allocation141_spill] sm:$0xff] }
 0x9ae   : > { %v17784_v4 = vpop.eup %17783  ;;  %17803 = vrcp.f32 %v11931_v20  ;;  %v11932_v60 = vadd.f32 1.0, %v17782_v11  ;;  %27029 = vst [vmem:[#allocation159_spill] sm:$0xff] %v24250_v30  ;;  %v24252_v61 = vpop.f32.mrb[62].mxu1  ;;  %v11561_v20 = vsub.f32 0.0, %v11433_v31  ;;  %v11751_v46 = vmul.f32 1.442695, %v11559_v18 }
 0x9af   : > { %27030 = vst [vmem:[#allocation185_spill] sm:$0xff] %v24252_v61  ;;  %v17786_v48 = vpop.eup %17785  ;;  %17805 = vrcp.f32 %v11933_v12  ;;  %v11934_v26 = vadd.f32 1.0, %v17784_v4  ;;  %v24254_v50 = vpop.f32.mrb[63].mxu0  ;;  %v11560_v12 = vsub.f32 0.0, %v11432_v1  ;;  %v27034_v4 = vld [vmem:[#allocation127_spill] sm:$0xff] }
 0x9b0   : > { %27031 = vst [vmem:[#allocation160_spill] sm:$0xff] %v24254_v50  ;;  %v24256_v38 = vpop.f32.mrb[63].mxu1  ;;  %v17788_v49 = vpop.eup %17787  ;;  %17807 = vrcp.f32 %v11932_v60  ;;  %v11935_v22 = vadd.f32 1.0, %v17786_v48  ;;  %v11435_v36 = vadd.f32 %v24056_v5, %v27034_v4  ;;  %v27035_v60 = vld [vmem:[#allocation133_spill] sm:$0xff]  ;;  %v27037_v5 = vld [vmem:[#allocation135_spill] sm:$0xff]  ;;  %v11564_v4 = vsub.f32 0.0, %v11436_v24 }
 0x9b1   : > { %27032 = vst [vmem:[#allocation161_spill] sm:$0xff] %v24256_v38  ;;  %v17790_v17 = vpop.eup %17789  ;;  %17809 = vrcp.f32 %v11934_v26  ;;  %v11937_v11 = vadd.f32 1.0, %v17788_v49  ;;  %v11437_v48 = vadd.f32 %v24058_v25, %v27035_v60  ;;  %v11755_v49 = vmul.f32 1.442695, %v11561_v20  ;;  %v27040_v60 = vld [vmem:[#allocation140_spill] sm:$0xff] }
 0x9b2   : > { %v17792_v30 = vpop.eup %17791  ;;  %17811 = vrcp.f32 %v11935_v22  ;;  %v11936_v61 = vadd.f32 1.0, %v17790_v17  ;;  %v11562_v17 = vsub.f32 0.0, %v11434_v51  ;;  %v11563_v25 = vsub.f32 0.0, %v11435_v36 }
 0x9b3   : > { %v17794_v50 = vpop.eup %17793  ;;  %17813 = vrcp.f32 %v11937_v11  ;;  %v11938_v38 = vadd.f32 1.0, %v17792_v30  ;;  %v11438_v11 = vadd.f32 %v24062_v6, %v27037_v5  ;;  %v11565_v7 = vsub.f32 0.0, %v11437_v48  ;;  %v27042_v5 = vld [vmem:[#allocation70_spill] sm:$0xff] }
 0x9b4   : > { %v17796_v31 = vpop.eup %17795  ;;  %17815 = vrcp.f32 %v11936_v61  ;;  %v11939_v26 = vadd.f32 1.0, %v17794_v50  ;;  %v11439_v50 = vadd.f32 %v24066_v55, %v27038_v27  ;;  %v11753_v6 = vmul.f32 1.442695, %v11560_v12 }
 0x9b5   : > { %v17798_v22 = vpop.eup %17797  ;;  %17817 = vrcp.f32 %v11938_v38  ;;  %v11941_v1 = vadd.f32 1.0, %v17796_v31  ;;  %v11441_v38 = vadd.f32 %v24068_v32, %v27039_v45  ;;  %v11440_v36 = vadd.f32 %v24072_v15, %v27040_v60 }
 0x9b6   : > { %v17800_v30 = vpop.eup %17799  ;;  %17819 = vrcp.f32 %v11939_v26  ;;  %v11940_v18 = vadd.f32 1.0, %v17798_v22  ;;  %v11757_v55 = vmul.f32 1.442695, %v11562_v17  ;;  %v11566_v26 = vsub.f32 0.0, %v11438_v11  ;;  %v27041_v22 = vld [vmem:[#allocation69_spill] sm:$0xff] }
 0x9b7   : > { %v17802_v61 = vpop.eup %17801  ;;  %17821 = vrcp.f32 %v11941_v1  ;;  %v11942_v20 = vadd.f32 1.0, %v17800_v30  ;;  %v11442_v48 = vadd.f32 %v24074_v28, %v27041_v22  ;;  %v11759_v32 = vmul.f32 1.442695, %v11563_v25 }
 0x9b8   : > { %v17804_v51 = vpop.eup %17803  ;;  %12186 = vst [vmem:[%s20653_s18 + $0x198] sm:$0xff] %v17802_v61  ;;  %17823 = vrcp.f32 %v11940_v18  ;;  %v11567_v12 = vsub.f32 0.0, %v11439_v50  ;;  %v11443_v24 = vadd.f32 %v24080_v10, %v27042_v5  ;;  %v11763_v15 = vmul.f32 1.442695, %v11565_v7 }
 0x9b9   : > { %v17806_v31 = vpop.eup %17805  ;;  %12187 = vst [vmem:[%s20653_s18 + $0x1a0] sm:$0xff] %v17804_v51  ;;  %17825 = vrcp.f32 %v11942_v20  ;;  %v11569_v18 = vsub.f32 0.0, %v11441_v38  ;;  %v11761_v28 = vmul.f32 1.442695, %v11564_v4  ;;  %v11568_v11 = vsub.f32 0.0, %v11440_v36 }
 0x9ba   : > { %v17808_v1 = vpop.eup %17807  ;;  %12189 = vst [vmem:[%s20653_s18 + $0x1b0] sm:$0xff] %v17806_v31  ;;  %17827 = vpow2.f32 %v11751_v46  ;;  %v11765_v46 = vmul.f32 1.442695, %v11566_v26  ;;  %v11570_v25 = vsub.f32 0.0, %v11442_v48  ;;  %v11571_v50 = vsub.f32 0.0, %v11443_v24  ;;  %v27043_v31 = vld [vmem:[#allocation77_spill] sm:$0xff] }
 0x9bb   : > { %v17810_v30 = vpop.eup %17809  ;;  %12188 = vst [vmem:[%s20653_s18 + $0x1a8] sm:$0xff] %v17808_v1  ;;  %17829 = vpow2.f32 %v11755_v49  ;;  %v11767_v49 = vmul.f32 1.442695, %v11567_v12  ;;  %v11771_v20 = vmul.f32 1.442695, %v11569_v18  ;;  %v27044_v48 = vld [vmem:[#allocation143_spill] sm:$0xff] }
 0x9bc   : > { %v17812_v17 = vpop.eup %17811  ;;  %12190 = vst [vmem:[%s20653_s18 + $0x1b8] sm:$0xff] %v17810_v30  ;;  %17831 = vpow2.f32 %v11753_v6  ;;  %v11769_v45 = vmul.f32 1.442695, %v11568_v11  ;;  %v11773_v51 = vmul.f32 1.442695, %v11570_v25  ;;  %v11444_v1 = vadd.f32 %v24086_v14, %v27044_v48 }
 0x9bd   : > { %v17814_v27 = vpop.eup %17813  ;;  %12191 = vst [vmem:[%s20653_s18 + $0x1c0] sm:$0xff] %v17812_v17  ;;  %17833 = vpow2.f32 %v11757_v55  ;;  %v11775_v4 = vmul.f32 1.442695, %v11571_v50  ;;  %v11445_v55 = vadd.f32 %v24084_v19, %v27043_v31 }
 0x9be   : > { %v17816_v10 = vpop.eup %17815  ;;  %12193 = vst [vmem:[%s20653_s18 + $0x1d0] sm:$0xff] %v17814_v27  ;;  %17835 = vpow2.f32 %v11759_v32  ;;  %v11572_v19 = vsub.f32 0.0, %v11444_v1 }
 0x9bf   : > { %v17818_v61 = vpop.eup %17817  ;;  %12192 = vst [vmem:[%s20653_s18 + $0x1c8] sm:$0xff] %v17816_v10  ;;  %17837 = vpow2.f32 %v11763_v15  ;;  %v11573_v18 = vsub.f32 0.0, %v11445_v55 }
 0x9c0   : > { %v17820_v7 = vpop.eup %17819  ;;  %12194 = vst [vmem:[%s20653_s18 + $0x1d8] sm:$0xff] %v17818_v61  ;;  %17839 = vpow2.f32 %v11761_v28 }
 0x9c1   : > { %v17822_v38 = vpop.eup %17821  ;;  %12195 = vst [vmem:[%s20653_s18 + $0x1e0] sm:$0xff] %v17820_v7  ;;  %17841 = vpow2.f32 %v11765_v46  ;;  %v27045_v46 = vld [vmem:[#allocation144_spill] sm:$0xff]  ;;  %v11779_v7 = vmul.f32 1.442695, %v11573_v18 }
 0x9c2   : > { %v17824_v6 = vpop.eup %17823  ;;  %12197 = vst [vmem:[%s20653_s18 + $0x1f0] sm:$0xff] %v17822_v38  ;;  %17843 = vpow2.f32 %v11767_v49  ;;  %v11446_v14 = vadd.f32 %v24090_v16, %v27045_v46  ;;  %v27046_v49 = vld [vmem:[#allocation85_spill] sm:$0xff] }
 0x9c3   : > { %v17826_v60 = vpop.eup %17825  ;;  %12196 = vst [vmem:[%s20653_s18 + $0x1e8] sm:$0xff] %v17824_v6  ;;  %17845 = vpow2.f32 %v11771_v20  ;;  %v11447_v50 = vadd.f32 %v24096_v41, %v27046_v49 }
 0x9c4   : > { %v17828_v36 = vpop.eup %17827  ;;  %12198 = vst [vmem:[%s20653_s18 + $0x1f8] sm:$0xff] %v17826_v60  ;;  %17847 = vpow2.f32 %v11769_v45  ;;  %v27047_v45 = vld [vmem:[#allocation147_spill] sm:$0xff]  ;;  %v27048_v60 = vld [vmem:[#allocation145_spill] sm:$0xff]  ;;  %v11574_v55 = vsub.f32 0.0, %v11446_v14 }
 0x9c5   : > { %v17830_v26 = vpop.eup %17829  ;;  %v11943_v22 = vadd.f32 1.0, %v17828_v36  ;;  %17849 = vpow2.f32 %v11773_v51  ;;  %v11449_v38 = vadd.f32 %v24098_v52, %v27047_v45  ;;  %v11448_v16 = vadd.f32 %v24102_v9, %v27048_v60  ;;  %v27050_v52 = vld [vmem:[#allocation11_spill] sm:$0xff] }
 0x9c6   : > { %v17832_v32 = vpop.eup %17831  ;;  %v11945_v12 = vadd.f32 1.0, %v17830_v26  ;;  %17851 = vpow2.f32 %v11775_v4  ;;  %v11777_v4 = vmul.f32 1.442695, %v11572_v19  ;;  %v27049_v26 = vld [vmem:[#allocation9_spill] sm:$0xff]  ;;  %v11575_v1 = vsub.f32 0.0, %v11447_v50 }
 0x9c7   : > { %v17834_v5 = vpop.eup %17833  ;;  %17853 = vrcp.f32 %v11943_v22  ;;  %v11944_v24 = vadd.f32 1.0, %v17832_v32  ;;  %v11450_v41 = vadd.f32 %v24104_v54, %v27049_v26  ;;  %v11451_v32 = vadd.f32 %v24115_v53, %v27050_v52 }
 0x9c8   : > { %v17836_v30 = vpop.eup %17835  ;;  %17855 = vrcp.f32 %v11945_v12  ;;  %v11946_v15 = vadd.f32 1.0, %v17834_v5  ;;  %v11577_v9 = vsub.f32 0.0, %v11449_v38  ;;  %v11576_v54 = vsub.f32 0.0, %v11448_v16 }
 0x9c9   : > { %v17838_v17 = vpop.eup %17837  ;;  %17857 = vrcp.f32 %v11944_v24  ;;  %v11947_v28 = vadd.f32 1.0, %v17836_v30  ;;  %v27051_v24 = vld [vmem:[#allocation150_spill] sm:$0xff]  ;;  %v11781_v53 = vmul.f32 1.442695, %v11574_v55 }
 0x9ca   : > { %v17840_v11 = vpop.eup %17839  ;;  %17859 = vrcp.f32 %v11946_v15  ;;  %v11949_v27 = vadd.f32 1.0, %v17838_v17  ;;  %v11453_v30 = vadd.f32 %v24117_v62, %v27051_v24  ;;  %v27052_v17 = vld [vmem:[#allocation148_spill] sm:$0xff]  ;;  %v11783_v62 = vmul.f32 1.442695, %v11575_v1 }
 0x9cb   : > { %v17842_v25 = vpop.eup %17841  ;;  %17861 = vrcp.f32 %v11947_v28  ;;  %v11948_v10 = vadd.f32 1.0, %v17840_v11  ;;  %v11452_v28 = vadd.f32 %v24120_v42, %v27052_v17  ;;  %v11578_v11 = vsub.f32 0.0, %v11450_v41  ;;  %v27057_v17 = vld [vmem:[#allocation20_spill] sm:$0xff] }
 0x9cc   : > { %v17844_v61 = vpop.eup %17843  ;;  %17863 = vrcp.f32 %v11949_v27  ;;  %v11950_v20 = vadd.f32 1.0, %v17842_v25  ;;  %v27053_v27 = vld [vmem:[#allocation153_spill] sm:$0xff]  ;;  %v11579_v25 = vsub.f32 0.0, %v11451_v32  ;;  %v11787_v42 = vmul.f32 1.442695, %v11577_v9 }
 0x9cd   : > { %v17846_v51 = vpop.eup %17845  ;;  %17865 = vrcp.f32 %v11948_v10  ;;  %v11951_v6 = vadd.f32 1.0, %v17844_v61  ;;  %v11454_v46 = vadd.f32 %v24122_v39, %v27053_v27  ;;  %v27054_v10 = vld [vmem:[#allocation155_spill] sm:$0xff]  ;;  %v11581_v61 = vsub.f32 0.0, %v11453_v30  ;;  %v27056_v30 = vld [vmem:[#allocation88_spill] sm:$0xff] }
 0x9ce   : > { %v17848_v36 = vpop.eup %17847  ;;  %17867 = vrcp.f32 %v11950_v20  ;;  %v11953_v31 = vadd.f32 1.0, %v17846_v51  ;;  %v11455_v49 = vadd.f32 %v24127_v58, %v27054_v10  ;;  %v27055_v20 = vld [vmem:[#allocation93_spill] sm:$0xff]  ;;  %v11785_v39 = vmul.f32 1.442695, %v11576_v54 }
 0x9cf   : > { %v17850_v22 = vpop.eup %17849  ;;  %17869 = vrcp.f32 %v11951_v6  ;;  %v11952_v48 = vadd.f32 1.0, %v17848_v36  ;;  %v11457_v45 = vadd.f32 %v24129_v59, %v27055_v20  ;;  %v11580_v51 = vsub.f32 0.0, %v11452_v28 }
 0x9d0   : > { %v17852_v12 = vpop.eup %17851  ;;  %17871 = vrcp.f32 %v11953_v31  ;;  %v11954_v5 = vadd.f32 1.0, %v17850_v22  ;;  %v11789_v58 = vmul.f32 1.442695, %v11578_v11  ;;  %v11582_v60 = vsub.f32 0.0, %v11454_v46  ;;  %v27058_v46 = vld [vmem:[#allocation18_spill] sm:$0xff] }
 0x9d1   : > { %v17854_v15 = vpop.eup %17853  ;;  %17873 = vrcp.f32 %v11952_v48  ;;  %v11955_v18 = vadd.f32 1.0, %v17852_v12  ;;  %v11583_v36 = vsub.f32 0.0, %v11455_v49  ;;  %v11585_v31 = vsub.f32 0.0, %v11457_v45 }
 0x9d2   : > { %v17856_v19 = vpop.eup %17855  ;;  %12199 = vst [vmem:[%s20653_s18 + $0x200] sm:$0xff] %v17854_v15  ;;  %17875 = vrcp.f32 %v11954_v5  ;;  %v11793_v26 = vmul.f32 1.442695, %v11580_v51  ;;  %v11797_v22 = vmul.f32 1.442695, %v11582_v60  ;;  %v11456_v15 = vadd.f32 %v24132_v40, %v27056_v30  ;;  %v27060_v51 = vld [vmem:[#allocation24_spill] sm:$0xff] }
 0x9d3   : > { %v17858_v14 = vpop.eup %17857  ;;  %12201 = vst [vmem:[%s20653_s18 + $0x210] sm:$0xff] %v17856_v19  ;;  %17877 = vrcp.f32 %v11955_v18  ;;  %v11799_v1 = vmul.f32 1.442695, %v11583_v36  ;;  %v11803_v32 = vmul.f32 1.442695, %v11585_v31  ;;  %v11458_v28 = vadd.f32 %v24134_v37, %v27057_v17  ;;  %v27062_v31 = vld [vmem:[#allocation26_spill] sm:$0xff] }
 0x9d4   : > { %v17860_v50 = vpop.eup %17859  ;;  %12200 = vst [vmem:[%s20653_s18 + $0x208] sm:$0xff] %v17858_v14  ;;  %17879 = vpow2.f32 %v11779_v7  ;;  %v11791_v7 = vmul.f32 1.442695, %v11579_v25  ;;  %v11459_v14 = vadd.f32 %v24139_v35, %v27058_v46  ;;  %v11584_v10 = vsub.f32 0.0, %v11456_v15  ;;  %v27067_v30 = vld [vmem:[#allocation35_spill] sm:$0xff] }
 0x9d5   : > { %v17862_v38 = vpop.eup %17861  ;;  %12202 = vst [vmem:[%s20653_s18 + $0x218] sm:$0xff] %v17860_v50  ;;  %17881 = vpow2.f32 %v11777_v4  ;;  %v11795_v4 = vmul.f32 1.442695, %v11581_v61  ;;  %v11586_v50 = vsub.f32 0.0, %v11458_v28  ;;  %v27059_v61 = vld [vmem:[#allocation94_spill] sm:$0xff]  ;;  %v11460_v35 = vadd.f32 %v24144_v34, %v27060_v51  ;;  %v27063_v34 = vld [vmem:[#allocation29_spill] sm:$0xff] }
 0x9d6   : > { %v17864_v6 = vpop.eup %17863  ;;  %12203 = vst [vmem:[%s20653_s18 + $0x220] sm:$0xff] %v17862_v38  ;;  %17883 = vpow2.f32 %v11781_v53  ;;  %v11461_v20 = vadd.f32 %v24141_v21, %v27059_v61  ;;  %v11801_v60 = vmul.f32 1.442695, %v11584_v10  ;;  %v11463_v21 = vadd.f32 %v24153_v23, %v27062_v31  ;;  %v27068_v15 = vld [vmem:[#allocation171_spill] sm:$0xff] }
 0x9d7   : > { %v17866_v16 = vpop.eup %17865  ;;  %12205 = vst [vmem:[%s20653_s18 + $0x230] sm:$0xff] %v17864_v6  ;;  %17885 = vpow2.f32 %v11783_v62 }
 0x9d8   : > { %v17868_v59 = vpop.eup %17867  ;;  %12204 = vst [vmem:[%s20653_s18 + $0x228] sm:$0xff] %v17866_v16  ;;  %17887 = vpow2.f32 %v11787_v42  ;;  %v27061_v16 = vld [vmem:[#allocation96_spill] sm:$0xff]  ;;  %v11591_v28 = vsub.f32 0.0, %v11463_v21 }
 0x9d9   : > { %v17870_v55 = vpop.eup %17869  ;;  %12206 = vst [vmem:[%s20653_s18 + $0x238] sm:$0xff] %v17868_v59  ;;  %17889 = vpow2.f32 %v11785_v39  ;;  %v11587_v39 = vsub.f32 0.0, %v11459_v14 }
 0x9da   : > { %v17872_v41 = vpop.eup %17871  ;;  %12207 = vst [vmem:[%s20653_s18 + $0x240] sm:$0xff] %v17870_v55  ;;  %17891 = vpow2.f32 %v11789_v58  ;;  %v11815_v51 = vmul.f32 1.442695, %v11591_v28 }
 0x9db   : > { %v17874_v48 = vpop.eup %17873  ;;  %12209 = vst [vmem:[%s20653_s18 + $0x250] sm:$0xff] %v17872_v41  ;;  %17893 = vpow2.f32 %v11791_v7  ;;  %v11462_v7 = vadd.f32 %v24146_v44, %v27061_v16  ;;  %v11589_v41 = vsub.f32 0.0, %v11461_v20  ;;  %v11588_v44 = vsub.f32 0.0, %v11460_v35 }
 0x9dc   : > { %v17876_v52 = vpop.eup %17875  ;;  %12208 = vst [vmem:[%s20653_s18 + $0x248] sm:$0xff] %v17874_v48  ;;  %17895 = vpow2.f32 %v11795_v4  ;;  %v11805_v4 = vmul.f32 1.442695, %v11586_v50  ;;  %v11807_v17 = vmul.f32 1.442695, %v11587_v39 }
 0x9dd   : > { %v17878_v12 = vpop.eup %17877  ;;  %12210 = vst [vmem:[%s20653_s18 + $0x258] sm:$0xff] %v17876_v52  ;;  %17897 = vpow2.f32 %v11793_v26  ;;  %v11590_v23 = vsub.f32 0.0, %v11462_v7  ;;  %v11811_v46 = vmul.f32 1.442695, %v11589_v41 }
 0x9de   : > { %v17880_v5 = vpop.eup %17879  ;;  %12211 = vst [vmem:[%s20653_s18 + $0x260] sm:$0xff] %v17878_v12  ;;  %17899 = vpow2.f32 %v11797_v22  ;;  %v27064_v22 = vld [vmem:[#allocation168_spill] sm:$0xff]  ;;  %v27066_v12 = vld [vmem:[#allocation169_spill] sm:$0xff] }
 0x9df   : > { %v17882_v9 = vpop.eup %17881  ;;  %v11957_v24 = vadd.f32 1.0, %v17880_v5  ;;  %17901 = vpow2.f32 %v11799_v1  ;;  %v11465_v48 = vadd.f32 %v27064_v22, %v27063_v34 }
 0x9e0   : > { %v17884_v18 = vpop.eup %17883  ;;  %v11956_v54 = vadd.f32 1.0, %v17882_v9  ;;  %17903 = vpow2.f32 %v11803_v32  ;;  %v27065_v32 = vld [vmem:[#allocation32_spill] sm:$0xff] }
 0x9e1   : > { %v17886_v19 = vpop.eup %17885  ;;  %17905 = vrcp.f32 %v11957_v24  ;;  %v11958_v53 = vadd.f32 1.0, %v17884_v18  ;;  %v11464_v5 = vadd.f32 %v27066_v12, %v27065_v32  ;;  %v11466_v18 = vadd.f32 %v27068_v15, %v27067_v30 }
 0x9e2   : > { %v17888_v11 = vpop.eup %17887  ;;  %17907 = vrcp.f32 %v11956_v54  ;;  %v11959_v27 = vadd.f32 1.0, %v17886_v19  ;;  %v27069_v19 = vld [vmem:[#allocation97_spill] sm:$0xff]  ;;  %v11593_v14 = vsub.f32 0.0, %v11465_v48 }
 0x9e3   : > { %v17890_v62 = vpop.eup %17889  ;;  %17909 = vrcp.f32 %v11958_v53  ;;  %v11961_v25 = vadd.f32 1.0, %v17888_v11  ;;  %v27070_v53 = vld [vmem:[#allocation211_spill] sm:$0xff]  ;;  %v11592_v50 = vsub.f32 0.0, %v11464_v5 }
 0x9e4   : > { %v17892_v40 = vpop.eup %17891  ;;  %17911 = vrcp.f32 %v11959_v27  ;;  %v11960_v49 = vadd.f32 1.0, %v17890_v62  ;;  %v11467_v11 = vadd.f32 %v27070_v53, %v27069_v19  ;;  %v27071_v62 = vld [vmem:[#allocation39_spill] sm:$0xff]  ;;  %v27078_v53 = vld [vmem:[#allocation106_spill] sm:$0xff] }
 0x9e5   : > { %v17894_v42 = vpop.eup %17893  ;;  %17913 = vrcp.f32 %v11961_v25  ;;  %v11962_v37 = vadd.f32 1.0, %v17892_v40  ;;  %v27072_v25 = vld [vmem:[#allocation212_spill] sm:$0xff]  ;;  %v11817_v7 = vmul.f32 1.442695, %v11592_v50 }
 0x9e6   : > { %v17896_v45 = vpop.eup %17895  ;;  %17915 = vrcp.f32 %v11960_v49  ;;  %v11963_v38 = vadd.f32 1.0, %v17894_v42  ;;  %v11469_v10 = vadd.f32 %v27072_v25, %v27071_v62  ;;  %v11809_v49 = vmul.f32 1.442695, %v11588_v44  ;;  %v27073_v42 = vld [vmem:[#allocation105_spill] sm:$0xff] }
 0x9e7   : > { %v17898_v6 = vpop.eup %17897  ;;  %17917 = vrcp.f32 %v11962_v37  ;;  %v11965_v58 = vadd.f32 1.0, %v17896_v45  ;;  %v27074_v37 = vld [vmem:[#allocation244_spill] sm:$0xff]  ;;  %v11813_v45 = vmul.f32 1.442695, %v11590_v23  ;;  %v11595_v35 = vsub.f32 0.0, %v11467_v11 }
 0x9e8   : > { %v17900_v36 = vpop.eup %17899  ;;  %17919 = vrcp.f32 %v11963_v38  ;;  %v11964_v59 = vadd.f32 1.0, %v17898_v6  ;;  %v11468_v61 = vadd.f32 %v27074_v37, %v27073_v42  ;;  %v11594_v38 = vsub.f32 0.0, %v11466_v18  ;;  %v27079_v11 = vld [vmem:[#allocation256_spill] sm:$0xff] }
 0x9e9   : > { %v17902_v55 = vpop.eup %17901  ;;  %17921 = vrcp.f32 %v11965_v58  ;;  %v11966_v26 = vadd.f32 1.0, %v17900_v36  ;;  %v11819_v58 = vmul.f32 1.442695, %v11593_v14  ;;  %v11823_v21 = vmul.f32 1.442695, %v11595_v35  ;;  %v27084_v35 = vld [vmem:[#allocation51_spill] sm:$0xff] }
 0x9ea   : > { %v17904_v1 = vpop.eup %17903  ;;  %17923 = vrcp.f32 %v11964_v59  ;;  %v11967_v52 = vadd.f32 1.0, %v17902_v55  ;;  %v11596_v36 = vsub.f32 0.0, %v11468_v61  ;;  %v27082_v61 = vld [vmem:[#allocation109_spill] sm:$0xff] }
 0x9eb   : > { %v17906_v9 = vpop.eup %17905  ;;  %17925 = vrcp.f32 %v11966_v26  ;;  %v11969_v24 = vadd.f32 1.0, %v17904_v1  ;;  %v27075_v1 = vld [vmem:[#allocation45_spill] sm:$0xff] }
 0x9ec   : > { %v17908_v54 = vpop.eup %17907  ;;  %12213 = vst [vmem:[%s20653_s18 + $0x270] sm:$0xff] %v17906_v9  ;;  %17927 = vrcp.f32 %v11967_v52  ;;  %v11825_v34 = vmul.f32 1.442695, %v11596_v36  ;;  %v27076_v52 = vld [vmem:[#allocation245_spill] sm:$0xff] }
 0x9ed   : > { %v17910_v27 = vpop.eup %17909  ;;  %12212 = vst [vmem:[%s20653_s18 + $0x268] sm:$0xff] %v17908_v54  ;;  %17929 = vrcp.f32 %v11969_v24  ;;  %v11470_v44 = vadd.f32 %v27076_v52, %v27075_v1  ;;  %v27077_v24 = vld [vmem:[#allocation41_spill] sm:$0xff]  ;;  %v27088_v52 = vld [vmem:[#allocation111_spill] sm:$0xff] }
 0x9ee   : > { %v17912_v40 = vpop.eup %17911  ;;  %12214 = vst [vmem:[%s20653_s18 + $0x278] sm:$0xff] %v17910_v27  ;;  %17931 = vpow2.f32 %v11801_v60  ;;  %v11597_v60 = vsub.f32 0.0, %v11469_v10  ;;  %v11471_v23 = vadd.f32 %v24179_v3, %v27077_v24  ;;  %v11473_v27 = vadd.f32 %v27079_v11, %v27078_v53  ;;  %v27080_v10 = vld [vmem:[#allocation47_spill] sm:$0xff] }
 0x9ef   : > { %v17914_v20 = vpop.eup %17913  ;;  %12215 = vst [vmem:[%s20653_s18 + $0x280] sm:$0xff] %v17912_v40  ;;  %17933 = vpow2.f32 %v11805_v4  ;;  %v11821_v4 = vmul.f32 1.442695, %v11594_v38  ;;  %v27081_v40 = vld [vmem:[#allocation260_spill] sm:$0xff] }
 0x9f0   : > { %v17916_v39 = vpop.eup %17915  ;;  %12217 = vst [vmem:[%s20653_s18 + $0x290] sm:$0xff] %v17914_v20  ;;  %17935 = vpow2.f32 %v11807_v17  ;;  %v11827_v26 = vmul.f32 1.442695, %v11597_v60  ;;  %v11598_v17 = vsub.f32 0.0, %v11470_v44  ;;  %v11599_v62 = vsub.f32 0.0, %v11471_v23  ;;  %v27083_v20 = vld [vmem:[#allocation293_spill] sm:$0xff] }
 0x9f1   : > { %v17918_v6 = vpop.eup %17917  ;;  %12216 = vst [vmem:[%s20653_s18 + $0x288] sm:$0xff] %v17916_v39  ;;  %17937 = vpow2.f32 %v11811_v46  ;;  %v11479_v44 = vadd.f32 %v24212_v0, %v27088_v52 }
 0x9f2   : > { %v17920_v16 = vpop.eup %17919  ;;  %12218 = vst [vmem:[%s20653_s18 + $0x298] sm:$0xff] %v17918_v6  ;;  %17939 = vpow2.f32 %v11809_v49  ;;  %v11472_v49 = vadd.f32 %v27081_v40, %v27080_v10  ;;  %v11829_v37 = vmul.f32 1.442695, %v11598_v17  ;;  %v11475_v6 = vadd.f32 %v24196_v29, %v27084_v35  ;;  %v27091_v17 = vld [vmem:[#allocation60_spill] sm:$0xff] }
 0x9f3   : > { %v17922_v59 = vpop.eup %17921  ;;  %12219 = vst [vmem:[%s20653_s18 + $0x2a0] sm:$0xff] %v17920_v16  ;;  %17941 = vpow2.f32 %v11813_v45  ;;  %v11474_v45 = vadd.f32 %v27083_v20, %v27082_v61  ;;  %v11831_v16 = vmul.f32 1.442695, %v11599_v62  ;;  %v11607_v53 = vsub.f32 0.0, %v11479_v44 }
 0x9f4   : > { %v17924_v31 = vpop.eup %17923  ;;  %12221 = vst [vmem:[%s20653_s18 + $0x2b0] sm:$0xff] %v17922_v59  ;;  %17943 = vpow2.f32 %v11815_v51  ;;  %v11601_v51 = vsub.f32 0.0, %v11473_v27 }
 0x9f5   : > { %v17926_v55 = vpop.eup %17925  ;;  %12220 = vst [vmem:[%s20653_s18 + $0x2a8] sm:$0xff] %v17924_v31  ;;  %17945 = vpow2.f32 %v11819_v58  ;;  %v11600_v31 = vsub.f32 0.0, %v11472_v49  ;;  %v11602_v29 = vsub.f32 0.0, %v11474_v45  ;;  %v11847_v40 = vmul.f32 1.442695, %v11607_v53 }
 0x9f6   : > { %v17928_v41 = vpop.eup %17927  ;;  %12222 = vst [vmem:[%s20653_s18 + $0x2b8] sm:$0xff] %v17926_v55  ;;  %17947 = vpow2.f32 %v11817_v7  ;;  %v27085_v7 = vld [vmem:[#allocation53_spill] sm:$0xff] }
 0x9f7   : > { %v17930_v22 = vpop.eup %17929  ;;  %12223 = vst [vmem:[%s20653_s18 + $0x2c0] sm:$0xff] %v17928_v41  ;;  %17949 = vpow2.f32 %v11821_v4  ;;  %v11477_v36 = vadd.f32 %v24198_v57, %v27085_v7  ;;  %v11603_v57 = vsub.f32 0.0, %v11475_v6  ;;  %v11837_v0 = vmul.f32 1.442695, %v11602_v29 }
 0x9f8   : > { %v17932_v48 = vpop.eup %17931  ;;  %12225 = vst [vmem:[%s20653_s18 + $0x2d0] sm:$0xff] %v17930_v22  ;;  %17951 = vpow2.f32 %v11823_v21  ;;  %v27086_v21 = vld [vmem:[#allocation54_spill] sm:$0xff] }
 0x9f9   : > { %v17934_v32 = vpop.eup %17933  ;;  %v11968_v12 = vadd.f32 1.0, %v17932_v48  ;;  %17953 = vpow2.f32 %v11827_v26  ;;  %v11476_v55 = vadd.f32 %v24203_v43, %v27086_v21  ;;  %v11835_v43 = vmul.f32 1.442695, %v11601_v51 }
 0x9fa   : > { %v17936_v5 = vpop.eup %17935  ;;  %v11970_v9 = vadd.f32 1.0, %v17934_v32  ;;  %17955 = vpow2.f32 %v11825_v34  ;;  %v27087_v34 = vld [vmem:[#allocation55_spill] sm:$0xff] }
 0x9fb   : > { %v17938_v30 = vpop.eup %17937  ;;  %17957 = vrcp.f32 %v11968_v12  ;;  %v11971_v15 = vadd.f32 1.0, %v17936_v5  ;;  %v11478_v22 = vadd.f32 %v24205_v63, %v27087_v34  ;;  %v11605_v12 = vsub.f32 0.0, %v11477_v36  ;;  %v27089_v5 = vld [vmem:[#allocation56_spill] sm:$0xff] }
 0x9fc   : > { %v17940_v18 = vpop.eup %17939  ;;  %17959 = vrcp.f32 %v11970_v9  ;;  %v11973_v54 = vadd.f32 1.0, %v17938_v30  ;;  %v11481_v9 = vadd.f32 %v24214_v13, %v27089_v5  ;;  %v11833_v63 = vmul.f32 1.442695, %v11600_v31  ;;  %v27090_v30 = vld [vmem:[#allocation117_spill] sm:$0xff]  ;;  %v27098_v5 = vld [vmem:[#allocation156_spill] sm:$0xff] }
 0x9fd   : > { %v17942_v28 = vpop.eup %17941  ;;  %17961 = vrcp.f32 %v11971_v15  ;;  %v11972_v19 = vadd.f32 1.0, %v17940_v18  ;;  %v11604_v23 = vsub.f32 0.0, %v11476_v55  ;;  %v11480_v15 = vadd.f32 %v24217_v33, %v27090_v30  ;;  %v27100_v30 = vld [vmem:[#allocation157_spill] sm:$0xff] }
 0x9fe   : > { %v17944_v46 = vpop.eup %17943  ;;  %17963 = vrcp.f32 %v11973_v54  ;;  %v11974_v14 = vadd.f32 1.0, %v17942_v28  ;;  %v11606_v54 = vsub.f32 0.0, %v11478_v22  ;;  %v11482_v28 = vadd.f32 %v24219_v2, %v27091_v17  ;;  %v27101_v17 = vld [vmem:[#allocation72_spill] sm:$0xff] }
 0x9ff   : > { %v17946_v25 = vpop.eup %17945  ;;  %17965 = vrcp.f32 %v11972_v19  ;;  %v11975_v3 = vadd.f32 1.0, %v17944_v46  ;;  %v11839_v13 = vmul.f32 1.442695, %v11603_v57  ;;  %v11843_v33 = vmul.f32 1.442695, %v11605_v12  ;;  %v27096_v57 = vld [vmem:[#allocation207_spill] sm:$0xff] }
 0xa00   : > { %v17948_v50 = vpop.eup %17947  ;;  %17967 = vrcp.f32 %v11974_v14  ;;  %v11977_v42 = vadd.f32 1.0, %v17946_v25  ;;  %v11609_v27 = vsub.f32 0.0, %v11481_v9  ;;  %v11841_v14 = vmul.f32 1.442695, %v11604_v23  ;;  %v27097_v12 = vld [vmem:[#allocation66_spill] sm:$0xff]  ;;  %v27099_v23 = vld [vmem:[#allocation68_spill] sm:$0xff] }
 0xa01   : > { %v17950_v38 = vpop.eup %17949  ;;  %17969 = vrcp.f32 %v11975_v3  ;;  %v11976_v39 = vadd.f32 1.0, %v17948_v50  ;;  %v11608_v62 = vsub.f32 0.0, %v11480_v15  ;;  %v11845_v25 = vmul.f32 1.442695, %v11606_v54 }
 0xa02   : > { %v17952_v58 = vpop.eup %17951  ;;  %17971 = vrcp.f32 %v11977_v42  ;;  %v11978_v60 = vadd.f32 1.0, %v17950_v38  ;;  %v11610_v3 = vsub.f32 0.0, %v11482_v28  ;;  %v11851_v50 = vmul.f32 1.442695, %v11609_v27  ;;  %v27102_v28 = vld [vmem:[#allocation283_spill] sm:$0xff]  ;;  %v27104_v27 = vld [vmem:[#allocation158_spill] sm:$0xff] }
 0xa03   : > { %v17954_v59 = vpop.eup %17953  ;;  %17973 = vrcp.f32 %v11976_v39  ;;  %v11979_v4 = vadd.f32 1.0, %v17952_v58  ;;  %v27092_v39 = vld [vmem:[#allocation57_spill] sm:$0xff]  ;;  %v11487_v9 = vadd.f32 %v27098_v5, %v27097_v12  ;;  %v11489_v15 = vadd.f32 %v27100_v30, %v27099_v23 }
 0xa04   : > { %v17956_v26 = vpop.eup %17955  ;;  %17975 = vrcp.f32 %v11978_v60  ;;  %v11981_v41 = vadd.f32 1.0, %v17954_v59  ;;  %v11853_v20 = vmul.f32 1.442695, %v11610_v3  ;;  %v11483_v51 = vadd.f32 %v24224_v56, %v27092_v39  ;;  %v27094_v56 = vld [vmem:[#allocation62_spill] sm:$0xff]  ;;  %v27106_v3 = vld [vmem:[#allocation159_spill] sm:$0xff]  ;;  %v27109_v39 = vld [vmem:[#allocation129_spill] sm:$0xff] }
 0xa05   : > { %v17958_v48 = vpop.eup %17957  ;;  %17977 = vrcp.f32 %v11979_v4  ;;  %v11980_v1 = vadd.f32 1.0, %v17956_v26 }
 0xa06   : > { %v17960_v32 = vpop.eup %17959  ;;  %12224 = vst [vmem:[%s20653_s18 + $0x2c8] sm:$0xff] %v17958_v48  ;;  %17979 = vrcp.f32 %v11981_v41  ;;  %v11611_v21 = vsub.f32 0.0, %v11483_v51  ;;  %v11484_v41 = vadd.f32 %v24229_v8, %v27094_v56  ;;  %v27110_v51 = vld [vmem:[#allocation160_spill] sm:$0xff] }
 0xa07   : > { %v17962_v24 = vpop.eup %17961  ;;  %12226 = vst [vmem:[%s20653_s18 + $0x2d8] sm:$0xff] %v17960_v32  ;;  %17981 = vrcp.f32 %v11980_v1  ;;  %v27095_v1 = vld [vmem:[#allocation120_spill] sm:$0xff] }
 0xa08   : > { %v17964_v18 = vpop.eup %17963  ;;  %12227 = vst [vmem:[%s20653_s18 + $0x2e0] sm:$0xff] %v17962_v24  ;;  %17983 = vpow2.f32 %v11829_v37  ;;  %v11849_v37 = vmul.f32 1.442695, %v11608_v62  ;;  %v11486_v52 = vadd.f32 %v27096_v57, %v27095_v1 }
 0xa09   : > { %v17966_v19 = vpop.eup %17965  ;;  %12229 = vst [vmem:[%s20653_s18 + $0x2f0] sm:$0xff] %v17964_v18  ;;  %17985 = vpow2.f32 %v11831_v16  ;;  %v27093_v16 = vld [vmem:[#allocation119_spill] sm:$0xff] }
 0xa0a   : > { %v17968_v11 = vpop.eup %17967  ;;  %12228 = vst [vmem:[%s20653_s18 + $0x2e8] sm:$0xff] %v17966_v19  ;;  %17987 = vpow2.f32 %v11835_v43  ;;  %v11485_v7 = vadd.f32 %v24226_v47, %v27093_v16  ;;  %v11855_v43 = vmul.f32 1.442695, %v11611_v21  ;;  %v11488_v19 = vadd.f32 %v27102_v28, %v27101_v17  ;;  %v27111_v16 = vld [vmem:[#allocation84_spill] sm:$0xff] }
 0xa0b   : > { %v17970_v46 = vpop.eup %17969  ;;  %12230 = vst [vmem:[%s20653_s18 + $0x2f8] sm:$0xff] %v17968_v11  ;;  %17989 = vpow2.f32 %v11833_v63  ;;  %v11612_v63 = vsub.f32 0.0, %v11484_v41  ;;  %v11614_v11 = vsub.f32 0.0, %v11486_v52 }
 0xa0c   : > { %v17972_v2 = vpop.eup %17971  ;;  %12231 = vst [vmem:[%s20653_s18 + $0x300] sm:$0xff] %v17970_v46  ;;  %17991 = vpow2.f32 %v11837_v0  ;;  %v11613_v22 = vsub.f32 0.0, %v11485_v7  ;;  %v27112_v7 = vld [vmem:[#allocation161_spill] sm:$0xff] }
 0xa0d   : > { %v17974_v10 = vpop.eup %17973  ;;  %12233 = vst [vmem:[%s20653_s18 + $0x310] sm:$0xff] %v17972_v2  ;;  %17993 = vpow2.f32 %v11839_v13  ;;  %v11615_v2 = vsub.f32 0.0, %v11487_v9 }
 0xa0e   : > { %v17976_v49 = vpop.eup %17975  ;;  %12232 = vst [vmem:[%s20653_s18 + $0x308] sm:$0xff] %v17974_v10  ;;  %17995 = vpow2.f32 %v11843_v33  ;;  %v11859_v54 = vmul.f32 1.442695, %v11613_v22  ;;  %v27103_v33 = vld [vmem:[#allocation74_spill] sm:$0xff] }
 0xa0f   : > { %v17978_v42 = vpop.eup %17977  ;;  %12234 = vst [vmem:[%s20653_s18 + $0x318] sm:$0xff] %v17976_v49  ;;  %17997 = vpow2.f32 %v11841_v14  ;;  %v11490_v46 = vadd.f32 %v27104_v27, %v27103_v33 }
 0xa10   : > { %v17980_v61 = vpop.eup %17979  ;;  %12235 = vst [vmem:[%s20653_s18 + $0x320] sm:$0xff] %v17978_v42  ;;  %17999 = vpow2.f32 %v11845_v25  ;;  %v27105_v25 = vld [vmem:[#allocation123_spill] sm:$0xff]  ;;  %v27107_v42 = vld [vmem:[#allocation78_spill] sm:$0xff] }
 0xa11   : > { %v17982_v45 = vpop.eup %17981  ;;  %12237 = vst [vmem:[%s20653_s18 + $0x330] sm:$0xff] %v17980_v61  ;;  %18001 = vpow2.f32 %v11847_v40  ;;  %v11491_v10 = vadd.f32 %v27106_v3, %v27105_v25 }
 0xa12   : > { %v17984_v38 = vpop.eup %17983  ;;  %12236 = vst [vmem:[%s20653_s18 + $0x328] sm:$0xff] %v17982_v45  ;;  %18003 = vpow2.f32 %v11851_v50  ;;  %v11617_v50 = vsub.f32 0.0, %v11489_v15  ;;  %v11857_v45 = vmul.f32 1.442695, %v11612_v63 }
 0xa13   : > { %v17986_v35 = vpop.eup %17985  ;;  %v11982_v6 = vadd.f32 1.0, %v17984_v38  ;;  %18005 = vpow2.f32 %v11849_v37  ;;  %v27108_v37 = vld [vmem:[#allocation185_spill] sm:$0xff]  ;;  %v11616_v38 = vsub.f32 0.0, %v11488_v19 }
 0xa14   : > { %v17988_v58 = vpop.eup %17987  ;;  %v11983_v60 = vadd.f32 1.0, %v17986_v35  ;;  %18007 = vpow2.f32 %v11853_v20  ;;  %v11493_v61 = vadd.f32 %v27108_v37, %v27107_v42  ;;  %v11492_v35 = vadd.f32 %v27110_v51, %v27109_v39 }
 0xa15   : > { %v17990_v36 = vpop.eup %17989  ;;  %18009 = vrcp.f32 %v11982_v6  ;;  %v11985_v59 = vadd.f32 1.0, %v17988_v58  ;;  %v11861_v58 = vmul.f32 1.442695, %v11614_v11  ;;  %v11865_v41 = vmul.f32 1.442695, %v11616_v38 }
 0xa16   : > { %v17992_v4 = vpop.eup %17991  ;;  %18011 = vrcp.f32 %v11983_v60  ;;  %v11984_v31 = vadd.f32 1.0, %v17990_v36  ;;  %v11618_v60 = vsub.f32 0.0, %v11490_v46  ;;  %v11494_v36 = vadd.f32 %v27112_v7, %v27111_v16 }
 0xa17   : > { %v17994_v55 = vpop.eup %17993  ;;  %18013 = vrcp.f32 %v11985_v59  ;;  %v11986_v26 = vadd.f32 1.0, %v17992_v4  ;;  %v11863_v4 = vmul.f32 1.442695, %v11615_v2 }
 0xa18   : > { %v17996_v29 = vpop.eup %17995  ;;  %18015 = vrcp.f32 %v11984_v31  ;;  %v11987_v34 = vadd.f32 1.0, %v17994_v55  ;;  %v11619_v31 = vsub.f32 0.0, %v11491_v10  ;;  %v11867_v55 = vmul.f32 1.442695, %v11617_v50 }
 0xa19   : > { %v17998_v48 = vpop.eup %17997  ;;  %18017 = vrcp.f32 %v11986_v26  ;;  %v11989_v47 = vadd.f32 1.0, %v17996_v29  ;;  %v11621_v26 = vsub.f32 0.0, %v11493_v61  ;;  %v11620_v29 = vsub.f32 0.0, %v11492_v35 }
 0xa1a   : > { %v18000_v44 = vpop.eup %17999  ;;  %18019 = vrcp.f32 %v11987_v34  ;;  %v11988_v32 = vadd.f32 1.0, %v17998_v48  ;;  %v11869_v22 = vmul.f32 1.442695, %v11618_v60  ;;  %v11622_v48 = vsub.f32 0.0, %v11494_v36 }
 0xa1b   : > { %v18002_v24 = vpop.eup %18001  ;;  %18021 = vrcp.f32 %v11989_v47  ;;  %v11990_v8 = vadd.f32 1.0, %v18000_v44  ;;  %v11871_v1 = vmul.f32 1.442695, %v11619_v31  ;;  %v11875_v52 = vmul.f32 1.442695, %v11621_v26 }
 0xa1c   : > { %v18004_v18 = vpop.eup %18003  ;;  %18023 = vrcp.f32 %v11988_v32  ;;  %v11991_v0 = vadd.f32 1.0, %v18002_v24  ;;  %v11873_v32 = vmul.f32 1.442695, %v11620_v29  ;;  %v11877_v12 = vmul.f32 1.442695, %v11622_v48 }
 0xa1d   : > { %v18006_v13 = vpop.eup %18005  ;;  %18025 = vrcp.f32 %v11990_v8  ;;  %v11993_v53 = vadd.f32 1.0, %v18004_v18 }
 0xa1e   : > { %v18008_v14 = vpop.eup %18007  ;;  %18027 = vrcp.f32 %v11991_v0  ;;  %v11992_v62 = vadd.f32 1.0, %v18006_v13 }
 0xa1f   : > { %v18010_v40 = vpop.eup %18009  ;;  %18029 = vrcp.f32 %v11993_v53  ;;  %v11994_v49 = vadd.f32 1.0, %v18008_v14 }
 0xa20   : > { %v18012_v20 = vpop.eup %18011  ;;  %12238 = vst [vmem:[%s20653_s18 + $0x338] sm:$0xff] %v18010_v40  ;;  %18031 = vrcp.f32 %v11992_v62 }
 0xa21   : > { %v18014_v6 = vpop.eup %18013  ;;  %12239 = vst [vmem:[%s20653_s18 + $0x340] sm:$0xff] %v18012_v20  ;;  %18033 = vrcp.f32 %v11994_v49 }
 0xa22   : > { %v18016_v59 = vpop.eup %18015  ;;  %12241 = vst [vmem:[%s20653_s18 + $0x350] sm:$0xff] %v18014_v6  ;;  %18035 = vpow2.f32 %v11855_v43 }
 0xa23   : > { %v18018_v21 = vpop.eup %18017  ;;  %12240 = vst [vmem:[%s20653_s18 + $0x348] sm:$0xff] %v18016_v59  ;;  %18037 = vpow2.f32 %v11859_v54 }
 0xa24   : > { %v18020_v56 = vpop.eup %18019  ;;  %12242 = vst [vmem:[%s20653_s18 + $0x358] sm:$0xff] %v18018_v21  ;;  %18039 = vpow2.f32 %v11857_v45 }
 0xa25   : > { %v18022_v34 = vpop.eup %18021  ;;  %12243 = vst [vmem:[%s20653_s18 + $0x360] sm:$0xff] %v18020_v56  ;;  %18041 = vpow2.f32 %v11861_v58 }
 0xa26   : > { %v18024_v47 = vpop.eup %18023  ;;  %12245 = vst [vmem:[%s20653_s18 + $0x370] sm:$0xff] %v18022_v34  ;;  %18043 = vpow2.f32 %v11863_v4 }
 0xa27   : > { %v18026_v57 = vpop.eup %18025  ;;  %12244 = vst [vmem:[%s20653_s18 + $0x368] sm:$0xff] %v18024_v47  ;;  %18045 = vpow2.f32 %v11867_v55 }
 0xa28   : > { %v18028_v44 = vpop.eup %18027  ;;  %12246 = vst [vmem:[%s20653_s18 + $0x378] sm:$0xff] %v18026_v57  ;;  %18047 = vpow2.f32 %v11865_v41 }
 0xa29   : > { %v18030_v43 = vpop.eup %18029  ;;  %12247 = vst [vmem:[%s20653_s18 + $0x380] sm:$0xff] %v18028_v44  ;;  %18049 = vpow2.f32 %v11869_v22 }
 0xa2a   : > { %v18032_v5 = vpop.eup %18031  ;;  %12249 = vst [vmem:[%s20653_s18 + $0x390] sm:$0xff] %v18030_v43  ;;  %18051 = vpow2.f32 %v11871_v1 }
 0xa2b   : > { %v18034_v9 = vpop.eup %18033  ;;  %12248 = vst [vmem:[%s20653_s18 + $0x388] sm:$0xff] %v18032_v5  ;;  %18053 = vpow2.f32 %v11875_v52 }
 0xa2c   : > { %v18036_v24 = vpop.eup %18035  ;;  %12250 = vst [vmem:[%s20653_s18 + $0x398] sm:$0xff] %v18034_v9  ;;  %18055 = vpow2.f32 %v11873_v32 }
 0xa2d   : > { %v18038_v8 = vpop.eup %18037  ;;  %v11995_v63 = vadd.f32 1.0, %v18036_v24  ;;  %18057 = vpow2.f32 %v11877_v12 }
 0xa2e   : > { %v18040_v23 = vpop.eup %18039  ;;  %v11997_v30 = vadd.f32 1.0, %v18038_v8 }
 0xa2f   : > { %v18042_v15 = vpop.eup %18041  ;;  %18059 = vrcp.f32 %v11995_v63  ;;  %v11996_v18 = vadd.f32 1.0, %v18040_v23 }
 0xa30   : > { %v18044_v0 = vpop.eup %18043  ;;  %18061 = vrcp.f32 %v11997_v30  ;;  %v11998_v54 = vadd.f32 1.0, %v18042_v15 }
 0xa31   : > { %v18046_v17 = vpop.eup %18045  ;;  %18063 = vrcp.f32 %v11996_v18  ;;  %v11999_v28 = vadd.f32 1.0, %v18044_v0 }
 0xa32   : > { %v18048_v19 = vpop.eup %18047  ;;  %18065 = vrcp.f32 %v11998_v54  ;;  %v12001_v13 = vadd.f32 1.0, %v18046_v17 }
 0xa33   : > { %v18050_v53 = vpop.eup %18049  ;;  %18067 = vrcp.f32 %v11999_v28  ;;  %v12000_v11 = vadd.f32 1.0, %v18048_v19 }
 0xa34   : > { %v18052_v33 = vpop.eup %18051  ;;  %18069 = vrcp.f32 %v12001_v13  ;;  %v12002_v27 = vadd.f32 1.0, %v18050_v53 }
 0xa35   : > { %v18054_v46 = vpop.eup %18053  ;;  %18071 = vrcp.f32 %v12000_v11  ;;  %v12003_v14 = vadd.f32 1.0, %v18052_v33 }
 0xa36   : > { %v18056_v62 = vpop.eup %18055  ;;  %18073 = vrcp.f32 %v12002_v27  ;;  %v12005_v2 = vadd.f32 1.0, %v18054_v46 }
 0xa37   : > { %v18058_v25 = vpop.eup %18057  ;;  %18075 = vrcp.f32 %v12003_v14  ;;  %v12004_v3 = vadd.f32 1.0, %v18056_v62 }
 0xa38   : > { %18077 = vrcp.f32 %v12005_v2  ;;  %v12006_v10 = vadd.f32 1.0, %v18058_v25 }
 0xa39   : > { %v18060_v40 = vpop.eup %18059  ;;  %18079 = vrcp.f32 %v12004_v3 }
 0xa3a   : > { %v18062_v49 = vpop.eup %18061  ;;  %12251 = vst [vmem:[%s20653_s18 + $0x3a0] sm:$0xff] %v18060_v40  ;;  %18081 = vrcp.f32 %v12006_v10 }
 0xa3b   : > { %v18064_v50 = vpop.eup %18063  ;;  %12253 = vst [vmem:[%s20653_s18 + $0x3b0] sm:$0xff] %v18062_v49 }
 0xa3c   : > { %v18066_v42 = vpop.eup %18065  ;;  %12252 = vst [vmem:[%s20653_s18 + $0x3a8] sm:$0xff] %v18064_v50 }
 0xa3d   : > { %v18068_v37 = vpop.eup %18067  ;;  %12254 = vst [vmem:[%s20653_s18 + $0x3b8] sm:$0xff] %v18066_v42 }
 0xa3e   : > { %v18070_v61 = vpop.eup %18069  ;;  %12255 = vst [vmem:[%s20653_s18 + $0x3c0] sm:$0xff] %v18068_v37 }
 0xa3f   : > { %v18072_v20 = vpop.eup %18071  ;;  %12257 = vst [vmem:[%s20653_s18 + $0x3d0] sm:$0xff] %v18070_v61 }
 0xa40   : > { %v18074_v45 = vpop.eup %18073  ;;  %12256 = vst [vmem:[%s20653_s18 + $0x3c8] sm:$0xff] %v18072_v20 }
 0xa41   : > { %v18076_v38 = vpop.eup %18075  ;;  %12258 = vst [vmem:[%s20653_s18 + $0x3d8] sm:$0xff] %v18074_v45 }
 0xa42   : > { %v18078_v39 = vpop.eup %18077  ;;  %12259 = vst [vmem:[%s20653_s18 + $0x3e0] sm:$0xff] %v18076_v38 }
 0xa43   : > { %v18080_v51 = vpop.eup %18079  ;;  %12261 = vst [vmem:[%s20653_s18 + $0x3f0] sm:$0xff] %v18078_v39 }
 0xa44   : > { %v18082_v35 = vpop.eup %18081  ;;  %12260 = vst [vmem:[%s20653_s18 + $0x3e8] sm:$0xff] %v18080_v51 }
 0xa45   : > { %12262 = vst [vmem:[%s20653_s18 + $0x3f8] sm:$0xff] %v18082_v35 }
 0xa46 PF: > { %s12646_s23 = sshll.u32 %s18169_s28, 14  ;;  %s12280_s25 = sshll.u32 %s20653_s18, 4  ;;  %s24464_s25 = int_to_ptr.vmem [resolvable:$true] %s12280_s25 }
 0xa47   : > { %s24461_s8 = scalar_lea.hbm %s24520_s6, %s12646_s23  ;;  %s24468_s7 = scalar_lea.sflag [#allocation5], %s253_s15 }
 0xa48   : > { %s18097_s10 = scalar_lea.vmem %s24464_s25, 16384  ;;  %s18182_s28 = smov [#allocation4]  }
 0xa49   : > { %p18098_p5 = scmp.ne.s32.totalorder %s24464_s25, %s18097_s10  ;;  %s18101_s12 = sshll.u32 %s18182_s28, 4  ;;  %s18102_s12 = int_to_ptr.vmem [resolvable:$false] %s18101_s12 }
 0xa4a   : > { %s18103_s16 = scalar_lea.vmem %s18102_s12, 32768  ;;  %p18104_p8 = scmp.lt.s32.totalorder %s24464_s25, %s18102_s12 }
 0xa4b   : > { %p18099_p6 = pnand %p18098_p5, %p18263_p9  ;;  %p18105_p10 = scmp.lt.s32.totalorder %s18103_s16, %s18097_s10 }
 0xa4d   : > { %p18100_p7 = pneg %p18099_p6  ;;  %p18106_p11 = por %p18105_p10, %p18104_p8 }
 0xa4f   : > { %p18107_p12 = pnand %p18106_p11, %p18100_p7 }
 0xa51   : > { %18110 = shalt.err (!%p18107_p12)
}
 0xa52   : > { %s18111_s15 = scalar_lea.hbm %s24461_s8, 16384  ;;  %s18115_s17 = scalar_lea.hbm %s24520_s6, 32768 }
 0xa53   : > { %p18112_p0 = scmp.ne.s32.totalorder %s24461_s8, %s18111_s15  ;;  %p18116_p3 = scmp.lt.u32.totalorder %s24461_s8, %s24520_s6 }
 0xa54   : > { %p18117_p4 = scmp.lt.u32.totalorder %s18115_s17, %s18111_s15  ;;  %p18119_p6 = scmp.lt.u32.totalorder %s18111_s15, %s24461_s8 }
 0xa55   : > { %p18113_p1 = pnand %p18112_p0, %p18263_p9 }
 0xa56   : > { %p18118_p5 = por %p18117_p4, %p18116_p3 }
 0xa57   : > { %p18114_p2 = pneg %p18113_p1 }
 0xa58   : > { %p18120_p7 = por %p18119_p6, %p18118_p5 }
 0xa5a   : > { %p18121_p8 = pnand %p18120_p7, %p18114_p2 }
 0xa5c   : > { %18124 = shalt.err (!%p18121_p8)
}
 0xa5d   : > { %s18183_s23 = smov 512   ;;  %s18184_s24 = smov 32  }
 0xa5e   : > { %16999 = dma.vmem_to_hbm [thread:$0]  (%p18263_p9), %s24464_s25, 16384, %s24461_s8, %s24468_s7, %s18183_s23, %s18183_s23, %s18184_s24  }
 0xa5f PF: > { %p17005_p10 = scmp.ge.s32.totalorder %s18177_s30, 2  ;;  %s12295_s22 = sand.u32 1, %s18157_s26  }
 0xa60   : > { %s12296_s10 = scalar_lea.sflag [#allocation5], %s12295_s22 }
 0xa61   : > { %p17002_p11 = pnand %p17005_p10, %p18270_p13 }
 0xa63   : > { %18152 = dma.done.wait (!%p17002_p11), %s12296_s10, 16384  }
 0xa64   : > { %18154 = vsyncadd (!%p17002_p11), %s12296_s10, 4294950912  ;;  %s25_s30 = sadd.s32 1, %s18177_s30   ;;  %s27113_s26 = smov %s18161_s27 }
 0xa65   : > { %p22_p12 = scmp.ge.s32.totalorder %s25_s30, 4   ;;  %s27114_s27 = smov %s18165_s0 }
 0xa66   : > { %s27115_s0 = smov %s18276_s14  ;;  %s27116_s28 = smov %s18173_s29 }
 0xa67   : > { %s27117_s29 = smov %s27119_s9  ;;  %24 = sbr.rel (!%p22_p12) target bundleno = 19 (0x13), region = 86 }
 0xa6e   :  { %12301 = vsyncpa [#allocation5], 1 }
 0xa6f   :  { %12303 = vsyncpa [#allocation5 + $0x1], 1 }

</bundles_post_ra>
